<compile_context>
chip_gen: v7x
topology: tpu7x:2x2x1
jax: 0.10.0
libtpu: 0.0.40
codegen_flags: <defaults>
</compile_context>

<pallas_src>
import math

import numpy as np

import jax
import jax.numpy as jnp
from jax.experimental import pallas as pl
from jax.experimental.pallas import tpu as pltpu

EPS = 1e-5           # nn.BatchNorm2d default eps
LEAKY_SLOPE = 0.2    # nn.LeakyReLU(0.2) in conv_bn_relu
OUT_LANES = 128      # lane-dense final store; wrapper slices back to Out_ch


# ---------------------------------------------------------------------------
# Host-side helpers (shape-static)
# ---------------------------------------------------------------------------
def _w3x3_to_mat(w_oihw, dtype=jnp.bfloat16):
    """OIHW (Cout, Cin, 3, 3) -> im2col weight matrix ((ky,kx,ci) x Cout)."""
    co, ci, kh, kw = w_oihw.shape
    return jnp.transpose(w_oihw, (2, 3, 1, 0)).reshape(kh * kw * ci, co).astype(dtype)


def _interior_mask(N, H, W):
    """Flattened (N*(H+2)*(W+2),) 0/1 mask: 1 on valid interior rows of a padded grid."""
    Hp, Wp = H + 2, W + 2
    m = np.zeros((N, Hp, Wp), np.float32)
    m[:, 1:H + 1, 1:W + 1] = 1.0
    return m.reshape(N * Hp * Wp)


# ---------------------------------------------------------------------------
# Fused kernel
# ---------------------------------------------------------------------------
def _make_rn_bev_kernel(*, N, H1, W1):
    H2, W2 = H1 // 2, W1 // 2
    Hp1, Wp1, Hp2, Wp2 = H1 + 2, W1 + 2, H2 + 2, W2 + 2
    R1p, R2p = N * Hp1 * Wp1, N * Hp2 * Wp2
    R2 = N * H2 * W2
    E1, E2 = Wp1 + 1, Wp2 + 1
    cnt1, cnt2 = float(N * H1 * W1), float(R2)

    def bn(y, gb, cnt, wrow):
        """Train-mode BatchNorm folded into one per-channel FMA.
        Sums/sum-squares are MXU reductions with `wrow` (0/1 interior mask or all-ones
        row) as the matmul LHS, in f32; variance clamped >= 0."""
        inv = 1.0 / cnt
        s = jnp.dot(wrow, y, preferred_element_type=jnp.float32)
        ss = jnp.dot(wrow, y * y, preferred_element_type=jnp.float32)
        mean = s * inv
        var = jnp.maximum(ss * inv - mean * mean, 0.0)
        scale = gb[0:1, :] * jax.lax.rsqrt(var + EPS)
        shift = gb[1:2, :] - mean * scale
        return y * scale + shift

    def kernel(xp_ref, ws_ref, w11_ref, w12_ref, w21_ref, w22_ref, w1x1_ref,
               gb64_ref, gb128_ref, bias_ref, mrow_ref, mcol_ref, out_ref,
               g1_ref, g2_ref, pat1_ref, pat2s_ref, pat2_ref):
        mrow1 = mrow_ref[0:1, :]                    # (1, R1p) grid1 interior mask
        mrow2 = mrow_ref[1:2, 0:R2p]                # (1, R2p) grid2 interior mask
        mcol1 = mcol_ref[...]                       # (R1p, 1)

        # Zero once: extension rows + padded border rows *are* the conv zero padding.
        g1_ref[...] = jnp.zeros_like(g1_ref)
        g2_ref[...] = jnp.zeros_like(g2_ref)

        def commit_g1(v):
            """Zero border rows and keep the padded grid1 activation resident in VMEM
            (operand of the next conv).  Returns the masked value."""
            vm = v * mcol1
            g1_ref[pl.ds(E1, R1p), :] = vm
            return vm

        def conv3x3(src_ref, pat_ref, E, Wp, Rp, cin, w_ref):
            """3x3 stride-1 conv on a resident padded grid: 9 shifted row-windows ->
            one (Rp, 9*cin) bf16 im2col slab -> single fat-K MXU matmul.  Border output
            rows are garbage; BN stats exclude them (mrow) and commit_* re-zeros them."""
            for ky in range(3):
                for kx in range(3):
                    k = ky * 3 + kx
                    d = E + (ky - 1) * Wp + (kx - 1)
                    pat_ref[:, k * cin:(k + 1) * cin] = (
                        src_ref[pl.ds(d, Rp), :].astype(jnp.bfloat16))
            return jnp.dot(pat_ref[...], w_ref[...],
                           preferred_element_type=jnp.float32)

        # ---- stem: conv3x3 / stride 2 (im2col hoisted to wrapper) + BN + ReLU -----
        y = jnp.dot(xp_ref[...], ws_ref[...], preferred_element_type=jnp.float32)
        y = bn(y, gb64_ref[:, 0:64], cnt1, mrow1)
        act_s = commit_g1(jnp.maximum(y, 0.0))

        # ---- layer1 BasicBlock (stride 1, 64 -> 64) -------------------------------
        y = conv3x3(g1_ref, pat1_ref, E1, Wp1, R1p, 64, w11_ref)
        y = jnp.maximum(bn(y, gb64_ref[:, 64:128], cnt1, mrow1), 0.0)
        commit_g1(y)
        y = conv3x3(g1_ref, pat1_ref, E1, Wp1, R1p, 64, w12_ref)
        y = bn(y, gb64_ref[:, 128:192], cnt1, mrow1)
        commit_g1(jnp.maximum(y + act_s, 0.0))          # act1 resident in g1

        # ---- layer2 BasicBlock (stride 2 + 1x1 downsample, 64 -> 128) -------------
        # conv1 is computed directly at the output (grid2) resolution: the stride-2
        # im2col slab is gathered with sublane-strided loads from the resident act1.
        for ky in range(3):
            for kx in range(3):
                k = ky * 3 + kx
                for n in range(N):
                    for ho in range(H2):
                        src = E1 + (n * Hp1 + 2 * ho + ky) * Wp1 + kx
                        dst = (n * H2 + ho) * W2
                        pat2s_ref[pl.ds(dst, W2), k * 64:(k + 1) * 64] = (
                            g1_ref[pl.ds(src, W2, stride=2), :].astype(jnp.bfloat16))
        ones2 = jnp.ones((1, R2), jnp.float32)
        p = jnp.dot(pat2s_ref[...], w21_ref[...], preferred_element_type=jnp.float32)
        p = jnp.maximum(bn(p, gb128_ref[:, 0:128], cnt2, ones2), 0.0)   # dense rows

        # scatter dense p into the padded grid2 scratch (interior rows only)
        for n in range(N):
            for ho in range(H2):
                dst = E2 + (n * Hp2 + ho + 1) * Wp2 + 1
                src = (n * H2 + ho) * W2
                g2_ref[pl.ds(dst, W2), :] = p[src:src + W2, :]

        y = conv3x3(g2_ref, pat2_ref, E2, Wp2, R2p, 128, w22_ref)
        y = bn(y, gb128_ref[:, 128:256], cnt2, mrow2)

        # 1x1 stride-2 downsample of act1 == the centre tap of the stride-2 slab.
        ds = jnp.dot(pat2s_ref[:, 4 * 64:5 * 64], w1x1_ref[0:64, :],
                     preferred_element_type=jnp.float32)
        ds = bn(ds, gb128_ref[:, 256:384], cnt2, ones2)

        # gather valid rows of the conv2 output, residual add, ReLU
        rows = []
        for n in range(N):
            for ho in range(H2):
                s = (n * Hp2 + ho + 1) * Wp2 + 1
                rows.append(y[s:s + W2, :])
        act2 = jnp.maximum(jnp.concatenate(rows, axis=0) + ds, 0.0)     # (R2, 128)

        # ---- decoder heads: 1x1 + bias + LeakyReLU(0.2), then 1x1 + bias ----------
        q = jnp.dot(act2.astype(jnp.bfloat16), w1x1_ref[64:192, 0:64],
                    preferred_element_type=jnp.float32) + bias_ref[:, 0:64]
        q = jnp.where(q > 0, q, LEAKY_SLOPE * q)
        out_ref[...] = (jnp.dot(q.astype(jnp.bfloat16), w1x1_ref[192:256, :],
                                preferred_element_type=jnp.float32)
                        + bias_ref[:, 64:64 + OUT_LANES])               # lane-dense

    return kernel


# ---------------------------------------------------------------------------
# Wrapper: layout plumbing + single pallas_call
# ---------------------------------------------------------------------------
def rn_bev_forward(x_nchw, params):
    N, cin, H, W = x_nchw.shape
    assert H % 4 == 0 and W % 4 == 0
    assert len(params["layer1"]) == 1 and len(params["layer2"]) == 1
    H1, W1, H2, W2 = H // 2, W // 2, H // 4, W // 4
    Hp1, Wp1, Hp2, Wp2 = H1 + 2, W1 + 2, H2 + 2, W2 + 2
    R1p, R2p, R2 = N * Hp1 * Wp1, N * Hp2 * Wp2, N * H2 * W2
    E1, E2 = Wp1 + 1, Wp2 + 1
    out_ch = params["dec0_w"].shape[0]

    # Stem stride-2 im2col at output (grid1) resolution, zero-bordered (XLA, once).
    x = jnp.transpose(x_nchw, (0, 2, 3, 1)).astype(jnp.float32)
    xp = jnp.pad(x, ((0, 0), (1, 1), (1, 1), (0, 0)))
    taps = [xp[:, ky:ky + 2 * H1:2, kx:kx + 2 * W1:2, :]
            for ky in range(3) for kx in range(3)]
    patches = jnp.pad(jnp.concatenate(taps, axis=-1),
                      ((0, 0), (1, 1), (1, 1), (0, 0)))
    x_patches = patches.reshape(R1p, 9 * cin).astype(jnp.bfloat16)

    l1, l2 = params["layer1"][0], params["layer2"][0]
    w_stem = _w3x3_to_mat(params["conv1_w"])
    w11, w12 = _w3x3_to_mat(l1["conv1_w"]), _w3x3_to_mat(l1["conv2_w"])
    w21, w22 = _w3x3_to_mat(l2["conv1_w"]), _w3x3_to_mat(l2["conv2_w"])

    # Pack the small 1x1 weights / BN affines / biases / masks (fewer, larger DMAs).
    w_ds = jnp.transpose(l2["ds_w"][:, :, 0, 0])                                 # (64,128)
    w_d1 = jnp.pad(jnp.transpose(params["dec1_w"][:, :, 0, 0]), ((0, 0), (0, 64)))
    w_d0 = jnp.pad(jnp.transpose(params["dec0_w"][:, :, 0, 0]),
                   ((0, 0), (0, OUT_LANES - out_ch)))
    w1x1 = jnp.concatenate([w_ds, w_d1, w_d0], axis=0).astype(jnp.bfloat16)      # (256,128)

    def gb(g, b):
        return jnp.stack([g, b]).astype(jnp.float32)

    gb64 = jnp.concatenate([gb(params["bn1_g"], params["bn1_b"]),
                            gb(l1["bn1_g"], l1["bn1_b"]),
                            gb(l1["bn2_g"], l1["bn2_b"])], axis=1)               # (2,192)
    gb128 = jnp.concatenate([gb(l2["bn1_g"], l2["bn1_b"]),
                             gb(l2["bn2_g"], l2["bn2_b"]),
                             gb(l2["ds_g"], l2["ds_b"])], axis=1)                # (2,384)
    bias = jnp.concatenate(
        [params["dec1_b"].reshape(1, -1),
         jnp.pad(params["dec0_b"].reshape(1, -1), ((0, 0), (0, OUT_LANES - out_ch)))],
        axis=1).astype(jnp.float32)                                              # (1,192)

    m1, m2 = _interior_mask(N, H1, W1), _interior_mask(N, H2, W2)
    mrow = np.zeros((2, R1p), np.float32)
    mrow[0, :], mrow[1, :R2p] = m1, m2
    mrow = jnp.asarray(mrow)
    mcol1 = jnp.asarray(m1.reshape(R1p, 1))

    kernel = _make_rn_bev_kernel(N=N, H1=H1, W1=W1)
    vmem = pl.BlockSpec(memory_space=pltpu.MemorySpace.VMEM)
    out = pl.pallas_call(
        kernel,
        out_shape=jax.ShapeDtypeStruct((R2, OUT_LANES), jnp.float32),
        in_specs=[vmem] * 12,
        out_specs=vmem,
        scratch_shapes=[
            pltpu.VMEM((R1p + 2 * E1, 64), jnp.float32),    # resident padded grid1 act
            pltpu.VMEM((R2p + 2 * E2, 128), jnp.float32),   # resident padded grid2 act
            pltpu.VMEM((R1p, 9 * 64), jnp.bfloat16),        # grid1 im2col slab
            pltpu.VMEM((R2, 9 * 64), jnp.bfloat16),         # stride-2 im2col slab
            pltpu.VMEM((R2p, 9 * 128), jnp.bfloat16),       # grid2 im2col slab
        ],
    )(x_patches, w_stem, w11, w12, w21, w22, w1x1, gb64, gb128, bias, mrow, mcol1)

    out = out.reshape(N, H2, W2, OUT_LANES)[..., :out_ch]
    return jnp.transpose(out, (0, 3, 1, 2))                 # NHWC -> NCHW


# ---------------------------------------------------------------------------
# Parameter init (mirrors module __init__: kaiming fan_out convs, BN weight=1/bias=0,
# decoder 1x1 convs have bias (bn=False in conv_bn_relu))
# ---------------------------------------------------------------------------
def _kaiming_oihw(key, shape):
    fan_out = shape[0] * shape[2] * shape[3]
    return math.sqrt(2.0 / fan_out) * jax.random.normal(key, shape, jnp.float32)


def init_basic_block(key, inplanes, planes, stride):
    k1, k2, k3 = jax.random.split(key, 3)
    p = {"conv1_w": _kaiming_oihw(k1, (planes, inplanes, 3, 3)),
         "bn1_g": jnp.ones((planes,), jnp.float32),
         "bn1_b": jnp.zeros((planes,), jnp.float32),
         "conv2_w": _kaiming_oihw(k2, (planes, planes, 3, 3)),
         "bn2_g": jnp.ones((planes,), jnp.float32),
         "bn2_b": jnp.zeros((planes,), jnp.float32)}
    if stride != 1 or inplanes != planes:
        p["ds_w"] = _kaiming_oihw(k3, (planes, inplanes, 1, 1))
        p["ds_g"] = jnp.ones((planes,), jnp.float32)
        p["ds_b"] = jnp.zeros((planes,), jnp.float32)
    return p


def init_params(key, bev_ch=18, out_ch=4, layers=(1, 1)):
    inplanes = 64
    ks = jax.random.split(key, 7)
    params = {"conv1_w": _kaiming_oihw(ks[0], (inplanes, bev_ch, 3, 3)),
              "bn1_g": jnp.ones((inplanes,), jnp.float32),
              "bn1_b": jnp.zeros((inplanes,), jnp.float32)}
    k1 = jax.random.split(ks[1], layers[0])
    params["layer1"] = [init_basic_block(k1[i], 64, 64, 1) for i in range(layers[0])]
    k2 = jax.random.split(ks[2], layers[1])
    params["layer2"] = [init_basic_block(k2[i], 64 if i == 0 else 128, 128,
                                         2 if i == 0 else 1) for i in range(layers[1])]
    params["dec1_w"] = _kaiming_oihw(ks[3], (64, 128, 1, 1))
    params["dec1_b"] = jax.random.uniform(ks[4], (64,), jnp.float32,
                                          -1.0 / math.sqrt(128.0), 1.0 / math.sqrt(128.0))
    params["dec0_w"] = _kaiming_oihw(ks[5], (out_ch, 64, 1, 1))
    params["dec0_b"] = jax.random.uniform(ks[6], (out_ch,), jnp.float32,
                                          -1.0 / math.sqrt(64.0), 1.0 / math.sqrt(64.0))
    return params


# ---------------------------------------------------------------------------
# Pure-JAX reference (for the correctness check)
# ---------------------------------------------------------------------------
def _ref_conv(x, w_oihw, stride, pad):
    return jax.lax.conv_general_dilated(
        x, jnp.transpose(w_oihw, (2, 3, 1, 0)), (stride, stride),
        [(pad, pad), (pad, pad)], dimension_numbers=("NHWC", "HWIO", "NHWC"),
        precision=jax.lax.Precision.HIGHEST)


def _ref_bn(y, g, b):
    mean = jnp.mean(y, axis=(0, 1, 2), keepdims=True)
    var = jnp.mean(jnp.square(y - mean), axis=(0, 1, 2), keepdims=True)
    return (y - mean) * jax.lax.rsqrt(var + EPS) * g + b


def _ref_block(x, p, stride):
    identity = x
    out = jax.nn.relu(_ref_bn(_ref_conv(x, p["conv1_w"], stride, 1), p["bn1_g"], p["bn1_b"]))
    out = _ref_bn(_ref_conv(out, p["conv2_w"], 1, 1), p["bn2_g"], p["bn2_b"])
    if "ds_w" in p:
        identity = _ref_bn(_ref_conv(x, p["ds_w"], stride, 0), p["ds_g"], p["ds_b"])
    return jax.nn.relu(out + identity)


def rn_bev_forward_ref(x_nchw, params):
    x = jnp.transpose(x_nchw, (0, 2, 3, 1)).astype(jnp.float32)
    x = jax.nn.relu(_ref_bn(_ref_conv(x, params["conv1_w"], 2, 1),
                            params["bn1_g"], params["bn1_b"]))
    for p in params["layer1"]:
        x = _ref_block(x, p, 1)
    for i, p in enumerate(params["layer2"]):
        x = _ref_block(x, p, 2 if i == 0 else 1)
    x = _ref_conv(x, params["dec1_w"], 1, 0) + params["dec1_b"]
    x = jnp.where(x > 0, x, LEAKY_SLOPE * x)
    x = _ref_conv(x, params["dec0_w"], 1, 0) + params["dec0_b"]
    return jnp.transpose(x, (0, 3, 1, 2))


if __name__ == "__main__":
    key = jax.random.PRNGKey(0)
    kx, kp = jax.random.split(key)
    # torch input: NCHW with BEV_ch=18 (module default), small 16x16 BEV, batch 2
    x = jax.random.normal(kx, (2, 18, 16, 16), jnp.float32)
    params = init_params(kp, bev_ch=18, out_ch=4, layers=(1, 1))

    fwd = jax.jit(rn_bev_forward)
    out = jax.block_until_ready(fwd(x, params))
    ref = jax.block_until_ready(rn_bev_forward_ref(x, params))

    assert out.shape == (2, 4, 4, 4), out.shape          # (N, Out_ch, H/4, W/4)
    err = float(jnp.max(jnp.abs(out - ref)))
    scale = max(1.0, float(jnp.max(jnp.abs(ref))))
    # bf16 MXU operands (weights + im2col slabs, f32 accumulation) => slightly wider
    # tolerance than the previous all-f32 version; still catches structural bugs.
    assert err <= 3e-2 * scale, (err, scale)
    print("KERNEL_OK")
</pallas_src>

<mosaic_0001>
module attributes {stable_mosaic.version = 11 : i64} {
  func.func @kernel(%arg0: memref<200x162xbf16, #tpu.memory_space<vmem>>, %arg1: memref<162x64xbf16, #tpu.memory_space<vmem>>, %arg2: memref<576x64xbf16, #tpu.memory_space<vmem>>, %arg3: memref<576x64xbf16, #tpu.memory_space<vmem>>, %arg4: memref<576x128xbf16, #tpu.memory_space<vmem>>, %arg5: memref<1152x128xbf16, #tpu.memory_space<vmem>>, %arg6: memref<256x128xbf16, #tpu.memory_space<vmem>>, %arg7: memref<2x192xf32, #tpu.memory_space<vmem>>, %arg8: memref<2x384xf32, #tpu.memory_space<vmem>>, %arg9: memref<1x192xf32, #tpu.memory_space<vmem>>, %arg10: memref<2x200xf32, #tpu.memory_space<vmem>>, %arg11: memref<200x1xf32, #tpu.memory_space<vmem>>, %arg12: memref<32x128xf32, #tpu.memory_space<vmem>>, %arg13: memref<222x64xf32, #tpu.memory_space<vmem>>, %arg14: memref<86x128xf32, #tpu.memory_space<vmem>>, %arg15: memref<200x576xbf16, #tpu.memory_space<vmem>>, %arg16: memref<32x576xbf16, #tpu.memory_space<vmem>>, %arg17: memref<72x1152xbf16, #tpu.memory_space<vmem>>) attributes {dimension_semantics = [], scalar_prefetch = 0 : i64, scratch_operands = 5 : i64, tpu.core_type = #tpu.core_type<tc>} {
    %c0 = arith.constant 0 : index
    %c0_0 = arith.constant 0 : index
    %0 = vector.load %arg10[%c0, %c0_0] : memref<2x200xf32, #tpu.memory_space<vmem>>, vector<1x200xf32>
    %c1 = arith.constant 1 : index
    %c0_1 = arith.constant 0 : index
    %1 = vector.load %arg10[%c1, %c0_1] : memref<2x200xf32, #tpu.memory_space<vmem>>, vector<1x72xf32>
    %c0_2 = arith.constant 0 : index
    %c0_3 = arith.constant 0 : index
    %2 = vector.load %arg11[%c0_2, %c0_3] : memref<200x1xf32, #tpu.memory_space<vmem>>, vector<200x1xf32>
    %cst = arith.constant 0.000000e+00 : f32
    %3 = vector.broadcast %cst : f32 to vector<222x64xf32>
    %c0_4 = arith.constant 0 : index
    %c0_5 = arith.constant 0 : index
    %4 = vector.load %arg13[%c0_4, %c0_5] : memref<222x64xf32, #tpu.memory_space<vmem>>, vector<222x64xf32>
    tpu.vector_store %arg13[%c0_4, %c0_5], %3 {strides = array<i32>} : memref<222x64xf32, #tpu.memory_space<vmem>>, vector<222x64xf32>,
    %cst_6 = arith.constant 0.000000e+00 : f32
    %5 = vector.broadcast %cst_6 : f32 to vector<86x128xf32>
    %c0_7 = arith.constant 0 : index
    %c0_8 = arith.constant 0 : index
    %6 = vector.load %arg14[%c0_7, %c0_8] : memref<86x128xf32, #tpu.memory_space<vmem>>, vector<86x128xf32>
    tpu.vector_store %arg14[%c0_7, %c0_8], %5 {strides = array<i32>} : memref<86x128xf32, #tpu.memory_space<vmem>>, vector<86x128xf32>,
    %c0_9 = arith.constant 0 : index
    %c0_10 = arith.constant 0 : index
    %7 = vector.load %arg0[%c0_9, %c0_10] : memref<200x162xbf16, #tpu.memory_space<vmem>>, vector<200x162xbf16>
    %c0_11 = arith.constant 0 : index
    %c0_12 = arith.constant 0 : index
    %8 = vector.load %arg1[%c0_11, %c0_12] : memref<162x64xbf16, #tpu.memory_space<vmem>>, vector<162x64xbf16>
    %cst_13 = arith.constant dense<0.000000e+00> : vector<200x64xf32>
    %9 = tpu.matmul %7, %8, %cst_13 {dimension_numbers = #tpu.dot_dimension_numbers<[1], [0], [0], [1], [0, 0, 1, 1], [], []>} : vector<200x162xbf16>, vector<162x64xbf16>, vector<200x64xf32> -> vector<200x64xf32>
    %c0_14 = arith.constant 0 : index
    %c0_15 = arith.constant 0 : index
    %10 = vector.load %arg7[%c0_14, %c0_15] : memref<2x192xf32, #tpu.memory_space<vmem>>, vector<2x64xf32>
    %cst_16 = arith.constant dense<0.000000e+00> : vector<1x64xf32>
    %11 = tpu.matmul %0, %9, %cst_16 {dimension_numbers = #tpu.dot_dimension_numbers<[1], [0], [0], [1], [0, 0, 1, 1], [], []>} : vector<1x200xf32>, vector<200x64xf32>, vector<1x64xf32> -> vector<1x64xf32>
    %12 = arith.mulf %9, %9 : vector<200x64xf32>
    %cst_17 = arith.constant dense<0.000000e+00> : vector<1x64xf32>
    %13 = tpu.matmul %0, %12, %cst_17 {dimension_numbers = #tpu.dot_dimension_numbers<[1], [0], [0], [1], [0, 0, 1, 1], [], []>} : vector<1x200xf32>, vector<200x64xf32>, vector<1x64xf32> -> vector<1x64xf32>
    %cst_18 = arith.constant 7.812500e-03 : f32
    %14 = vector.broadcast %cst_18 : f32 to vector<1x64xf32>
    %15 = arith.mulf %11, %14 : vector<1x64xf32>
    %cst_19 = arith.constant 7.812500e-03 : f32
    %16 = vector.broadcast %cst_19 : f32 to vector<1x64xf32>
    %17 = arith.mulf %13, %16 : vector<1x64xf32>
    %18 = arith.mulf %15, %15 : vector<1x64xf32>
    %19 = arith.subf %17, %18 : vector<1x64xf32>
    %cst_20 = arith.constant 0.000000e+00 : f32
    %20 = vector.broadcast %cst_20 : f32 to vector<1x64xf32>
    %21 = arith.maximumf %19, %20 : vector<1x64xf32>
    %22 = vector.extract_strided_slice %10 {offsets = [0, 0], sizes = [1, 64], strides = [1, 1]} : vector<2x64xf32> to vector<1x64xf32>
    %cst_21 = arith.constant 9.99999974E-6 : f32
    %23 = vector.broadcast %cst_21 : f32 to vector<1x64xf32>
    %24 = arith.addf %21, %23 : vector<1x64xf32>
    %25 = math.rsqrt %24 : vector<1x64xf32>
    %26 = arith.mulf %22, %25 : vector<1x64xf32>
    %27 = vector.extract_strided_slice %10 {offsets = [1, 0], sizes = [1, 64], strides = [1, 1]} : vector<2x64xf32> to vector<1x64xf32>
    %28 = arith.mulf %15, %26 : vector<1x64xf32>
    %29 = arith.subf %27, %28 : vector<1x64xf32>
    %30 = vector.broadcast %26 : vector<1x64xf32> to vector<200x64xf32>
    %31 = arith.mulf %9, %30 : vector<200x64xf32>
    %32 = vector.broadcast %29 : vector<1x64xf32> to vector<200x64xf32>
    %33 = arith.addf %31, %32 : vector<200x64xf32>
    %cst_22 = arith.constant 0.000000e+00 : f32
    %34 = vector.broadcast %cst_22 : f32 to vector<200x64xf32>
    %35 = arith.maximumf %33, %34 : vector<200x64xf32>
    %36 = vector.broadcast %2 : vector<200x1xf32> to vector<200x64xf32>
    %37 = arith.mulf %35, %36 : vector<200x64xf32>
    %c11 = arith.constant 11 : index
    %c0_23 = arith.constant 0 : index
    %38 = vector.load %arg13[%c11, %c0_23] : memref<222x64xf32, #tpu.memory_space<vmem>>, vector<200x64xf32>
    tpu.vector_store %arg13[%c11, %c0_23], %37 {strides = array<i32>} : memref<222x64xf32, #tpu.memory_space<vmem>>, vector<200x64xf32>,
    %c0_24 = arith.constant 0 : index
    %c0_25 = arith.constant 0 : index
    %39 = vector.load %arg13[%c0_24, %c0_25] : memref<222x64xf32, #tpu.memory_space<vmem>>, vector<200x64xf32>
    %40 = arith.truncf %39 : vector<200x64xf32> to vector<200x64xbf16>
    %c0_26 = arith.constant 0 : index
    %c0_27 = arith.constant 0 : index
    %41 = vector.load %arg15[%c0_26, %c0_27] : memref<200x576xbf16, #tpu.memory_space<vmem>>, vector<200x64xbf16>
    tpu.vector_store %arg15[%c0_26, %c0_27], %40 {strides = array<i32>} : memref<200x576xbf16, #tpu.memory_space<vmem>>, vector<200x64xbf16>,
    %c1_28 = arith.constant 1 : index
    %c0_29 = arith.constant 0 : index
    %42 = vector.load %arg13[%c1_28, %c0_29] : memref<222x64xf32, #tpu.memory_space<vmem>>, vector<200x64xf32>
    %43 = arith.truncf %42 : vector<200x64xf32> to vector<200x64xbf16>
    %c0_30 = arith.constant 0 : index
    %c64 = arith.constant 64 : index
    %44 = vector.load %arg15[%c0_30, %c64] : memref<200x576xbf16, #tpu.memory_space<vmem>>, vector<200x64xbf16>
    tpu.vector_store %arg15[%c0_30, %c64], %43 {strides = array<i32>} : memref<200x576xbf16, #tpu.memory_space<vmem>>, vector<200x64xbf16>,
    %c2 = arith.constant 2 : index
    %c0_31 = arith.constant 0 : index
    %45 = vector.load %arg13[%c2, %c0_31] : memref<222x64xf32, #tpu.memory_space<vmem>>, vector<200x64xf32>
    %46 = arith.truncf %45 : vector<200x64xf32> to vector<200x64xbf16>
    %c0_32 = arith.constant 0 : index
    %c128 = arith.constant 128 : index
    %47 = vector.load %arg15[%c0_32, %c128] : memref<200x576xbf16, #tpu.memory_space<vmem>>, vector<200x64xbf16>
    tpu.vector_store %arg15[%c0_32, %c128], %46 {strides = array<i32>} : memref<200x576xbf16, #tpu.memory_space<vmem>>, vector<200x64xbf16>,
    %c10 = arith.constant 10 : index
    %c0_33 = arith.constant 0 : index
    %48 = vector.load %arg13[%c10, %c0_33] : memref<222x64xf32, #tpu.memory_space<vmem>>, vector<200x64xf32>
    %49 = arith.truncf %48 : vector<200x64xf32> to vector<200x64xbf16>
    %c0_34 = arith.constant 0 : index
    %c192 = arith.constant 192 : index
    %50 = vector.load %arg15[%c0_34, %c192] : memref<200x576xbf16, #tpu.memory_space<vmem>>, vector<200x64xbf16>
    tpu.vector_store %arg15[%c0_34, %c192], %49 {strides = array<i32>} : memref<200x576xbf16, #tpu.memory_space<vmem>>, vector<200x64xbf16>,
    %c11_35 = arith.constant 11 : index
    %c0_36 = arith.constant 0 : index
    %51 = vector.load %arg13[%c11_35, %c0_36] : memref<222x64xf32, #tpu.memory_space<vmem>>, vector<200x64xf32>
    %52 = arith.truncf %51 : vector<200x64xf32> to vector<200x64xbf16>
    %c0_37 = arith.constant 0 : index
    %c256 = arith.constant 256 : index
    %53 = vector.load %arg15[%c0_37, %c256] : memref<200x576xbf16, #tpu.memory_space<vmem>>, vector<200x64xbf16>
    tpu.vector_store %arg15[%c0_37, %c256], %52 {strides = array<i32>} : memref<200x576xbf16, #tpu.memory_space<vmem>>, vector<200x64xbf16>,
    %c12 = arith.constant 12 : index
    %c0_38 = arith.constant 0 : index
    %54 = vector.load %arg13[%c12, %c0_38] : memref<222x64xf32, #tpu.memory_space<vmem>>, vector<200x64xf32>
    %55 = arith.truncf %54 : vector<200x64xf32> to vector<200x64xbf16>
    %c0_39 = arith.constant 0 : index
    %c320 = arith.constant 320 : index
    %56 = vector.load %arg15[%c0_39, %c320] : memref<200x576xbf16, #tpu.memory_space<vmem>>, vector<200x64xbf16>
    tpu.vector_store %arg15[%c0_39, %c320], %55 {strides = array<i32>} : memref<200x576xbf16, #tpu.memory_space<vmem>>, vector<200x64xbf16>,
    %c20 = arith.constant 20 : index
    %c0_40 = arith.constant 0 : index
    %57 = vector.load %arg13[%c20, %c0_40] : memref<222x64xf32, #tpu.memory_space<vmem>>, vector<200x64xf32>
    %58 = arith.truncf %57 : vector<200x64xf32> to vector<200x64xbf16>
    %c0_41 = arith.constant 0 : index
    %c384 = arith.constant 384 : index
    %59 = vector.load %arg15[%c0_41, %c384] : memref<200x576xbf16, #tpu.memory_space<vmem>>, vector<200x64xbf16>
    tpu.vector_store %arg15[%c0_41, %c384], %58 {strides = array<i32>} : memref<200x576xbf16, #tpu.memory_space<vmem>>, vector<200x64xbf16>,
    %c21 = arith.constant 21 : index
    %c0_42 = arith.constant 0 : index
    %60 = vector.load %arg13[%c21, %c0_42] : memref<222x64xf32, #tpu.memory_space<vmem>>, vector<200x64xf32>
    %61 = arith.truncf %60 : vector<200x64xf32> to vector<200x64xbf16>
    %c0_43 = arith.constant 0 : index
    %c448 = arith.constant 448 : index
    %62 = vector.load %arg15[%c0_43, %c448] : memref<200x576xbf16, #tpu.memory_space<vmem>>, vector<200x64xbf16>
    tpu.vector_store %arg15[%c0_43, %c448], %61 {strides = array<i32>} : memref<200x576xbf16, #tpu.memory_space<vmem>>, vector<200x64xbf16>,
    %c22 = arith.constant 22 : index
    %c0_44 = arith.constant 0 : index
    %63 = vector.load %arg13[%c22, %c0_44] : memref<222x64xf32, #tpu.memory_space<vmem>>, vector<200x64xf32>
    %64 = arith.truncf %63 : vector<200x64xf32> to vector<200x64xbf16>
    %c0_45 = arith.constant 0 : index
    %c512 = arith.constant 512 : index
    %65 = vector.load %arg15[%c0_45, %c512] : memref<200x576xbf16, #tpu.memory_space<vmem>>, vector<200x64xbf16>
    tpu.vector_store %arg15[%c0_45, %c512], %64 {strides = array<i32>} : memref<200x576xbf16, #tpu.memory_space<vmem>>, vector<200x64xbf16>,
    %c0_46 = arith.constant 0 : index
    %c0_47 = arith.constant 0 : index
    %66 = vector.load %arg15[%c0_46, %c0_47] : memref<200x576xbf16, #tpu.memory_space<vmem>>, vector<200x576xbf16>
    %c0_48 = arith.constant 0 : index
    %c0_49 = arith.constant 0 : index
    %67 = vector.load %arg2[%c0_48, %c0_49] : memref<576x64xbf16, #tpu.memory_space<vmem>>, vector<576x64xbf16>
    %cst_50 = arith.constant dense<0.000000e+00> : vector<200x64xf32>
    %68 = tpu.matmul %66, %67, %cst_50 {dimension_numbers = #tpu.dot_dimension_numbers<[1], [0], [0], [1], [0, 0, 1, 1], [], []>} : vector<200x576xbf16>, vector<576x64xbf16>, vector<200x64xf32> -> vector<200x64xf32>
    %c0_51 = arith.constant 0 : index
    %c64_52 = arith.constant 64 : index
    %69 = vector.load %arg7[%c0_51, %c64_52] : memref<2x192xf32, #tpu.memory_space<vmem>>, vector<2x64xf32>
    %cst_53 = arith.constant dense<0.000000e+00> : vector<1x64xf32>
    %70 = tpu.matmul %0, %68, %cst_53 {dimension_numbers = #tpu.dot_dimension_numbers<[1], [0], [0], [1], [0, 0, 1, 1], [], []>} : vector<1x200xf32>, vector<200x64xf32>, vector<1x64xf32> -> vector<1x64xf32>
    %71 = arith.mulf %68, %68 : vector<200x64xf32>
    %cst_54 = arith.constant dense<0.000000e+00> : vector<1x64xf32>
    %72 = tpu.matmul %0, %71, %cst_54 {dimension_numbers = #tpu.dot_dimension_numbers<[1], [0], [0], [1], [0, 0, 1, 1], [], []>} : vector<1x200xf32>, vector<200x64xf32>, vector<1x64xf32> -> vector<1x64xf32>
    %cst_55 = arith.constant 7.812500e-03 : f32
    %73 = vector.broadcast %cst_55 : f32 to vector<1x64xf32>
    %74 = arith.mulf %70, %73 : vector<1x64xf32>
    %cst_56 = arith.constant 7.812500e-03 : f32
    %75 = vector.broadcast %cst_56 : f32 to vector<1x64xf32>
    %76 = arith.mulf %72, %75 : vector<1x64xf32>
    %77 = arith.mulf %74, %74 : vector<1x64xf32>
    %78 = arith.subf %76, %77 : vector<1x64xf32>
    %cst_57 = arith.constant 0.000000e+00 : f32
    %79 = vector.broadcast %cst_57 : f32 to vector<1x64xf32>
    %80 = arith.maximumf %78, %79 : vector<1x64xf32>
    %81 = vector.extract_strided_slice %69 {offsets = [0, 0], sizes = [1, 64], strides = [1, 1]} : vector<2x64xf32> to vector<1x64xf32>
    %cst_58 = arith.constant 9.99999974E-6 : f32
    %82 = vector.broadcast %cst_58 : f32 to vector<1x64xf32>
    %83 = arith.addf %80, %82 : vector<1x64xf32>
    %84 = math.rsqrt %83 : vector<1x64xf32>
    %85 = arith.mulf %81, %84 : vector<1x64xf32>
    %86 = vector.extract_strided_slice %69 {offsets = [1, 0], sizes = [1, 64], strides = [1, 1]} : vector<2x64xf32> to vector<1x64xf32>
    %87 = arith.mulf %74, %85 : vector<1x64xf32>
    %88 = arith.subf %86, %87 : vector<1x64xf32>
    %89 = vector.broadcast %85 : vector<1x64xf32> to vector<200x64xf32>
    %90 = arith.mulf %68, %89 : vector<200x64xf32>
    %91 = vector.broadcast %88 : vector<1x64xf32> to vector<200x64xf32>
    %92 = arith.addf %90, %91 : vector<200x64xf32>
    %cst_59 = arith.constant 0.000000e+00 : f32
    %93 = vector.broadcast %cst_59 : f32 to vector<200x64xf32>
    %94 = arith.maximumf %92, %93 : vector<200x64xf32>
    %95 = vector.broadcast %2 : vector<200x1xf32> to vector<200x64xf32>
    %96 = arith.mulf %94, %95 : vector<200x64xf32>
    %c11_60 = arith.constant 11 : index
    %c0_61 = arith.constant 0 : index
    %97 = vector.load %arg13[%c11_60, %c0_61] : memref<222x64xf32, #tpu.memory_space<vmem>>, vector<200x64xf32>
    tpu.vector_store %arg13[%c11_60, %c0_61], %96 {strides = array<i32>} : memref<222x64xf32, #tpu.memory_space<vmem>>, vector<200x64xf32>,
    %c0_62 = arith.constant 0 : index
    %c0_63 = arith.constant 0 : index
    %98 = vector.load %arg13[%c0_62, %c0_63] : memref<222x64xf32, #tpu.memory_space<vmem>>, vector<200x64xf32>
    %99 = arith.truncf %98 : vector<200x64xf32> to vector<200x64xbf16>
    %c0_64 = arith.constant 0 : index
    %c0_65 = arith.constant 0 : index
    %100 = vector.load %arg15[%c0_64, %c0_65] : memref<200x576xbf16, #tpu.memory_space<vmem>>, vector<200x64xbf16>
    tpu.vector_store %arg15[%c0_64, %c0_65], %99 {strides = array<i32>} : memref<200x576xbf16, #tpu.memory_space<vmem>>, vector<200x64xbf16>,
    %c1_66 = arith.constant 1 : index
    %c0_67 = arith.constant 0 : index
    %101 = vector.load %arg13[%c1_66, %c0_67] : memref<222x64xf32, #tpu.memory_space<vmem>>, vector<200x64xf32>
    %102 = arith.truncf %101 : vector<200x64xf32> to vector<200x64xbf16>
    %c0_68 = arith.constant 0 : index
    %c64_69 = arith.constant 64 : index
    %103 = vector.load %arg15[%c0_68, %c64_69] : memref<200x576xbf16, #tpu.memory_space<vmem>>, vector<200x64xbf16>
    tpu.vector_store %arg15[%c0_68, %c64_69], %102 {strides = array<i32>} : memref<200x576xbf16, #tpu.memory_space<vmem>>, vector<200x64xbf16>,
    %c2_70 = arith.constant 2 : index
    %c0_71 = arith.constant 0 : index
    %104 = vector.load %arg13[%c2_70, %c0_71] : memref<222x64xf32, #tpu.memory_space<vmem>>, vector<200x64xf32>
    %105 = arith.truncf %104 : vector<200x64xf32> to vector<200x64xbf16>
    %c0_72 = arith.constant 0 : index
    %c128_73 = arith.constant 128 : index
    %106 = vector.load %arg15[%c0_72, %c128_73] : memref<200x576xbf16, #tpu.memory_space<vmem>>, vector<200x64xbf16>
    tpu.vector_store %arg15[%c0_72, %c128_73], %105 {strides = array<i32>} : memref<200x576xbf16, #tpu.memory_space<vmem>>, vector<200x64xbf16>,
    %c10_74 = arith.constant 10 : index
    %c0_75 = arith.constant 0 : index
    %107 = vector.load %arg13[%c10_74, %c0_75] : memref<222x64xf32, #tpu.memory_space<vmem>>, vector<200x64xf32>
    %108 = arith.truncf %107 : vector<200x64xf32> to vector<200x64xbf16>
    %c0_76 = arith.constant 0 : index
    %c192_77 = arith.constant 192 : index
    %109 = vector.load %arg15[%c0_76, %c192_77] : memref<200x576xbf16, #tpu.memory_space<vmem>>, vector<200x64xbf16>
    tpu.vector_store %arg15[%c0_76, %c192_77], %108 {strides = array<i32>} : memref<200x576xbf16, #tpu.memory_space<vmem>>, vector<200x64xbf16>,
    %c11_78 = arith.constant 11 : index
    %c0_79 = arith.constant 0 : index
    %110 = vector.load %arg13[%c11_78, %c0_79] : memref<222x64xf32, #tpu.memory_space<vmem>>, vector<200x64xf32>
    %111 = arith.truncf %110 : vector<200x64xf32> to vector<200x64xbf16>
    %c0_80 = arith.constant 0 : index
    %c256_81 = arith.constant 256 : index
    %112 = vector.load %arg15[%c0_80, %c256_81] : memref<200x576xbf16, #tpu.memory_space<vmem>>, vector<200x64xbf16>
    tpu.vector_store %arg15[%c0_80, %c256_81], %111 {strides = array<i32>} : memref<200x576xbf16, #tpu.memory_space<vmem>>, vector<200x64xbf16>,
    %c12_82 = arith.constant 12 : index
    %c0_83 = arith.constant 0 : index
    %113 = vector.load %arg13[%c12_82, %c0_83] : memref<222x64xf32, #tpu.memory_space<vmem>>, vector<200x64xf32>
    %114 = arith.truncf %113 : vector<200x64xf32> to vector<200x64xbf16>
    %c0_84 = arith.constant 0 : index
    %c320_85 = arith.constant 320 : index
    %115 = vector.load %arg15[%c0_84, %c320_85] : memref<200x576xbf16, #tpu.memory_space<vmem>>, vector<200x64xbf16>
    tpu.vector_store %arg15[%c0_84, %c320_85], %114 {strides = array<i32>} : memref<200x576xbf16, #tpu.memory_space<vmem>>, vector<200x64xbf16>,
    %c20_86 = arith.constant 20 : index
    %c0_87 = arith.constant 0 : index
    %116 = vector.load %arg13[%c20_86, %c0_87] : memref<222x64xf32, #tpu.memory_space<vmem>>, vector<200x64xf32>
    %117 = arith.truncf %116 : vector<200x64xf32> to vector<200x64xbf16>
    %c0_88 = arith.constant 0 : index
    %c384_89 = arith.constant 384 : index
    %118 = vector.load %arg15[%c0_88, %c384_89] : memref<200x576xbf16, #tpu.memory_space<vmem>>, vector<200x64xbf16>
    tpu.vector_store %arg15[%c0_88, %c384_89], %117 {strides = array<i32>} : memref<200x576xbf16, #tpu.memory_space<vmem>>, vector<200x64xbf16>,
    %c21_90 = arith.constant 21 : index
    %c0_91 = arith.constant 0 : index
    %119 = vector.load %arg13[%c21_90, %c0_91] : memref<222x64xf32, #tpu.memory_space<vmem>>, vector<200x64xf32>
    %120 = arith.truncf %119 : vector<200x64xf32> to vector<200x64xbf16>
    %c0_92 = arith.constant 0 : index
    %c448_93 = arith.constant 448 : index
    %121 = vector.load %arg15[%c0_92, %c448_93] : memref<200x576xbf16, #tpu.memory_space<vmem>>, vector<200x64xbf16>
    tpu.vector_store %arg15[%c0_92, %c448_93], %120 {strides = array<i32>} : memref<200x576xbf16, #tpu.memory_space<vmem>>, vector<200x64xbf16>,
    %c22_94 = arith.constant 22 : index
    %c0_95 = arith.constant 0 : index
    %122 = vector.load %arg13[%c22_94, %c0_95] : memref<222x64xf32, #tpu.memory_space<vmem>>, vector<200x64xf32>
    %123 = arith.truncf %122 : vector<200x64xf32> to vector<200x64xbf16>
    %c0_96 = arith.constant 0 : index
    %c512_97 = arith.constant 512 : index
    %124 = vector.load %arg15[%c0_96, %c512_97] : memref<200x576xbf16, #tpu.memory_space<vmem>>, vector<200x64xbf16>
    tpu.vector_store %arg15[%c0_96, %c512_97], %123 {strides = array<i32>} : memref<200x576xbf16, #tpu.memory_space<vmem>>, vector<200x64xbf16>,
    %c0_98 = arith.constant 0 : index
    %c0_99 = arith.constant 0 : index
    %125 = vector.load %arg15[%c0_98, %c0_99] : memref<200x576xbf16, #tpu.memory_space<vmem>>, vector<200x576xbf16>
    %c0_100 = arith.constant 0 : index
    %c0_101 = arith.constant 0 : index
    %126 = vector.load %arg3[%c0_100, %c0_101] : memref<576x64xbf16, #tpu.memory_space<vmem>>, vector<576x64xbf16>
    %cst_102 = arith.constant dense<0.000000e+00> : vector<200x64xf32>
    %127 = tpu.matmul %125, %126, %cst_102 {dimension_numbers = #tpu.dot_dimension_numbers<[1], [0], [0], [1], [0, 0, 1, 1], [], []>} : vector<200x576xbf16>, vector<576x64xbf16>, vector<200x64xf32> -> vector<200x64xf32>
    %c0_103 = arith.constant 0 : index
    %c128_104 = arith.constant 128 : index
    %128 = vector.load %arg7[%c0_103, %c128_104] : memref<2x192xf32, #tpu.memory_space<vmem>>, vector<2x64xf32>
    %cst_105 = arith.constant dense<0.000000e+00> : vector<1x64xf32>
    %129 = tpu.matmul %0, %127, %cst_105 {dimension_numbers = #tpu.dot_dimension_numbers<[1], [0], [0], [1], [0, 0, 1, 1], [], []>} : vector<1x200xf32>, vector<200x64xf32>, vector<1x64xf32> -> vector<1x64xf32>
    %130 = arith.mulf %127, %127 : vector<200x64xf32>
    %cst_106 = arith.constant dense<0.000000e+00> : vector<1x64xf32>
    %131 = tpu.matmul %0, %130, %cst_106 {dimension_numbers = #tpu.dot_dimension_numbers<[1], [0], [0], [1], [0, 0, 1, 1], [], []>} : vector<1x200xf32>, vector<200x64xf32>, vector<1x64xf32> -> vector<1x64xf32>
    %cst_107 = arith.constant 7.812500e-03 : f32
    %132 = vector.broadcast %cst_107 : f32 to vector<1x64xf32>
    %133 = arith.mulf %129, %132 : vector<1x64xf32>
    %cst_108 = arith.constant 7.812500e-03 : f32
    %134 = vector.broadcast %cst_108 : f32 to vector<1x64xf32>
    %135 = arith.mulf %131, %134 : vector<1x64xf32>
    %136 = arith.mulf %133, %133 : vector<1x64xf32>
    %137 = arith.subf %135, %136 : vector<1x64xf32>
    %cst_109 = arith.constant 0.000000e+00 : f32
    %138 = vector.broadcast %cst_109 : f32 to vector<1x64xf32>
    %139 = arith.maximumf %137, %138 : vector<1x64xf32>
    %140 = vector.extract_strided_slice %128 {offsets = [0, 0], sizes = [1, 64], strides = [1, 1]} : vector<2x64xf32> to vector<1x64xf32>
    %cst_110 = arith.constant 9.99999974E-6 : f32
    %141 = vector.broadcast %cst_110 : f32 to vector<1x64xf32>
    %142 = arith.addf %139, %141 : vector<1x64xf32>
    %143 = math.rsqrt %142 : vector<1x64xf32>
    %144 = arith.mulf %140, %143 : vector<1x64xf32>
    %145 = vector.extract_strided_slice %128 {offsets = [1, 0], sizes = [1, 64], strides = [1, 1]} : vector<2x64xf32> to vector<1x64xf32>
    %146 = arith.mulf %133, %144 : vector<1x64xf32>
    %147 = arith.subf %145, %146 : vector<1x64xf32>
    %148 = vector.broadcast %144 : vector<1x64xf32> to vector<200x64xf32>
    %149 = arith.mulf %127, %148 : vector<200x64xf32>
    %150 = vector.broadcast %147 : vector<1x64xf32> to vector<200x64xf32>
    %151 = arith.addf %149, %150 : vector<200x64xf32>
    %152 = arith.addf %151, %37 : vector<200x64xf32>
    %cst_111 = arith.constant 0.000000e+00 : f32
    %153 = vector.broadcast %cst_111 : f32 to vector<200x64xf32>
    %154 = arith.maximumf %152, %153 : vector<200x64xf32>
    %155 = vector.broadcast %2 : vector<200x1xf32> to vector<200x64xf32>
    %156 = arith.mulf %154, %155 : vector<200x64xf32>
    %c11_112 = arith.constant 11 : index
    %c0_113 = arith.constant 0 : index
    %157 = vector.load %arg13[%c11_112, %c0_113] : memref<222x64xf32, #tpu.memory_space<vmem>>, vector<200x64xf32>
    tpu.vector_store %arg13[%c11_112, %c0_113], %156 {strides = array<i32>} : memref<222x64xf32, #tpu.memory_space<vmem>>, vector<200x64xf32>,
    %c11_114 = arith.constant 11 : index
    %c0_115 = arith.constant 0 : index
    %158 = tpu.strided_load %arg13[%c11_114, %c0_115] {strides = array<i32: 2, 1>} : memref<222x64xf32, #tpu.memory_space<vmem>>, vector<4x64xf32>
    %159 = arith.truncf %158 : vector<4x64xf32> to vector<4x64xbf16>
    %c0_116 = arith.constant 0 : index
    %c0_117 = arith.constant 0 : index
    %160 = vector.load %arg16[%c0_116, %c0_117] : memref<32x576xbf16, #tpu.memory_space<vmem>>, vector<4x64xbf16>
    tpu.vector_store %arg16[%c0_116, %c0_117], %159 {strides = array<i32>} : memref<32x576xbf16, #tpu.memory_space<vmem>>, vector<4x64xbf16>,
    %c31 = arith.constant 31 : index
    %c0_118 = arith.constant 0 : index
    %161 = tpu.strided_load %arg13[%c31, %c0_118] {strides = array<i32: 2, 1>} : memref<222x64xf32, #tpu.memory_space<vmem>>, vector<4x64xf32>
    %162 = arith.truncf %161 : vector<4x64xf32> to vector<4x64xbf16>
    %c4 = arith.constant 4 : index
    %c0_119 = arith.constant 0 : index
    %163 = vector.load %arg16[%c4, %c0_119] : memref<32x576xbf16, #tpu.memory_space<vmem>>, vector<4x64xbf16>
    tpu.vector_store %arg16[%c4, %c0_119], %162 {strides = array<i32>} : memref<32x576xbf16, #tpu.memory_space<vmem>>, vector<4x64xbf16>,
    %c51 = arith.constant 51 : index
    %c0_120 = arith.constant 0 : index
    %164 = tpu.strided_load %arg13[%c51, %c0_120] {strides = array<i32: 2, 1>} : memref<222x64xf32, #tpu.memory_space<vmem>>, vector<4x64xf32>
    %165 = arith.truncf %164 : vector<4x64xf32> to vector<4x64xbf16>
    %c8 = arith.constant 8 : index
    %c0_121 = arith.constant 0 : index
    %166 = vector.load %arg16[%c8, %c0_121] : memref<32x576xbf16, #tpu.memory_space<vmem>>, vector<4x64xbf16>
    tpu.vector_store %arg16[%c8, %c0_121], %165 {strides = array<i32>} : memref<32x576xbf16, #tpu.memory_space<vmem>>, vector<4x64xbf16>,
    %c71 = arith.constant 71 : index
    %c0_122 = arith.constant 0 : index
    %167 = tpu.strided_load %arg13[%c71, %c0_122] {strides = array<i32: 2, 1>} : memref<222x64xf32, #tpu.memory_space<vmem>>, vector<4x64xf32>
    %168 = arith.truncf %167 : vector<4x64xf32> to vector<4x64xbf16>
    %c12_123 = arith.constant 12 : index
    %c0_124 = arith.constant 0 : index
    %169 = vector.load %arg16[%c12_123, %c0_124] : memref<32x576xbf16, #tpu.memory_space<vmem>>, vector<4x64xbf16>
    tpu.vector_store %arg16[%c12_123, %c0_124], %168 {strides = array<i32>} : memref<32x576xbf16, #tpu.memory_space<vmem>>, vector<4x64xbf16>,
    %c111 = arith.constant 111 : index
    %c0_125 = arith.constant 0 : index
    %170 = tpu.strided_load %arg13[%c111, %c0_125] {strides = array<i32: 2, 1>} : memref<222x64xf32, #tpu.memory_space<vmem>>, vector<4x64xf32>
    %171 = arith.truncf %170 : vector<4x64xf32> to vector<4x64xbf16>
    %c16 = arith.constant 16 : index
    %c0_126 = arith.constant 0 : index
    %172 = vector.load %arg16[%c16, %c0_126] : memref<32x576xbf16, #tpu.memory_space<vmem>>, vector<4x64xbf16>
    tpu.vector_store %arg16[%c16, %c0_126], %171 {strides = array<i32>} : memref<32x576xbf16, #tpu.memory_space<vmem>>, vector<4x64xbf16>,
    %c131 = arith.constant 131 : index
    %c0_127 = arith.constant 0 : index
    %173 = tpu.strided_load %arg13[%c131, %c0_127] {strides = array<i32: 2, 1>} : memref<222x64xf32, #tpu.memory_space<vmem>>, vector<4x64xf32>
    %174 = arith.truncf %173 : vector<4x64xf32> to vector<4x64xbf16>
    %c20_128 = arith.constant 20 : index
    %c0_129 = arith.constant 0 : index
    %175 = vector.load %arg16[%c20_128, %c0_129] : memref<32x576xbf16, #tpu.memory_space<vmem>>, vector<4x64xbf16>
    tpu.vector_store %arg16[%c20_128, %c0_129], %174 {strides = array<i32>} : memref<32x576xbf16, #tpu.memory_space<vmem>>, vector<4x64xbf16>,
    %c151 = arith.constant 151 : index
    %c0_130 = arith.constant 0 : index
    %176 = tpu.strided_load %arg13[%c151, %c0_130] {strides = array<i32: 2, 1>} : memref<222x64xf32, #tpu.memory_space<vmem>>, vector<4x64xf32>
    %177 = arith.truncf %176 : vector<4x64xf32> to vector<4x64xbf16>
    %c24 = arith.constant 24 : index
    %c0_131 = arith.constant 0 : index
    %178 = vector.load %arg16[%c24, %c0_131] : memref<32x576xbf16, #tpu.memory_space<vmem>>, vector<4x64xbf16>
    tpu.vector_store %arg16[%c24, %c0_131], %177 {strides = array<i32>} : memref<32x576xbf16, #tpu.memory_space<vmem>>, vector<4x64xbf16>,
    %c171 = arith.constant 171 : index
    %c0_132 = arith.constant 0 : index
    %179 = tpu.strided_load %arg13[%c171, %c0_132] {strides = array<i32: 2, 1>} : memref<222x64xf32, #tpu.memory_space<vmem>>, vector<4x64xf32>
    %180 = arith.truncf %179 : vector<4x64xf32> to vector<4x64xbf16>
    %c28 = arith.constant 28 : index
    %c0_133 = arith.constant 0 : index
    %181 = vector.load %arg16[%c28, %c0_133] : memref<32x576xbf16, #tpu.memory_space<vmem>>, vector<4x64xbf16>
    tpu.vector_store %arg16[%c28, %c0_133], %180 {strides = array<i32>} : memref<32x576xbf16, #tpu.memory_space<vmem>>, vector<4x64xbf16>,
    %c12_134 = arith.constant 12 : index
    %c0_135 = arith.constant 0 : index
    %182 = tpu.strided_load %arg13[%c12_134, %c0_135] {strides = array<i32: 2, 1>} : memref<222x64xf32, #tpu.memory_space<vmem>>, vector<4x64xf32>
    %183 = arith.truncf %182 : vector<4x64xf32> to vector<4x64xbf16>
    %c0_136 = arith.constant 0 : index
    %c64_137 = arith.constant 64 : index
    %184 = vector.load %arg16[%c0_136, %c64_137] : memref<32x576xbf16, #tpu.memory_space<vmem>>, vector<4x64xbf16>
    tpu.vector_store %arg16[%c0_136, %c64_137], %183 {strides = array<i32>} : memref<32x576xbf16, #tpu.memory_space<vmem>>, vector<4x64xbf16>,
    %c32 = arith.constant 32 : index
    %c0_138 = arith.constant 0 : index
    %185 = tpu.strided_load %arg13[%c32, %c0_138] {strides = array<i32: 2, 1>} : memref<222x64xf32, #tpu.memory_space<vmem>>, vector<4x64xf32>
    %186 = arith.truncf %185 : vector<4x64xf32> to vector<4x64xbf16>
    %c4_139 = arith.constant 4 : index
    %c64_140 = arith.constant 64 : index
    %187 = vector.load %arg16[%c4_139, %c64_140] : memref<32x576xbf16, #tpu.memory_space<vmem>>, vector<4x64xbf16>
    tpu.vector_store %arg16[%c4_139, %c64_140], %186 {strides = array<i32>} : memref<32x576xbf16, #tpu.memory_space<vmem>>, vector<4x64xbf16>,
    %c52 = arith.constant 52 : index
    %c0_141 = arith.constant 0 : index
    %188 = tpu.strided_load %arg13[%c52, %c0_141] {strides = array<i32: 2, 1>} : memref<222x64xf32, #tpu.memory_space<vmem>>, vector<4x64xf32>
    %189 = arith.truncf %188 : vector<4x64xf32> to vector<4x64xbf16>
    %c8_142 = arith.constant 8 : index
    %c64_143 = arith.constant 64 : index
    %190 = vector.load %arg16[%c8_142, %c64_143] : memref<32x576xbf16, #tpu.memory_space<vmem>>, vector<4x64xbf16>
    tpu.vector_store %arg16[%c8_142, %c64_143], %189 {strides = array<i32>} : memref<32x576xbf16, #tpu.memory_space<vmem>>, vector<4x64xbf16>,
    %c72 = arith.constant 72 : index
    %c0_144 = arith.constant 0 : index
    %191 = tpu.strided_load %arg13[%c72, %c0_144] {strides = array<i32: 2, 1>} : memref<222x64xf32, #tpu.memory_space<vmem>>, vector<4x64xf32>
    %192 = arith.truncf %191 : vector<4x64xf32> to vector<4x64xbf16>
    %c12_145 = arith.constant 12 : index
    %c64_146 = arith.constant 64 : index
    %193 = vector.load %arg16[%c12_145, %c64_146] : memref<32x576xbf16, #tpu.memory_space<vmem>>, vector<4x64xbf16>
    tpu.vector_store %arg16[%c12_145, %c64_146], %192 {strides = array<i32>} : memref<32x576xbf16, #tpu.memory_space<vmem>>, vector<4x64xbf16>,
    %c112 = arith.constant 112 : index
    %c0_147 = arith.constant 0 : index
    %194 = tpu.strided_load %arg13[%c112, %c0_147] {strides = array<i32: 2, 1>} : memref<222x64xf32, #tpu.memory_space<vmem>>, vector<4x64xf32>
    %195 = arith.truncf %194 : vector<4x64xf32> to vector<4x64xbf16>
    %c16_148 = arith.constant 16 : index
    %c64_149 = arith.constant 64 : index
    %196 = vector.load %arg16[%c16_148, %c64_149] : memref<32x576xbf16, #tpu.memory_space<vmem>>, vector<4x64xbf16>
    tpu.vector_store %arg16[%c16_148, %c64_149], %195 {strides = array<i32>} : memref<32x576xbf16, #tpu.memory_space<vmem>>, vector<4x64xbf16>,
    %c132 = arith.constant 132 : index
    %c0_150 = arith.constant 0 : index
    %197 = tpu.strided_load %arg13[%c132, %c0_150] {strides = array<i32: 2, 1>} : memref<222x64xf32, #tpu.memory_space<vmem>>, vector<4x64xf32>
    %198 = arith.truncf %197 : vector<4x64xf32> to vector<4x64xbf16>
    %c20_151 = arith.constant 20 : index
    %c64_152 = arith.constant 64 : index
    %199 = vector.load %arg16[%c20_151, %c64_152] : memref<32x576xbf16, #tpu.memory_space<vmem>>, vector<4x64xbf16>
    tpu.vector_store %arg16[%c20_151, %c64_152], %198 {strides = array<i32>} : memref<32x576xbf16, #tpu.memory_space<vmem>>, vector<4x64xbf16>,
    %c152 = arith.constant 152 : index
    %c0_153 = arith.constant 0 : index
    %200 = tpu.strided_load %arg13[%c152, %c0_153] {strides = array<i32: 2, 1>} : memref<222x64xf32, #tpu.memory_space<vmem>>, vector<4x64xf32>
    %201 = arith.truncf %200 : vector<4x64xf32> to vector<4x64xbf16>
    %c24_154 = arith.constant 24 : index
    %c64_155 = arith.constant 64 : index
    %202 = vector.load %arg16[%c24_154, %c64_155] : memref<32x576xbf16, #tpu.memory_space<vmem>>, vector<4x64xbf16>
    tpu.vector_store %arg16[%c24_154, %c64_155], %201 {strides = array<i32>} : memref<32x576xbf16, #tpu.memory_space<vmem>>, vector<4x64xbf16>,
    %c172 = arith.constant 172 : index
    %c0_156 = arith.constant 0 : index
    %203 = tpu.strided_load %arg13[%c172, %c0_156] {strides = array<i32: 2, 1>} : memref<222x64xf32, #tpu.memory_space<vmem>>, vector<4x64xf32>
    %204 = arith.truncf %203 : vector<4x64xf32> to vector<4x64xbf16>
    %c28_157 = arith.constant 28 : index
    %c64_158 = arith.constant 64 : index
    %205 = vector.load %arg16[%c28_157, %c64_158] : memref<32x576xbf16, #tpu.memory_space<vmem>>, vector<4x64xbf16>
    tpu.vector_store %arg16[%c28_157, %c64_158], %204 {strides = array<i32>} : memref<32x576xbf16, #tpu.memory_space<vmem>>, vector<4x64xbf16>,
    %c13 = arith.constant 13 : index
    %c0_159 = arith.constant 0 : index
    %206 = tpu.strided_load %arg13[%c13, %c0_159] {strides = array<i32: 2, 1>} : memref<222x64xf32, #tpu.memory_space<vmem>>, vector<4x64xf32>
    %207 = arith.truncf %206 : vector<4x64xf32> to vector<4x64xbf16>
    %c0_160 = arith.constant 0 : index
    %c128_161 = arith.constant 128 : index
    %208 = vector.load %arg16[%c0_160, %c128_161] : memref<32x576xbf16, #tpu.memory_space<vmem>>, vector<4x64xbf16>
    tpu.vector_store %arg16[%c0_160, %c128_161], %207 {strides = array<i32>} : memref<32x576xbf16, #tpu.memory_space<vmem>>, vector<4x64xbf16>,
    %c33 = arith.constant 33 : index
    %c0_162 = arith.constant 0 : index
    %209 = tpu.strided_load %arg13[%c33, %c0_162] {strides = array<i32: 2, 1>} : memref<222x64xf32, #tpu.memory_space<vmem>>, vector<4x64xf32>
    %210 = arith.truncf %209 : vector<4x64xf32> to vector<4x64xbf16>
    %c4_163 = arith.constant 4 : index
    %c128_164 = arith.constant 128 : index
    %211 = vector.load %arg16[%c4_163, %c128_164] : memref<32x576xbf16, #tpu.memory_space<vmem>>, vector<4x64xbf16>
    tpu.vector_store %arg16[%c4_163, %c128_164], %210 {strides = array<i32>} : memref<32x576xbf16, #tpu.memory_space<vmem>>, vector<4x64xbf16>,
    %c53 = arith.constant 53 : index
    %c0_165 = arith.constant 0 : index
    %212 = tpu.strided_load %arg13[%c53, %c0_165] {strides = array<i32: 2, 1>} : memref<222x64xf32, #tpu.memory_space<vmem>>, vector<4x64xf32>
    %213 = arith.truncf %212 : vector<4x64xf32> to vector<4x64xbf16>
    %c8_166 = arith.constant 8 : index
    %c128_167 = arith.constant 128 : index
    %214 = vector.load %arg16[%c8_166, %c128_167] : memref<32x576xbf16, #tpu.memory_space<vmem>>, vector<4x64xbf16>
    tpu.vector_store %arg16[%c8_166, %c128_167], %213 {strides = array<i32>} : memref<32x576xbf16, #tpu.memory_space<vmem>>, vector<4x64xbf16>,
    %c73 = arith.constant 73 : index
    %c0_168 = arith.constant 0 : index
    %215 = tpu.strided_load %arg13[%c73, %c0_168] {strides = array<i32: 2, 1>} : memref<222x64xf32, #tpu.memory_space<vmem>>, vector<4x64xf32>
    %216 = arith.truncf %215 : vector<4x64xf32> to vector<4x64xbf16>
    %c12_169 = arith.constant 12 : index
    %c128_170 = arith.constant 128 : index
    %217 = vector.load %arg16[%c12_169, %c128_170] : memref<32x576xbf16, #tpu.memory_space<vmem>>, vector<4x64xbf16>
    tpu.vector_store %arg16[%c12_169, %c128_170], %216 {strides = array<i32>} : memref<32x576xbf16, #tpu.memory_space<vmem>>, vector<4x64xbf16>,
    %c113 = arith.constant 113 : index
    %c0_171 = arith.constant 0 : index
    %218 = tpu.strided_load %arg13[%c113, %c0_171] {strides = array<i32: 2, 1>} : memref<222x64xf32, #tpu.memory_space<vmem>>, vector<4x64xf32>
    %219 = arith.truncf %218 : vector<4x64xf32> to vector<4x64xbf16>
    %c16_172 = arith.constant 16 : index
    %c128_173 = arith.constant 128 : index
    %220 = vector.load %arg16[%c16_172, %c128_173] : memref<32x576xbf16, #tpu.memory_space<vmem>>, vector<4x64xbf16>
    tpu.vector_store %arg16[%c16_172, %c128_173], %219 {strides = array<i32>} : memref<32x576xbf16, #tpu.memory_space<vmem>>, vector<4x64xbf16>,
    %c133 = arith.constant 133 : index
    %c0_174 = arith.constant 0 : index
    %221 = tpu.strided_load %arg13[%c133, %c0_174] {strides = array<i32: 2, 1>} : memref<222x64xf32, #tpu.memory_space<vmem>>, vector<4x64xf32>
    %222 = arith.truncf %221 : vector<4x64xf32> to vector<4x64xbf16>
    %c20_175 = arith.constant 20 : index
    %c128_176 = arith.constant 128 : index
    %223 = vector.load %arg16[%c20_175, %c128_176] : memref<32x576xbf16, #tpu.memory_space<vmem>>, vector<4x64xbf16>
    tpu.vector_store %arg16[%c20_175, %c128_176], %222 {strides = array<i32>} : memref<32x576xbf16, #tpu.memory_space<vmem>>, vector<4x64xbf16>,
    %c153 = arith.constant 153 : index
    %c0_177 = arith.constant 0 : index
    %224 = tpu.strided_load %arg13[%c153, %c0_177] {strides = array<i32: 2, 1>} : memref<222x64xf32, #tpu.memory_space<vmem>>, vector<4x64xf32>
    %225 = arith.truncf %224 : vector<4x64xf32> to vector<4x64xbf16>
    %c24_178 = arith.constant 24 : index
    %c128_179 = arith.constant 128 : index
    %226 = vector.load %arg16[%c24_178, %c128_179] : memref<32x576xbf16, #tpu.memory_space<vmem>>, vector<4x64xbf16>
    tpu.vector_store %arg16[%c24_178, %c128_179], %225 {strides = array<i32>} : memref<32x576xbf16, #tpu.memory_space<vmem>>, vector<4x64xbf16>,
    %c173 = arith.constant 173 : index
    %c0_180 = arith.constant 0 : index
    %227 = tpu.strided_load %arg13[%c173, %c0_180] {strides = array<i32: 2, 1>} : memref<222x64xf32, #tpu.memory_space<vmem>>, vector<4x64xf32>
    %228 = arith.truncf %227 : vector<4x64xf32> to vector<4x64xbf16>
    %c28_181 = arith.constant 28 : index
    %c128_182 = arith.constant 128 : index
    %229 = vector.load %arg16[%c28_181, %c128_182] : memref<32x576xbf16, #tpu.memory_space<vmem>>, vector<4x64xbf16>
    tpu.vector_store %arg16[%c28_181, %c128_182], %228 {strides = array<i32>} : memref<32x576xbf16, #tpu.memory_space<vmem>>, vector<4x64xbf16>,
    %c21_183 = arith.constant 21 : index
    %c0_184 = arith.constant 0 : index
    %230 = tpu.strided_load %arg13[%c21_183, %c0_184] {strides = array<i32: 2, 1>} : memref<222x64xf32, #tpu.memory_space<vmem>>, vector<4x64xf32>
    %231 = arith.truncf %230 : vector<4x64xf32> to vector<4x64xbf16>
    %c0_185 = arith.constant 0 : index
    %c192_186 = arith.constant 192 : index
    %232 = vector.load %arg16[%c0_185, %c192_186] : memref<32x576xbf16, #tpu.memory_space<vmem>>, vector<4x64xbf16>
    tpu.vector_store %arg16[%c0_185, %c192_186], %231 {strides = array<i32>} : memref<32x576xbf16, #tpu.memory_space<vmem>>, vector<4x64xbf16>,
    %c41 = arith.constant 41 : index
    %c0_187 = arith.constant 0 : index
    %233 = tpu.strided_load %arg13[%c41, %c0_187] {strides = array<i32: 2, 1>} : memref<222x64xf32, #tpu.memory_space<vmem>>, vector<4x64xf32>
    %234 = arith.truncf %233 : vector<4x64xf32> to vector<4x64xbf16>
    %c4_188 = arith.constant 4 : index
    %c192_189 = arith.constant 192 : index
    %235 = vector.load %arg16[%c4_188, %c192_189] : memref<32x576xbf16, #tpu.memory_space<vmem>>, vector<4x64xbf16>
    tpu.vector_store %arg16[%c4_188, %c192_189], %234 {strides = array<i32>} : memref<32x576xbf16, #tpu.memory_space<vmem>>, vector<4x64xbf16>,
    %c61 = arith.constant 61 : index
    %c0_190 = arith.constant 0 : index
    %236 = tpu.strided_load %arg13[%c61, %c0_190] {strides = array<i32: 2, 1>} : memref<222x64xf32, #tpu.memory_space<vmem>>, vector<4x64xf32>
    %237 = arith.truncf %236 : vector<4x64xf32> to vector<4x64xbf16>
    %c8_191 = arith.constant 8 : index
    %c192_192 = arith.constant 192 : index
    %238 = vector.load %arg16[%c8_191, %c192_192] : memref<32x576xbf16, #tpu.memory_space<vmem>>, vector<4x64xbf16>
    tpu.vector_store %arg16[%c8_191, %c192_192], %237 {strides = array<i32>} : memref<32x576xbf16, #tpu.memory_space<vmem>>, vector<4x64xbf16>,
    %c81 = arith.constant 81 : index
    %c0_193 = arith.constant 0 : index
    %239 = tpu.strided_load %arg13[%c81, %c0_193] {strides = array<i32: 2, 1>} : memref<222x64xf32, #tpu.memory_space<vmem>>, vector<4x64xf32>
    %240 = arith.truncf %239 : vector<4x64xf32> to vector<4x64xbf16>
    %c12_194 = arith.constant 12 : index
    %c192_195 = arith.constant 192 : index
    %241 = vector.load %arg16[%c12_194, %c192_195] : memref<32x576xbf16, #tpu.memory_space<vmem>>, vector<4x64xbf16>
    tpu.vector_store %arg16[%c12_194, %c192_195], %240 {strides = array<i32>} : memref<32x576xbf16, #tpu.memory_space<vmem>>, vector<4x64xbf16>,
    %c121 = arith.constant 121 : index
    %c0_196 = arith.constant 0 : index
    %242 = tpu.strided_load %arg13[%c121, %c0_196] {strides = array<i32: 2, 1>} : memref<222x64xf32, #tpu.memory_space<vmem>>, vector<4x64xf32>
    %243 = arith.truncf %242 : vector<4x64xf32> to vector<4x64xbf16>
    %c16_197 = arith.constant 16 : index
    %c192_198 = arith.constant 192 : index
    %244 = vector.load %arg16[%c16_197, %c192_198] : memref<32x576xbf16, #tpu.memory_space<vmem>>, vector<4x64xbf16>
    tpu.vector_store %arg16[%c16_197, %c192_198], %243 {strides = array<i32>} : memref<32x576xbf16, #tpu.memory_space<vmem>>, vector<4x64xbf16>,
    %c141 = arith.constant 141 : index
    %c0_199 = arith.constant 0 : index
    %245 = tpu.strided_load %arg13[%c141, %c0_199] {strides = array<i32: 2, 1>} : memref<222x64xf32, #tpu.memory_space<vmem>>, vector<4x64xf32>
    %246 = arith.truncf %245 : vector<4x64xf32> to vector<4x64xbf16>
    %c20_200 = arith.constant 20 : index
    %c192_201 = arith.constant 192 : index
    %247 = vector.load %arg16[%c20_200, %c192_201] : memref<32x576xbf16, #tpu.memory_space<vmem>>, vector<4x64xbf16>
    tpu.vector_store %arg16[%c20_200, %c192_201], %246 {strides = array<i32>} : memref<32x576xbf16, #tpu.memory_space<vmem>>, vector<4x64xbf16>,
    %c161 = arith.constant 161 : index
    %c0_202 = arith.constant 0 : index
    %248 = tpu.strided_load %arg13[%c161, %c0_202] {strides = array<i32: 2, 1>} : memref<222x64xf32, #tpu.memory_space<vmem>>, vector<4x64xf32>
    %249 = arith.truncf %248 : vector<4x64xf32> to vector<4x64xbf16>
    %c24_203 = arith.constant 24 : index
    %c192_204 = arith.constant 192 : index
    %250 = vector.load %arg16[%c24_203, %c192_204] : memref<32x576xbf16, #tpu.memory_space<vmem>>, vector<4x64xbf16>
    tpu.vector_store %arg16[%c24_203, %c192_204], %249 {strides = array<i32>} : memref<32x576xbf16, #tpu.memory_space<vmem>>, vector<4x64xbf16>,
    %c181 = arith.constant 181 : index
    %c0_205 = arith.constant 0 : index
    %251 = tpu.strided_load %arg13[%c181, %c0_205] {strides = array<i32: 2, 1>} : memref<222x64xf32, #tpu.memory_space<vmem>>, vector<4x64xf32>
    %252 = arith.truncf %251 : vector<4x64xf32> to vector<4x64xbf16>
    %c28_206 = arith.constant 28 : index
    %c192_207 = arith.constant 192 : index
    %253 = vector.load %arg16[%c28_206, %c192_207] : memref<32x576xbf16, #tpu.memory_space<vmem>>, vector<4x64xbf16>
    tpu.vector_store %arg16[%c28_206, %c192_207], %252 {strides = array<i32>} : memref<32x576xbf16, #tpu.memory_space<vmem>>, vector<4x64xbf16>,
    %c22_208 = arith.constant 22 : index
    %c0_209 = arith.constant 0 : index
    %254 = tpu.strided_load %arg13[%c22_208, %c0_209] {strides = array<i32: 2, 1>} : memref<222x64xf32, #tpu.memory_space<vmem>>, vector<4x64xf32>
    %255 = arith.truncf %254 : vector<4x64xf32> to vector<4x64xbf16>
    %c0_210 = arith.constant 0 : index
    %c256_211 = arith.constant 256 : index
    %256 = vector.load %arg16[%c0_210, %c256_211] : memref<32x576xbf16, #tpu.memory_space<vmem>>, vector<4x64xbf16>
    tpu.vector_store %arg16[%c0_210, %c256_211], %255 {strides = array<i32>} : memref<32x576xbf16, #tpu.memory_space<vmem>>, vector<4x64xbf16>,
    %c42 = arith.constant 42 : index
    %c0_212 = arith.constant 0 : index
    %257 = tpu.strided_load %arg13[%c42, %c0_212] {strides = array<i32: 2, 1>} : memref<222x64xf32, #tpu.memory_space<vmem>>, vector<4x64xf32>
    %258 = arith.truncf %257 : vector<4x64xf32> to vector<4x64xbf16>
    %c4_213 = arith.constant 4 : index
    %c256_214 = arith.constant 256 : index
    %259 = vector.load %arg16[%c4_213, %c256_214] : memref<32x576xbf16, #tpu.memory_space<vmem>>, vector<4x64xbf16>
    tpu.vector_store %arg16[%c4_213, %c256_214], %258 {strides = array<i32>} : memref<32x576xbf16, #tpu.memory_space<vmem>>, vector<4x64xbf16>,
    %c62 = arith.constant 62 : index
    %c0_215 = arith.constant 0 : index
    %260 = tpu.strided_load %arg13[%c62, %c0_215] {strides = array<i32: 2, 1>} : memref<222x64xf32, #tpu.memory_space<vmem>>, vector<4x64xf32>
    %261 = arith.truncf %260 : vector<4x64xf32> to vector<4x64xbf16>
    %c8_216 = arith.constant 8 : index
    %c256_217 = arith.constant 256 : index
    %262 = vector.load %arg16[%c8_216, %c256_217] : memref<32x576xbf16, #tpu.memory_space<vmem>>, vector<4x64xbf16>
    tpu.vector_store %arg16[%c8_216, %c256_217], %261 {strides = array<i32>} : memref<32x576xbf16, #tpu.memory_space<vmem>>, vector<4x64xbf16>,
    %c82 = arith.constant 82 : index
    %c0_218 = arith.constant 0 : index
    %263 = tpu.strided_load %arg13[%c82, %c0_218] {strides = array<i32: 2, 1>} : memref<222x64xf32, #tpu.memory_space<vmem>>, vector<4x64xf32>
    %264 = arith.truncf %263 : vector<4x64xf32> to vector<4x64xbf16>
    %c12_219 = arith.constant 12 : index
    %c256_220 = arith.constant 256 : index
    %265 = vector.load %arg16[%c12_219, %c256_220] : memref<32x576xbf16, #tpu.memory_space<vmem>>, vector<4x64xbf16>
    tpu.vector_store %arg16[%c12_219, %c256_220], %264 {strides = array<i32>} : memref<32x576xbf16, #tpu.memory_space<vmem>>, vector<4x64xbf16>,
    %c122 = arith.constant 122 : index
    %c0_221 = arith.constant 0 : index
    %266 = tpu.strided_load %arg13[%c122, %c0_221] {strides = array<i32: 2, 1>} : memref<222x64xf32, #tpu.memory_space<vmem>>, vector<4x64xf32>
    %267 = arith.truncf %266 : vector<4x64xf32> to vector<4x64xbf16>
    %c16_222 = arith.constant 16 : index
    %c256_223 = arith.constant 256 : index
    %268 = vector.load %arg16[%c16_222, %c256_223] : memref<32x576xbf16, #tpu.memory_space<vmem>>, vector<4x64xbf16>
    tpu.vector_store %arg16[%c16_222, %c256_223], %267 {strides = array<i32>} : memref<32x576xbf16, #tpu.memory_space<vmem>>, vector<4x64xbf16>,
    %c142 = arith.constant 142 : index
    %c0_224 = arith.constant 0 : index
    %269 = tpu.strided_load %arg13[%c142, %c0_224] {strides = array<i32: 2, 1>} : memref<222x64xf32, #tpu.memory_space<vmem>>, vector<4x64xf32>
    %270 = arith.truncf %269 : vector<4x64xf32> to vector<4x64xbf16>
    %c20_225 = arith.constant 20 : index
    %c256_226 = arith.constant 256 : index
    %271 = vector.load %arg16[%c20_225, %c256_226] : memref<32x576xbf16, #tpu.memory_space<vmem>>, vector<4x64xbf16>
    tpu.vector_store %arg16[%c20_225, %c256_226], %270 {strides = array<i32>} : memref<32x576xbf16, #tpu.memory_space<vmem>>, vector<4x64xbf16>,
    %c162 = arith.constant 162 : index
    %c0_227 = arith.constant 0 : index
    %272 = tpu.strided_load %arg13[%c162, %c0_227] {strides = array<i32: 2, 1>} : memref<222x64xf32, #tpu.memory_space<vmem>>, vector<4x64xf32>
    %273 = arith.truncf %272 : vector<4x64xf32> to vector<4x64xbf16>
    %c24_228 = arith.constant 24 : index
    %c256_229 = arith.constant 256 : index
    %274 = vector.load %arg16[%c24_228, %c256_229] : memref<32x576xbf16, #tpu.memory_space<vmem>>, vector<4x64xbf16>
    tpu.vector_store %arg16[%c24_228, %c256_229], %273 {strides = array<i32>} : memref<32x576xbf16, #tpu.memory_space<vmem>>, vector<4x64xbf16>,
    %c182 = arith.constant 182 : index
    %c0_230 = arith.constant 0 : index
    %275 = tpu.strided_load %arg13[%c182, %c0_230] {strides = array<i32: 2, 1>} : memref<222x64xf32, #tpu.memory_space<vmem>>, vector<4x64xf32>
    %276 = arith.truncf %275 : vector<4x64xf32> to vector<4x64xbf16>
    %c28_231 = arith.constant 28 : index
    %c256_232 = arith.constant 256 : index
    %277 = vector.load %arg16[%c28_231, %c256_232] : memref<32x576xbf16, #tpu.memory_space<vmem>>, vector<4x64xbf16>
    tpu.vector_store %arg16[%c28_231, %c256_232], %276 {strides = array<i32>} : memref<32x576xbf16, #tpu.memory_space<vmem>>, vector<4x64xbf16>,
    %c23 = arith.constant 23 : index
    %c0_233 = arith.constant 0 : index
    %278 = tpu.strided_load %arg13[%c23, %c0_233] {strides = array<i32: 2, 1>} : memref<222x64xf32, #tpu.memory_space<vmem>>, vector<4x64xf32>
    %279 = arith.truncf %278 : vector<4x64xf32> to vector<4x64xbf16>
    %c0_234 = arith.constant 0 : index
    %c320_235 = arith.constant 320 : index
    %280 = vector.load %arg16[%c0_234, %c320_235] : memref<32x576xbf16, #tpu.memory_space<vmem>>, vector<4x64xbf16>
    tpu.vector_store %arg16[%c0_234, %c320_235], %279 {strides = array<i32>} : memref<32x576xbf16, #tpu.memory_space<vmem>>, vector<4x64xbf16>,
    %c43 = arith.constant 43 : index
    %c0_236 = arith.constant 0 : index
    %281 = tpu.strided_load %arg13[%c43, %c0_236] {strides = array<i32: 2, 1>} : memref<222x64xf32, #tpu.memory_space<vmem>>, vector<4x64xf32>
    %282 = arith.truncf %281 : vector<4x64xf32> to vector<4x64xbf16>
    %c4_237 = arith.constant 4 : index
    %c320_238 = arith.constant 320 : index
    %283 = vector.load %arg16[%c4_237, %c320_238] : memref<32x576xbf16, #tpu.memory_space<vmem>>, vector<4x64xbf16>
    tpu.vector_store %arg16[%c4_237, %c320_238], %282 {strides = array<i32>} : memref<32x576xbf16, #tpu.memory_space<vmem>>, vector<4x64xbf16>,
    %c63 = arith.constant 63 : index
    %c0_239 = arith.constant 0 : index
    %284 = tpu.strided_load %arg13[%c63, %c0_239] {strides = array<i32: 2, 1>} : memref<222x64xf32, #tpu.memory_space<vmem>>, vector<4x64xf32>
    %285 = arith.truncf %284 : vector<4x64xf32> to vector<4x64xbf16>
    %c8_240 = arith.constant 8 : index
    %c320_241 = arith.constant 320 : index
    %286 = vector.load %arg16[%c8_240, %c320_241] : memref<32x576xbf16, #tpu.memory_space<vmem>>, vector<4x64xbf16>
    tpu.vector_store %arg16[%c8_240, %c320_241], %285 {strides = array<i32>} : memref<32x576xbf16, #tpu.memory_space<vmem>>, vector<4x64xbf16>,
    %c83 = arith.constant 83 : index
    %c0_242 = arith.constant 0 : index
    %287 = tpu.strided_load %arg13[%c83, %c0_242] {strides = array<i32: 2, 1>} : memref<222x64xf32, #tpu.memory_space<vmem>>, vector<4x64xf32>
    %288 = arith.truncf %287 : vector<4x64xf32> to vector<4x64xbf16>
    %c12_243 = arith.constant 12 : index
    %c320_244 = arith.constant 320 : index
    %289 = vector.load %arg16[%c12_243, %c320_244] : memref<32x576xbf16, #tpu.memory_space<vmem>>, vector<4x64xbf16>
    tpu.vector_store %arg16[%c12_243, %c320_244], %288 {strides = array<i32>} : memref<32x576xbf16, #tpu.memory_space<vmem>>, vector<4x64xbf16>,
    %c123 = arith.constant 123 : index
    %c0_245 = arith.constant 0 : index
    %290 = tpu.strided_load %arg13[%c123, %c0_245] {strides = array<i32: 2, 1>} : memref<222x64xf32, #tpu.memory_space<vmem>>, vector<4x64xf32>
    %291 = arith.truncf %290 : vector<4x64xf32> to vector<4x64xbf16>
    %c16_246 = arith.constant 16 : index
    %c320_247 = arith.constant 320 : index
    %292 = vector.load %arg16[%c16_246, %c320_247] : memref<32x576xbf16, #tpu.memory_space<vmem>>, vector<4x64xbf16>
    tpu.vector_store %arg16[%c16_246, %c320_247], %291 {strides = array<i32>} : memref<32x576xbf16, #tpu.memory_space<vmem>>, vector<4x64xbf16>,
    %c143 = arith.constant 143 : index
    %c0_248 = arith.constant 0 : index
    %293 = tpu.strided_load %arg13[%c143, %c0_248] {strides = array<i32: 2, 1>} : memref<222x64xf32, #tpu.memory_space<vmem>>, vector<4x64xf32>
    %294 = arith.truncf %293 : vector<4x64xf32> to vector<4x64xbf16>
    %c20_249 = arith.constant 20 : index
    %c320_250 = arith.constant 320 : index
    %295 = vector.load %arg16[%c20_249, %c320_250] : memref<32x576xbf16, #tpu.memory_space<vmem>>, vector<4x64xbf16>
    tpu.vector_store %arg16[%c20_249, %c320_250], %294 {strides = array<i32>} : memref<32x576xbf16, #tpu.memory_space<vmem>>, vector<4x64xbf16>,
    %c163 = arith.constant 163 : index
    %c0_251 = arith.constant 0 : index
    %296 = tpu.strided_load %arg13[%c163, %c0_251] {strides = array<i32: 2, 1>} : memref<222x64xf32, #tpu.memory_space<vmem>>, vector<4x64xf32>
    %297 = arith.truncf %296 : vector<4x64xf32> to vector<4x64xbf16>
    %c24_252 = arith.constant 24 : index
    %c320_253 = arith.constant 320 : index
    %298 = vector.load %arg16[%c24_252, %c320_253] : memref<32x576xbf16, #tpu.memory_space<vmem>>, vector<4x64xbf16>
    tpu.vector_store %arg16[%c24_252, %c320_253], %297 {strides = array<i32>} : memref<32x576xbf16, #tpu.memory_space<vmem>>, vector<4x64xbf16>,
    %c183 = arith.constant 183 : index
    %c0_254 = arith.constant 0 : index
    %299 = tpu.strided_load %arg13[%c183, %c0_254] {strides = array<i32: 2, 1>} : memref<222x64xf32, #tpu.memory_space<vmem>>, vector<4x64xf32>
    %300 = arith.truncf %299 : vector<4x64xf32> to vector<4x64xbf16>
    %c28_255 = arith.constant 28 : index
    %c320_256 = arith.constant 320 : index
    %301 = vector.load %arg16[%c28_255, %c320_256] : memref<32x576xbf16, #tpu.memory_space<vmem>>, vector<4x64xbf16>
    tpu.vector_store %arg16[%c28_255, %c320_256], %300 {strides = array<i32>} : memref<32x576xbf16, #tpu.memory_space<vmem>>, vector<4x64xbf16>,
    %c31_257 = arith.constant 31 : index
    %c0_258 = arith.constant 0 : index
    %302 = tpu.strided_load %arg13[%c31_257, %c0_258] {strides = array<i32: 2, 1>} : memref<222x64xf32, #tpu.memory_space<vmem>>, vector<4x64xf32>
    %303 = arith.truncf %302 : vector<4x64xf32> to vector<4x64xbf16>
    %c0_259 = arith.constant 0 : index
    %c384_260 = arith.constant 384 : index
    %304 = vector.load %arg16[%c0_259, %c384_260] : memref<32x576xbf16, #tpu.memory_space<vmem>>, vector<4x64xbf16>
    tpu.vector_store %arg16[%c0_259, %c384_260], %303 {strides = array<i32>} : memref<32x576xbf16, #tpu.memory_space<vmem>>, vector<4x64xbf16>,
    %c51_261 = arith.constant 51 : index
    %c0_262 = arith.constant 0 : index
    %305 = tpu.strided_load %arg13[%c51_261, %c0_262] {strides = array<i32: 2, 1>} : memref<222x64xf32, #tpu.memory_space<vmem>>, vector<4x64xf32>
    %306 = arith.truncf %305 : vector<4x64xf32> to vector<4x64xbf16>
    %c4_263 = arith.constant 4 : index
    %c384_264 = arith.constant 384 : index
    %307 = vector.load %arg16[%c4_263, %c384_264] : memref<32x576xbf16, #tpu.memory_space<vmem>>, vector<4x64xbf16>
    tpu.vector_store %arg16[%c4_263, %c384_264], %306 {strides = array<i32>} : memref<32x576xbf16, #tpu.memory_space<vmem>>, vector<4x64xbf16>,
    %c71_265 = arith.constant 71 : index
    %c0_266 = arith.constant 0 : index
    %308 = tpu.strided_load %arg13[%c71_265, %c0_266] {strides = array<i32: 2, 1>} : memref<222x64xf32, #tpu.memory_space<vmem>>, vector<4x64xf32>
    %309 = arith.truncf %308 : vector<4x64xf32> to vector<4x64xbf16>
    %c8_267 = arith.constant 8 : index
    %c384_268 = arith.constant 384 : index
    %310 = vector.load %arg16[%c8_267, %c384_268] : memref<32x576xbf16, #tpu.memory_space<vmem>>, vector<4x64xbf16>
    tpu.vector_store %arg16[%c8_267, %c384_268], %309 {strides = array<i32>} : memref<32x576xbf16, #tpu.memory_space<vmem>>, vector<4x64xbf16>,
    %c91 = arith.constant 91 : index
    %c0_269 = arith.constant 0 : index
    %311 = tpu.strided_load %arg13[%c91, %c0_269] {strides = array<i32: 2, 1>} : memref<222x64xf32, #tpu.memory_space<vmem>>, vector<4x64xf32>
    %312 = arith.truncf %311 : vector<4x64xf32> to vector<4x64xbf16>
    %c12_270 = arith.constant 12 : index
    %c384_271 = arith.constant 384 : index
    %313 = vector.load %arg16[%c12_270, %c384_271] : memref<32x576xbf16, #tpu.memory_space<vmem>>, vector<4x64xbf16>
    tpu.vector_store %arg16[%c12_270, %c384_271], %312 {strides = array<i32>} : memref<32x576xbf16, #tpu.memory_space<vmem>>, vector<4x64xbf16>,
    %c131_272 = arith.constant 131 : index
    %c0_273 = arith.constant 0 : index
    %314 = tpu.strided_load %arg13[%c131_272, %c0_273] {strides = array<i32: 2, 1>} : memref<222x64xf32, #tpu.memory_space<vmem>>, vector<4x64xf32>
    %315 = arith.truncf %314 : vector<4x64xf32> to vector<4x64xbf16>
    %c16_274 = arith.constant 16 : index
    %c384_275 = arith.constant 384 : index
    %316 = vector.load %arg16[%c16_274, %c384_275] : memref<32x576xbf16, #tpu.memory_space<vmem>>, vector<4x64xbf16>
    tpu.vector_store %arg16[%c16_274, %c384_275], %315 {strides = array<i32>} : memref<32x576xbf16, #tpu.memory_space<vmem>>, vector<4x64xbf16>,
    %c151_276 = arith.constant 151 : index
    %c0_277 = arith.constant 0 : index
    %317 = tpu.strided_load %arg13[%c151_276, %c0_277] {strides = array<i32: 2, 1>} : memref<222x64xf32, #tpu.memory_space<vmem>>, vector<4x64xf32>
    %318 = arith.truncf %317 : vector<4x64xf32> to vector<4x64xbf16>
    %c20_278 = arith.constant 20 : index
    %c384_279 = arith.constant 384 : index
    %319 = vector.load %arg16[%c20_278, %c384_279] : memref<32x576xbf16, #tpu.memory_space<vmem>>, vector<4x64xbf16>
    tpu.vector_store %arg16[%c20_278, %c384_279], %318 {strides = array<i32>} : memref<32x576xbf16, #tpu.memory_space<vmem>>, vector<4x64xbf16>,
    %c171_280 = arith.constant 171 : index
    %c0_281 = arith.constant 0 : index
    %320 = tpu.strided_load %arg13[%c171_280, %c0_281] {strides = array<i32: 2, 1>} : memref<222x64xf32, #tpu.memory_space<vmem>>, vector<4x64xf32>
    %321 = arith.truncf %320 : vector<4x64xf32> to vector<4x64xbf16>
    %c24_282 = arith.constant 24 : index
    %c384_283 = arith.constant 384 : index
    %322 = vector.load %arg16[%c24_282, %c384_283] : memref<32x576xbf16, #tpu.memory_space<vmem>>, vector<4x64xbf16>
    tpu.vector_store %arg16[%c24_282, %c384_283], %321 {strides = array<i32>} : memref<32x576xbf16, #tpu.memory_space<vmem>>, vector<4x64xbf16>,
    %c191 = arith.constant 191 : index
    %c0_284 = arith.constant 0 : index
    %323 = tpu.strided_load %arg13[%c191, %c0_284] {strides = array<i32: 2, 1>} : memref<222x64xf32, #tpu.memory_space<vmem>>, vector<4x64xf32>
    %324 = arith.truncf %323 : vector<4x64xf32> to vector<4x64xbf16>
    %c28_285 = arith.constant 28 : index
    %c384_286 = arith.constant 384 : index
    %325 = vector.load %arg16[%c28_285, %c384_286] : memref<32x576xbf16, #tpu.memory_space<vmem>>, vector<4x64xbf16>
    tpu.vector_store %arg16[%c28_285, %c384_286], %324 {strides = array<i32>} : memref<32x576xbf16, #tpu.memory_space<vmem>>, vector<4x64xbf16>,
    %c32_287 = arith.constant 32 : index
    %c0_288 = arith.constant 0 : index
    %326 = tpu.strided_load %arg13[%c32_287, %c0_288] {strides = array<i32: 2, 1>} : memref<222x64xf32, #tpu.memory_space<vmem>>, vector<4x64xf32>
    %327 = arith.truncf %326 : vector<4x64xf32> to vector<4x64xbf16>
    %c0_289 = arith.constant 0 : index
    %c448_290 = arith.constant 448 : index
    %328 = vector.load %arg16[%c0_289, %c448_290] : memref<32x576xbf16, #tpu.memory_space<vmem>>, vector<4x64xbf16>
    tpu.vector_store %arg16[%c0_289, %c448_290], %327 {strides = array<i32>} : memref<32x576xbf16, #tpu.memory_space<vmem>>, vector<4x64xbf16>,
    %c52_291 = arith.constant 52 : index
    %c0_292 = arith.constant 0 : index
    %329 = tpu.strided_load %arg13[%c52_291, %c0_292] {strides = array<i32: 2, 1>} : memref<222x64xf32, #tpu.memory_space<vmem>>, vector<4x64xf32>
    %330 = arith.truncf %329 : vector<4x64xf32> to vector<4x64xbf16>
    %c4_293 = arith.constant 4 : index
    %c448_294 = arith.constant 448 : index
    %331 = vector.load %arg16[%c4_293, %c448_294] : memref<32x576xbf16, #tpu.memory_space<vmem>>, vector<4x64xbf16>
    tpu.vector_store %arg16[%c4_293, %c448_294], %330 {strides = array<i32>} : memref<32x576xbf16, #tpu.memory_space<vmem>>, vector<4x64xbf16>,
    %c72_295 = arith.constant 72 : index
    %c0_296 = arith.constant 0 : index
    %332 = tpu.strided_load %arg13[%c72_295, %c0_296] {strides = array<i32: 2, 1>} : memref<222x64xf32, #tpu.memory_space<vmem>>, vector<4x64xf32>
    %333 = arith.truncf %332 : vector<4x64xf32> to vector<4x64xbf16>
    %c8_297 = arith.constant 8 : index
    %c448_298 = arith.constant 448 : index
    %334 = vector.load %arg16[%c8_297, %c448_298] : memref<32x576xbf16, #tpu.memory_space<vmem>>, vector<4x64xbf16>
    tpu.vector_store %arg16[%c8_297, %c448_298], %333 {strides = array<i32>} : memref<32x576xbf16, #tpu.memory_space<vmem>>, vector<4x64xbf16>,
    %c92 = arith.constant 92 : index
    %c0_299 = arith.constant 0 : index
    %335 = tpu.strided_load %arg13[%c92, %c0_299] {strides = array<i32: 2, 1>} : memref<222x64xf32, #tpu.memory_space<vmem>>, vector<4x64xf32>
    %336 = arith.truncf %335 : vector<4x64xf32> to vector<4x64xbf16>
    %c12_300 = arith.constant 12 : index
    %c448_301 = arith.constant 448 : index
    %337 = vector.load %arg16[%c12_300, %c448_301] : memref<32x576xbf16, #tpu.memory_space<vmem>>, vector<4x64xbf16>
    tpu.vector_store %arg16[%c12_300, %c448_301], %336 {strides = array<i32>} : memref<32x576xbf16, #tpu.memory_space<vmem>>, vector<4x64xbf16>,
    %c132_302 = arith.constant 132 : index
    %c0_303 = arith.constant 0 : index
    %338 = tpu.strided_load %arg13[%c132_302, %c0_303] {strides = array<i32: 2, 1>} : memref<222x64xf32, #tpu.memory_space<vmem>>, vector<4x64xf32>
    %339 = arith.truncf %338 : vector<4x64xf32> to vector<4x64xbf16>
    %c16_304 = arith.constant 16 : index
    %c448_305 = arith.constant 448 : index
    %340 = vector.load %arg16[%c16_304, %c448_305] : memref<32x576xbf16, #tpu.memory_space<vmem>>, vector<4x64xbf16>
    tpu.vector_store %arg16[%c16_304, %c448_305], %339 {strides = array<i32>} : memref<32x576xbf16, #tpu.memory_space<vmem>>, vector<4x64xbf16>,
    %c152_306 = arith.constant 152 : index
    %c0_307 = arith.constant 0 : index
    %341 = tpu.strided_load %arg13[%c152_306, %c0_307] {strides = array<i32: 2, 1>} : memref<222x64xf32, #tpu.memory_space<vmem>>, vector<4x64xf32>
    %342 = arith.truncf %341 : vector<4x64xf32> to vector<4x64xbf16>
    %c20_308 = arith.constant 20 : index
    %c448_309 = arith.constant 448 : index
    %343 = vector.load %arg16[%c20_308, %c448_309] : memref<32x576xbf16, #tpu.memory_space<vmem>>, vector<4x64xbf16>
    tpu.vector_store %arg16[%c20_308, %c448_309], %342 {strides = array<i32>} : memref<32x576xbf16, #tpu.memory_space<vmem>>, vector<4x64xbf16>,
    %c172_310 = arith.constant 172 : index
    %c0_311 = arith.constant 0 : index
    %344 = tpu.strided_load %arg13[%c172_310, %c0_311] {strides = array<i32: 2, 1>} : memref<222x64xf32, #tpu.memory_space<vmem>>, vector<4x64xf32>
    %345 = arith.truncf %344 : vector<4x64xf32> to vector<4x64xbf16>
    %c24_312 = arith.constant 24 : index
    %c448_313 = arith.constant 448 : index
    %346 = vector.load %arg16[%c24_312, %c448_313] : memref<32x576xbf16, #tpu.memory_space<vmem>>, vector<4x64xbf16>
    tpu.vector_store %arg16[%c24_312, %c448_313], %345 {strides = array<i32>} : memref<32x576xbf16, #tpu.memory_space<vmem>>, vector<4x64xbf16>,
    %c192_314 = arith.constant 192 : index
    %c0_315 = arith.constant 0 : index
    %347 = tpu.strided_load %arg13[%c192_314, %c0_315] {strides = array<i32: 2, 1>} : memref<222x64xf32, #tpu.memory_space<vmem>>, vector<4x64xf32>
    %348 = arith.truncf %347 : vector<4x64xf32> to vector<4x64xbf16>
    %c28_316 = arith.constant 28 : index
    %c448_317 = arith.constant 448 : index
    %349 = vector.load %arg16[%c28_316, %c448_317] : memref<32x576xbf16, #tpu.memory_space<vmem>>, vector<4x64xbf16>
    tpu.vector_store %arg16[%c28_316, %c448_317], %348 {strides = array<i32>} : memref<32x576xbf16, #tpu.memory_space<vmem>>, vector<4x64xbf16>,
    %c33_318 = arith.constant 33 : index
    %c0_319 = arith.constant 0 : index
    %350 = tpu.strided_load %arg13[%c33_318, %c0_319] {strides = array<i32: 2, 1>} : memref<222x64xf32, #tpu.memory_space<vmem>>, vector<4x64xf32>
    %351 = arith.truncf %350 : vector<4x64xf32> to vector<4x64xbf16>
    %c0_320 = arith.constant 0 : index
    %c512_321 = arith.constant 512 : index
    %352 = vector.load %arg16[%c0_320, %c512_321] : memref<32x576xbf16, #tpu.memory_space<vmem>>, vector<4x64xbf16>
    tpu.vector_store %arg16[%c0_320, %c512_321], %351 {strides = array<i32>} : memref<32x576xbf16, #tpu.memory_space<vmem>>, vector<4x64xbf16>,
    %c53_322 = arith.constant 53 : index
    %c0_323 = arith.constant 0 : index
    %353 = tpu.strided_load %arg13[%c53_322, %c0_323] {strides = array<i32: 2, 1>} : memref<222x64xf32, #tpu.memory_space<vmem>>, vector<4x64xf32>
    %354 = arith.truncf %353 : vector<4x64xf32> to vector<4x64xbf16>
    %c4_324 = arith.constant 4 : index
    %c512_325 = arith.constant 512 : index
    %355 = vector.load %arg16[%c4_324, %c512_325] : memref<32x576xbf16, #tpu.memory_space<vmem>>, vector<4x64xbf16>
    tpu.vector_store %arg16[%c4_324, %c512_325], %354 {strides = array<i32>} : memref<32x576xbf16, #tpu.memory_space<vmem>>, vector<4x64xbf16>,
    %c73_326 = arith.constant 73 : index
    %c0_327 = arith.constant 0 : index
    %356 = tpu.strided_load %arg13[%c73_326, %c0_327] {strides = array<i32: 2, 1>} : memref<222x64xf32, #tpu.memory_space<vmem>>, vector<4x64xf32>
    %357 = arith.truncf %356 : vector<4x64xf32> to vector<4x64xbf16>
    %c8_328 = arith.constant 8 : index
    %c512_329 = arith.constant 512 : index
    %358 = vector.load %arg16[%c8_328, %c512_329] : memref<32x576xbf16, #tpu.memory_space<vmem>>, vector<4x64xbf16>
    tpu.vector_store %arg16[%c8_328, %c512_329], %357 {strides = array<i32>} : memref<32x576xbf16, #tpu.memory_space<vmem>>, vector<4x64xbf16>,
    %c93 = arith.constant 93 : index
    %c0_330 = arith.constant 0 : index
    %359 = tpu.strided_load %arg13[%c93, %c0_330] {strides = array<i32: 2, 1>} : memref<222x64xf32, #tpu.memory_space<vmem>>, vector<4x64xf32>
    %360 = arith.truncf %359 : vector<4x64xf32> to vector<4x64xbf16>
    %c12_331 = arith.constant 12 : index
    %c512_332 = arith.constant 512 : index
    %361 = vector.load %arg16[%c12_331, %c512_332] : memref<32x576xbf16, #tpu.memory_space<vmem>>, vector<4x64xbf16>
    tpu.vector_store %arg16[%c12_331, %c512_332], %360 {strides = array<i32>} : memref<32x576xbf16, #tpu.memory_space<vmem>>, vector<4x64xbf16>,
    %c133_333 = arith.constant 133 : index
    %c0_334 = arith.constant 0 : index
    %362 = tpu.strided_load %arg13[%c133_333, %c0_334] {strides = array<i32: 2, 1>} : memref<222x64xf32, #tpu.memory_space<vmem>>, vector<4x64xf32>
    %363 = arith.truncf %362 : vector<4x64xf32> to vector<4x64xbf16>
    %c16_335 = arith.constant 16 : index
    %c512_336 = arith.constant 512 : index
    %364 = vector.load %arg16[%c16_335, %c512_336] : memref<32x576xbf16, #tpu.memory_space<vmem>>, vector<4x64xbf16>
    tpu.vector_store %arg16[%c16_335, %c512_336], %363 {strides = array<i32>} : memref<32x576xbf16, #tpu.memory_space<vmem>>, vector<4x64xbf16>,
    %c153_337 = arith.constant 153 : index
    %c0_338 = arith.constant 0 : index
    %365 = tpu.strided_load %arg13[%c153_337, %c0_338] {strides = array<i32: 2, 1>} : memref<222x64xf32, #tpu.memory_space<vmem>>, vector<4x64xf32>
    %366 = arith.truncf %365 : vector<4x64xf32> to vector<4x64xbf16>
    %c20_339 = arith.constant 20 : index
    %c512_340 = arith.constant 512 : index
    %367 = vector.load %arg16[%c20_339, %c512_340] : memref<32x576xbf16, #tpu.memory_space<vmem>>, vector<4x64xbf16>
    tpu.vector_store %arg16[%c20_339, %c512_340], %366 {strides = array<i32>} : memref<32x576xbf16, #tpu.memory_space<vmem>>, vector<4x64xbf16>,
    %c173_341 = arith.constant 173 : index
    %c0_342 = arith.constant 0 : index
    %368 = tpu.strided_load %arg13[%c173_341, %c0_342] {strides = array<i32: 2, 1>} : memref<222x64xf32, #tpu.memory_space<vmem>>, vector<4x64xf32>
    %369 = arith.truncf %368 : vector<4x64xf32> to vector<4x64xbf16>
    %c24_343 = arith.constant 24 : index
    %c512_344 = arith.constant 512 : index
    %370 = vector.load %arg16[%c24_343, %c512_344] : memref<32x576xbf16, #tpu.memory_space<vmem>>, vector<4x64xbf16>
    tpu.vector_store %arg16[%c24_343, %c512_344], %369 {strides = array<i32>} : memref<32x576xbf16, #tpu.memory_space<vmem>>, vector<4x64xbf16>,
    %c193 = arith.constant 193 : index
    %c0_345 = arith.constant 0 : index
    %371 = tpu.strided_load %arg13[%c193, %c0_345] {strides = array<i32: 2, 1>} : memref<222x64xf32, #tpu.memory_space<vmem>>, vector<4x64xf32>
    %372 = arith.truncf %371 : vector<4x64xf32> to vector<4x64xbf16>
    %c28_346 = arith.constant 28 : index
    %c512_347 = arith.constant 512 : index
    %373 = vector.load %arg16[%c28_346, %c512_347] : memref<32x576xbf16, #tpu.memory_space<vmem>>, vector<4x64xbf16>
    tpu.vector_store %arg16[%c28_346, %c512_347], %372 {strides = array<i32>} : memref<32x576xbf16, #tpu.memory_space<vmem>>, vector<4x64xbf16>,
    %cst_348 = arith.constant 1.000000e+00 : f32
    %374 = vector.broadcast %cst_348 : f32 to vector<1x32xf32>
    %c0_349 = arith.constant 0 : index
    %c0_350 = arith.constant 0 : index
    %375 = vector.load %arg16[%c0_349, %c0_350] : memref<32x576xbf16, #tpu.memory_space<vmem>>, vector<32x576xbf16>
    %c0_351 = arith.constant 0 : index
    %c0_352 = arith.constant 0 : index
    %376 = vector.load %arg4[%c0_351, %c0_352] : memref<576x128xbf16, #tpu.memory_space<vmem>>, vector<576x128xbf16>
    %cst_353 = arith.constant dense<0.000000e+00> : vector<32x128xf32>
    %377 = tpu.matmul %375, %376, %cst_353 {dimension_numbers = #tpu.dot_dimension_numbers<[1], [0], [0], [1], [0, 0, 1, 1], [], []>} : vector<32x576xbf16>, vector<576x128xbf16>, vector<32x128xf32> -> vector<32x128xf32>
    %c0_354 = arith.constant 0 : index
    %c0_355 = arith.constant 0 : index
    %378 = vector.load %arg8[%c0_354, %c0_355] : memref<2x384xf32, #tpu.memory_space<vmem>>, vector<2x128xf32>
    %cst_356 = arith.constant dense<0.000000e+00> : vector<1x128xf32>
    %379 = tpu.matmul %374, %377, %cst_356 {dimension_numbers = #tpu.dot_dimension_numbers<[1], [0], [0], [1], [0, 0, 1, 1], [], []>} : vector<1x32xf32>, vector<32x128xf32>, vector<1x128xf32> -> vector<1x128xf32>
    %380 = arith.mulf %377, %377 : vector<32x128xf32>
    %cst_357 = arith.constant dense<0.000000e+00> : vector<1x128xf32>
    %381 = tpu.matmul %374, %380, %cst_357 {dimension_numbers = #tpu.dot_dimension_numbers<[1], [0], [0], [1], [0, 0, 1, 1], [], []>} : vector<1x32xf32>, vector<32x128xf32>, vector<1x128xf32> -> vector<1x128xf32>
    %cst_358 = arith.constant 3.125000e-02 : f32
    %382 = vector.broadcast %cst_358 : f32 to vector<1x128xf32>
    %383 = arith.mulf %379, %382 : vector<1x128xf32>
    %cst_359 = arith.constant 3.125000e-02 : f32
    %384 = vector.broadcast %cst_359 : f32 to vector<1x128xf32>
    %385 = arith.mulf %381, %384 : vector<1x128xf32>
    %386 = arith.mulf %383, %383 : vector<1x128xf32>
    %387 = arith.subf %385, %386 : vector<1x128xf32>
    %cst_360 = arith.constant 0.000000e+00 : f32
    %388 = vector.broadcast %cst_360 : f32 to vector<1x128xf32>
    %389 = arith.maximumf %387, %388 : vector<1x128xf32>
    %390 = vector.extract_strided_slice %378 {offsets = [0, 0], sizes = [1, 128], strides = [1, 1]} : vector<2x128xf32> to vector<1x128xf32>
    %cst_361 = arith.constant 9.99999974E-6 : f32
    %391 = vector.broadcast %cst_361 : f32 to vector<1x128xf32>
    %392 = arith.addf %389, %391 : vector<1x128xf32>
    %393 = math.rsqrt %392 : vector<1x128xf32>
    %394 = arith.mulf %390, %393 : vector<1x128xf32>
    %395 = vector.extract_strided_slice %378 {offsets = [1, 0], sizes = [1, 128], strides = [1, 1]} : vector<2x128xf32> to vector<1x128xf32>
    %396 = arith.mulf %383, %394 : vector<1x128xf32>
    %397 = arith.subf %395, %396 : vector<1x128xf32>
    %398 = vector.broadcast %394 : vector<1x128xf32> to vector<32x128xf32>
    %399 = arith.mulf %377, %398 : vector<32x128xf32>
    %400 = vector.broadcast %397 : vector<1x128xf32> to vector<32x128xf32>
    %401 = arith.addf %399, %400 : vector<32x128xf32>
    %cst_362 = arith.constant 0.000000e+00 : f32
    %402 = vector.broadcast %cst_362 : f32 to vector<32x128xf32>
    %403 = arith.maximumf %401, %402 : vector<32x128xf32>
    %404 = vector.extract_strided_slice %403 {offsets = [0, 0], sizes = [4, 128], strides = [1, 1]} : vector<32x128xf32> to vector<4x128xf32>
    %c14 = arith.constant 14 : index
    %c0_363 = arith.constant 0 : index
    %405 = vector.load %arg14[%c14, %c0_363] : memref<86x128xf32, #tpu.memory_space<vmem>>, vector<4x128xf32>
    tpu.vector_store %arg14[%c14, %c0_363], %404 {strides = array<i32>} : memref<86x128xf32, #tpu.memory_space<vmem>>, vector<4x128xf32>,
    %406 = vector.extract_strided_slice %403 {offsets = [4, 0], sizes = [4, 128], strides = [1, 1]} : vector<32x128xf32> to vector<4x128xf32>
    %c20_364 = arith.constant 20 : index
    %c0_365 = arith.constant 0 : index
    %407 = vector.load %arg14[%c20_364, %c0_365] : memref<86x128xf32, #tpu.memory_space<vmem>>, vector<4x128xf32>
    tpu.vector_store %arg14[%c20_364, %c0_365], %406 {strides = array<i32>} : memref<86x128xf32, #tpu.memory_space<vmem>>, vector<4x128xf32>,
    %408 = vector.extract_strided_slice %403 {offsets = [8, 0], sizes = [4, 128], strides = [1, 1]} : vector<32x128xf32> to vector<4x128xf32>
    %c26 = arith.constant 26 : index
    %c0_366 = arith.constant 0 : index
    %409 = vector.load %arg14[%c26, %c0_366] : memref<86x128xf32, #tpu.memory_space<vmem>>, vector<4x128xf32>
    tpu.vector_store %arg14[%c26, %c0_366], %408 {strides = array<i32>} : memref<86x128xf32, #tpu.memory_space<vmem>>, vector<4x128xf32>,
    %410 = vector.extract_strided_slice %403 {offsets = [12, 0], sizes = [4, 128], strides = [1, 1]} : vector<32x128xf32> to vector<4x128xf32>
    %c32_367 = arith.constant 32 : index
    %c0_368 = arith.constant 0 : index
    %411 = vector.load %arg14[%c32_367, %c0_368] : memref<86x128xf32, #tpu.memory_space<vmem>>, vector<4x128xf32>
    tpu.vector_store %arg14[%c32_367, %c0_368], %410 {strides = array<i32>} : memref<86x128xf32, #tpu.memory_space<vmem>>, vector<4x128xf32>,
    %412 = vector.extract_strided_slice %403 {offsets = [16, 0], sizes = [4, 128], strides = [1, 1]} : vector<32x128xf32> to vector<4x128xf32>
    %c50 = arith.constant 50 : index
    %c0_369 = arith.constant 0 : index
    %413 = vector.load %arg14[%c50, %c0_369] : memref<86x128xf32, #tpu.memory_space<vmem>>, vector<4x128xf32>
    tpu.vector_store %arg14[%c50, %c0_369], %412 {strides = array<i32>} : memref<86x128xf32, #tpu.memory_space<vmem>>, vector<4x128xf32>,
    %414 = vector.extract_strided_slice %403 {offsets = [20, 0], sizes = [4, 128], strides = [1, 1]} : vector<32x128xf32> to vector<4x128xf32>
    %c56 = arith.constant 56 : index
    %c0_370 = arith.constant 0 : index
    %415 = vector.load %arg14[%c56, %c0_370] : memref<86x128xf32, #tpu.memory_space<vmem>>, vector<4x128xf32>
    tpu.vector_store %arg14[%c56, %c0_370], %414 {strides = array<i32>} : memref<86x128xf32, #tpu.memory_space<vmem>>, vector<4x128xf32>,
    %416 = vector.extract_strided_slice %403 {offsets = [24, 0], sizes = [4, 128], strides = [1, 1]} : vector<32x128xf32> to vector<4x128xf32>
    %c62_371 = arith.constant 62 : index
    %c0_372 = arith.constant 0 : index
    %417 = vector.load %arg14[%c62_371, %c0_372] : memref<86x128xf32, #tpu.memory_space<vmem>>, vector<4x128xf32>
    tpu.vector_store %arg14[%c62_371, %c0_372], %416 {strides = array<i32>} : memref<86x128xf32, #tpu.memory_space<vmem>>, vector<4x128xf32>,
    %418 = vector.extract_strided_slice %403 {offsets = [28, 0], sizes = [4, 128], strides = [1, 1]} : vector<32x128xf32> to vector<4x128xf32>
    %c68 = arith.constant 68 : index
    %c0_373 = arith.constant 0 : index
    %419 = vector.load %arg14[%c68, %c0_373] : memref<86x128xf32, #tpu.memory_space<vmem>>, vector<4x128xf32>
    tpu.vector_store %arg14[%c68, %c0_373], %418 {strides = array<i32>} : memref<86x128xf32, #tpu.memory_space<vmem>>, vector<4x128xf32>,
    %c0_374 = arith.constant 0 : index
    %c0_375 = arith.constant 0 : index
    %420 = vector.load %arg14[%c0_374, %c0_375] : memref<86x128xf32, #tpu.memory_space<vmem>>, vector<72x128xf32>
    %421 = arith.truncf %420 : vector<72x128xf32> to vector<72x128xbf16>
    %c0_376 = arith.constant 0 : index
    %c0_377 = arith.constant 0 : index
    %422 = vector.load %arg17[%c0_376, %c0_377] : memref<72x1152xbf16, #tpu.memory_space<vmem>>, vector<72x128xbf16>
    tpu.vector_store %arg17[%c0_376, %c0_377], %421 {strides = array<i32>} : memref<72x1152xbf16, #tpu.memory_space<vmem>>, vector<72x128xbf16>,
    %c1_378 = arith.constant 1 : index
    %c0_379 = arith.constant 0 : index
    %423 = vector.load %arg14[%c1_378, %c0_379] : memref<86x128xf32, #tpu.memory_space<vmem>>, vector<72x128xf32>
    %424 = arith.truncf %423 : vector<72x128xf32> to vector<72x128xbf16>
    %c0_380 = arith.constant 0 : index
    %c128_381 = arith.constant 128 : index
    %425 = vector.load %arg17[%c0_380, %c128_381] : memref<72x1152xbf16, #tpu.memory_space<vmem>>, vector<72x128xbf16>
    tpu.vector_store %arg17[%c0_380, %c128_381], %424 {strides = array<i32>} : memref<72x1152xbf16, #tpu.memory_space<vmem>>, vector<72x128xbf16>,
    %c2_382 = arith.constant 2 : index
    %c0_383 = arith.constant 0 : index
    %426 = vector.load %arg14[%c2_382, %c0_383] : memref<86x128xf32, #tpu.memory_space<vmem>>, vector<72x128xf32>
    %427 = arith.truncf %426 : vector<72x128xf32> to vector<72x128xbf16>
    %c0_384 = arith.constant 0 : index
    %c256_385 = arith.constant 256 : index
    %428 = vector.load %arg17[%c0_384, %c256_385] : memref<72x1152xbf16, #tpu.memory_space<vmem>>, vector<72x128xbf16>
    tpu.vector_store %arg17[%c0_384, %c256_385], %427 {strides = array<i32>} : memref<72x1152xbf16, #tpu.memory_space<vmem>>, vector<72x128xbf16>,
    %c6 = arith.constant 6 : index
    %c0_386 = arith.constant 0 : index
    %429 = vector.load %arg14[%c6, %c0_386] : memref<86x128xf32, #tpu.memory_space<vmem>>, vector<72x128xf32>
    %430 = arith.truncf %429 : vector<72x128xf32> to vector<72x128xbf16>
    %c0_387 = arith.constant 0 : index
    %c384_388 = arith.constant 384 : index
    %431 = vector.load %arg17[%c0_387, %c384_388] : memref<72x1152xbf16, #tpu.memory_space<vmem>>, vector<72x128xbf16>
    tpu.vector_store %arg17[%c0_387, %c384_388], %430 {strides = array<i32>} : memref<72x1152xbf16, #tpu.memory_space<vmem>>, vector<72x128xbf16>,
    %c7 = arith.constant 7 : index
    %c0_389 = arith.constant 0 : index
    %432 = vector.load %arg14[%c7, %c0_389] : memref<86x128xf32, #tpu.memory_space<vmem>>, vector<72x128xf32>
    %433 = arith.truncf %432 : vector<72x128xf32> to vector<72x128xbf16>
    %c0_390 = arith.constant 0 : index
    %c512_391 = arith.constant 512 : index
    %434 = vector.load %arg17[%c0_390, %c512_391] : memref<72x1152xbf16, #tpu.memory_space<vmem>>, vector<72x128xbf16>
    tpu.vector_store %arg17[%c0_390, %c512_391], %433 {strides = array<i32>} : memref<72x1152xbf16, #tpu.memory_space<vmem>>, vector<72x128xbf16>,
    %c8_392 = arith.constant 8 : index
    %c0_393 = arith.constant 0 : index
    %435 = vector.load %arg14[%c8_392, %c0_393] : memref<86x128xf32, #tpu.memory_space<vmem>>, vector<72x128xf32>
    %436 = arith.truncf %435 : vector<72x128xf32> to vector<72x128xbf16>
    %c0_394 = arith.constant 0 : index
    %c640 = arith.constant 640 : index
    %437 = vector.load %arg17[%c0_394, %c640] : memref<72x1152xbf16, #tpu.memory_space<vmem>>, vector<72x128xbf16>
    tpu.vector_store %arg17[%c0_394, %c640], %436 {strides = array<i32>} : memref<72x1152xbf16, #tpu.memory_space<vmem>>, vector<72x128xbf16>,
    %c12_395 = arith.constant 12 : index
    %c0_396 = arith.constant 0 : index
    %438 = vector.load %arg14[%c12_395, %c0_396] : memref<86x128xf32, #tpu.memory_space<vmem>>, vector<72x128xf32>
    %439 = arith.truncf %438 : vector<72x128xf32> to vector<72x128xbf16>
    %c0_397 = arith.constant 0 : index
    %c768 = arith.constant 768 : index
    %440 = vector.load %arg17[%c0_397, %c768] : memref<72x1152xbf16, #tpu.memory_space<vmem>>, vector<72x128xbf16>
    tpu.vector_store %arg17[%c0_397, %c768], %439 {strides = array<i32>} : memref<72x1152xbf16, #tpu.memory_space<vmem>>, vector<72x128xbf16>,
    %c13_398 = arith.constant 13 : index
    %c0_399 = arith.constant 0 : index
    %441 = vector.load %arg14[%c13_398, %c0_399] : memref<86x128xf32, #tpu.memory_space<vmem>>, vector<72x128xf32>
    %442 = arith.truncf %441 : vector<72x128xf32> to vector<72x128xbf16>
    %c0_400 = arith.constant 0 : index
    %c896 = arith.constant 896 : index
    %443 = vector.load %arg17[%c0_400, %c896] : memref<72x1152xbf16, #tpu.memory_space<vmem>>, vector<72x128xbf16>
    tpu.vector_store %arg17[%c0_400, %c896], %442 {strides = array<i32>} : memref<72x1152xbf16, #tpu.memory_space<vmem>>, vector<72x128xbf16>,
    %c14_401 = arith.constant 14 : index
    %c0_402 = arith.constant 0 : index
    %444 = vector.load %arg14[%c14_401, %c0_402] : memref<86x128xf32, #tpu.memory_space<vmem>>, vector<72x128xf32>
    %445 = arith.truncf %444 : vector<72x128xf32> to vector<72x128xbf16>
    %c0_403 = arith.constant 0 : index
    %c1024 = arith.constant 1024 : index
    %446 = vector.load %arg17[%c0_403, %c1024] : memref<72x1152xbf16, #tpu.memory_space<vmem>>, vector<72x128xbf16>
    tpu.vector_store %arg17[%c0_403, %c1024], %445 {strides = array<i32>} : memref<72x1152xbf16, #tpu.memory_space<vmem>>, vector<72x128xbf16>,
    %c0_404 = arith.constant 0 : index
    %c0_405 = arith.constant 0 : index
    %447 = vector.load %arg17[%c0_404, %c0_405] : memref<72x1152xbf16, #tpu.memory_space<vmem>>, vector<72x1152xbf16>
    %c0_406 = arith.constant 0 : index
    %c0_407 = arith.constant 0 : index
    %448 = vector.load %arg5[%c0_406, %c0_407] : memref<1152x128xbf16, #tpu.memory_space<vmem>>, vector<1152x128xbf16>
    %cst_408 = arith.constant dense<0.000000e+00> : vector<72x128xf32>
    %449 = tpu.matmul %447, %448, %cst_408 {dimension_numbers = #tpu.dot_dimension_numbers<[1], [0], [0], [1], [0, 0, 1, 1], [], []>} : vector<72x1152xbf16>, vector<1152x128xbf16>, vector<72x128xf32> -> vector<72x128xf32>
    %c0_409 = arith.constant 0 : index
    %c128_410 = arith.constant 128 : index
    %450 = vector.load %arg8[%c0_409, %c128_410] : memref<2x384xf32, #tpu.memory_space<vmem>>, vector<2x128xf32>
    %cst_411 = arith.constant dense<0.000000e+00> : vector<1x128xf32>
    %451 = tpu.matmul %1, %449, %cst_411 {dimension_numbers = #tpu.dot_dimension_numbers<[1], [0], [0], [1], [0, 0, 1, 1], [], []>} : vector<1x72xf32>, vector<72x128xf32>, vector<1x128xf32> -> vector<1x128xf32>
    %452 = arith.mulf %449, %449 : vector<72x128xf32>
    %cst_412 = arith.constant dense<0.000000e+00> : vector<1x128xf32>
    %453 = tpu.matmul %1, %452, %cst_412 {dimension_numbers = #tpu.dot_dimension_numbers<[1], [0], [0], [1], [0, 0, 1, 1], [], []>} : vector<1x72xf32>, vector<72x128xf32>, vector<1x128xf32> -> vector<1x128xf32>
    %cst_413 = arith.constant 3.125000e-02 : f32
    %454 = vector.broadcast %cst_413 : f32 to vector<1x128xf32>
    %455 = arith.mulf %451, %454 : vector<1x128xf32>
    %cst_414 = arith.constant 3.125000e-02 : f32
    %456 = vector.broadcast %cst_414 : f32 to vector<1x128xf32>
    %457 = arith.mulf %453, %456 : vector<1x128xf32>
    %458 = arith.mulf %455, %455 : vector<1x128xf32>
    %459 = arith.subf %457, %458 : vector<1x128xf32>
    %cst_415 = arith.constant 0.000000e+00 : f32
    %460 = vector.broadcast %cst_415 : f32 to vector<1x128xf32>
    %461 = arith.maximumf %459, %460 : vector<1x128xf32>
    %462 = vector.extract_strided_slice %450 {offsets = [0, 0], sizes = [1, 128], strides = [1, 1]} : vector<2x128xf32> to vector<1x128xf32>
    %cst_416 = arith.constant 9.99999974E-6 : f32
    %463 = vector.broadcast %cst_416 : f32 to vector<1x128xf32>
    %464 = arith.addf %461, %463 : vector<1x128xf32>
    %465 = math.rsqrt %464 : vector<1x128xf32>
    %466 = arith.mulf %462, %465 : vector<1x128xf32>
    %467 = vector.extract_strided_slice %450 {offsets = [1, 0], sizes = [1, 128], strides = [1, 1]} : vector<2x128xf32> to vector<1x128xf32>
    %468 = arith.mulf %455, %466 : vector<1x128xf32>
    %469 = arith.subf %467, %468 : vector<1x128xf32>
    %470 = vector.broadcast %466 : vector<1x128xf32> to vector<72x128xf32>
    %471 = arith.mulf %449, %470 : vector<72x128xf32>
    %472 = vector.broadcast %469 : vector<1x128xf32> to vector<72x128xf32>
    %473 = arith.addf %471, %472 : vector<72x128xf32>
    %c0_417 = arith.constant 0 : index
    %c256_418 = arith.constant 256 : index
    %474 = vector.load %arg16[%c0_417, %c256_418] : memref<32x576xbf16, #tpu.memory_space<vmem>>, vector<32x64xbf16>
    %c0_419 = arith.constant 0 : index
    %c0_420 = arith.constant 0 : index
    %475 = vector.load %arg6[%c0_419, %c0_420] : memref<256x128xbf16, #tpu.memory_space<vmem>>, vector<64x128xbf16>
    %cst_421 = arith.constant dense<0.000000e+00> : vector<32x128xf32>
    %476 = tpu.matmul %474, %475, %cst_421 {dimension_numbers = #tpu.dot_dimension_numbers<[1], [0], [0], [1], [0, 0, 1, 1], [], []>} : vector<32x64xbf16>, vector<64x128xbf16>, vector<32x128xf32> -> vector<32x128xf32>
    %c0_422 = arith.constant 0 : index
    %c256_423 = arith.constant 256 : index
    %477 = vector.load %arg8[%c0_422, %c256_423] : memref<2x384xf32, #tpu.memory_space<vmem>>, vector<2x128xf32>
    %cst_424 = arith.constant dense<0.000000e+00> : vector<1x128xf32>
    %478 = tpu.matmul %374, %476, %cst_424 {dimension_numbers = #tpu.dot_dimension_numbers<[1], [0], [0], [1], [0, 0, 1, 1], [], []>} : vector<1x32xf32>, vector<32x128xf32>, vector<1x128xf32> -> vector<1x128xf32>
    %479 = arith.mulf %476, %476 : vector<32x128xf32>
    %cst_425 = arith.constant dense<0.000000e+00> : vector<1x128xf32>
    %480 = tpu.matmul %374, %479, %cst_425 {dimension_numbers = #tpu.dot_dimension_numbers<[1], [0], [0], [1], [0, 0, 1, 1], [], []>} : vector<1x32xf32>, vector<32x128xf32>, vector<1x128xf32> -> vector<1x128xf32>
    %cst_426 = arith.constant 3.125000e-02 : f32
    %481 = vector.broadcast %cst_426 : f32 to vector<1x128xf32>
    %482 = arith.mulf %478, %481 : vector<1x128xf32>
    %cst_427 = arith.constant 3.125000e-02 : f32
    %483 = vector.broadcast %cst_427 : f32 to vector<1x128xf32>
    %484 = arith.mulf %480, %483 : vector<1x128xf32>
    %485 = arith.mulf %482, %482 : vector<1x128xf32>
    %486 = arith.subf %484, %485 : vector<1x128xf32>
    %cst_428 = arith.constant 0.000000e+00 : f32
    %487 = vector.broadcast %cst_428 : f32 to vector<1x128xf32>
    %488 = arith.maximumf %486, %487 : vector<1x128xf32>
    %489 = vector.extract_strided_slice %477 {offsets = [0, 0], sizes = [1, 128], strides = [1, 1]} : vector<2x128xf32> to vector<1x128xf32>
    %cst_429 = arith.constant 9.99999974E-6 : f32
    %490 = vector.broadcast %cst_429 : f32 to vector<1x128xf32>
    %491 = arith.addf %488, %490 : vector<1x128xf32>
    %492 = math.rsqrt %491 : vector<1x128xf32>
    %493 = arith.mulf %489, %492 : vector<1x128xf32>
    %494 = vector.extract_strided_slice %477 {offsets = [1, 0], sizes = [1, 128], strides = [1, 1]} : vector<2x128xf32> to vector<1x128xf32>
    %495 = arith.mulf %482, %493 : vector<1x128xf32>
    %496 = arith.subf %494, %495 : vector<1x128xf32>
    %497 = vector.broadcast %493 : vector<1x128xf32> to vector<32x128xf32>
    %498 = arith.mulf %476, %497 : vector<32x128xf32>
    %499 = vector.broadcast %496 : vector<1x128xf32> to vector<32x128xf32>
    %500 = arith.addf %498, %499 : vector<32x128xf32>
    %501 = vector.extract_strided_slice %473 {offsets = [7, 0], sizes = [4, 128], strides = [1, 1]} : vector<72x128xf32> to vector<4x128xf32>
    %502 = vector.extract_strided_slice %473 {offsets = [13, 0], sizes = [4, 128], strides = [1, 1]} : vector<72x128xf32> to vector<4x128xf32>
    %503 = vector.extract_strided_slice %473 {offsets = [19, 0], sizes = [4, 128], strides = [1, 1]} : vector<72x128xf32> to vector<4x128xf32>
    %504 = vector.extract_strided_slice %473 {offsets = [25, 0], sizes = [4, 128], strides = [1, 1]} : vector<72x128xf32> to vector<4x128xf32>
    %505 = vector.extract_strided_slice %473 {offsets = [43, 0], sizes = [4, 128], strides = [1, 1]} : vector<72x128xf32> to vector<4x128xf32>
    %506 = vector.extract_strided_slice %473 {offsets = [49, 0], sizes = [4, 128], strides = [1, 1]} : vector<72x128xf32> to vector<4x128xf32>
    %507 = vector.extract_strided_slice %473 {offsets = [55, 0], sizes = [4, 128], strides = [1, 1]} : vector<72x128xf32> to vector<4x128xf32>
    %508 = vector.extract_strided_slice %473 {offsets = [61, 0], sizes = [4, 128], strides = [1, 1]} : vector<72x128xf32> to vector<4x128xf32>
    %509 = tpu.concatenate %501, %502, %503, %504, %505, %506, %507, %508 in 0 : vector<4x128xf32>, vector<4x128xf32>, vector<4x128xf32>, vector<4x128xf32>, vector<4x128xf32>, vector<4x128xf32>, vector<4x128xf32>, vector<4x128xf32> -> vector<32x128xf32>
    %510 = arith.addf %509, %500 : vector<32x128xf32>
    %cst_430 = arith.constant 0.000000e+00 : f32
    %511 = vector.broadcast %cst_430 : f32 to vector<32x128xf32>
    %512 = arith.maximumf %510, %511 : vector<32x128xf32>
    %513 = arith.truncf %512 : vector<32x128xf32> to vector<32x128xbf16>
    %c64_431 = arith.constant 64 : index
    %c0_432 = arith.constant 0 : index
    %514 = vector.load %arg6[%c64_431, %c0_432] : memref<256x128xbf16, #tpu.memory_space<vmem>>, vector<128x64xbf16>
    %cst_433 = arith.constant dense<0.000000e+00> : vector<32x64xf32>
    %515 = tpu.matmul %513, %514, %cst_433 {dimension_numbers = #tpu.dot_dimension_numbers<[1], [0], [0], [1], [0, 0, 1, 1], [], []>} : vector<32x128xbf16>, vector<128x64xbf16>, vector<32x64xf32> -> vector<32x64xf32>
    %c0_434 = arith.constant 0 : index
    %c0_435 = arith.constant 0 : index
    %516 = vector.load %arg9[%c0_434, %c0_435] : memref<1x192xf32, #tpu.memory_space<vmem>>, vector<1x64xf32>
    %517 = vector.broadcast %516 : vector<1x64xf32> to vector<32x64xf32>
    %518 = arith.addf %515, %517 : vector<32x64xf32>
    %cst_436 = arith.constant 0.000000e+00 : f32
    %519 = vector.broadcast %cst_436 : f32 to vector<32x64xf32>
    %520 = arith.cmpf ogt, %518, %519 : vector<32x64xf32>
    %cst_437 = arith.constant 2.000000e-01 : f32
    %521 = vector.broadcast %cst_437 : f32 to vector<32x64xf32>
    %522 = arith.mulf %521, %518 : vector<32x64xf32>
    %523 = arith.select %520, %518, %522 : vector<32x64xi1>, vector<32x64xf32>
    %524 = arith.truncf %523 : vector<32x64xf32> to vector<32x64xbf16>
    %c192_438 = arith.constant 192 : index
    %c0_439 = arith.constant 0 : index
    %525 = vector.load %arg6[%c192_438, %c0_439] : memref<256x128xbf16, #tpu.memory_space<vmem>>, vector<64x128xbf16>
    %cst_440 = arith.constant dense<0.000000e+00> : vector<32x128xf32>
    %526 = tpu.matmul %524, %525, %cst_440 {dimension_numbers = #tpu.dot_dimension_numbers<[1], [0], [0], [1], [0, 0, 1, 1], [], []>} : vector<32x64xbf16>, vector<64x128xbf16>, vector<32x128xf32> -> vector<32x128xf32>
    %c0_441 = arith.constant 0 : index
    %c64_442 = arith.constant 64 : index
    %527 = vector.load %arg9[%c0_441, %c64_442] : memref<1x192xf32, #tpu.memory_space<vmem>>, vector<1x128xf32>
    %528 = vector.broadcast %527 : vector<1x128xf32> to vector<32x128xf32>
    %529 = arith.addf %526, %528 : vector<32x128xf32>
    %c0_443 = arith.constant 0 : index
    %c0_444 = arith.constant 0 : index
    %530 = vector.load %arg12[%c0_443, %c0_444] : memref<32x128xf32, #tpu.memory_space<vmem>>, vector<32x128xf32>
    tpu.vector_store %arg12[%c0_443, %c0_444], %529 {strides = array<i32>} : memref<32x128xf32, #tpu.memory_space<vmem>>, vector<32x128xf32>,
    return
  }
}

</mosaic_0001>

<bundles_post_ra>
// kernel: rn_bev_forward.1
= control target key start
LH: loop header
LB: loop body
LE: loop exit
PB: predicated region body
PF: predicated region fallthrough
CT: control target
= control target key end

     0   :  { %v13933_v0 = vmov 0   ;;  %vm333_vm0 = vcmask 277504   ;;  %vm373_vm1 = vcmask 1040384   ;;  %v17441_v39 = vmov 0.0|0.0   ;;  %s13936_s21 = smov 64   ;;  %s17428_s1 = inlined_call_operand.vmem [shape: bf16[162,64], index: 1, kind: input, shape index: {}]   ;;  %s17429_s0 = inlined_call_operand.vmem [shape: bf16[200,162], index: 0, kind: input, shape index: {}]   ;;  %s17430_s10 = inlined_call_operand.vmem [shape: f32[2,200], index: 10, kind: input, shape index: {}]   ;;  %s17431_s11 = inlined_call_operand.vmem [shape: f32[200,1], index: 11, kind: input, shape index: {}]   ;;  %s17432_s7 = inlined_call_operand.vmem [shape: f32[2,192], index: 7, kind: input, shape index: {}]   ;;  %s17433_s2 = inlined_call_operand.vmem [shape: bf16[576,64], index: 2, kind: input, shape index: {}]   ;;  %s17434_s3 = inlined_call_operand.vmem [shape: bf16[576,64], index: 3, kind: input, shape index: {}]   ;;  %s17435_s4 = inlined_call_operand.vmem [shape: bf16[576,128], index: 4, kind: input, shape index: {}]   ;;  %s17436_s5 = inlined_call_operand.vmem [shape: bf16[1152,128], index: 5, kind: input, shape index: {}]   ;;  %s17437_s8 = inlined_call_operand.vmem [shape: f32[2,384], index: 8, kind: input, shape index: {}]   ;;  %s17438_s6 = inlined_call_operand.vmem [shape: bf16[256,128], index: 6, kind: input, shape index: {}]   ;;  %s17439_s9 = inlined_call_operand.vmem [shape: f32[1,192], index: 9, kind: input, shape index: {}]   ;;  %s17440_s12 = inlined_call_operand.vmem [shape: f32[32,128], index: 12, kind: output, shape index: {}]  }
   0x1   :  { %377 = vmatprep.subr.bf16.mxu0 %v13933_v0  ;;  %v13486_v1 = vld [vmem:[%s17428_s1] sm:$0xff]   ;;  %13484 = vset.pattern.permute.xlu0 %v13933_v0  ;;  %v13487_v2 = vld [vmem:[%s17428_s1 + $0x8] sm:$0xff]   ;;  %v13488_v3 = vld [vmem:[%s17428_s1 + $0x10] sm:$0xff]   ;;  %v515_v41 = vlaneseq  ;;  %v13935_v46 = vmov 0.0   ;;  %vm524_vm2 = vcmask 588800   ;;  %vm69_vm3 = vcmask 523264  }
   0x2   :  { %13485 = vset.pattern.permute.xlu1 %v13933_v0  ;;  %378 = vmatpush1.bf16.msra.mxu0 %v13486_v1  ;;  %v13489_v4 = vld [vmem:[%s17428_s1 + $0x18] sm:$0xff]   ;;  %v13499_v5 = vld [vmem:[%s17429_s0 + $0x4] ss:$8 sps:$4 sm:$0xff]   ;;  %v13492_v8 = vld [vmem:[%s17428_s1 + $0x30] sm:$0xff]   ;;  %99 = vst [vmem:[#allocation3] sm:$0xff] %v13935_v46  ;;  %vm1298_vm4 = vcmask 1043968  }
   0x3   :  { %379 = vmatprep.subr.bf16.mxu0 %v13933_v0  ;;  %10693 = vmatprep.mubr.msk.bf16.mxu0 %vm333_vm0, %v13499_v5  ;;  %v13490_v6 = vld [vmem:[%s17428_s1 + $0x20] sm:$0xff]   ;;  %v13491_v7 = vld [vmem:[%s17428_s1 + $0x28] sm:$0xff]   ;;  %v13493_v9 = vld [vmem:[%s17428_s1 + $0x38] sm:$0xff]   ;;  %v14128_v42 = vshrl.u32 %v515_v41, 7  ;;  %100 = vst [vmem:[#allocation3 + $0x8] sm:$0xff] %v13935_v46  ;;  %vm1096_vm5 = vcmask 519168  }
   0x4   :  { %v13494_v10 = vld [vmem:[%s17428_s1 + $0x40] sm:$0xff]   ;;  %v13495_v11 = vld [vmem:[%s17428_s1 + $0x48] sm:$0xff]   ;;  %v13496_v12 = vld [vmem:[%s17428_s1 + $0x50] ss:$0 sps:$4 sm:$0x11]   ;;  %13213 = vmatprep.subr.bf16.mxu1 %v17441_v39  ;;  %101 = vst [vmem:[#allocation3 + $0x10] sm:$0xff] %v13935_v46 }
   0x5   :  { %v375_v13 = vsel %vm373_vm1, %v13496_v12, 0  ;;  %v13497_v14 = vld [vmem:[%s17429_s0] ss:$8 sps:$4 sm:$0xff]   ;;  %v13500_v15 = vld [vmem:[%s17429_s0 + $0x14] ss:$8 sps:$4 sm:$0xff]   ;;  %v14131_v43 = vsub.s32 1, %v14128_v42 }
   0x6   :  { %380 = vmatpush1.bf16.msra.mxu0 %v13487_v2  ;;  %v13502_v16 = vld [vmem:[%s17429_s0 + $0x10] ss:$8 sps:$4 sm:$0xff]   ;;  %v13503_v17 = vld [vmem:[%s17429_s0 + $0x24] ss:$8 sps:$4 sm:$0xff]   ;;  %v13505_v18 = vld [vmem:[%s17429_s0 + $0x20] ss:$8 sps:$4 sm:$0xff]  }
   0x7   :  { %381 = vmatprep.subr.bf16.mxu0 %v13933_v0  ;;  %v13506_v19 = vld [vmem:[%s17429_s0 + $0x34] ss:$8 sps:$4 sm:$0xff]   ;;  %v13508_v20 = vld [vmem:[%s17429_s0 + $0x30] ss:$8 sps:$4 sm:$0xff]   ;;  %v13509_v21 = vld [vmem:[%s17429_s0 + $0x44] ss:$8 sps:$4 sm:$0xff]  }
   0x8   :  { %v13511_v22 = vld [vmem:[%s17429_s0 + $0x40] ss:$8 sps:$4 sm:$0xff]   ;;  %v13512_v23 = vld [vmem:[%s17429_s0 + $0x54] ss:$8 sps:$4 sm:$0xff]   ;;  %v13514_v24 = vld [vmem:[%s17429_s0 + $0x50] ss:$8 sps:$4 sm:$0xff]  }
   0x9   :  { %v13515_v25 = vld [vmem:[%s17429_s0 + $0x64] ss:$8 sps:$4 sm:$0xff]   ;;  %v13517_v26 = vld [vmem:[%s17429_s0 + $0x60] ss:$8 sps:$4 sm:$0xff]   ;;  %v13518_v27 = vld [vmem:[%s17429_s0 + $0x74] ss:$8 sps:$4 sm:$0xff]  }
   0xa   :  { %382 = vmatpush1.bf16.msra.mxu0 %v13488_v3  ;;  %v13520_v28 = vld [vmem:[%s17429_s0 + $0x70] ss:$8 sps:$4 sm:$0xff]   ;;  %v13521_v29 = vld [vmem:[%s17429_s0 + $0x84] ss:$8 sps:$4 sm:$0xff]   ;;  %v13523_v30 = vld [vmem:[%s17429_s0 + $0x80] ss:$8 sps:$4 sm:$0xff]  }
   0xb   :  { %383 = vmatprep.subr.bf16.mxu0 %v13933_v0  ;;  %v13524_v31 = vld [vmem:[%s17429_s0 + $0x94] ss:$8 sps:$4 sm:$0xff]   ;;  %v13526_v32 = vld [vmem:[%s17429_s0 + $0x90] ss:$8 sps:$4 sm:$0xff]   ;;  %v13527_v33 = vld [vmem:[%s17429_s0 + $0xa4] ss:$8 sps:$4 sm:$0xff]  }
   0xc   :  { %v13529_v34 = vld [vmem:[%s17429_s0 + $0xa0] ss:$8 sps:$4 sm:$0xff]   ;;  %v13530_v35 = vld [vmem:[%s17429_s0 + $0xb4] ss:$8 sps:$4 sm:$0xff]   ;;  %v13532_v37 = vld [vmem:[%s17429_s0 + $0xb0] ss:$8 sps:$4 sm:$0xff]  }
   0xd   :  { %v134_v36 = vld [vmem:[%s17429_s0 + $0xc0] sm:$0xff]  ;;  %17493 = vst [vmem:[#allocation7_spill] sm:$0xff] %v14131_v43  ;;  %102 = vst [vmem:[#allocation3 + $0x18] sm:$0xff] %v13935_v46  ;;  %vm97_vm6 = vcmask 521216   ;;  %vm13938_vm7 = vmmov 0   ;;  %vm7039_vm8 = vcmask 517120  }
   0xe   :  { %384 = vmatpush1.bf16.msra.mxu0 %v13489_v4  ;;  %v10681_v38 = vcombine.high %v134_v36, %v134_v36  ;;  %v10680_v40 = vcombine.low %v134_v36, %v134_v36  ;;  %v14136_v44 = vld [vmem:[%s17430_s10] ss:$2 sm:$0x3]  ;;  %103 = vst [vmem:[#allocation3 + $0x20] sm:$0xff] %v13935_v46  ;;  %104 = vst [vmem:[#allocation3 + $0x28] sm:$0xff] %v13935_v46  ;;  %vm7047_vm9 = vcmask 519170  }
   0xf   :  { %385 = vmatprep.subr.bf16.mxu0 %v13933_v0  ;;  %v14140_v45 = vrot.slane %v14136_v44, %v14131_v43  ;;  %105 = vst [vmem:[#allocation3 + $0x30] sm:$0xff] %v13935_v46  ;;  %106 = vst [vmem:[#allocation3 + $0x38] sm:$0xff] %v13935_v46  ;;  %vm7063_vm10 = vcmask 523270   ;;  %vm7055_vm11 = vcmask 521220   ;;  %vm7097_vm12 = vcmask 1041920  }
  0x10   :  { %107 = vst [vmem:[#allocation3 + $0x40] sm:$0xff] %v13935_v46  ;;  %108 = vst [vmem:[#allocation3 + $0x48] sm:$0xff] %v13935_v46  ;;  %vm7107_vm13 = vcmask 1043970   ;;  %vm7127_vm14 = vcmask 1048070   ;;  %vm7117_vm15 = vcmask 1046020  }
  0x11   :  { %109 = vst [vmem:[#allocation3 + $0x50] sm:$0x3f] %v13935_v46  ;;  %10706 = vmatprep.mubr.msk.f32.mxu1 %vm524_vm2, %v14140_v45  ;;  %70 = vst.msk [vmem:[#allocation2] sm:$0xff] %vm69_vm3, %v13935_v46 }
  0x12   :  { %386 = vmatpush1.bf16.msra.mxu0 %v13490_v6  ;;  %71 = vst.msk [vmem:[#allocation2 + $0x8] sm:$0xff] %vm69_vm3, %v13935_v46  ;;  %72 = vst.msk [vmem:[#allocation2 + $0x10] sm:$0xff] %vm69_vm3, %v13935_v46 }
  0x13   :  { %387 = vmatprep.subr.bf16.mxu0 %v13933_v0  ;;  %73 = vst.msk [vmem:[#allocation2 + $0x18] sm:$0xff] %vm69_vm3, %v13935_v46  ;;  %74 = vst.msk [vmem:[#allocation2 + $0x20] sm:$0xff] %vm69_vm3, %v13935_v46 }
  0x14   :  { %75 = vst.msk [vmem:[#allocation2 + $0x28] sm:$0xff] %vm69_vm3, %v13935_v46  ;;  %76 = vst.msk [vmem:[#allocation2 + $0x30] sm:$0xff] %vm69_vm3, %v13935_v46 }
  0x15   :  { %77 = vst.msk [vmem:[#allocation2 + $0x38] sm:$0xff] %vm69_vm3, %v13935_v46  ;;  %78 = vst.msk [vmem:[#allocation2 + $0x40] sm:$0xff] %vm69_vm3, %v13935_v46 }
  0x16   :  { %388 = vmatpush1.bf16.msra.mxu0 %v13491_v7  ;;  %v44_v7 = vld [vmem:[%s17431_s11] sm:$0xff]  ;;  %79 = vst.msk [vmem:[#allocation2 + $0x48] sm:$0xff] %vm69_vm3, %v13935_v46  ;;  %80 = vst.msk [vmem:[#allocation2 + $0x50] sm:$0xff] %vm69_vm3, %v13935_v46 }
  0x17   :  { %389 = vmatprep.subr.bf16.mxu0 %v13933_v0  ;;  %81 = vst.msk [vmem:[#allocation2 + $0x58] sm:$0xff] %vm69_vm3, %v13935_v46  ;;  %82 = vst.msk [vmem:[#allocation2 + $0x60] sm:$0xff] %vm69_vm3, %v13935_v46  ;;  %797 = vperm.xlu0 %13484, %v44_v7  }
  0x18   :  { %83 = vst.msk [vmem:[#allocation2 + $0x68] sm:$0xff] %vm69_vm3, %v13935_v46  ;;  %84 = vst.msk [vmem:[#allocation2 + $0x70] sm:$0xff] %vm69_vm3, %v13935_v46 }
  0x19   :  { %85 = vst.msk [vmem:[#allocation2 + $0x78] sm:$0xff] %vm69_vm3, %v13935_v46  ;;  %86 = vst.msk [vmem:[#allocation2 + $0x80] sm:$0xff] %vm69_vm3, %v13935_v46 }
  0x1a   :  { %390 = vmatpush1.bf16.msra.mxu0 %v13492_v8  ;;  %v46_v8 = vld [vmem:[%s17431_s11 + $0x10] sm:$0xff]  ;;  %87 = vst.msk [vmem:[#allocation2 + $0x88] sm:$0xff] %vm69_vm3, %v13935_v46  ;;  %88 = vst.msk [vmem:[#allocation2 + $0x90] sm:$0xff] %vm69_vm3, %v13935_v46 }
  0x1b   :  { %391 = vmatprep.subr.bf16.mxu0 %v13933_v0  ;;  %89 = vst.msk [vmem:[#allocation2 + $0x98] sm:$0xff] %vm69_vm3, %v13935_v46  ;;  %90 = vst.msk [vmem:[#allocation2 + $0xa0] sm:$0xff] %vm69_vm3, %v13935_v46  ;;  %807 = vperm.xlu1 %13485, %v46_v8  }
  0x1c   :  { %91 = vst.msk [vmem:[#allocation2 + $0xa8] sm:$0xff] %vm69_vm3, %v13935_v46  ;;  %92 = vst.msk [vmem:[#allocation2 + $0xb0] sm:$0xff] %vm69_vm3, %v13935_v46 }
  0x1d   :  { %93 = vst.msk [vmem:[#allocation2 + $0xb8] sm:$0xff] %vm69_vm3, %v13935_v46  ;;  %94 = vst.msk [vmem:[#allocation2 + $0xc0] sm:$0xff] %vm69_vm3, %v13935_v46 }
  0x1e   :  { %392 = vmatpush1.bf16.msra.mxu0 %v13493_v9  ;;  %95 = vst.msk [vmem:[#allocation2 + $0xc8] sm:$0xff] %vm69_vm3, %v13935_v46  ;;  %96 = vst.msk [vmem:[#allocation2 + $0xd0] sm:$0xff] %vm69_vm3, %v13935_v46  ;;  %v45_v9 = vld [vmem:[%s17431_s11 + $0x8] sm:$0xff] }
  0x1f   :  { %393 = vmatprep.subr.bf16.mxu0 %v13933_v0  ;;  %802 = vperm.xlu0 %13484, %v45_v9  }
  0x22   :  { %394 = vmatpush1.bf16.msra.mxu0 %v13494_v10 }
  0x23   :  { %395 = vmatprep.subr.bf16.mxu0 %v13933_v0 }
  0x26   :  { %396 = vmatpush1.bf16.msra.mxu0 %v13495_v11  ;;  %v47_v11 = vld [vmem:[%s17431_s11 + $0x18] sm:$0xff] }
  0x27   :  { %397 = vmatprep.subr.bf16.mxu0 %v13933_v0  ;;  %812 = vperm.xlu1 %13485, %v47_v11  }
  0x2a   :  { %398 = vmatpush1.bf16.msra.mxu0 %v375_v13 }
  0x2d   :  { %410 = vmatmul.mubr.bf16.vlgmr.msra.gmra.mrb[0].mxu0 %v13497_v14 }
  0x2e   :  { %10694 = vmatprep.mubr.msk.bf16.mxu0 %vm333_vm0, %v13500_v15 }
  0x35   :  { %418 = vmatmul.mubr.bf16.gmra.mrb[4].mxu0 %v13502_v16 }
  0x36   :  { %10695 = vmatprep.mubr.msk.bf16.mxu0 %vm333_vm0, %v13503_v17 }
  0x3d   :  { %426 = vmatmul.mubr.bf16.gmra.mrb[8].mxu0 %v13505_v18  ;;  %v48_v18 = vld [vmem:[%s17431_s11 + $0x20] sm:$0xff] }
  0x3e   :  { %10696 = vmatprep.mubr.msk.bf16.mxu0 %vm333_vm0, %v13506_v19  ;;  %v49_v19 = vld [vmem:[%s17431_s11 + $0x28] sm:$0xff]  ;;  %817 = vperm.xlu0 %13484, %v48_v18   ;;  %v62_v18 = vld [vmem:[%s17431_s11 + $0x90] sm:$0xff] }
  0x3f   :  { %822 = vperm.xlu1 %13485, %v49_v19   ;;  %v1122_v19 = vld [vmem:[#allocation2 + $0x1] sm:$0xff] }
  0x45   :  { %434 = vmatmul.mubr.bf16.gmra.mrb[12].mxu0 %v13508_v20 }
  0x46   :  { %10697 = vmatprep.mubr.msk.bf16.mxu0 %vm333_vm0, %v13509_v21  ;;  %v50_v21 = vld [vmem:[%s17431_s11 + $0x30] sm:$0xff] }
  0x47   :  { %827 = vperm.xlu0 %13484, %v50_v21  }
  0x4d   :  { %442 = vmatmul.mubr.bf16.gmra.mrb[16].mxu0 %v13511_v22 }
  0x4e   :  { %10698 = vmatprep.mubr.msk.bf16.mxu0 %vm333_vm0, %v13512_v23  ;;  %v51_v23 = vld [vmem:[%s17431_s11 + $0x38] sm:$0xff] }
  0x4f   :  { %832 = vperm.xlu1 %13485, %v51_v23   ;;  %v63_v23 = vld [vmem:[%s17431_s11 + $0x98] sm:$0xff] }
  0x55   :  { %450 = vmatmul.mubr.bf16.gmra.mrb[20].mxu0 %v13514_v24 }
  0x56   :  { %10699 = vmatprep.mubr.msk.bf16.mxu0 %vm333_vm0, %v13515_v25 }
  0x5d   :  { %458 = vmatmul.mubr.bf16.gmra.mrb[24].mxu0 %v13517_v26 }
  0x5e   :  { %10700 = vmatprep.mubr.msk.bf16.mxu0 %vm333_vm0, %v13518_v27 }
  0x65   :  { %466 = vmatmul.mubr.bf16.gmra.mrb[28].mxu0 %v13520_v28 }
  0x66   :  { %10701 = vmatprep.mubr.msk.bf16.mxu0 %vm333_vm0, %v13521_v29 }
  0x6d   :  { %474 = vmatmul.mubr.bf16.gmra.mrb[32].mxu0 %v13523_v30  ;;  %v52_v30 = vld [vmem:[%s17431_s11 + $0x40] sm:$0xff] }
  0x6e   :  { %10702 = vmatprep.mubr.msk.bf16.mxu0 %vm333_vm0, %v13524_v31  ;;  %v53_v31 = vld [vmem:[%s17431_s11 + $0x48] sm:$0xff]  ;;  %837 = vperm.xlu0 %13484, %v52_v30  }
  0x6f   :  { %842 = vperm.xlu1 %13485, %v53_v31  }
  0x75   :  { %482 = vmatmul.mubr.bf16.gmra.mrb[36].mxu0 %v13526_v32 }
  0x76   :  { %10703 = vmatprep.mubr.msk.bf16.mxu0 %vm333_vm0, %v13527_v33  ;;  %v54_v33 = vld [vmem:[%s17431_s11 + $0x50] sm:$0xff] }
  0x77   :  { %847 = vperm.xlu0 %13484, %v54_v33  }
  0x7d   :  { %490 = vmatmul.mubr.bf16.gmra.mrb[40].mxu0 %v13529_v34 }
  0x7e   :  { %10704 = vmatprep.mubr.msk.bf16.mxu0 %vm333_vm0, %v13530_v35  ;;  %v55_v35 = vld [vmem:[%s17431_s11 + $0x58] sm:$0xff] }
  0x7f   :  { %852 = vperm.xlu1 %13485, %v55_v35  }
  0x85   :  { %498 = vmatmul.mubr.bf16.gmra.mrb[44].mxu0 %v13532_v37 }
  0x86   :  { %10705 = vmatprep.mubr.msk.bf16.mxu0 %vm333_vm0, %v10681_v38  ;;  %vm8008_vm0 = vcmask 261120  }
  0x8d   :  { %506 = vmatmul.mubr.bf16.gmra.mrb[48].mxu0 %v10680_v40 }
 0x100   :  { %v14155_v47 = vpop.f32.mrb[0].mxu0 }
 0x101   :  { %v413_v48 = vpop.f32.mrb[1].mxu0  ;;  %v14161_v50 = vmul.f32 %v14155_v47, %v14155_v47 }
 0x102   :  { %v14157_v49 = vpop.f32.mrb[2].mxu0 }
 0x103   :  { %v14165_v51 = vmul.f32 %v14157_v49, %v14157_v49  ;;  %v416_v52 = vpop.f32.mrb[3].mxu0  ;;  %v13214_v53 = vpack.c.bf16 %v14157_v49, %v14155_v47 }
 0x104   :  { %v56_v52 = vld [vmem:[%s17431_s11 + $0x60] sm:$0xff] }
 0x105   :  { %13215 = vmatpush1.bf16.msra.mxu1 %v13214_v53  ;;  %v13250_v54 = vpack.c.bf16 %v14165_v51, %v14161_v50  ;;  %v57_v53 = vld [vmem:[%s17431_s11 + $0x68] sm:$0xff]  ;;  %857 = vperm.xlu0 %13484, %v56_v52  }
 0x106   :  { %13216 = vmatprep.subr.bf16.mxu1 %v17441_v39  ;;  %862 = vperm.xlu1 %13485, %v57_v53   ;;  %v67_v53 = vld [vmem:[%s17431_s11 + $0xb8] sm:$0xff] }
 0x108   :  { %v14172_v55 = vpop.f32.mrb[4].mxu0 }
 0x109   :  { %v421_v56 = vpop.f32.mrb[5].mxu0  ;;  %v14178_v58 = vmul.f32 %v14172_v55, %v14172_v55 }
 0x10a   :  { %v14174_v57 = vpop.f32.mrb[6].mxu0 }
 0x10b   :  { %v14182_v59 = vmul.f32 %v14174_v57, %v14174_v57  ;;  %v424_v60 = vpop.f32.mrb[7].mxu0  ;;  %v13217_v61 = vpack.c.bf16 %v14174_v57, %v14172_v55 }
 0x10c   :  { %v58_v60 = vld [vmem:[%s17431_s11 + $0x70] sm:$0xff] }
 0x10d   :  { %13218 = vmatpush1.bf16.msra.mxu1 %v13217_v61  ;;  %v13253_v62 = vpack.c.bf16 %v14182_v59, %v14178_v58  ;;  %867 = vperm.xlu0 %13484, %v58_v60   ;;  %v14524_v59 = vpop.permute.xlu0 %797 }
 0x10e   :  { %13219 = vmatprep.subr.bf16.mxu1 %v17441_v39  ;;  %17499 = vst [vmem:[#allocation9_spill] sm:$0xff] %v14524_v59 }
 0x110   :  { %v14189_v63 = vpop.f32.mrb[8].mxu0 }
 0x111   :  { %v429_v0 = vpop.f32.mrb[9].mxu0  ;;  %v14195_v2 = vmul.f32 %v14189_v63, %v14189_v63 }
 0x112   :  { %v14191_v1 = vpop.f32.mrb[10].mxu0  ;;  %v59_v0 = vld [vmem:[%s17431_s11 + $0x78] sm:$0xff] }
 0x113   :  { %v14199_v3 = vmul.f32 %v14191_v1, %v14191_v1  ;;  %v432_v4 = vpop.f32.mrb[11].mxu0  ;;  %v13220_v5 = vpack.c.bf16 %v14191_v1, %v14189_v63  ;;  %872 = vperm.xlu1 %13485, %v59_v0  }
 0x115   :  { %13221 = vmatpush1.bf16.msra.mxu1 %v13220_v5  ;;  %v13256_v6 = vpack.c.bf16 %v14199_v3, %v14195_v2 }
 0x116   :  { %13222 = vmatprep.subr.bf16.mxu1 %v17441_v39 }
 0x118   :  { %v14269_v10 = vpop.f32.mrb[12].mxu0 }
 0x119   :  { %v437_v12 = vpop.f32.mrb[13].mxu0  ;;  %v14278_v14 = vmul.f32 %v14269_v10, %v14269_v10 }
 0x11a   :  { %v14274_v13 = vpop.f32.mrb[14].mxu0  ;;  %v60_v12 = vld [vmem:[%s17431_s11 + $0x80] sm:$0xff] }
 0x11b   :  { %v14282_v15 = vmul.f32 %v14274_v13, %v14274_v13  ;;  %v440_v16 = vpop.f32.mrb[15].mxu0  ;;  %v13223_v17 = vpack.c.bf16 %v14274_v13, %v14269_v10  ;;  %877 = vperm.xlu0 %13484, %v60_v12  }
 0x11c   :  { %v61_v16 = vld [vmem:[%s17431_s11 + $0x88] sm:$0xff] }
 0x11d   :  { %13224 = vmatpush1.bf16.msra.mxu1 %v13223_v17  ;;  %v13259_v20 = vpack.c.bf16 %v14282_v15, %v14278_v14  ;;  %882 = vperm.xlu1 %13485, %v61_v16   ;;  %v66_v16 = vld [vmem:[%s17431_s11 + $0xb0] sm:$0xff] }
 0x11e   :  { %13225 = vmatprep.subr.bf16.mxu1 %v17441_v39 }
 0x11f   :  { %887 = vperm.xlu0 %13484, %v62_v18  }
 0x120   :  { %v14298_v22 = vpop.f32.mrb[16].mxu0 }
 0x121   :  { %v445_v24 = vpop.f32.mrb[17].mxu0  ;;  %v14309_v27 = vmul.f32 %v14298_v22, %v14298_v22  ;;  %892 = vperm.xlu1 %13485, %v63_v23  }
 0x122   :  { %v14303_v25 = vpop.f32.mrb[18].mxu0 }
 0x123   :  { %v13226_v26 = vpack.c.bf16 %v14303_v25, %v14298_v22  ;;  %v14313_v28 = vmul.f32 %v14303_v25, %v14303_v25  ;;  %v448_v29 = vpop.f32.mrb[19].mxu0 }
 0x124   :  { %v11678_v29 = vpack.c.bf16 %v1122_v19, %v1122_v19  ;;  %v68_v19 = vld [vmem:[%s17431_s11 + $0xc0] sm:$0xff] }
 0x125   :  { %13227 = vmatpush1.bf16.msra.mxu1 %v13226_v26 }
 0x126   :  { %13228 = vmatprep.subr.bf16.mxu1 %v17441_v39  ;;  %1223 = vrot.lane.b32.xlu0 %v11678_v29, %s13936_s21 }
 0x128   :  { %v14327_v34 = vpop.f32.mrb[20].mxu0 }
 0x129   :  { %v453_v36 = vpop.f32.mrb[21].mxu0  ;;  %v14336_v38 = vmul.f32 %v14327_v34, %v14327_v34 }
 0x12a   :  { %v14332_v37 = vpop.f32.mrb[22].mxu0  ;;  %v65_v36 = vld [vmem:[%s17431_s11 + $0xa8] sm:$0xff] }
 0x12b   :  { %v14340_v40 = vmul.f32 %v14332_v37, %v14332_v37  ;;  %v456_v41 = vpop.f32.mrb[23].mxu0  ;;  %v13229_v48 = vpack.c.bf16 %v14332_v37, %v14327_v34  ;;  %902 = vperm.xlu1 %13485, %v65_v36  }
 0x12d   :  { %13230 = vmatpush1.bf16.msra.mxu1 %v13229_v48  ;;  %v64_v48 = vld [vmem:[%s17431_s11 + $0xa0] sm:$0xff]  ;;  %v17496_v50 = vpack.c.bf16 %v14340_v40, %v14336_v38 }
 0x12e   :  { %13231 = vmatprep.subr.bf16.mxu1 %v17441_v39  ;;  %897 = vperm.xlu0 %13484, %v64_v48  }
 0x12f   :  { %912 = vperm.xlu1 %13485, %v67_v53  }
 0x130   :  { %v14356_v61 = vpop.f32.mrb[24].mxu0 }
 0x131   :  { %v461_v4 = vpop.f32.mrb[25].mxu0  ;;  %v14365_v7 = vmul.f32 %v14356_v61, %v14356_v61 }
 0x132   :  { %v14361_v5 = vpop.f32.mrb[26].mxu0  ;;  %907 = vperm.xlu0 %13484, %v66_v16  }
 0x133   :  { %v13232_v8 = vpack.c.bf16 %v14361_v5, %v14356_v61  ;;  %v14371_v9 = vmul.f32 %v14361_v5, %v14361_v5  ;;  %v464_v11 = vpop.f32.mrb[27].mxu0 }
 0x135   :  { %13233 = vmatpush1.bf16.msra.mxu1 %v13232_v8  ;;  %v17497_v51 = vpack.c.bf16 %v14371_v9, %v14365_v7  ;;  %v14546_v7 = vpop.permute.xlu1 %807 }
 0x136   :  { %13234 = vmatprep.subr.bf16.mxu1 %v17441_v39  ;;  %917 = vperm.xlu0 %13484, %v68_v19  }
 0x138   :  { %v14385_v21 = vpop.f32.mrb[28].mxu0 }
 0x139   :  { %v469_v24 = vpop.f32.mrb[29].mxu0  ;;  %v14394_v30 = vmul.f32 %v14385_v21, %v14385_v21  ;;  %v14548_v9 = vpop.permute.xlu1 %812 }
 0x13a   :  { %v14390_v26 = vpop.f32.mrb[30].mxu0 }
 0x13b   :  { %v13235_v31 = vpack.c.bf16 %v14390_v26, %v14385_v21  ;;  %v14400_v33 = vmul.f32 %v14390_v26, %v14390_v26  ;;  %v472_v35 = vpop.f32.mrb[31].mxu0 }
 0x13d   :  { %13236 = vmatpush1.bf16.msra.mxu1 %v13235_v31 }
 0x13e   :  { %13237 = vmatprep.subr.bf16.mxu1 %v17441_v39 }
 0x140   :  { %v14412_v52 = vpop.f32.mrb[32].mxu0 }
 0x141   :  { %v477_v60 = vpop.f32.mrb[33].mxu0  ;;  %v14421_v4 = vmul.f32 %v14412_v52, %v14412_v52 }
 0x142   :  { %v14417_v0 = vpop.f32.mrb[34].mxu0 }
 0x143   :  { %v13238_v8 = vpack.c.bf16 %v14417_v0, %v14412_v52  ;;  %v14427_v11 = vmul.f32 %v14417_v0, %v14417_v0  ;;  %v480_v12 = vpop.f32.mrb[35].mxu0 }
 0x145   :  { %v13274_v18 = vpack.c.bf16 %v14427_v11, %v14421_v4  ;;  %13239 = vmatpush1.bf16.msra.mxu1 %v13238_v8 }
 0x146   :  { %13240 = vmatprep.subr.bf16.mxu1 %v17441_v39 }
 0x148   :  { %v14438_v23 = vpop.f32.mrb[36].mxu0 }
 0x149   :  { %v485_v24 = vpop.f32.mrb[37].mxu0  ;;  %v615_v31 = vmul.f32 %v14438_v23, %v14438_v23 }
 0x14a   :  { %v14440_v29 = vpop.f32.mrb[38].mxu0 }
 0x14b   :  { %v13241_v35 = vpack.c.bf16 %v14440_v29, %v14438_v23  ;;  %v616_v36 = vmul.f32 %v14440_v29, %v14440_v29  ;;  %v488_v48 = vpop.f32.mrb[39].mxu0 }
 0x14c   :  { %v14465_v48 = vsub.s32 0, %v14128_v42 }
 0x14d   :  { %v13277_v53 = vpack.c.bf16 %v616_v36, %v615_v31  ;;  %13242 = vmatpush1.bf16.msra.mxu1 %v13241_v35 }
 0x14e   :  { %13243 = vmatprep.subr.bf16.mxu1 %v17441_v39  ;;  %17494 = vst [vmem:[#allocation8_spill] sm:$0xff] %v14465_v48 }
 0x150   :  { %v14449_v60 = vpop.f32.mrb[40].mxu0 }
 0x151   :  { %v493_v4 = vpop.f32.mrb[41].mxu0  ;;  %v617_v11 = vmul.f32 %v14449_v60, %v14449_v60 }
 0x152   :  { %v14451_v8 = vpop.f32.mrb[42].mxu0 }
 0x153   :  { %v13244_v12 = vpack.c.bf16 %v14451_v8, %v14449_v60  ;;  %v618_v16 = vmul.f32 %v14451_v8, %v14451_v8  ;;  %v496_v19 = vpop.f32.mrb[43].mxu0 }
 0x154   :  { %v14476_v19 = vrot.slane %v14136_v44, %v14465_v48  ;;  %v17495_v44 = vpack.c.bf16 %v14313_v28, %v14309_v27  ;;  %v970_v28 = vld [vmem:[#allocation2] sm:$0xff] }
 0x155   :  { %v13280_v24 = vpack.c.bf16 %v618_v16, %v617_v11  ;;  %13245 = vmatpush1.bf16.msra.mxu1 %v13244_v12 }
 0x156   :  { %13246 = vmatprep.subr.bf16.mxu1 %v17441_v39 }
 0x158   :  { %v14460_v31 = vpop.f32.mrb[44].mxu0 }
 0x159   :  { %v501_v35 = vpop.f32.mrb[45].mxu0  ;;  %v619_v4 = vmul.f32 %v14460_v31, %v14460_v31 }
 0x15a   :  { %v14462_v36 = vpop.f32.mrb[46].mxu0 }
 0x15b   :  { %v13247_v41 = vpack.c.bf16 %v14462_v36, %v14460_v31  ;;  %v620_v11 = vmul.f32 %v14462_v36, %v14462_v36  ;;  %v504_v12 = vpop.f32.mrb[47].mxu0 }
 0x15d   :  { %v13283_v16 = vpack.c.bf16 %v620_v11, %v619_v4  ;;  %13248 = vmatpush1.bf16.msra.mxu1 %v13247_v41 }
 0x15e   :  { %575 = vmatprep.subr.mxu1 %v13935_v46 }
 0x160   :  { %v14478_v35 = vpop.f32.mrb[48].mxu0 }
 0x161   :  { %v509_v17 = vpop.f32.mrb[49].mxu0  ;;  %576 = vmatpush1.msra.mxu1 %v14478_v35  ;;  %v621_v58 = vmul.f32 %v14478_v35, %v14478_v35 }
 0x162   :  { %v510_v56 = vpop.f32.mrb[50].mxu0  ;;  %592 = vmatmul.mubr.f32.vlgmr.msra.gmra.mrb[0].mxu1 %v14476_v19  ;;  %13249 = vmatprep.subr.bf16.mxu1 %v17441_v39  ;;  %v14550_v17 = vpop.permute.xlu1 %822 }
 0x163   :  { %v511_v32 = vpop.f32.mrb[51].mxu0  ;;  %13251 = vmatpush1.bf16.msra.mxu1 %v13250_v54  ;;  %10707 = vmatprep.mubr.msk.f32.mxu1 %vm524_vm2, %v14140_v45  ;;  %v17498_v54 = vpack.c.bf16 %v14400_v33, %v14394_v30 }
 0x164   :  { %13252 = vmatprep.subr.bf16.mxu1 %v17441_v39  ;;  %v11653_v32 = vpack.c.bf16 %v970_v28, %v970_v28  ;;  %v513_v28 = vld [vmem:[%s17432_s7] sm:$0x3] }
 0x166   :  { %1097 = vst.msk [vmem:[#allocation4] sm:$0xf] %vm1096_vm5, %v11653_v32  ;;  %v14552_v33 = vpop.permute.xlu1 %832 }
 0x167   :  { %13254 = vmatpush1.bf16.msra.mxu1 %v13253_v62  ;;  %v14526_v62 = vpop.permute.xlu0 %802 }
 0x168   :  { %13255 = vmatprep.subr.bf16.mxu1 %v17441_v39 }
 0x16a   :  { %v14554_v11 = vpop.permute.xlu1 %842 }
 0x16b   :  { %13257 = vmatpush1.bf16.msra.mxu1 %v13256_v6  ;;  %v14528_v2 = vpop.permute.xlu0 %817 }
 0x16c   :  { %13258 = vmatprep.subr.bf16.mxu1 %v17441_v39 }
 0x16f   :  { %13260 = vmatpush1.bf16.msra.mxu1 %v13259_v20  ;;  %v14530_v3 = vpop.permute.xlu0 %827 }
 0x170   :  { %13261 = vmatprep.subr.bf16.mxu1 %v17441_v39 }
 0x173   :  { %13263 = vmatpush1.bf16.msra.mxu1 %v17495_v44  ;;  %v14532_v6 = vpop.permute.xlu0 %837  ;;  %v14556_v44 = vpop.permute.xlu1 %852 }
 0x174   :  { %13264 = vmatprep.subr.bf16.mxu1 %v17441_v39 }
 0x177   :  { %13266 = vmatpush1.bf16.msra.mxu1 %v17496_v50  ;;  %v14534_v14 = vpop.permute.xlu0 %847  ;;  %v13937_v50 = vmov 1983009808  }
 0x178   :  { %13267 = vmatprep.subr.bf16.mxu1 %v17441_v39 }
 0x17b   :  { %13269 = vmatpush1.bf16.msra.mxu1 %v17497_v51  ;;  %v703_v51 = vunpack.c.l.s4 %v13937_v50 }
 0x17c   :  { %13270 = vmatprep.subr.bf16.mxu1 %v17441_v39 }
 0x17f   :  { %13272 = vmatpush1.bf16.msra.mxu1 %v17498_v54 }
 0x180   :  { %13273 = vmatprep.subr.bf16.mxu1 %v17441_v39 }
 0x183   :  { %13275 = vmatpush1.bf16.msra.mxu1 %v13274_v18 }
 0x184   :  { %13276 = vmatprep.subr.bf16.mxu1 %v17441_v39  ;;  %v14536_v15 = vpop.permute.xlu0 %857 }
 0x185   :  { %v14558_v54 = vpop.permute.xlu1 %862 }
 0x187   :  { %13278 = vmatpush1.bf16.msra.mxu1 %v13277_v53 }
 0x188   :  { %13279 = vmatprep.subr.bf16.mxu1 %v17441_v39 }
 0x18b   :  { %13281 = vmatpush1.bf16.msra.mxu1 %v13280_v24 }
 0x18c   :  { %13282 = vmatprep.subr.bf16.mxu1 %v17441_v39 }
 0x18f   :  { %13284 = vmatpush1.bf16.msra.mxu1 %v13283_v16 }
 0x190   :  { %670 = vmatprep.subr.mxu1 %v13935_v46  ;;  %v14538_v46 = vpop.permute.xlu0 %867 }
 0x193   :  { %671 = vmatpush1.msra.mxu1 %v621_v58  ;;  %v704_v58 = vunpack.c.0.s8 %v703_v51 }
 0x194   :  { %687 = vmatmul.mubr.f32.vlgmr.msra.gmra.mrb[2].mxu1 %v14476_v19 }
 0x19a   :  { %v14540_v20 = vpop.permute.xlu0 %877 }
 0x19e   :  { %v14542_v27 = vpop.permute.xlu0 %887 }
 0x19f   :  { %17500 = vst [vmem:[#allocation10_spill] sm:$0xff] %v14542_v27 }
 0x1a2   :  { %v1224_v38 = vpop.permute.xlu0 %1223 }
 0x1a3   :  { %1299 = vst.msk [vmem:[#allocation4] sm:$0xf] %vm1298_vm4, %v1224_v38 }
 0x235   :  { %v593_v40 = vpop.f32.mrb[0].mxu1 }
 0x236   :  { %v595_v56 = vpop.f32.mrb[1].mxu1  ;;  %v692_v30 = vmul.f32 0.0078125, %v593_v40  ;;  %v14564_v40 = vsub.s32 %v704_v58, %v14128_v42 }
 0x237   :  { %v14566_v56 = vpop.permute.xlu1 %872 }
 0x238   :  { %v694_v18 = vmul.f32 %v692_v30, %v692_v30  ;;  %17501 = vst [vmem:[#allocation11_spill] sm:$0xff] %v14564_v40 }
 0x267   :  { %v688_v41 = vpop.f32.mrb[2].mxu1 }
 0x268   :  { %v693_v53 = vmul.f32 0.0078125, %v688_v41  ;;  %v690_v24 = vpop.f32.mrb[3].mxu1 }
 0x26a   :  { %v695_v4 = vsub.f32 %v693_v53, %v694_v18 }
 0x26c   :  { %v696_v12 = vmax.f32 %v695_v4, 0.0 }
 0x26e   :  { %v697_v16 = vadd.f32 1e-05, %v696_v12 }
 0x270   :  { %13914 = vrsqrt.f32 %v697_v16 }
 0x27a   :  { %v13915_v32 = vpop.eup %13914 }
 0x27b   :  { %v699_v38 = vmul.f32 %v13915_v32, %v513_v28 }
 0x27d   :  { %v700_v41 = vmul.f32 %v699_v38, %v692_v30  ;;  %v715_v18 = vrot.slane %v699_v38, %v14465_v48 }
 0x27f   :  { %v708_v53 = vrot.slane %v700_v41, %v14564_v40  ;;  %v720_v24 = vmul.f32 %v715_v18, %v14189_v63  ;;  %v721_v4 = vmul.f32 %v715_v18, %v14191_v1  ;;  %v722_v12 = vmul.f32 %v715_v18, %v14269_v10 }
 0x280   :  { %v723_v16 = vmul.f32 %v715_v18, %v14274_v13  ;;  %v726_v50 = vmul.f32 %v715_v18, %v14327_v34  ;;  %v724_v42 = vmul.f32 %v715_v18, %v14298_v22  ;;  %v725_v51 = vmul.f32 %v715_v18, %v14303_v25  ;;  %v14588_v22 = vpop.permute.xlu1 %882 }
 0x281   :  { %v709_v58 = vrot.slane %v708_v53, 7  ;;  %v728_v30 = vmul.f32 %v715_v18, %v14356_v61  ;;  %v727_v32 = vmul.f32 %v715_v18, %v14332_v37  ;;  %v730_v38 = vmul.f32 %v715_v18, %v14385_v21  ;;  %17502 = vst [vmem:[#allocation12_spill] sm:$0xff] %v14588_v22 }
 0x282   :  { %v729_v63 = vmul.f32 %v715_v18, %v14361_v5  ;;  %v732_v1 = vmul.f32 %v715_v18, %v14412_v52  ;;  %v14583_v10 = vmul.f32 %v715_v18, %v14390_v26  ;;  %v14586_v13 = vmul.f32 %v715_v18, %v14438_v23 }
 0x283   :  { %v711_v25 = vsub.f32 %v513_v28, %v709_v58  ;;  %v14591_v34 = vmul.f32 %v715_v18, %v14417_v0  ;;  %v14594_v37 = vmul.f32 %v715_v18, %v14440_v29  ;;  %v14597_v61 = vmul.f32 %v715_v18, %v14449_v60 }
 0x284   :  { %v14600_v5 = vmul.f32 %v715_v18, %v14451_v8  ;;  %v14603_v21 = vmul.f32 %v715_v18, %v14460_v31  ;;  %v14606_v26 = vmul.f32 %v715_v18, %v14462_v36  ;;  %v14609_v52 = vmul.f32 %v715_v18, %v14478_v35  ;;  %v13535_v31 = vld [vmem:[%s17433_s2 + $0x40] sm:$0xff]   ;;  %v14640_v53 = vpop.permute.xlu1 %892 }
 0x285   :  { %v14612_v0 = vrot.slane %v711_v25, %v14131_v43  ;;  %v14615_v23 = vmul.f32 %v715_v18, %v14155_v47  ;;  %v14618_v29 = vmul.f32 %v715_v18, %v14157_v49  ;;  %v14621_v60 = vmul.f32 %v715_v18, %v14172_v55  ;;  %v13536_v49 = vld [vmem:[%s17433_s2] sm:$0xff]   ;;  %17503 = vst [vmem:[#allocation13_spill] sm:$0xff] %v14640_v53 }
 0x286   :  { %v14624_v8 = vmul.f32 %v715_v18, %v14174_v57  ;;  %12184 = vmatprep.subr.bf16.mxu1 %v13535_v31 }
 0x287   :  { %v749_v36 = vadd.f32 %v14612_v0, %v720_v24  ;;  %v750_v35 = vadd.f32 %v14612_v0, %v721_v4  ;;  %v751_v47 = vadd.f32 %v14612_v0, %v722_v12  ;;  %v752_v28 = vadd.f32 %v14612_v0, %v723_v16  ;;  %v14642_v16 = vpop.permute.xlu0 %897  ;;  %12185 = vmatpush3.bf16.msra.mxu1 %v13536_v49 }
 0x288   :  { %v755_v55 = vadd.f32 %v14612_v0, %v726_v50  ;;  %v753_v57 = vadd.f32 %v14612_v0, %v724_v42  ;;  %v754_v41 = vadd.f32 %v14612_v0, %v725_v51  ;;  %v757_v18 = vadd.f32 %v14612_v0, %v728_v30  ;;  %17504 = vst [vmem:[#allocation14_spill] sm:$0xff] %v14642_v16  ;;  %v13537_v50 = vld [vmem:[%s17433_s2 + $0x48] sm:$0xff]  }
 0x289   :  { %v774_v24 = vmax.f32 %v749_v36, 0.0  ;;  %v775_v4 = vmax.f32 %v750_v35, 0.0  ;;  %v776_v12 = vmax.f32 %v751_v47, 0.0  ;;  %v777_v58 = vmax.f32 %v752_v28, 0.0  ;;  %v13538_v42 = vld [vmem:[%s17433_s2 + $0x8] sm:$0xff]   ;;  %12186 = vmatprep.subr.bf16.mxu1 %v13537_v50 }
 0x28a   :  { %v780_v51 = vmax.f32 %v755_v55, 0.0  ;;  %v778_v30 = vmax.f32 %v753_v57, 0.0  ;;  %v779_v25 = vmax.f32 %v754_v41, 0.0  ;;  %v782_v39 = vmax.f32 %v757_v18, 0.0 }
 0x28b   :  { %v14651_v31 = vmul.f32 %v14528_v2, %v774_v24  ;;  %v14654_v36 = vmul.f32 %v14550_v17, %v775_v4  ;;  %v14657_v35 = vmul.f32 %v14530_v3, %v776_v12  ;;  %v14660_v47 = vmul.f32 %v14552_v33, %v777_v58  ;;  %12187 = vmatpush3.bf16.msra.mxu1 %v13538_v42  ;;  %v13539_v4 = vld [vmem:[%s17433_s2 + $0x50] sm:$0xff]   ;;  %v14708_v58 = vpop.permute.xlu1 %902 }
 0x28c   :  { %v14663_v28 = vmul.f32 %v14534_v14, %v780_v51  ;;  %v14666_v49 = vmul.f32 %v14532_v6, %v778_v30  ;;  %v14669_v55 = vmul.f32 %v14554_v11, %v779_v25  ;;  %v14672_v57 = vmul.f32 %v14536_v15, %v782_v39  ;;  %v13540_v12 = vld [vmem:[%s17433_s2 + $0x10] sm:$0xff]   ;;  %17513 = vst [vmem:[#allocation23_spill] sm:$0xff] %v14708_v58  ;;  %v14710_v25 = vpop.permute.xlu0 %907 }
 0x28d   :  { %17505 = vst [vmem:[#allocation15_spill] sm:$0xff] %v14651_v31  ;;  %17506 = vst [vmem:[#allocation16_spill] sm:$0xff] %v14654_v36  ;;  %v756_v41 = vadd.f32 %v14612_v0, %v727_v32  ;;  %v759_v18 = vadd.f32 %v14612_v0, %v730_v38  ;;  %v758_v24 = vadd.f32 %v14612_v0, %v729_v63  ;;  %12188 = vmatprep.subr.bf16.mxu1 %v13539_v4 }
 0x28e   :  { %17507 = vst [vmem:[#allocation17_spill] sm:$0xff] %v14657_v35  ;;  %17508 = vst [vmem:[#allocation18_spill] sm:$0xff] %v14660_v47  ;;  %v761_v39 = vadd.f32 %v14612_v0, %v732_v1  ;;  %v760_v32 = vadd.f32 %v14612_v0, %v14583_v10  ;;  %v763_v38 = vadd.f32 %v14612_v0, %v14586_v13 }
 0x28f   :  { %17509 = vst [vmem:[#allocation19_spill] sm:$0xff] %v14663_v28  ;;  %17510 = vst [vmem:[#allocation20_spill] sm:$0xff] %v14666_v49  ;;  %v762_v63 = vadd.f32 %v14612_v0, %v14591_v34  ;;  %v764_v1 = vadd.f32 %v14612_v0, %v14594_v37  ;;  %v781_v50 = vmax.f32 %v756_v41, 0.0  ;;  %v784_v42 = vmax.f32 %v759_v18, 0.0  ;;  %12189 = vmatpush3.bf16.msra.mxu1 %v13540_v12  ;;  %v13541_v18 = vld [vmem:[%s17433_s2 + $0x58] sm:$0xff]  }
 0x290   :  { %17511 = vst [vmem:[#allocation21_spill] sm:$0xff] %v14669_v55  ;;  %17512 = vst [vmem:[#allocation22_spill] sm:$0xff] %v14672_v57  ;;  %v783_v51 = vmax.f32 %v758_v24, 0.0  ;;  %v786_v30 = vmax.f32 %v761_v39, 0.0  ;;  %v788_v10 = vmax.f32 %v763_v38, 0.0  ;;  %v13542_v24 = vld [vmem:[%s17433_s2 + $0x18] sm:$0xff]   ;;  %v768_v12 = vadd.f32 %v14612_v0, %v14606_v26  ;;  %12190 = vmatprep.subr.bf16.mxu1 %v13541_v18 }
 0x291   :  { %949 = vst.msk [vmem:[#allocation2 + $0x2b] sm:$0xff] %vm69_vm3, %v14651_v31  ;;  %950 = vst.msk [vmem:[#allocation2 + $0x33] sm:$0xff] %vm69_vm3, %v14654_v36  ;;  %v14713_v13 = vmul.f32 %v14556_v44, %v781_v50  ;;  %v14716_v34 = vmul.f32 %v14538_v46, %v784_v42  ;;  %v746_v26 = vadd.f32 %v14612_v0, %v14618_v29 }
 0x292   :  { %951 = vst.msk [vmem:[#allocation2 + $0x3b] sm:$0xff] %vm69_vm3, %v14657_v35  ;;  %952 = vst.msk [vmem:[#allocation2 + $0x43] sm:$0xff] %vm69_vm3, %v14660_v47  ;;  %v14719_v37 = vmul.f32 %v14558_v54, %v783_v51  ;;  %v14722_v41 = vmul.f32 %v14540_v20, %v786_v30  ;;  %v14734_v4 = vmul.f32 %v14542_v27, %v788_v10  ;;  %v793_v51 = vmax.f32 %v768_v12, 0.0  ;;  %v14776_v30 = vpop.permute.xlu0 %917 }
 0x293   :  { %955 = vst.msk [vmem:[#allocation2 + $0x5b] sm:$0xff] %vm69_vm3, %v14663_v28  ;;  %953 = vst.msk [vmem:[#allocation2 + $0x4b] sm:$0xff] %vm69_vm3, %v14666_v49  ;;  %v787_v28 = vmax.f32 %v762_v63, 0.0  ;;  %v747_v63 = vadd.f32 %v14612_v0, %v14621_v60  ;;  %12191 = vmatpush3.bf16.msra.mxu1 %v13542_v24 }
 0x294   :  { %954 = vst.msk [vmem:[#allocation2 + $0x53] sm:$0xff] %vm69_vm3, %v14669_v55  ;;  %957 = vst.msk [vmem:[#allocation2 + $0x6b] sm:$0xff] %vm69_vm3, %v14672_v57  ;;  %v785_v57 = vmax.f32 %v760_v32, 0.0  ;;  %v789_v55 = vmax.f32 %v764_v1, 0.0 }
 0x295   :  { %17514 = vst [vmem:[#allocation24_spill] sm:$0xff] %v14710_v25  ;;  %17515 = vst [vmem:[#allocation25_spill] sm:$0xff] %v14713_v13  ;;  %v14737_v32 = vmul.f32 %v14588_v22, %v787_v28  ;;  %v766_v28 = vadd.f32 %v14612_v0, %v14600_v5  ;;  %v769_v5 = vadd.f32 %v14612_v0, %v14609_v52  ;;  %v772_v52 = vmax.f32 %v747_v63, 0.0 }
 0x296   :  { %17516 = vst [vmem:[#allocation26_spill] sm:$0xff] %v14716_v34  ;;  %17517 = vst [vmem:[#allocation27_spill] sm:$0xff] %v14719_v37  ;;  %v14731_v39 = vmul.f32 %v14566_v56, %v785_v57  ;;  %v14740_v38 = vmul.f32 %v14640_v53, %v789_v55  ;;  %v765_v57 = vadd.f32 %v14612_v0, %v14597_v61  ;;  %v14766_v61 = vpop.permute.xlu1 %912 }
 0x297   :  { %17518 = vst [vmem:[#allocation28_spill] sm:$0xff] %v14722_v41  ;;  %17520 = vst [vmem:[#allocation30_spill] sm:$0xff] %v14734_v4  ;;  %v767_v55 = vadd.f32 %v14612_v0, %v14603_v21  ;;  %v745_v21 = vadd.f32 %v14612_v0, %v14615_v23  ;;  %v791_v50 = vmax.f32 %v766_v28, 0.0  ;;  %v794_v10 = vmax.f32 %v769_v5, 0.0 }
 0x298   :  { %17519 = vst [vmem:[#allocation29_spill] sm:$0xff] %v14731_v39  ;;  %17521 = vst [vmem:[#allocation31_spill] sm:$0xff] %v14737_v32  ;;  %v790_v1 = vmax.f32 %v765_v57, 0.0  ;;  %v14788_v57 = vmul.f32 %v14766_v61, %v793_v51 }
 0x299   :  { %17522 = vst [vmem:[#allocation32_spill] sm:$0xff] %v14740_v38  ;;  %956 = vst.msk [vmem:[#allocation2 + $0x63] sm:$0xff] %vm69_vm3, %v14713_v13  ;;  %v792_v42 = vmax.f32 %v767_v55, 0.0  ;;  %v770_v18 = vmax.f32 %v745_v21, 0.0  ;;  %v14782_v29 = vmul.f32 %v14708_v58, %v791_v50  ;;  %v1481_v28 = vld [vmem:[#allocation2 + $0x3a] sm:$0xff]  ;;  %v14791_v55 = vmul.f32 %v14776_v30, %v794_v10 }
 0x29a   :  { %959 = vst.msk [vmem:[#allocation2 + $0x7b] sm:$0xff] %vm69_vm3, %v14716_v34  ;;  %958 = vst.msk [vmem:[#allocation2 + $0x73] sm:$0xff] %vm69_vm3, %v14719_v37  ;;  %v14779_v23 = vmul.f32 %v14642_v16, %v790_v1  ;;  %v14800_v21 = vmul.f32 %v14546_v7, %v772_v52  ;;  %v2385_v63 = vld [vmem:[#allocation2 + $0x3e] sm:$0xff] }
 0x29b   :  { %961 = vst.msk [vmem:[#allocation2 + $0x8b] sm:$0xff] %vm69_vm3, %v14722_v41  ;;  %960 = vst.msk [vmem:[#allocation2 + $0x83] sm:$0xff] %vm69_vm3, %v14731_v39  ;;  %v14785_v60 = vmul.f32 %v14710_v25, %v792_v42  ;;  %v1484_v24 = vld [vmem:[#allocation2 + $0x52] sm:$0xff]  ;;  %v14794_v12 = vmul.f32 %v14524_v59, %v770_v18  ;;  %v1485_v42 = vld [vmem:[#allocation2 + $0x5a] sm:$0xff] }
 0x29c   :  { %963 = vst.msk [vmem:[#allocation2 + $0x9b] sm:$0xff] %vm69_vm3, %v14734_v4  ;;  %962 = vst.msk [vmem:[#allocation2 + $0x93] sm:$0xff] %vm69_vm3, %v14737_v32  ;;  %v1480_v4 = vld [vmem:[#allocation2 + $0x32] sm:$0xff]  ;;  %v1482_v32 = vld [vmem:[#allocation2 + $0x42] sm:$0xff] }
 0x29d   :  { %964 = vst.msk [vmem:[#allocation2 + $0xa3] sm:$0xff] %vm69_vm3, %v14740_v38  ;;  %17523 = vst [vmem:[#allocation33_spill] sm:$0xff] %v14766_v61  ;;  %v771_v38 = vmax.f32 %v746_v26, 0.0  ;;  %v1483_v26 = vld [vmem:[#allocation2 + $0x4a] sm:$0xff]  ;;  %v14812_v1 = vpack.c.bf16 %v1480_v4, %v1480_v4  ;;  %v14814_v50 = vpack.c.bf16 %v1482_v32, %v1482_v32  ;;  %v2388_v10 = vld [vmem:[#allocation2 + $0x56] sm:$0xff] }
 0x29e   :  { %17524 = vst [vmem:[#allocation34_spill] sm:$0xff] %v14776_v30  ;;  %17525 = vst [vmem:[#allocation35_spill] sm:$0xff] %v14779_v23  ;;  %v2387_v51 = vld [vmem:[#allocation2 + $0x4e] sm:$0xff]  ;;  %v14828_v52 = vpack.c.bf16 %v1483_v26, %v1483_v26  ;;  %v11861_v41 = vpack.c.bf16 %v2388_v10, %v2388_v10 }
 0x29f   :  { %17526 = vst [vmem:[#allocation36_spill] sm:$0xff] %v14782_v29  ;;  %17527 = vst [vmem:[#allocation37_spill] sm:$0xff] %v14785_v60  ;;  %v14797_v5 = vmul.f32 %v14526_v62, %v771_v38  ;;  %v748_v38 = vadd.f32 %v14612_v0, %v14624_v8  ;;  %v14824_v0 = vpack.c.bf16 %v1481_v28, %v1481_v28 }
 0x2a0   :  { %17528 = vst [vmem:[#allocation38_spill] sm:$0xff] %v14788_v57  ;;  %17529 = vst [vmem:[#allocation39_spill] sm:$0xff] %v14791_v55  ;;  %v2389_v18 = vld [vmem:[#allocation2 + $0x5e] sm:$0xff]  ;;  %v14826_v8 = vpack.c.bf16 %v1484_v24, %v1484_v24  ;;  %v2390_v4 = vld [vmem:[#allocation2 + $0x66] sm:$0xff]  ;;  %v11858_v28 = vpack.c.bf16 %v2385_v63, %v2385_v63 }
 0x2a1   :  { %17530 = vst [vmem:[#allocation40_spill] sm:$0xff] %v14794_v12  ;;  %17531 = vst [vmem:[#allocation41_spill] sm:$0xff] %v14797_v5  ;;  %v773_v32 = vmax.f32 %v748_v38, 0.0  ;;  %v1486_v38 = vld [vmem:[#allocation2 + $0x62] sm:$0xff]  ;;  %v1487_v49 = vld [vmem:[#allocation2 + $0x6a] sm:$0xff]  ;;  %v11863_v63 = vpack.c.bf16 %v2390_v4, %v2390_v4 }
 0x2a2   :  { %17532 = vst [vmem:[#allocation42_spill] sm:$0xff] %v14800_v21  ;;  %965 = vst.msk [vmem:[#allocation2 + $0xab] sm:$0xff] %vm69_vm3, %v14779_v23  ;;  %v2394_v24 = vld [vmem:[#allocation2 + $0x86] sm:$0xff]  ;;  %v11860_v23 = vpack.c.bf16 %v2387_v51, %v2387_v51  ;;  %v14845_v37 = vpack.c.bf16 %v1486_v38, %v1486_v38  ;;  %v14854_v51 = vpack.c.bf16 %v1487_v49, %v1487_v49  ;;  %v1489_v61 = vld [vmem:[#allocation2 + $0x7a] sm:$0xff] }
 0x2a3   :  { %966 = vst.msk [vmem:[#allocation2 + $0xb3] sm:$0xff] %vm69_vm3, %v14782_v29  ;;  %967 = vst.msk [vmem:[#allocation2 + $0xbb] sm:$0xff] %vm69_vm3, %v14785_v60  ;;  %v14834_v60 = vpack.c.bf16 %v1485_v42, %v1485_v42  ;;  %v14841_v26 = vmul.f32 %v14548_v9, %v773_v32  ;;  %v1488_v29 = vld [vmem:[#allocation2 + $0x72] sm:$0xff]  ;;  %v11862_v42 = vpack.c.bf16 %v2389_v18, %v2389_v18 }
 0x2a4   :  { %968 = vst.msk [vmem:[#allocation2 + $0xc3] sm:$0xff] %vm69_vm3, %v14788_v57  ;;  %969 = vst.msk [vmem:[#allocation2 + $0xcb] sm:$0xff] %vm69_vm3, %v14791_v55  ;;  %v2392_v55 = vld [vmem:[#allocation2 + $0x76] sm:$0xff]  ;;  %v2393_v57 = vld [vmem:[#allocation2 + $0x7e] sm:$0xff]  ;;  %v14847_v13 = vpack.c.bf16 %v1488_v29, %v1488_v29 }
 0x2a5   :  { %945 = vst.msk [vmem:[#allocation2 + $0xb] sm:$0xff] %vm69_vm3, %v14794_v12  ;;  %946 = vst.msk [vmem:[#allocation2 + $0x13] sm:$0xff] %vm69_vm3, %v14797_v5  ;;  %v2391_v12 = vld [vmem:[#allocation2 + $0x6e] sm:$0xff]  ;;  %v2396_v34 = vld [vmem:[#allocation2 + $0x96] sm:$0xff]  ;;  %v11865_v49 = vpack.c.bf16 %v2392_v55, %v2392_v55 }
 0x2a6   :  { %947 = vst.msk [vmem:[#allocation2 + $0x1b] sm:$0xff] %vm69_vm3, %v14800_v21  ;;  %17533 = vst [vmem:[#allocation43_spill] sm:$0xff] %v14841_v26  ;;  %v2395_v39 = vld [vmem:[#allocation2 + $0x8e] sm:$0xff]  ;;  %v2397_v32 = vld [vmem:[#allocation2 + $0x9e] sm:$0xff]  ;;  %v11864_v29 = vpack.c.bf16 %v2391_v12, %v2391_v12 }
 0x2a7   :  { %1456 = vst.msk [vmem:[#allocation4 + $0x7c] sm:$0xf] %vm1096_vm5, %v14812_v1  ;;  %1458 = vst.msk [vmem:[#allocation4 + $0xa4] sm:$0xf] %vm1096_vm5, %v14814_v50  ;;  %v11868_v12 = vpack.c.bf16 %v2395_v39, %v2395_v39 }
 0x2a8   :  { %1457 = vst.msk [vmem:[#allocation4 + $0x90] sm:$0xf] %vm1096_vm5, %v14824_v0  ;;  %1460 = vst.msk [vmem:[#allocation4 + $0xcc] sm:$0xf] %vm1096_vm5, %v14826_v8 }
 0x2a9   :  { %1459 = vst.msk [vmem:[#allocation4 + $0xb8] sm:$0xf] %vm1096_vm5, %v14828_v52  ;;  %1461 = vst.msk [vmem:[#allocation4 + $0xe0] sm:$0xf] %vm1096_vm5, %v14834_v60  ;;  %v2398_v10 = vld [vmem:[#allocation2 + $0xa6] sm:$0xff] }
 0x2aa   :  { %2511 = vst.msk [vmem:[#allocation4 + $0x74] sm:$0xf] %vm1096_vm5, %v11858_v28  ;;  %2513 = vst.msk [vmem:[#allocation4 + $0x9c] sm:$0xf] %vm1096_vm5, %v11860_v23  ;;  %v2399_v18 = vld [vmem:[#allocation2 + $0xae] sm:$0xff]  ;;  %v2400_v38 = vld [vmem:[#allocation2 + $0xb6] sm:$0xff]  ;;  %v11867_v23 = vpack.c.bf16 %v2394_v24, %v2394_v24 }
 0x2ab   :  { %948 = vst.msk [vmem:[#allocation2 + $0x23] sm:$0xff] %vm69_vm3, %v14841_v26  ;;  %v2401_v4 = vld [vmem:[#allocation2 + $0xbe] sm:$0xff]  ;;  %v2402_v47 = vld [vmem:[#allocation2 + $0xc6] sm:$0xff]  ;;  %v11870_v26 = vpack.c.bf16 %v2397_v32, %v2397_v32  ;;  %v11872_v55 = vpack.c.bf16 %v2399_v18, %v2399_v18 }
 0x2ac   :  { %2514 = vst.msk [vmem:[#allocation4 + $0xb0] sm:$0xf] %vm1096_vm5, %v11861_v41  ;;  %2515 = vst.msk [vmem:[#allocation4 + $0xc4] sm:$0xf] %vm1096_vm5, %v11862_v42  ;;  %v1475_v28 = vld [vmem:[#allocation2 + $0xa] sm:$0xff]  ;;  %v11866_v41 = vpack.c.bf16 %v2393_v57, %v2393_v57  ;;  %v11869_v42 = vpack.c.bf16 %v2396_v34, %v2396_v34  ;;  %v1476_v31 = vld [vmem:[#allocation2 + $0x12] sm:$0xff]  ;;  %v11873_v34 = vpack.c.bf16 %v2400_v38, %v2400_v38 }
 0x2ad   :  { %1462 = vst.msk [vmem:[#allocation4 + $0xf4] sm:$0xf] %vm1096_vm5, %v14845_v37  ;;  %1464 = vst.msk [vmem:[#allocation4 + $0x11c] sm:$0xf] %vm1096_vm5, %v14847_v13  ;;  %v11728_v35 = vpack.c.bf16 %v1475_v28, %v1475_v28  ;;  %v1123_v36 = vld [vmem:[#allocation2 + $0x9] sm:$0xff]  ;;  %v1124_v5 = vld [vmem:[#allocation2 + $0x11] sm:$0xff]  ;;  %v11729_v30 = vpack.c.bf16 %v1476_v31, %v1476_v31  ;;  %v14873_v57 = vpack.c.bf16 %v1489_v61, %v1489_v61 }
 0x2ae   :  { %2516 = vst.msk [vmem:[#allocation4 + $0xd8] sm:$0xf] %vm1096_vm5, %v11863_v63  ;;  %1463 = vst.msk [vmem:[#allocation4 + $0x108] sm:$0xf] %vm1096_vm5, %v14854_v51  ;;  %v11871_v63 = vpack.c.bf16 %v2398_v10, %v2398_v10  ;;  %v11679_v21 = vpack.c.bf16 %v1123_v36, %v1123_v36  ;;  %v1477_v59 = vld [vmem:[#allocation2 + $0x1a] sm:$0xff]  ;;  %v11874_v31 = vpack.c.bf16 %v2401_v4, %v2401_v4  ;;  %v1491_v36 = vld [vmem:[#allocation2 + $0x8a] sm:$0xff] }
 0x2af   :  { %2517 = vst.msk [vmem:[#allocation4 + $0xec] sm:$0xf] %vm1096_vm5, %v11864_v29  ;;  %2518 = vst.msk [vmem:[#allocation4 + $0x100] sm:$0xf] %vm1096_vm5, %v11865_v49  ;;  %1576 = vrot.lane.b32.xlu0 %v11728_v35, %s13936_s21  ;;  %v11730_v39 = vpack.c.bf16 %v1477_v59, %v1477_v59  ;;  %v11875_v24 = vpack.c.bf16 %v2402_v47, %v2402_v47  ;;  %v11680_v59 = vpack.c.bf16 %v1124_v5, %v1124_v5  ;;  %v1125_v47 = vld [vmem:[#allocation2 + $0x19] sm:$0xff]  ;;  %v1324_v4 = vld [vmem:[#allocation2 + $0x2] sm:$0xff] }
 0x2b0   :  { %2519 = vst.msk [vmem:[#allocation4 + $0x114] sm:$0xf] %vm1096_vm5, %v11866_v41  ;;  %2520 = vst.msk [vmem:[#allocation4 + $0x128] sm:$0xf] %vm1096_vm5, %v11867_v23  ;;  %1225 = vrot.lane.b32.xlu1 %v11679_v21, %s13936_s21  ;;  %v14882_v29 = vpack.c.bf16 %v1491_v36, %v1491_v36  ;;  %v11681_v10 = vpack.c.bf16 %v1125_v47, %v1125_v47  ;;  %v13543_v38 = vld [vmem:[%s17433_s2 + $0x60] sm:$0xff]   ;;  %v14907_v41 = vpack.c.bf16 %v1324_v4, %v1324_v4 }
 0x2b1   :  { %2521 = vst.msk [vmem:[#allocation4 + $0x13c] sm:$0xf] %vm1096_vm5, %v11868_v12  ;;  %2522 = vst.msk [vmem:[#allocation4 + $0x150] sm:$0xf] %vm1096_vm5, %v11869_v42  ;;  %v13544_v28 = vld [vmem:[%s17433_s2 + $0x20] sm:$0xff]   ;;  %12192 = vmatprep.subr.bf16.mxu1 %v13543_v38  ;;  %v13545_v12 = vld [vmem:[%s17433_s2 + $0x68] sm:$0xff]  }
 0x2b2   :  { %1451 = vst.msk [vmem:[#allocation4 + $0x18] sm:$0xf] %vm1096_vm5, %v11728_v35  ;;  %2523 = vst.msk [vmem:[#allocation4 + $0x164] sm:$0xf] %vm1096_vm5, %v11870_v26  ;;  %v1478_v61 = vld [vmem:[#allocation2 + $0x22] sm:$0xff]  ;;  %v1479_v32 = vld [vmem:[#allocation2 + $0x2a] sm:$0xff]  ;;  %12193 = vmatpush3.bf16.msra.mxu1 %v13544_v28 }
 0x2b3   :  { %2524 = vst.msk [vmem:[#allocation4 + $0x178] sm:$0xf] %vm1096_vm5, %v11871_v63  ;;  %2525 = vst.msk [vmem:[#allocation4 + $0x18c] sm:$0xf] %vm1096_vm5, %v11872_v55  ;;  %v11731_v35 = vpack.c.bf16 %v1478_v61, %v1478_v61  ;;  %v11732_v21 = vpack.c.bf16 %v1479_v32, %v1479_v32  ;;  %v1493_v26 = vld [vmem:[#allocation2 + $0x9a] sm:$0xff]  ;;  %1227 = vrot.lane.b32.xlu0 %v11680_v59, %s13936_s21  ;;  %v1127_v42 = vld [vmem:[#allocation2 + $0x29] sm:$0xff]  ;;  %12194 = vmatprep.subr.bf16.mxu1 %v13545_v12 }
 0x2b4   :  { %1452 = vst.msk [vmem:[#allocation4 + $0x2c] sm:$0xf] %vm1096_vm5, %v11729_v30  ;;  %2526 = vst.msk [vmem:[#allocation4 + $0x1a0] sm:$0xf] %vm1096_vm5, %v11873_v34  ;;  %v14890_v5 = vpack.c.bf16 %v1493_v26, %v1493_v26  ;;  %1578 = vrot.lane.b32.xlu1 %v11729_v30, %s13936_s21  ;;  %v1126_v18 = vld [vmem:[#allocation2 + $0x21] sm:$0xff]  ;;  %v972_v63 = vld [vmem:[#allocation2 + $0x10] sm:$0xff] }
 0x2b5   :  { %1453 = vst.msk [vmem:[#allocation4 + $0x40] sm:$0xf] %vm1096_vm5, %v11730_v39  ;;  %1465 = vst.msk [vmem:[#allocation4 + $0x130] sm:$0xf] %vm1096_vm5, %v14873_v57  ;;  %v11682_v49 = vpack.c.bf16 %v1126_v18, %v1126_v18  ;;  %v971_v30 = vld [vmem:[#allocation2 + $0x8] sm:$0xff]  ;;  %v11655_v34 = vpack.c.bf16 %v972_v63, %v972_v63  ;;  %v1129_v59 = vld [vmem:[#allocation2 + $0x39] sm:$0xff] }
 0x2b6   :  { %2527 = vst.msk [vmem:[#allocation4 + $0x1b4] sm:$0xf] %vm1096_vm5, %v11874_v31  ;;  %2528 = vst.msk [vmem:[#allocation4 + $0x1c8] sm:$0xf] %vm1096_vm5, %v11875_v24  ;;  %v11654_v23 = vpack.c.bf16 %v971_v30, %v971_v30  ;;  %v13546_v55 = vld [vmem:[%s17433_s2 + $0x28] sm:$0xff]   ;;  %v973_v31 = vld [vmem:[#allocation2 + $0x18] sm:$0xff]  ;;  %v11683_v24 = vpack.c.bf16 %v1127_v42, %v1127_v42  ;;  %v11685_v47 = vpack.c.bf16 %v1129_v59, %v1129_v59 }
 0x2b7   :  { %1467 = vst.msk [vmem:[#allocation4 + $0x158] sm:$0xf] %vm1096_vm5, %v14882_v29  ;;  %1454 = vst.msk [vmem:[#allocation4 + $0x54] sm:$0xf] %vm1096_vm5, %v11731_v35  ;;  %1580 = vrot.lane.b32.xlu0 %v11730_v39, %s13936_s21  ;;  %v13547_v39 = vld [vmem:[%s17433_s2 + $0x70] sm:$0xff]   ;;  %v11656_v36 = vpack.c.bf16 %v973_v31, %v973_v31  ;;  %12195 = vmatpush3.bf16.msra.mxu1 %v13546_v55  ;;  %v974_v32 = vld [vmem:[#allocation2 + $0x20] sm:$0xff] }
 0x2b8   :  { %1455 = vst.msk [vmem:[#allocation4 + $0x68] sm:$0xf] %vm1096_vm5, %v11732_v21  ;;  %1469 = vst.msk [vmem:[#allocation4 + $0x180] sm:$0xf] %vm1096_vm5, %v14890_v5  ;;  %1229 = vrot.lane.b32.xlu1 %v11681_v10, %s13936_s21  ;;  %v13548_v61 = vld [vmem:[%s17433_s2 + $0x30] sm:$0xff]   ;;  %12196 = vmatprep.subr.bf16.mxu1 %v13547_v39  ;;  %v11657_v26 = vpack.c.bf16 %v974_v32, %v974_v32  ;;  %v975_v18 = vld [vmem:[#allocation2 + $0x28] sm:$0xff] }
 0x2b9   :  { %1450 = vst.msk [vmem:[#allocation4 + $0x4] sm:$0xf] %vm1096_vm5, %v14907_v41  ;;  %1098 = vst.msk [vmem:[#allocation4 + $0x14] sm:$0xf] %vm1096_vm5, %v11654_v23  ;;  %v1128_v10 = vld [vmem:[#allocation2 + $0x31] sm:$0xff]  ;;  %v11658_v38 = vpack.c.bf16 %v975_v18, %v975_v18  ;;  %v13551_v30 = vld [vmem:[%s17433_s2 + $0xc0] sm:$0xff]  }
 0x2ba   :  { %1099 = vst.msk [vmem:[#allocation4 + $0x28] sm:$0xf] %vm1096_vm5, %v11655_v34  ;;  %1100 = vst.msk [vmem:[#allocation4 + $0x3c] sm:$0xf] %vm1096_vm5, %v11656_v36  ;;  %v13552_v28 = vld [vmem:[%s17433_s2 + $0x80] sm:$0xff]   ;;  %12278 = vmatprep.subr.bf16.mxu0 %v13551_v30  ;;  %v976_v23 = vld [vmem:[#allocation2 + $0x30] sm:$0xff]  ;;  %v11684_v12 = vpack.c.bf16 %v1128_v10, %v1128_v10 }
 0x2bb   :  { %1231 = vrot.lane.b32.xlu0 %v11682_v49, %s13936_s21  ;;  %1101 = vst.msk [vmem:[#allocation4 + $0x50] sm:$0xf] %vm1096_vm5, %v11657_v26  ;;  %v977_v49 = vld [vmem:[#allocation2 + $0x38] sm:$0xff]  ;;  %12197 = vmatpush3.bf16.msra.mxu1 %v13548_v61  ;;  %1102 = vst.msk [vmem:[#allocation4 + $0x64] sm:$0xf] %vm1096_vm5, %v11658_v38  ;;  %v1131_v42 = vld [vmem:[#allocation2 + $0x49] sm:$0xff]  ;;  %v11659_v63 = vpack.c.bf16 %v976_v23, %v976_v23 }
 0x2bc   :  { %1582 = vrot.lane.b32.xlu1 %v11731_v35, %s13936_s21  ;;  %v13549_v35 = vld [vmem:[%s17433_s2 + $0x78] sm:$0xff]   ;;  %v11660_v4 = vpack.c.bf16 %v977_v49, %v977_v49  ;;  %12279 = vmatpush3.bf16.msra.mxu0 %v13552_v28  ;;  %v14952_v55 = vld [vmem:[#allocation3] sm:$0xff]  ;;  %v11687_v31 = vpack.c.bf16 %v1131_v42, %v1131_v42  ;;  %v13559_v59 = vld [vmem:[%s17433_s2 + $0x88] sm:$0xff]  }
 0x2bd   :  { %12198 = vmatprep.subr.bf16.mxu1 %v13549_v35  ;;  %1103 = vst.msk [vmem:[#allocation4 + $0x78] sm:$0xf] %vm1096_vm5, %v11659_v63  ;;  %v978_v39 = vld [vmem:[#allocation2 + $0x40] sm:$0xff]  ;;  %v981_v61 = vld [vmem:[#allocation2 + $0x58] sm:$0xff]  ;;  %v980_v35 = vld [vmem:[#allocation2 + $0x50] sm:$0xff] }
 0x2be   :  { %1104 = vst.msk [vmem:[#allocation4 + $0x8c] sm:$0xf] %vm1096_vm5, %v11660_v4  ;;  %v11661_v36 = vpack.c.bf16 %v978_v39, %v978_v39  ;;  %v11664_v32 = vpack.c.bf16 %v981_v61, %v981_v61  ;;  %v11663_v26 = vpack.c.bf16 %v980_v35, %v980_v35  ;;  %v983_v10 = vld [vmem:[#allocation2 + $0x68] sm:$0xff]  ;;  %v982_v4 = vld [vmem:[#allocation2 + $0x60] sm:$0xff]  ;;  %v13565_v30 = vld [vmem:[%s17433_s2 + $0x90] sm:$0xff]  }
 0x2bf   :  { %1584 = vrot.lane.b32.xlu0 %v11732_v21, %s13936_s21  ;;  %v13550_v21 = vld [vmem:[%s17433_s2 + $0x38] sm:$0xff]   ;;  %v11666_v49 = vpack.c.bf16 %v983_v10, %v983_v10  ;;  %v11665_v28 = vpack.c.bf16 %v982_v4, %v982_v4  ;;  %v1843_v23 = vld [vmem:[#allocation2 + $0x8c] sm:$0xff]  ;;  %98 = vst.msk [vmem:[#allocation2 + $0xd8] sm:$0x3f] %vm97_vm6, %v14952_v55 }
 0x2c0   :  { %1233 = vrot.lane.b32.xlu1 %v11683_v24, %s13936_s21  ;;  %12199 = vmatpush3.bf16.msra.mxu1 %v13550_v21  ;;  %v13558_v24 = vld [vmem:[%s17433_s2 + $0xc8] sm:$0xff]   ;;  %1105 = vst.msk [vmem:[#allocation4 + $0xa0] sm:$0xf] %vm1096_vm5, %v11661_v36  ;;  %v1133_v21 = vld [vmem:[#allocation2 + $0x59] sm:$0xff]  ;;  %1108 = vst.msk [vmem:[#allocation4 + $0xdc] sm:$0xf] %vm1096_vm5, %v11664_v32  ;;  %v14983_v42 = vpack.c.bf16 %v1843_v23, %v1843_v23 }
 0x2c1   :  { %12915 = vmatprep.subr.bf16.mxu1 %v14952_v55  ;;  %12280 = vmatprep.subr.bf16.mxu0 %v13558_v24  ;;  %1107 = vst.msk [vmem:[#allocation4 + $0xc8] sm:$0xf] %vm1096_vm5, %v11663_v26  ;;  %1110 = vst.msk [vmem:[#allocation4 + $0x104] sm:$0xf] %vm1096_vm5, %v11666_v49  ;;  %v1845_v39 = vld [vmem:[#allocation2 + $0x9c] sm:$0xff]  ;;  %v987_v24 = vld [vmem:[#allocation2 + $0x88] sm:$0xff] }
 0x2c2   :  { %12281 = vmatpush3.bf16.msra.mxu0 %v13559_v59  ;;  %1109 = vst.msk [vmem:[#allocation4 + $0xf0] sm:$0xf] %vm1096_vm5, %v11665_v28  ;;  %v14989_v36 = vpack.c.bf16 %v1845_v39, %v1845_v39  ;;  %2169 = vst.msk [vmem:[#allocation4 + $0x138] sm:$0xf] %vm1096_vm5, %v14983_v42  ;;  %v1135_v61 = vld [vmem:[#allocation2 + $0x69] sm:$0xff]  ;;  %v986_v32 = vld [vmem:[#allocation2 + $0x80] sm:$0xff] }
 0x2c3   :  { %1237 = vrot.lane.b32.xlu0 %v11685_v47, %s13936_s21  ;;  %v1841_v47 = vld [vmem:[#allocation2 + $0x7c] sm:$0xff]  ;;  %v1847_v35 = vld [vmem:[#allocation2 + $0xac] sm:$0xff] }
 0x2c4   :  { %1586 = vrot.lane.b32.xlu1 %v14812_v1, %s13936_s21  ;;  %v979_v1 = vld [vmem:[#allocation2 + $0x48] sm:$0xff]  ;;  %v14967_v38 = vpack.c.bf16 %v1841_v47, %v1841_v47  ;;  %2171 = vst.msk [vmem:[#allocation4 + $0x160] sm:$0xf] %vm1096_vm5, %v14989_v36  ;;  %v989_v26 = vld [vmem:[#allocation2 + $0x98] sm:$0xff]  ;;  %v15000_v47 = vpack.c.bf16 %v1847_v35, %v1847_v35  ;;  %v988_v4 = vld [vmem:[#allocation2 + $0x90] sm:$0xff] }
 0x2c5   :  { %v11662_v34 = vpack.c.bf16 %v979_v1, %v979_v1  ;;  %v1132_v1 = vld [vmem:[#allocation2 + $0x51] sm:$0xff]  ;;  %v11672_v10 = vpack.c.bf16 %v989_v26, %v989_v26  ;;  %v991_v28 = vld [vmem:[#allocation2 + $0xa8] sm:$0xff]  ;;  %v1137_v23 = vld [vmem:[#allocation2 + $0x79] sm:$0xff] }
 0x2c6   :  { %2167 = vst.msk [vmem:[#allocation4 + $0x110] sm:$0xf] %vm1096_vm5, %v14967_v38  ;;  %v11688_v59 = vpack.c.bf16 %v1132_v1, %v1132_v1  ;;  %2173 = vst.msk [vmem:[#allocation4 + $0x188] sm:$0xf] %vm1096_vm5, %v15000_v47  ;;  %v11674_v1 = vpack.c.bf16 %v991_v28, %v991_v28  ;;  %v1345_v39 = vld [vmem:[#allocation2 + $0xaa] sm:$0xff] }
 0x2c7   :  { %1590 = vrot.lane.b32.xlu0 %v14814_v50, %s13936_s21  ;;  %1106 = vst.msk [vmem:[#allocation4 + $0xb4] sm:$0xf] %vm1096_vm5, %v11662_v34  ;;  %v1130_v50 = vld [vmem:[#allocation2 + $0x41] sm:$0xff]  ;;  %v984_v34 = vld [vmem:[#allocation2 + $0x70] sm:$0xff]  ;;  %1116 = vst.msk [vmem:[#allocation4 + $0x17c] sm:$0xf] %vm1096_vm5, %v11672_v10 }
 0x2c8   :  { %1235 = vrot.lane.b32.xlu1 %v11684_v12, %s13936_s21  ;;  %v11686_v18 = vpack.c.bf16 %v1130_v50, %v1130_v50  ;;  %v985_v12 = vld [vmem:[#allocation2 + $0x78] sm:$0xff]  ;;  %v11670_v50 = vpack.c.bf16 %v987_v24, %v987_v24  ;;  %1118 = vst.msk [vmem:[#allocation4 + $0x1a4] sm:$0xf] %vm1096_vm5, %v11674_v1 }
 0x2c9   :  { %v11668_v63 = vpack.c.bf16 %v985_v12, %v985_v12  ;;  %v13569_v12 = vld [vmem:[%s17433_s2 + $0xd8] sm:$0xff]  }
 0x2ca   :  { %1114 = vst.msk [vmem:[#allocation4 + $0x154] sm:$0xf] %vm1096_vm5, %v11670_v50  ;;  %v1677_v1 = vld [vmem:[#allocation2 + $0x13] sm:$0xff] }
 0x2cb   :  { %1241 = vrot.lane.b32.xlu0 %v11687_v31, %s13936_s21  ;;  %1112 = vst.msk [vmem:[#allocation4 + $0x12c] sm:$0xf] %vm1096_vm5, %v11668_v63  ;;  %v11667_v31 = vpack.c.bf16 %v984_v34, %v984_v34 }
 0x2cc   :  { %1588 = vrot.lane.b32.xlu1 %v14824_v0, %s13936_s21  ;;  %v13564_v0 = vld [vmem:[%s17433_s2 + $0xd0] sm:$0xff]  }
 0x2cd   :  { %12282 = vmatprep.subr.bf16.mxu0 %v13564_v0  ;;  %1111 = vst.msk [vmem:[#allocation4 + $0x118] sm:$0xf] %vm1096_vm5, %v11667_v31  ;;  %v1134_v0 = vld [vmem:[#allocation2 + $0x61] sm:$0xff] }
 0x2ce   :  { %12283 = vmatpush3.bf16.msra.mxu0 %v13565_v30  ;;  %v1849_v30 = vld [vmem:[#allocation2 + $0xbc] sm:$0xff]  ;;  %v11690_v24 = vpack.c.bf16 %v1134_v0, %v1134_v0  ;;  %v992_v0 = vld [vmem:[#allocation2 + $0xb0] sm:$0xff] }
 0x2cf   :  { %1594 = vrot.lane.b32.xlu0 %v14826_v8, %s13936_s21  ;;  %v11689_v8 = vpack.c.bf16 %v1133_v21, %v1133_v21  ;;  %v11691_v21 = vpack.c.bf16 %v1135_v61, %v1135_v61  ;;  %v15014_v63 = vpack.c.bf16 %v1849_v30, %v1849_v30  ;;  %v990_v31 = vld [vmem:[#allocation2 + $0xa0] sm:$0xff]  ;;  %12284 = vmatprep.subr.bf16.mxu0 %v13569_v12  ;;  %v993_v61 = vld [vmem:[#allocation2 + $0xb8] sm:$0xff] }
 0x2d0   :  { %1239 = vrot.lane.b32.xlu1 %v11686_v18, %s13936_s21  ;;  %v1340_v18 = vld [vmem:[#allocation2 + $0x82] sm:$0xff]  ;;  %v11673_v50 = vpack.c.bf16 %v990_v31, %v990_v31  ;;  %v11676_v26 = vpack.c.bf16 %v993_v61, %v993_v61  ;;  %v1346_v30 = vld [vmem:[#allocation2 + $0xb2] sm:$0xff]  ;;  %v11675_v28 = vpack.c.bf16 %v992_v0, %v992_v0 }
 0x2d1   :  { %v11719_v49 = vpack.c.bf16 %v1340_v18, %v1340_v18  ;;  %2175 = vst.msk [vmem:[#allocation4 + $0x1b0] sm:$0xf] %vm1096_vm5, %v15014_v63  ;;  %v1490_v18 = vld [vmem:[#allocation2 + $0x82] sm:$0xff]  ;;  %v11725_v12 = vpack.c.bf16 %v1346_v30, %v1346_v30  ;;  %v1681_v0 = vld [vmem:[#allocation2 + $0x33] sm:$0xff] }
 0x2d2   :  { %1117 = vst.msk [vmem:[#allocation4 + $0x190] sm:$0xf] %vm1096_vm5, %v11673_v50  ;;  %1120 = vst.msk [vmem:[#allocation4 + $0x1cc] sm:$0xf] %vm1096_vm5, %v11676_v26  ;;  %v1139_v31 = vld [vmem:[#allocation2 + $0x89] sm:$0xff]  ;;  %v2028_v26 = vld [vmem:[#allocation2 + $0x14] sm:$0xff] }
 0x2d3   :  { %1245 = vrot.lane.b32.xlu0 %v11689_v8, %s13936_s21  ;;  %1466 = vst.msk [vmem:[#allocation4 + $0x144] sm:$0xf] %vm1096_vm5, %v11719_v49  ;;  %v1342_v8 = vld [vmem:[#allocation2 + $0x92] sm:$0xff]  ;;  %v11693_v49 = vpack.c.bf16 %v1137_v23, %v1137_v23  ;;  %v11754_v23 = vpack.c.bf16 %v1677_v1, %v1677_v1  ;;  %1119 = vst.msk [vmem:[#allocation4 + $0x1b8] sm:$0xf] %vm1096_vm5, %v11675_v28  ;;  %v1679_v50 = vld [vmem:[#allocation2 + $0x23] sm:$0xff] }
 0x2d4   :  { %1592 = vrot.lane.b32.xlu1 %v14828_v52, %s13936_s21  ;;  %v11669_v52 = vpack.c.bf16 %v986_v32, %v986_v32  ;;  %v11721_v34 = vpack.c.bf16 %v1342_v8, %v1342_v8  ;;  %v1344_v32 = vld [vmem:[#allocation2 + $0xa2] sm:$0xff]  ;;  %1472 = vst.msk [vmem:[#allocation4 + $0x1bc] sm:$0xf] %vm1096_vm5, %v11725_v12  ;;  %v1492_v30 = vld [vmem:[#allocation2 + $0x92] sm:$0xff]  ;;  %v11695_v12 = vpack.c.bf16 %v1139_v31, %v1139_v31 }
 0x2d5   :  { %v11723_v10 = vpack.c.bf16 %v1344_v32, %v1344_v32  ;;  %1803 = vst.msk [vmem:[#allocation4 + $0x1c] sm:$0xf] %vm1096_vm5, %v11754_v23  ;;  %v1138_v1 = vld [vmem:[#allocation2 + $0x81] sm:$0xff]  ;;  %v1680_v23 = vld [vmem:[#allocation2 + $0x2b] sm:$0xff] }
 0x2d6   :  { %1113 = vst.msk [vmem:[#allocation4 + $0x140] sm:$0xf] %vm1096_vm5, %v11669_v52  ;;  %1468 = vst.msk [vmem:[#allocation4 + $0x16c] sm:$0xf] %vm1096_vm5, %v11721_v34  ;;  %v13570_v52 = vld [vmem:[%s17433_s2 + $0x98] sm:$0xff]   ;;  %v994_v34 = vld [vmem:[#allocation2 + $0xc0] sm:$0xff] }
 0x2d7   :  { %1598 = vrot.lane.b32.xlu0 %v14845_v37, %s13936_s21  ;;  %v11671_v37 = vpack.c.bf16 %v988_v4, %v988_v4  ;;  %v1136_v4 = vld [vmem:[#allocation2 + $0x71] sm:$0xff]  ;;  %12285 = vmatpush3.bf16.msra.mxu0 %v13570_v52  ;;  %1470 = vst.msk [vmem:[#allocation4 + $0x194] sm:$0xf] %vm1096_vm5, %v11723_v10  ;;  %v11756_v52 = vpack.c.bf16 %v1679_v50, %v1679_v50  ;;  %v13575_v31 = vld [vmem:[%s17433_s2 + $0xe0] sm:$0xff]  }
 0x2d8   :  { %1243 = vrot.lane.b32.xlu1 %v11688_v59, %s13936_s21  ;;  %v1851_v59 = vld [vmem:[#allocation2 + $0xcc] sm:$0xff]  ;;  %v11803_v10 = vpack.c.bf16 %v2028_v26, %v2028_v26  ;;  %v13576_v26 = vld [vmem:[%s17433_s2 + $0xa0] sm:$0xff]   ;;  %12286 = vmatprep.subr.bf16.mxu0 %v13575_v31 }
 0x2d9   :  { %1115 = vst.msk [vmem:[#allocation4 + $0x168] sm:$0xf] %vm1096_vm5, %v11671_v37  ;;  %v15025_v35 = vpack.c.bf16 %v1851_v59, %v1851_v59  ;;  %v1348_v37 = vld [vmem:[#allocation2 + $0xc2] sm:$0xff]  ;;  %v11743_v59 = vpack.c.bf16 %v1490_v18, %v1490_v18  ;;  %1805 = vst.msk [vmem:[#allocation4 + $0x44] sm:$0xf] %vm1096_vm5, %v11756_v52  ;;  %v2035_v52 = vld [vmem:[#allocation2 + $0x4c] sm:$0xff] }
 0x2da   :  { %v11727_v8 = vpack.c.bf16 %v1348_v37, %v1348_v37  ;;  %v2030_v37 = vld [vmem:[#allocation2 + $0x24] sm:$0xff]  ;;  %2154 = vst.msk [vmem:[#allocation4 + $0xc] sm:$0xf] %vm1096_vm5, %v11803_v10 }
 0x2db   :  { %1249 = vrot.lane.b32.xlu0 %v11691_v21, %s13936_s21  ;;  %v1347_v21 = vld [vmem:[#allocation2 + $0xba] sm:$0xff]  ;;  %2177 = vst.msk [vmem:[#allocation4 + $0x1d8] sm:$0xf] %vm1096_vm5, %v15025_v35  ;;  %v11805_v28 = vpack.c.bf16 %v2030_v37, %v2030_v37  ;;  %v2034_v37 = vld [vmem:[#allocation2 + $0x44] sm:$0xff]  ;;  %12287 = vmatpush3.bf16.msra.mxu0 %v13576_v26  ;;  %v2039_v26 = vld [vmem:[#allocation2 + $0x6c] sm:$0xff] }
 0x2dc   :  { %1596 = vrot.lane.b32.xlu1 %v14834_v60, %s13936_s21  ;;  %v11724_v60 = vpack.c.bf16 %v1345_v39, %v1345_v39  ;;  %v11677_v39 = vpack.c.bf16 %v994_v34, %v994_v34  ;;  %1474 = vst.msk [vmem:[#allocation4 + $0x1e4] sm:$0xf] %vm1096_vm5, %v11727_v8  ;;  %v2033_v8 = vld [vmem:[#allocation2 + $0x3c] sm:$0xff] }
 0x2dd   :  { %v11808_v34 = vpack.c.bf16 %v2033_v8, %v2033_v8  ;;  %2156 = vst.msk [vmem:[#allocation4 + $0x34] sm:$0xf] %vm1096_vm5, %v11805_v28  ;;  %v11745_v28 = vpack.c.bf16 %v1492_v30, %v1492_v30  ;;  %v11809_v8 = vpack.c.bf16 %v2034_v37, %v2034_v37 }
 0x2de   :  { %1471 = vst.msk [vmem:[#allocation4 + $0x1a8] sm:$0xf] %vm1096_vm5, %v11724_v60  ;;  %v1676_v60 = vld [vmem:[#allocation2 + $0xb] sm:$0xff]  ;;  %1121 = vst.msk [vmem:[#allocation4 + $0x1e0] sm:$0xf] %vm1096_vm5, %v11677_v39  ;;  %v1683_v39 = vld [vmem:[#allocation2 + $0x43] sm:$0xff] }
 0x2df   :  { %1602 = vrot.lane.b32.xlu0 %v14847_v13, %s13936_s21  ;;  %v11726_v13 = vpack.c.bf16 %v1347_v21, %v1347_v21  ;;  %v11753_v32 = vpack.c.bf16 %v1676_v60, %v1676_v60  ;;  %v2031_v21 = vld [vmem:[#allocation2 + $0x2c] sm:$0xff]  ;;  %v11757_v60 = vpack.c.bf16 %v1680_v23, %v1680_v23  ;;  %v11760_v50 = vpack.c.bf16 %v1683_v39, %v1683_v39  ;;  %v2037_v23 = vld [vmem:[#allocation2 + $0x5c] sm:$0xff] }
 0x2e0   :  { %1247 = vrot.lane.b32.xlu1 %v11690_v24, %s13936_s21  ;;  %v2029_v24 = vld [vmem:[#allocation2 + $0x1c] sm:$0xff]  ;;  %v11806_v18 = vpack.c.bf16 %v2031_v21, %v2031_v21  ;;  %2159 = vst.msk [vmem:[#allocation4 + $0x70] sm:$0xf] %vm1096_vm5, %v11808_v34  ;;  %v11810_v21 = vpack.c.bf16 %v2035_v52, %v2035_v52  ;;  %v1684_v39 = vld [vmem:[#allocation2 + $0x4b] sm:$0xff]  ;;  %2160 = vst.msk [vmem:[#allocation4 + $0x84] sm:$0xf] %vm1096_vm5, %v11809_v8 }
 0x2e1   :  { %1473 = vst.msk [vmem:[#allocation4 + $0x1d0] sm:$0xf] %vm1096_vm5, %v11726_v13  ;;  %v11804_v61 = vpack.c.bf16 %v2029_v24, %v2029_v24  ;;  %1802 = vst.msk [vmem:[#allocation4 + $0x8] sm:$0xf] %vm1096_vm5, %v11753_v32  ;;  %v2032_v24 = vld [vmem:[#allocation2 + $0x34] sm:$0xff]  ;;  %v2381_v32 = vld [vmem:[#allocation2 + $0x1e] sm:$0xff]  ;;  %v11761_v30 = vpack.c.bf16 %v1684_v39, %v1684_v39 }
 0x2e2   :  { %2157 = vst.msk [vmem:[#allocation4 + $0x48] sm:$0xf] %vm1096_vm5, %v11806_v18  ;;  %v11854_v10 = vpack.c.bf16 %v2381_v32, %v2381_v32  ;;  %v1141_v18 = vld [vmem:[#allocation2 + $0x99] sm:$0xff]  ;;  %1806 = vst.msk [vmem:[#allocation4 + $0x58] sm:$0xf] %vm1096_vm5, %v11757_v60  ;;  %v1688_v8 = vld [vmem:[#allocation2 + $0x6b] sm:$0xff] }
 0x2e3   :  { %1253 = vrot.lane.b32.xlu0 %v11693_v49, %s13936_s21  ;;  %v1678_v49 = vld [vmem:[#allocation2 + $0x1b] sm:$0xff]  ;;  %2155 = vst.msk [vmem:[#allocation4 + $0x20] sm:$0xf] %vm1096_vm5, %v11804_v61  ;;  %1809 = vst.msk [vmem:[#allocation4 + $0x94] sm:$0xf] %vm1096_vm5, %v11760_v50  ;;  %v11812_v50 = vpack.c.bf16 %v2037_v23, %v2037_v23  ;;  %v11697_v37 = vpack.c.bf16 %v1141_v18, %v1141_v18  ;;  %v1691_v23 = vld [vmem:[#allocation2 + $0x83] sm:$0xff] }
 0x2e4   :  { %1600 = vrot.lane.b32.xlu1 %v14854_v51, %s13936_s21  ;;  %v11692_v51 = vpack.c.bf16 %v1136_v4, %v1136_v4  ;;  %v11755_v13 = vpack.c.bf16 %v1678_v49, %v1678_v49  ;;  %v11758_v4 = vpack.c.bf16 %v1681_v0, %v1681_v0  ;;  %v2380_v61 = vld [vmem:[#allocation2 + $0x16] sm:$0xff]  ;;  %2507 = vst.msk [vmem:[#allocation4 + $0x24] sm:$0xf] %vm1096_vm5, %v11854_v10  ;;  %2161 = vst.msk [vmem:[#allocation4 + $0x98] sm:$0xf] %vm1096_vm5, %v11810_v21  ;;  %v1494_v10 = vld [vmem:[#allocation2 + $0xa2] sm:$0xff] }
 0x2e5   :  { %v1682_v49 = vld [vmem:[#allocation2 + $0x3b] sm:$0xff]  ;;  %v1685_v0 = vld [vmem:[#allocation2 + $0x53] sm:$0xff]  ;;  %2163 = vst.msk [vmem:[#allocation4 + $0xc0] sm:$0xf] %vm1096_vm5, %v11812_v50  ;;  %1810 = vst.msk [vmem:[#allocation4 + $0xa8] sm:$0xf] %vm1096_vm5, %v11761_v30  ;;  %v11814_v21 = vpack.c.bf16 %v2039_v26, %v2039_v26 }
 0x2e6   :  { %1804 = vst.msk [vmem:[#allocation4 + $0x30] sm:$0xf] %vm1096_vm5, %v11755_v13  ;;  %1807 = vst.msk [vmem:[#allocation4 + $0x6c] sm:$0xf] %vm1096_vm5, %v11758_v4  ;;  %v11759_v13 = vpack.c.bf16 %v1682_v49, %v1682_v49  ;;  %v2382_v4 = vld [vmem:[#allocation2 + $0x26] sm:$0xff]  ;;  %v2384_v32 = vld [vmem:[#allocation2 + $0x36] sm:$0xff] }
 0x2e7   :  { %1606 = vrot.lane.b32.xlu0 %v11743_v59, %s13936_s21  ;;  %v11807_v59 = vpack.c.bf16 %v2032_v24, %v2032_v24  ;;  %v11855_v34 = vpack.c.bf16 %v2382_v4, %v2382_v4  ;;  %v11694_v24 = vpack.c.bf16 %v1138_v1, %v1138_v1  ;;  %v11857_v1 = vpack.c.bf16 %v2384_v32, %v2384_v32  ;;  %v2040_v39 = vld [vmem:[#allocation2 + $0x74] sm:$0xff]  ;;  %v2042_v32 = vld [vmem:[#allocation2 + $0x84] sm:$0xff] }
 0x2e8   :  { %1251 = vrot.lane.b32.xlu1 %v11692_v51, %s13936_s21  ;;  %v11853_v51 = vpack.c.bf16 %v2380_v61, %v2380_v61  ;;  %1808 = vst.msk [vmem:[#allocation4 + $0x80] sm:$0xf] %vm1096_vm5, %v11759_v13  ;;  %v2036_v61 = vld [vmem:[#allocation2 + $0x54] sm:$0xff]  ;;  %2165 = vst.msk [vmem:[#allocation4 + $0xe8] sm:$0xf] %vm1096_vm5, %v11814_v21  ;;  %v13580_v26 = vld [vmem:[%s17433_s2 + $0xe8] sm:$0xff]  }
 0x2e9   :  { %2158 = vst.msk [vmem:[#allocation4 + $0x5c] sm:$0xf] %vm1096_vm5, %v11807_v59  ;;  %v1687_v59 = vld [vmem:[#allocation2 + $0x63] sm:$0xff]  ;;  %2508 = vst.msk [vmem:[#allocation4 + $0x38] sm:$0xf] %vm1096_vm5, %v11855_v34  ;;  %v11811_v31 = vpack.c.bf16 %v2036_v61, %v2036_v61  ;;  %v1689_v13 = vld [vmem:[#allocation2 + $0x73] sm:$0xff]  ;;  %v11765_v34 = vpack.c.bf16 %v1688_v8, %v1688_v8  ;;  %12288 = vmatprep.subr.bf16.mxu0 %v13580_v26 }
 0x2ea   :  { %2506 = vst.msk [vmem:[#allocation4 + $0x10] sm:$0xf] %vm1096_vm5, %v11853_v51  ;;  %v11764_v52 = vpack.c.bf16 %v1687_v59, %v1687_v59  ;;  %v1686_v51 = vld [vmem:[#allocation2 + $0x5b] sm:$0xff]  ;;  %2510 = vst.msk [vmem:[#allocation4 + $0x60] sm:$0xf] %vm1096_vm5, %v11857_v1  ;;  %v11766_v4 = vpack.c.bf16 %v1689_v13, %v1689_v13  ;;  %v1140_v18 = vld [vmem:[#allocation2 + $0x91] sm:$0xff]  ;;  %v11747_v59 = vpack.c.bf16 %v1494_v10, %v1494_v10 }
 0x2eb   :  { %1257 = vrot.lane.b32.xlu0 %v11695_v12, %s13936_s21  ;;  %v2383_v12 = vld [vmem:[#allocation2 + $0x2e] sm:$0xff]  ;;  %v11763_v49 = vpack.c.bf16 %v1686_v51, %v1686_v51  ;;  %2162 = vst.msk [vmem:[#allocation4 + $0xac] sm:$0xf] %vm1096_vm5, %v11811_v31  ;;  %v1690_v50 = vld [vmem:[#allocation2 + $0x7b] sm:$0xff]  ;;  %1814 = vst.msk [vmem:[#allocation4 + $0xf8] sm:$0xf] %vm1096_vm5, %v11765_v34 }
 0x2ec   :  { %1604 = vrot.lane.b32.xlu1 %v14873_v57, %s13936_s21  ;;  %v11762_v57 = vpack.c.bf16 %v1685_v0, %v1685_v0  ;;  %v11856_v60 = vpack.c.bf16 %v2383_v12, %v2383_v12  ;;  %v2038_v0 = vld [vmem:[#allocation2 + $0x64] sm:$0xff]  ;;  %1813 = vst.msk [vmem:[#allocation4 + $0xe4] sm:$0xf] %vm1096_vm5, %v11764_v52  ;;  %1815 = vst.msk [vmem:[#allocation4 + $0x10c] sm:$0xf] %vm1096_vm5, %v11766_v4  ;;  %v11767_v30 = vpack.c.bf16 %v1690_v50, %v1690_v50  ;;  %v1693_v61 = vld [vmem:[#allocation2 + $0x93] sm:$0xff] }
 0x2ed   :  { %1812 = vst.msk [vmem:[#allocation4 + $0xd0] sm:$0xf] %vm1096_vm5, %v11763_v49  ;;  %v11696_v52 = vpack.c.bf16 %v1140_v18, %v1140_v18  ;;  %v1143_v31 = vld [vmem:[#allocation2 + $0xa9] sm:$0xff]  ;;  %v11770_v1 = vpack.c.bf16 %v1693_v61, %v1693_v61  ;;  %v2044_v13 = vld [vmem:[#allocation2 + $0x94] sm:$0xff] }
 0x2ee   :  { %1811 = vst.msk [vmem:[#allocation4 + $0xbc] sm:$0xf] %vm1096_vm5, %v11762_v57  ;;  %2509 = vst.msk [vmem:[#allocation4 + $0x4c] sm:$0xf] %vm1096_vm5, %v11856_v60  ;;  %v2386_v57 = vld [vmem:[#allocation2 + $0x46] sm:$0xff]  ;;  %v11815_v60 = vpack.c.bf16 %v2040_v39, %v2040_v39  ;;  %v11699_v10 = vpack.c.bf16 %v1143_v31, %v1143_v31  ;;  %v1694_v8 = vld [vmem:[#allocation2 + $0x9b] sm:$0xff] }
 0x2ef   :  { %1610 = vrot.lane.b32.xlu0 %v11745_v28, %s13936_s21  ;;  %v11813_v28 = vpack.c.bf16 %v2038_v0, %v2038_v0  ;;  %v11859_v12 = vpack.c.bf16 %v2386_v57, %v2386_v57  ;;  %1816 = vst.msk [vmem:[#allocation4 + $0x120] sm:$0xf] %vm1096_vm5, %v11767_v30  ;;  %v13583_v51 = vld [vmem:[%s17433_s2 + $0xa8] sm:$0xff]   ;;  %1819 = vst.msk [vmem:[#allocation4 + $0x15c] sm:$0xf] %vm1096_vm5, %v11770_v1  ;;  %v1496_v0 = vld [vmem:[#allocation2 + $0xb2] sm:$0xff]  ;;  %v11771_v18 = vpack.c.bf16 %v1694_v8, %v1694_v8 }
 0x2f0   :  { %1255 = vrot.lane.b32.xlu1 %v11694_v24, %s13936_s21  ;;  %v11768_v24 = vpack.c.bf16 %v1691_v23, %v1691_v23  ;;  %2166 = vst.msk [vmem:[#allocation4 + $0xfc] sm:$0xf] %vm1096_vm5, %v11815_v60  ;;  %v1692_v21 = vld [vmem:[#allocation2 + $0x8b] sm:$0xff]  ;;  %v1695_v49 = vld [vmem:[#allocation2 + $0xa3] sm:$0xff]  ;;  %12289 = vmatpush3.bf16.msra.mxu0 %v13583_v51  ;;  %v11749_v23 = vpack.c.bf16 %v1496_v0, %v1496_v0  ;;  %v1145_v39 = vld [vmem:[#allocation2 + $0xb9] sm:$0xff] }
 0x2f1   :  { %2164 = vst.msk [vmem:[#allocation4 + $0xd4] sm:$0xf] %vm1096_vm5, %v11813_v28  ;;  %2512 = vst.msk [vmem:[#allocation4 + $0x88] sm:$0xf] %vm1096_vm5, %v11859_v12  ;;  %v11772_v4 = vpack.c.bf16 %v1695_v49, %v1695_v49  ;;  %v11819_v28 = vpack.c.bf16 %v2044_v13, %v2044_v13  ;;  %v1142_v57 = vld [vmem:[#allocation2 + $0xa1] sm:$0xff]  ;;  %v1697_v12 = vld [vmem:[#allocation2 + $0xb3] sm:$0xff]  ;;  %v11701_v26 = vpack.c.bf16 %v1145_v39, %v1145_v39 }
 0x2f2   :  { %1817 = vst.msk [vmem:[#allocation4 + $0x134] sm:$0xf] %vm1096_vm5, %v11768_v24  ;;  %v2046_v34 = vld [vmem:[#allocation2 + $0xa4] sm:$0xff]  ;;  %v11774_v24 = vpack.c.bf16 %v1697_v12, %v1697_v12  ;;  %v11698_v50 = vpack.c.bf16 %v1142_v57, %v1142_v57  ;;  %v2048_v61 = vld [vmem:[#allocation2 + $0xb4] sm:$0xff]  ;;  %1820 = vst.msk [vmem:[#allocation4 + $0x170] sm:$0xf] %vm1096_vm5, %v11771_v18 }
 0x2f3   :  { %1261 = vrot.lane.b32.xlu0 %v11697_v37, %s13936_s21  ;;  %v11769_v37 = vpack.c.bf16 %v1692_v21, %v1692_v21  ;;  %1821 = vst.msk [vmem:[#allocation4 + $0x184] sm:$0xf] %vm1096_vm5, %v11772_v4  ;;  %2170 = vst.msk [vmem:[#allocation4 + $0x14c] sm:$0xf] %vm1096_vm5, %v11819_v28  ;;  %v11821_v60 = vpack.c.bf16 %v2046_v34, %v2046_v34  ;;  %v1696_v30 = vld [vmem:[#allocation2 + $0xab] sm:$0xff]  ;;  %v11823_v31 = vpack.c.bf16 %v2048_v61, %v2048_v61  ;;  %v1698_v1 = vld [vmem:[#allocation2 + $0xbb] sm:$0xff] }
 0x2f4   :  { %1608 = vrot.lane.b32.xlu1 %v14882_v29, %s13936_s21  ;;  %v11817_v29 = vpack.c.bf16 %v2042_v32, %v2042_v32  ;;  %1823 = vst.msk [vmem:[#allocation4 + $0x1ac] sm:$0xf] %vm1096_vm5, %v11774_v24  ;;  %v11773_v32 = vpack.c.bf16 %v1696_v30, %v1696_v30  ;;  %v1498_v51 = vld [vmem:[#allocation2 + $0xc2] sm:$0xff]  ;;  %v1700_v49 = vld [vmem:[#allocation2 + $0xcb] sm:$0xff]  ;;  %v1497_v39 = vld [vmem:[#allocation2 + $0xba] sm:$0xff] }
 0x2f5   :  { %1818 = vst.msk [vmem:[#allocation4 + $0x148] sm:$0xf] %vm1096_vm5, %v11769_v37  ;;  %2172 = vst.msk [vmem:[#allocation4 + $0x174] sm:$0xf] %vm1096_vm5, %v11821_v60  ;;  %v1144_v0 = vld [vmem:[#allocation2 + $0xb1] sm:$0xff]  ;;  %v11777_v37 = vpack.c.bf16 %v1700_v49, %v1700_v49  ;;  %v11751_v12 = vpack.c.bf16 %v1498_v51, %v1498_v51  ;;  %v11750_v24 = vpack.c.bf16 %v1497_v39, %v1497_v39  ;;  %v2180_v61 = vld [vmem:[#allocation2 + $0x1d] sm:$0xff] }
 0x2f6   :  { %2168 = vst.msk [vmem:[#allocation4 + $0x124] sm:$0xf] %vm1096_vm5, %v11817_v29  ;;  %v2050_v29 = vld [vmem:[#allocation2 + $0xc4] sm:$0xff]  ;;  %1822 = vst.msk [vmem:[#allocation4 + $0x198] sm:$0xf] %vm1096_vm5, %v11773_v32  ;;  %v13586_v4 = vld [vmem:[%s17433_s2 + $0xf0] sm:$0xff]   ;;  %v11700_v34 = vpack.c.bf16 %v1144_v0, %v1144_v0 }
 0x2f7   :  { %1614 = vrot.lane.b32.xlu0 %v11747_v59, %s13936_s21  ;;  %v1699_v59 = vld [vmem:[#allocation2 + $0xc3] sm:$0xff]  ;;  %2174 = vst.msk [vmem:[#allocation4 + $0x19c] sm:$0xf] %vm1096_vm5, %v11823_v31  ;;  %v11825_v21 = vpack.c.bf16 %v2050_v29, %v2050_v29  ;;  %v13587_v28 = vld [vmem:[%s17433_s2 + $0xb0] sm:$0xff]   ;;  %1826 = vst.msk [vmem:[#allocation4 + $0x1e8] sm:$0xf] %vm1096_vm5, %v11777_v37  ;;  %12290 = vmatprep.subr.bf16.mxu0 %v13586_v4 }
 0x2f8   :  { %1259 = vrot.lane.b32.xlu1 %v11696_v52, %s13936_s21  ;;  %v11776_v52 = vpack.c.bf16 %v1699_v59, %v1699_v59  ;;  %v2403_v57 = vld [vmem:[#allocation2 + $0xce] sm:$0xff]  ;;  %12291 = vmatpush3.bf16.msra.mxu0 %v13587_v28  ;;  %v13592_v32 = vld [vmem:[%s17433_s2 + $0xf8] sm:$0xff]   ;;  %v17534_v49 = vmov 0.0|0.0   ;;  %v2181_v28 = vld [vmem:[#allocation2 + $0x25] sm:$0xff] }
 0x2f9   :  { %2176 = vst.msk [vmem:[#allocation4 + $0x1c4] sm:$0xf] %vm1096_vm5, %v11825_v21  ;;  %v11876_v8 = vpack.c.bf16 %v2403_v57, %v2403_v57  ;;  %v1828_v60 = vld [vmem:[#allocation2 + $0x14] sm:$0xff]  ;;  %12292 = vmatprep.subr.bf16.mxu0 %v13592_v32 }
 0x2fa   :  { %1825 = vst.msk [vmem:[#allocation4 + $0x1d4] sm:$0xf] %vm1096_vm5, %v11776_v52  ;;  %v11779_v30 = vpack.c.bf16 %v1828_v60, %v1828_v60  ;;  %v11829_v52 = vpack.c.bf16 %v2180_v61, %v2180_v61  ;;  %v2179_v29 = vld [vmem:[#allocation2 + $0x15] sm:$0xff]  ;;  %v2182_v21 = vld [vmem:[#allocation2 + $0x2d] sm:$0xff]  ;;  %v1834_v60 = vld [vmem:[#allocation2 + $0x44] sm:$0xff] }
 0x2fb   :  { %1265 = vrot.lane.b32.xlu0 %v11699_v10, %s13936_s21  ;;  %v11775_v10 = vpack.c.bf16 %v1698_v1, %v1698_v1  ;;  %2529 = vst.msk [vmem:[#allocation4 + $0x1dc] sm:$0xf] %vm1096_vm5, %v11876_v8  ;;  %v1830_v1 = vld [vmem:[#allocation2 + $0x24] sm:$0xff]  ;;  %v11831_v0 = vpack.c.bf16 %v2182_v21, %v2182_v21  ;;  %v1832_v4 = vld [vmem:[#allocation2 + $0x34] sm:$0xff]  ;;  %v11830_v8 = vpack.c.bf16 %v2181_v28, %v2181_v28 }
 0x2fc   :  { %1612 = vrot.lane.b32.xlu1 %v14890_v5, %s13936_s21  ;;  %v1495_v5 = vld [vmem:[#allocation2 + $0xaa] sm:$0xff]  ;;  %v11781_v51 = vpack.c.bf16 %v1830_v1, %v1830_v1  ;;  %v11783_v57 = vpack.c.bf16 %v1832_v4, %v1832_v4 }
 0x2fd   :  { %v11748_v13 = vpack.c.bf16 %v1495_v5, %v1495_v5  ;;  %1824 = vst.msk [vmem:[#allocation4 + $0x1c0] sm:$0xf] %vm1096_vm5, %v11775_v10  ;;  %v1827_v5 = vld [vmem:[#allocation2 + $0xc] sm:$0xff]  ;;  %v11828_v10 = vpack.c.bf16 %v2179_v29, %v2179_v29 }
 0x2fe   :  { %v11778_v31 = vpack.c.bf16 %v1827_v5, %v1827_v5  ;;  %v2186_v32 = vld [vmem:[#allocation2 + $0x4d] sm:$0xff]  ;;  %v2185_v21 = vld [vmem:[#allocation2 + $0x45] sm:$0xff] }
 0x2ff   :  { %1618 = vrot.lane.b32.xlu0 %v11749_v23, %s13936_s21  ;;  %v1499_v23 = vld [vmem:[#allocation2 + $0xca] sm:$0xff]  ;;  %v11835_v29 = vpack.c.bf16 %v2186_v32, %v2186_v32  ;;  %v11834_v4 = vpack.c.bf16 %v2185_v21, %v2185_v21 }
 0x300   :  { %1263 = vrot.lane.b32.xlu1 %v11698_v50, %s13936_s21  ;;  %v11752_v18 = vpack.c.bf16 %v1499_v23, %v1499_v23  ;;  %v1146_v50 = vld [vmem:[#allocation2 + $0xc1] sm:$0xff] }
 0x301   :  { %v11702_v59 = vpack.c.bf16 %v1146_v50, %v1146_v50  ;;  %v2183_v50 = vld [vmem:[#allocation2 + $0x35] sm:$0xff] }
 0x302   :  { %v11832_v5 = vpack.c.bf16 %v2183_v50, %v2183_v50  ;;  %v2187_v50 = vld [vmem:[#allocation2 + $0x55] sm:$0xff] }
 0x303   :  { %1269 = vrot.lane.b32.xlu0 %v11701_v26, %s13936_s21  ;;  %v13593_v26 = vld [vmem:[%s17433_s2 + $0xb8] sm:$0xff]  }
 0x304   :  { %1616 = vrot.lane.b32.xlu1 %v11748_v13, %s13936_s21  ;;  %12293 = vmatpush3.bf16.msra.mxu0 %v13593_v26  ;;  %v1829_v13 = vld [vmem:[#allocation2 + $0x1c] sm:$0xff] }
 0x305   :  { %13285 = vmatprep.subr.bf16.mxu0 %v17534_v49  ;;  %v11780_v37 = vpack.c.bf16 %v1829_v13, %v1829_v13 }
 0x307   :  { %1622 = vrot.lane.b32.xlu0 %v11751_v12, %s13936_s21  ;;  %v2184_v12 = vld [vmem:[#allocation2 + $0x3d] sm:$0xff] }
 0x308   :  { %1267 = vrot.lane.b32.xlu1 %v11700_v34, %s13936_s21  ;;  %v1831_v34 = vld [vmem:[#allocation2 + $0x2c] sm:$0xff]  ;;  %v11833_v39 = vpack.c.bf16 %v2184_v12, %v2184_v12 }
 0x309   :  { %v1835_v12 = vld [vmem:[#allocation2 + $0x4c] sm:$0xff] }
 0x30b   :  { %1624 = vrot.lane.b32.xlu0 %v11752_v18, %s13936_s21 }
 0x30c   :  { %1620 = vrot.lane.b32.xlu1 %v11750_v24, %s13936_s21  ;;  %v11782_v24 = vpack.c.bf16 %v1831_v34, %v1831_v34  ;;  %v13555_v34 = vld [vmem:[%s17433_s2 + $0x100] sm:$0xff]  }
 0x30f   :  { %1930 = vrot.lane.b32.xlu0 %v11779_v30, %s13936_s21 }
 0x310   :  { %1271 = vrot.lane.b32.xlu1 %v11702_v59, %s13936_s21  ;;  %v11785_v59 = vpack.c.bf16 %v1834_v60, %v1834_v60  ;;  %v1838_v60 = vld [vmem:[#allocation2 + $0x64] sm:$0xff] }
 0x313   :  { %2282 = vrot.lane.b32.xlu0 %v11829_v52, %s13936_s21  ;;  %v1833_v52 = vld [vmem:[#allocation2 + $0x3c] sm:$0xff] }
 0x314   :  { %1928 = vrot.lane.b32.xlu1 %v11778_v31, %s13936_s21 }
 0x317   :  { %1934 = vrot.lane.b32.xlu0 %v11781_v51, %s13936_s21  ;;  %v11784_v51 = vpack.c.bf16 %v1833_v52, %v1833_v52  ;;  %v11836_v52 = vpack.c.bf16 %v2187_v50, %v2187_v50  ;;  %v1839_v50 = vld [vmem:[#allocation2 + $0x6c] sm:$0xff] }
 0x318   :  { %2280 = vrot.lane.b32.xlu1 %v11828_v10, %s13936_s21  ;;  %v1836_v10 = vld [vmem:[#allocation2 + $0x54] sm:$0xff] }
 0x31b   :  { %2286 = vrot.lane.b32.xlu0 %v11831_v0, %s13936_s21  ;;  %v11787_v0 = vpack.c.bf16 %v1836_v10, %v1836_v10 }
 0x31c   :  { %1932 = vrot.lane.b32.xlu1 %v11780_v37, %s13936_s21 }
 0x31f   :  { %1938 = vrot.lane.b32.xlu0 %v11783_v57, %s13936_s21 }
 0x320   :  { %2284 = vrot.lane.b32.xlu1 %v11830_v8, %s13936_s21 }
 0x321   :  { %v1577_v23 = vpop.permute.xlu0 %1576 }
 0x322   :  { %1651 = vst.msk [vmem:[#allocation4 + $0x4] sm:$0xf] %vm1298_vm4, %v1577_v23  ;;  %v1226_v18 = vpop.permute.xlu1 %1225 }
 0x323   :  { %1300 = vst.msk [vmem:[#allocation4 + $0x14] sm:$0xf] %vm1298_vm4, %v1226_v18  ;;  %2290 = vrot.lane.b32.xlu0 %v11833_v39, %s13936_s21 }
 0x324   :  { %1936 = vrot.lane.b32.xlu1 %v11782_v24, %s13936_s21  ;;  %v11786_v24 = vpack.c.bf16 %v1835_v12, %v1835_v12  ;;  %v2192_v12 = vld [vmem:[#allocation2 + $0x7d] sm:$0xff] }
 0x325   :  { %v1228_v30 = vpop.permute.xlu0 %1227 }
 0x326   :  { %1301 = vst.msk [vmem:[#allocation4 + $0x28] sm:$0xf] %vm1298_vm4, %v1228_v30  ;;  %v1579_v61 = vpop.permute.xlu1 %1578  ;;  %v13566_v30 = vld [vmem:[%s17433_s2 + $0x108] sm:$0xff]  }
 0x327   :  { %1652 = vst.msk [vmem:[#allocation4 + $0x18] sm:$0xf] %vm1298_vm4, %v1579_v61  ;;  %1942 = vrot.lane.b32.xlu0 %v11785_v59, %s13936_s21  ;;  %v11789_v61 = vpack.c.bf16 %v1838_v60, %v1838_v60 }
 0x328   :  { %2288 = vrot.lane.b32.xlu1 %v11832_v5, %s13936_s21  ;;  %v2190_v5 = vld [vmem:[#allocation2 + $0x6d] sm:$0xff] }
 0x329   :  { %v2531_v31 = vld [vmem:[#allocation4] sm:$0xff]  ;;  %v1581_v1 = vpop.permute.xlu0 %1580  ;;  %v11839_v21 = vpack.c.bf16 %v2190_v5, %v2190_v5  ;;  %v11790_v5 = vpack.c.bf16 %v1839_v50, %v1839_v50 }
 0x32a   :  { %4484 = vst.msk [vmem:[#allocation4 + $0x4] sm:$0xf] %vm1096_vm5, %v14907_v41  ;;  %v1230_v26 = vpop.permute.xlu1 %1229  ;;  %v2188_v41 = vld [vmem:[#allocation2 + $0x5d] sm:$0xff] }
 0x32b   :  { %1653 = vst.msk [vmem:[#allocation4 + $0x2c] sm:$0xf] %vm1298_vm4, %v1581_v1  ;;  %1302 = vst.msk [vmem:[#allocation4 + $0x3c] sm:$0xf] %vm1298_vm4, %v1230_v26  ;;  %2294 = vrot.lane.b32.xlu0 %v11835_v29, %s13936_s21  ;;  %v11837_v39 = vpack.c.bf16 %v2188_v41, %v2188_v41  ;;  %v13590_v41 = vld [vmem:[%s17433_s2 + $0x118] sm:$0xff]  }
 0x32c   :  { %1940 = vrot.lane.b32.xlu1 %v11784_v51, %s13936_s21  ;;  %v1837_v51 = vld [vmem:[#allocation2 + $0x5c] sm:$0xff] }
 0x32d   :  { %v1232_v13 = vpop.permute.xlu0 %1231 }
 0x32e   :  { %1303 = vst.msk [vmem:[#allocation4 + $0x50] sm:$0xf] %vm1298_vm4, %v1232_v13  ;;  %v1583_v37 = vpop.permute.xlu1 %1582  ;;  %v2534_v28 = vld [vmem:[#allocation4 + $0x14] sm:$0xff]  ;;  %v15187_v13 = vld [vmem:[#allocation3] sm:$0xff] }
 0x32f   :  { %1654 = vst.msk [vmem:[#allocation4 + $0x40] sm:$0xf] %vm1298_vm4, %v1583_v37  ;;  %1946 = vrot.lane.b32.xlu0 %v11787_v0, %s13936_s21  ;;  %v10934_v57 = vcombine.high %v2531_v31, %v2534_v28  ;;  %v10933_v8 = vcombine.low %v2531_v31, %v2534_v28  ;;  %v11788_v37 = vpack.c.bf16 %v1837_v51, %v1837_v51  ;;  %v2189_v28 = vld [vmem:[#allocation2 + $0x65] sm:$0xff] }
 0x330   :  { %2292 = vrot.lane.b32.xlu1 %v11834_v4, %s13936_s21  ;;  %v1840_v4 = vld [vmem:[#allocation2 + $0x74] sm:$0xff] }
 0x331   :  { %3282 = vmatprep.mubr.bf16.mxu1 %v10934_v57  ;;  %v1585_v23 = vpop.permute.xlu0 %1584 }
 0x332   :  { %1655 = vst.msk [vmem:[#allocation4 + $0x54] sm:$0xf] %vm1298_vm4, %v1585_v23  ;;  %v1234_v18 = vpop.permute.xlu1 %1233  ;;  %3283 = vmatmul.mubr.bf16.vlgmr.msra.gmra.mrb[4].mxu1 %v10933_v8  ;;  %v2537_v31 = vld [vmem:[#allocation4 + $0x28] sm:$0xff]  ;;  %v11791_v8 = vpack.c.bf16 %v1840_v4, %v1840_v4  ;;  %v11838_v23 = vpack.c.bf16 %v2189_v28, %v2189_v28 }
 0x333   :  { %1304 = vst.msk [vmem:[#allocation4 + $0x64] sm:$0xf] %vm1298_vm4, %v1234_v18  ;;  %2298 = vrot.lane.b32.xlu0 %v11837_v39, %s13936_s21  ;;  %12916 = vmatpush3.bf16.msra.mxu1 %v13555_v34 }
 0x334   :  { %1944 = vrot.lane.b32.xlu1 %v11786_v24, %s13936_s21  ;;  %12917 = vmatprep.subr.bf16.mxu1 %v14952_v55  ;;  %v13579_v55 = vld [vmem:[%s17433_s2 + $0x110] sm:$0xff]  }
 0x335   :  { %v1238_v59 = vpop.permute.xlu0 %1237 }
 0x336   :  { %1306 = vst.msk [vmem:[#allocation4 + $0x8c] sm:$0xf] %vm1298_vm4, %v1238_v59  ;;  %v1587_v32 = vpop.permute.xlu1 %1586  ;;  %v2540_v1 = vld [vmem:[#allocation4 + $0x3c] sm:$0xff]  ;;  %v11841_v59 = vpack.c.bf16 %v2192_v12, %v2192_v12 }
 0x337   :  { %v13553_v29 = vld [vmem:[#allocation4 + $0x2c] ss:$20 sps:$4 sm:$0xff]   ;;  %1656 = vst.msk [vmem:[#allocation4 + $0x68] sm:$0xf] %vm1298_vm4, %v1587_v32  ;;  %1950 = vrot.lane.b32.xlu0 %v11789_v61, %s13936_s21  ;;  %v10938_v26 = vcombine.low %v2537_v31, %v2540_v1  ;;  %12918 = vmatpush3.bf16.msra.mxu1 %v13566_v30 }
 0x338   :  { %2296 = vrot.lane.b32.xlu1 %v11836_v52, %s13936_s21  ;;  %3290 = vmatprep.mubr.bf16.mxu1 %v13553_v29  ;;  %v1842_v32 = vld [vmem:[#allocation2 + $0x84] sm:$0xff]  ;;  %v2191_v52 = vld [vmem:[#allocation2 + $0x75] sm:$0xff]  ;;  %v2194_v29 = vld [vmem:[#allocation2 + $0x8d] sm:$0xff] }
 0x339   :  { %v1591_v10 = vpop.permute.xlu0 %1590  ;;  %12919 = vmatprep.subr.bf16.mxu1 %v15187_v13  ;;  %v2543_v39 = vld [vmem:[#allocation4 + $0x50] sm:$0xff]  ;;  %v11793_v1 = vpack.c.bf16 %v1842_v32, %v1842_v32  ;;  %v11840_v51 = vpack.c.bf16 %v2191_v52, %v2191_v52  ;;  %v11843_v4 = vpack.c.bf16 %v2194_v29, %v2194_v29 }
 0x33a   :  { %1658 = vst.msk [vmem:[#allocation4 + $0x90] sm:$0xf] %vm1298_vm4, %v1591_v10  ;;  %v1236_v0 = vpop.permute.xlu1 %1235  ;;  %3291 = vmatmul.mubr.bf16.gmra.mrb[8].mxu1 %v10938_v26 }
 0x33b   :  { %1305 = vst.msk [vmem:[#allocation4 + $0x78] sm:$0xf] %vm1298_vm4, %v1236_v0  ;;  %2302 = vrot.lane.b32.xlu0 %v11839_v21, %s13936_s21  ;;  %12920 = vmatpush3.bf16.msra.mxu1 %v13579_v55 }
 0x33c   :  { %1948 = vrot.lane.b32.xlu1 %v11788_v37, %s13936_s21  ;;  %12921 = vmatprep.subr.bf16.mxu1 %v15187_v13 }
 0x33d   :  { %v1242_v57 = vpop.permute.xlu0 %1241 }
 0x33e   :  { %1308 = vst.msk [vmem:[#allocation4 + $0xb4] sm:$0xf] %vm1298_vm4, %v1242_v57  ;;  %v1589_v34 = vpop.permute.xlu1 %1588  ;;  %v2546_v18 = vld [vmem:[#allocation4 + $0x64] sm:$0xff]  ;;  %v2193_v57 = vld [vmem:[#allocation2 + $0x85] sm:$0xff] }
 0x33f   :  { %v13556_v24 = vld [vmem:[#allocation4 + $0x54] ss:$20 sps:$4 sm:$0xff]   ;;  %1657 = vst.msk [vmem:[#allocation4 + $0x7c] sm:$0xf] %vm1298_vm4, %v1589_v34  ;;  %1954 = vrot.lane.b32.xlu0 %v11791_v8, %s13936_s21  ;;  %v10943_v60 = vcombine.low %v2543_v39, %v2546_v18  ;;  %12922 = vmatpush3.bf16.msra.mxu1 %v13590_v41  ;;  %v1844_v41 = vld [vmem:[#allocation2 + $0x94] sm:$0xff]  ;;  %v11842_v39 = vpack.c.bf16 %v2193_v57, %v2193_v57 }
 0x340   :  { %2300 = vrot.lane.b32.xlu1 %v11838_v23, %s13936_s21  ;;  %3298 = vmatprep.mubr.bf16.mxu1 %v13556_v24  ;;  %v11795_v12 = vpack.c.bf16 %v1844_v41, %v1844_v41  ;;  %v2196_v34 = vld [vmem:[#allocation2 + $0x9d] sm:$0xff] }
 0x341   :  { %v1595_v30 = vpop.permute.xlu0 %1594  ;;  %v2552_v10 = vld [vmem:[#allocation4 + $0x8c] sm:$0xff] }
 0x342   :  { %1660 = vst.msk [vmem:[#allocation4 + $0xb8] sm:$0xf] %vm1298_vm4, %v1595_v30  ;;  %v1240_v61 = vpop.permute.xlu1 %1239  ;;  %3299 = vmatmul.mubr.bf16.gmra.mrb[12].mxu1 %v10943_v60  ;;  %v2200_v57 = vld [vmem:[#allocation2 + $0xbd] sm:$0xff] }
 0x343   :  { %1307 = vst.msk [vmem:[#allocation4 + $0xa0] sm:$0xf] %vm1298_vm4, %v1240_v61  ;;  %2306 = vrot.lane.b32.xlu0 %v11841_v59, %s13936_s21  ;;  %v1846_v61 = vld [vmem:[#allocation2 + $0xa4] sm:$0xff] }
 0x344   :  { %1952 = vrot.lane.b32.xlu1 %v11790_v5, %s13936_s21  ;;  %v2195_v5 = vld [vmem:[#allocation2 + $0x95] sm:$0xff]  ;;  %v11797_v52 = vpack.c.bf16 %v1846_v61, %v1846_v61 }
 0x345   :  { %v1246_v31 = vpop.permute.xlu0 %1245  ;;  %v11844_v29 = vpack.c.bf16 %v2195_v5, %v2195_v5  ;;  %v2202_v5 = vld [vmem:[#allocation2 + $0xcd] sm:$0xff] }
 0x346   :  { %1310 = vst.msk [vmem:[#allocation4 + $0xdc] sm:$0xf] %vm1298_vm4, %v1246_v31  ;;  %v1593_v26 = vpop.permute.xlu1 %1592  ;;  %v2549_v55 = vld [vmem:[#allocation4 + $0x78] sm:$0xff] }
 0x347   :  { %v13560_v21 = vld [vmem:[#allocation4 + $0x7c] ss:$20 sps:$4 sm:$0xff]   ;;  %1659 = vst.msk [vmem:[#allocation4 + $0xa4] sm:$0xf] %vm1298_vm4, %v1593_v26  ;;  %1958 = vrot.lane.b32.xlu0 %v11793_v1, %s13936_s21  ;;  %v10948_v0 = vcombine.low %v2549_v55, %v2552_v10 }
 0x348   :  { %2304 = vrot.lane.b32.xlu1 %v11840_v51, %s13936_s21  ;;  %3306 = vmatprep.mubr.bf16.mxu1 %v13560_v21  ;;  %v2198_v31 = vld [vmem:[#allocation2 + $0xad] sm:$0xff] }
 0x349   :  { %v1599_v37 = vpop.permute.xlu0 %1598  ;;  %v2558_v24 = vld [vmem:[#allocation4 + $0xb4] sm:$0xff] }
 0x34a   :  { %1662 = vst.msk [vmem:[#allocation4 + $0xe0] sm:$0xf] %vm1298_vm4, %v1599_v37  ;;  %v1244_v28 = vpop.permute.xlu1 %1243  ;;  %3307 = vmatmul.mubr.bf16.gmra.mrb[16].mxu1 %v10948_v0  ;;  %v1848_v37 = vld [vmem:[#allocation2 + $0xb4] sm:$0xff] }
 0x34b   :  { %1309 = vst.msk [vmem:[#allocation4 + $0xc8] sm:$0xf] %vm1298_vm4, %v1244_v28  ;;  %2310 = vrot.lane.b32.xlu0 %v11843_v4, %s13936_s21  ;;  %v2197_v4 = vld [vmem:[#allocation2 + $0xa5] sm:$0xff]  ;;  %v11799_v41 = vpack.c.bf16 %v1848_v37, %v1848_v37 }
 0x34c   :  { %1956 = vrot.lane.b32.xlu1 %v14967_v38, %s13936_s21  ;;  %v11845_v38 = vpack.c.bf16 %v2196_v34, %v2196_v34 }
 0x34d   :  { %v1250_v8 = vpop.permute.xlu0 %1249 }
 0x34e   :  { %1312 = vst.msk [vmem:[#allocation4 + $0x104] sm:$0xf] %vm1298_vm4, %v1250_v8  ;;  %v1597_v23 = vpop.permute.xlu1 %1596  ;;  %v2555_v18 = vld [vmem:[#allocation4 + $0xa0] sm:$0xff] }
 0x34f   :  { %v13562_v60 = vld [vmem:[#allocation4 + $0xa4] ss:$20 sps:$4 sm:$0xff]   ;;  %1661 = vst.msk [vmem:[#allocation4 + $0xcc] sm:$0xf] %vm1298_vm4, %v1597_v23  ;;  %1962 = vrot.lane.b32.xlu0 %v11795_v12, %s13936_s21  ;;  %v10953_v50 = vcombine.low %v2555_v18, %v2558_v24  ;;  %v11846_v12 = vpack.c.bf16 %v2197_v4, %v2197_v4 }
 0x350   :  { %2308 = vrot.lane.b32.xlu1 %v11842_v39, %s13936_s21  ;;  %3314 = vmatprep.mubr.bf16.mxu1 %v13562_v60 }
 0x351   :  { %v1603_v30 = vpop.permute.xlu0 %1602  ;;  %v2564_v51 = vld [vmem:[#allocation4 + $0xdc] sm:$0xff] }
 0x352   :  { %1664 = vst.msk [vmem:[#allocation4 + $0x108] sm:$0xf] %vm1298_vm4, %v1603_v30  ;;  %v1248_v59 = vpop.permute.xlu1 %1247  ;;  %3315 = vmatmul.mubr.bf16.gmra.mrb[20].mxu1 %v10953_v50  ;;  %v1850_v50 = vld [vmem:[#allocation2 + $0xc4] sm:$0xff]  ;;  %v2199_v30 = vld [vmem:[#allocation2 + $0xb5] sm:$0xff] }
 0x353   :  { %1311 = vst.msk [vmem:[#allocation4 + $0xf0] sm:$0xf] %vm1298_vm4, %v1248_v59  ;;  %2314 = vrot.lane.b32.xlu0 %v11845_v38, %s13936_s21  ;;  %v2052_v38 = vld [vmem:[#allocation2 + $0xd4] sm:$0xff]  ;;  %v11801_v61 = vpack.c.bf16 %v1850_v50, %v1850_v50 }
 0x354   :  { %1960 = vrot.lane.b32.xlu1 %v14983_v42, %s13936_s21  ;;  %v11847_v42 = vpack.c.bf16 %v2198_v31, %v2198_v31  ;;  %v11848_v31 = vpack.c.bf16 %v2199_v30, %v2199_v30 }
 0x355   :  { %v1254_v32 = vpop.permute.xlu0 %1253 }
 0x356   :  { %1314 = vst.msk [vmem:[#allocation4 + $0x12c] sm:$0xf] %vm1298_vm4, %v1254_v32  ;;  %v1601_v1 = vpop.permute.xlu1 %1600  ;;  %v2561_v26 = vld [vmem:[#allocation4 + $0xc8] sm:$0xff]  ;;  %v11827_v32 = vpack.c.bf16 %v2052_v38, %v2052_v38 }
 0x357   :  { %v13567_v55 = vld [vmem:[#allocation4 + $0xcc] ss:$20 sps:$4 sm:$0xff]   ;;  %1663 = vst.msk [vmem:[#allocation4 + $0xf4] sm:$0xf] %vm1298_vm4, %v1601_v1  ;;  %1966 = vrot.lane.b32.xlu0 %v11797_v52, %s13936_s21  ;;  %v10958_v10 = vcombine.low %v2561_v26, %v2564_v51 }
 0x358   :  { %2312 = vrot.lane.b32.xlu1 %v11844_v29, %s13936_s21  ;;  %3322 = vmatprep.mubr.bf16.mxu1 %v13567_v55  ;;  %2178 = vst.msk [vmem:[#allocation4 + $0x1ec] sm:$0xf] %vm1096_vm5, %v11827_v32 }
 0x359   :  { %v1607_v21 = vpop.permute.xlu0 %1606  ;;  %v2570_v23 = vld [vmem:[#allocation4 + $0x104] sm:$0xff] }
 0x35a   :  { %1666 = vst.msk [vmem:[#allocation4 + $0x130] sm:$0xf] %vm1298_vm4, %v1607_v21  ;;  %v1252_v0 = vpop.permute.xlu1 %1251  ;;  %3323 = vmatmul.mubr.bf16.gmra.mrb[24].mxu1 %v10958_v10  ;;  %v11851_v10 = vpack.c.bf16 %v2202_v5, %v2202_v5 }
 0x35b   :  { %1313 = vst.msk [vmem:[#allocation4 + $0x118] sm:$0xf] %vm1298_vm4, %v1252_v0  ;;  %2318 = vrot.lane.b32.xlu0 %v11847_v42, %s13936_s21  ;;  %v2201_v42 = vld [vmem:[#allocation2 + $0xc5] sm:$0xff] }
 0x35c   :  { %1964 = vrot.lane.b32.xlu1 %v14989_v36, %s13936_s21  ;;  %v11849_v36 = vpack.c.bf16 %v2200_v57, %v2200_v57 }
 0x35d   :  { %v1258_v28 = vpop.permute.xlu0 %1257 }
 0x35e   :  { %1316 = vst.msk [vmem:[#allocation4 + $0x154] sm:$0xf] %vm1298_vm4, %v1258_v28  ;;  %v1605_v8 = vpop.permute.xlu1 %1604  ;;  %v2567_v34 = vld [vmem:[#allocation4 + $0xf0] sm:$0xff]  ;;  %v11850_v28 = vpack.c.bf16 %v2201_v42, %v2201_v42 }
 0x35f   :  { %v13571_v39 = vld [vmem:[#allocation4 + $0xf4] ss:$20 sps:$4 sm:$0xff]   ;;  %1665 = vst.msk [vmem:[#allocation4 + $0x11c] sm:$0xf] %vm1298_vm4, %v1605_v8  ;;  %1970 = vrot.lane.b32.xlu0 %v11799_v41, %s13936_s21  ;;  %v10963_v18 = vcombine.low %v2567_v34, %v2570_v23 }
 0x360   :  { %2316 = vrot.lane.b32.xlu1 %v11846_v12, %s13936_s21  ;;  %3330 = vmatprep.mubr.bf16.mxu1 %v13571_v39  ;;  %v2404_v39 = vld [vmem:[#allocation2 + $0xd6] sm:$0xff] }
 0x361   :  { %v1611_v24 = vpop.permute.xlu0 %1610  ;;  %v2576_v29 = vld [vmem:[#allocation4 + $0x12c] sm:$0xff]  ;;  %v11877_v50 = vpack.c.bf16 %v2404_v39, %v2404_v39 }
 0x362   :  { %1668 = vst.msk [vmem:[#allocation4 + $0x158] sm:$0xf] %vm1298_vm4, %v1611_v24  ;;  %v1256_v60 = vpop.permute.xlu1 %1255  ;;  %3331 = vmatmul.mubr.bf16.gmra.mrb[28].mxu1 %v10963_v18 }
 0x363   :  { %1315 = vst.msk [vmem:[#allocation4 + $0x140] sm:$0xf] %vm1298_vm4, %v1256_v60  ;;  %2322 = vrot.lane.b32.xlu0 %v11849_v36, %s13936_s21 }
 0x364   :  { %1968 = vrot.lane.b32.xlu1 %v15000_v47, %s13936_s21  ;;  %v2203_v47 = vld [vmem:[#allocation2 + $0xd5] sm:$0xff]  ;;  %2530 = vst.msk [vmem:[#allocation4 + $0x1f0] sm:$0xf] %vm1096_vm5, %v11877_v50 }
 0x365   :  { %v1262_v59 = vpop.permute.xlu0 %1261  ;;  %v11852_v0 = vpack.c.bf16 %v2203_v47, %v2203_v47 }
 0x366   :  { %1318 = vst.msk [vmem:[#allocation4 + $0x17c] sm:$0xf] %vm1298_vm4, %v1262_v59  ;;  %v1609_v52 = vpop.permute.xlu1 %1608  ;;  %v2573_v1 = vld [vmem:[#allocation4 + $0x118] sm:$0xff] }
 0x367   :  { %v13573_v26 = vld [vmem:[#allocation4 + $0x11c] ss:$20 sps:$4 sm:$0xff]   ;;  %1667 = vst.msk [vmem:[#allocation4 + $0x144] sm:$0xf] %vm1298_vm4, %v1609_v52  ;;  %1974 = vrot.lane.b32.xlu0 %v11801_v61, %s13936_s21  ;;  %v10968_v51 = vcombine.low %v2573_v1, %v2576_v29 }
 0x368   :  { %2320 = vrot.lane.b32.xlu1 %v11848_v31, %s13936_s21  ;;  %3338 = vmatprep.mubr.bf16.mxu1 %v13573_v26 }
 0x369   :  { %v1615_v55 = vpop.permute.xlu0 %1614  ;;  %v2582_v57 = vld [vmem:[#allocation4 + $0x154] sm:$0xff] }
 0x36a   :  { %1670 = vst.msk [vmem:[#allocation4 + $0x180] sm:$0xf] %vm1298_vm4, %v1615_v55  ;;  %v1260_v21 = vpop.permute.xlu1 %1259  ;;  %3339 = vmatmul.mubr.bf16.gmra.mrb[32].mxu1 %v10968_v51 }
 0x36b   :  { %1317 = vst.msk [vmem:[#allocation4 + $0x168] sm:$0xf] %vm1298_vm4, %v1260_v21  ;;  %2326 = vrot.lane.b32.xlu0 %v11851_v10, %s13936_s21  ;;  %v15267_v1 = vld [vmem:[#allocation4 + $0x1f0] ss:$0 sps:$4 sm:$0xff]  }
 0x36c   :  { %1972 = vrot.lane.b32.xlu1 %v15014_v63, %s13936_s21  ;;  %5564 = vst.msk [vmem:[#allocation4 + $0x1f0] sm:$0xf] %vm1096_vm5, %v11877_v50 }
 0x36d   :  { %v1266_v37 = vpop.permute.xlu0 %1265 }
 0x36e   :  { %1320 = vst.msk [vmem:[#allocation4 + $0x1a4] sm:$0xf] %vm1298_vm4, %v1266_v37  ;;  %v1613_v4 = vpop.permute.xlu1 %1612  ;;  %v2579_v41 = vld [vmem:[#allocation4 + $0x140] sm:$0xff] }
 0x36f   :  { %v13577_v8 = vld [vmem:[#allocation4 + $0x144] ss:$20 sps:$4 sm:$0xff]   ;;  %1669 = vst.msk [vmem:[#allocation4 + $0x16c] sm:$0xf] %vm1298_vm4, %v1613_v4  ;;  %v10973_v12 = vcombine.low %v2579_v41, %v2582_v57  ;;  %2328 = vrot.lane.b32.xlu0 %v11852_v0, %s13936_s21 }
 0x370   :  { %2324 = vrot.lane.b32.xlu1 %v11850_v28, %s13936_s21  ;;  %3346 = vmatprep.mubr.bf16.mxu1 %v13577_v8 }
 0x371   :  { %v1619_v34 = vpop.permute.xlu0 %1618  ;;  %v2588_v36 = vld [vmem:[#allocation4 + $0x17c] sm:$0xff] }
 0x372   :  { %1672 = vst.msk [vmem:[#allocation4 + $0x1a8] sm:$0xf] %vm1298_vm4, %v1619_v34  ;;  %v1264_v63 = vpop.permute.xlu1 %1263  ;;  %3347 = vmatmul.mubr.bf16.gmra.mrb[36].mxu1 %v10973_v12 }
 0x373   :  { %1319 = vst.msk [vmem:[#allocation4 + $0x190] sm:$0xf] %vm1298_vm4, %v1264_v63 }
 0x374   :  { %1976 = vrot.lane.b32.xlu1 %v15025_v35, %s13936_s21 }
 0x375   :  { %v1270_v23 = vpop.permute.xlu0 %1269 }
 0x376   :  { %1322 = vst.msk [vmem:[#allocation4 + $0x1cc] sm:$0xf] %vm1298_vm4, %v1270_v23  ;;  %v1617_v18 = vpop.permute.xlu1 %1616  ;;  %v2585_v24 = vld [vmem:[#allocation4 + $0x168] sm:$0xff] }
 0x377   :  { %v13581_v60 = vld [vmem:[#allocation4 + $0x16c] ss:$20 sps:$4 sm:$0xff]   ;;  %1671 = vst.msk [vmem:[#allocation4 + $0x194] sm:$0xf] %vm1298_vm4, %v1617_v18  ;;  %v10978_v30 = vcombine.low %v2585_v24, %v2588_v36 }
 0x378   :  { %3354 = vmatprep.mubr.bf16.mxu1 %v13581_v60  ;;  %v13596_v60 = vld [vmem:[#allocation4 + $0x10] ss:$20 sps:$4 sm:$0xff]  }
 0x379   :  { %v1623_v38 = vpop.permute.xlu0 %1622  ;;  %v2594_v32 = vld [vmem:[#allocation4 + $0x1a4] sm:$0xff] }
 0x37a   :  { %1674 = vst.msk [vmem:[#allocation4 + $0x1d0] sm:$0xf] %vm1298_vm4, %v1623_v38  ;;  %v1268_v59 = vpop.permute.xlu1 %1267  ;;  %3355 = vmatmul.mubr.bf16.gmra.mrb[40].mxu1 %v10978_v30 }
 0x37b   :  { %1321 = vst.msk [vmem:[#allocation4 + $0x1b8] sm:$0xf] %vm1298_vm4, %v1268_v59 }
 0x37d   :  { %v1625_v35 = vpop.permute.xlu0 %1624 }
 0x37e   :  { %1675 = vst.msk [vmem:[#allocation4 + $0x1e4] sm:$0xf] %vm1298_vm4, %v1625_v35  ;;  %v1621_v61 = vpop.permute.xlu1 %1620  ;;  %v2591_v5 = vld [vmem:[#allocation4 + $0x190] sm:$0xff] }
 0x37f   :  { %v13584_v52 = vld [vmem:[#allocation4 + $0x194] ss:$20 sps:$4 sm:$0xff]   ;;  %1673 = vst.msk [vmem:[#allocation4 + $0x1bc] sm:$0xf] %vm1298_vm4, %v1621_v61  ;;  %v10983_v31 = vcombine.low %v2591_v5, %v2594_v32 }
 0x380   :  { %3362 = vmatprep.mubr.bf16.mxu1 %v13584_v52  ;;  %v13599_v52 = vld [vmem:[#allocation4 + $0x38] ss:$20 sps:$4 sm:$0xff]  }
 0x381   :  { %v1931_v29 = vpop.permute.xlu0 %1930  ;;  %v2600_v10 = vld [vmem:[#allocation4 + $0x1cc] sm:$0xff] }
 0x382   :  { %2004 = vst.msk [vmem:[#allocation4 + $0x1c] sm:$0xf] %vm1298_vm4, %v1931_v29  ;;  %v1272_v26 = vpop.permute.xlu1 %1271  ;;  %3363 = vmatmul.mubr.bf16.gmra.mrb[44].mxu1 %v10983_v31 }
 0x383   :  { %1323 = vst.msk [vmem:[#allocation4 + $0x1e0] sm:$0xf] %vm1298_vm4, %v1272_v26 }
 0x385   :  { %v2283_v51 = vpop.permute.xlu0 %2282 }
 0x386   :  { %2356 = vst.msk [vmem:[#allocation4 + $0x20] sm:$0xf] %vm1298_vm4, %v2283_v51  ;;  %v1929_v47 = vpop.permute.xlu1 %1928  ;;  %v2597_v55 = vld [vmem:[#allocation4 + $0x1b8] sm:$0xff] }
 0x387   :  { %v13588_v21 = vld [vmem:[#allocation4 + $0x1bc] ss:$20 sps:$4 sm:$0xff]   ;;  %2003 = vst.msk [vmem:[#allocation4 + $0x8] sm:$0xf] %vm1298_vm4, %v1929_v47  ;;  %v10988_v42 = vcombine.low %v2597_v55, %v2600_v10 }
 0x388   :  { %3370 = vmatprep.mubr.bf16.mxu1 %v13588_v21 }
 0x389   :  { %v1935_v0 = vpop.permute.xlu0 %1934 }
 0x38a   :  { %2006 = vst.msk [vmem:[#allocation4 + $0x44] sm:$0xf] %vm1298_vm4, %v1935_v0  ;;  %v2281_v37 = vpop.permute.xlu1 %2280  ;;  %3371 = vmatmul.mubr.bf16.gmra.mrb[48].mxu1 %v10988_v42  ;;  %v2603_v4 = vld [vmem:[#allocation4 + $0x1e0] sm:$0xff] }
 0x38b   :  { %2355 = vst.msk [vmem:[#allocation4 + $0xc] sm:$0xf] %vm1298_vm4, %v2281_v37  ;;  %v10994_v28 = vcombine.high %v2603_v4, %v2603_v4  ;;  %v10993_v8 = vcombine.low %v2603_v4, %v2603_v4  ;;  %v13602_v42 = vld [vmem:[#allocation4 + $0x60] ss:$20 sps:$4 sm:$0xff]  }
 0x38d   :  { %3378 = vmatprep.mubr.bf16.mxu1 %v10994_v28  ;;  %v2287_v41 = vpop.permute.xlu0 %2286  ;;  %v2535_v23 = vld [vmem:[#allocation4 + $0x1c] sm:$0xff] }
 0x38e   :  { %2358 = vst.msk [vmem:[#allocation4 + $0x48] sm:$0xf] %vm1298_vm4, %v2287_v41  ;;  %v1933_v57 = vpop.permute.xlu1 %1932 }
 0x38f   :  { %2005 = vst.msk [vmem:[#allocation4 + $0x30] sm:$0xf] %vm1298_vm4, %v1933_v57 }
 0x391   :  { %v1939_v12 = vpop.permute.xlu0 %1938 }
 0x392   :  { %2008 = vst.msk [vmem:[#allocation4 + $0x6c] sm:$0xf] %vm1298_vm4, %v1939_v12  ;;  %v2285_v34 = vpop.permute.xlu1 %2284  ;;  %3379 = vmatmul.mubr.bf16.gmra.mrb[52].mxu1 %v10993_v8  ;;  %v2532_v63 = vld [vmem:[#allocation4 + $0x8] sm:$0xff] }
 0x393   :  { %v13594_v39 = vld [vmem:[#allocation4 + $0xc] ss:$20 sps:$4 sm:$0xff]   ;;  %2357 = vst.msk [vmem:[#allocation4 + $0x34] sm:$0xf] %vm1298_vm4, %v2285_v34  ;;  %v10935_v18 = vcombine.low %v2532_v63, %v2535_v23  ;;  %12923 = vmatprep.mubr.msk.bf16.mxu1 %vm13938_vm7, %v15187_v13  ;;  %v13605_v34 = vld [vmem:[#allocation4 + $0x88] ss:$20 sps:$4 sm:$0xff]  }
 0x394   :  { %3418 = vmatprep.mubr.bf16.mxu0 %v13594_v39 }
 0x395   :  { %v2291_v24 = vpop.permute.xlu0 %2290  ;;  %3419 = vmatmul.mubr.bf16.vlgmr.msra.gmra.mrb[52].mxu0 %v10935_v18  ;;  %v2541_v59 = vld [vmem:[#allocation4 + $0x44] sm:$0xff] }
 0x396   :  { %2360 = vst.msk [vmem:[#allocation4 + $0x70] sm:$0xf] %vm1298_vm4, %v2291_v24  ;;  %v1937_v36 = vpop.permute.xlu1 %1936 }
 0x397   :  { %2007 = vst.msk [vmem:[#allocation4 + $0x58] sm:$0xf] %vm1298_vm4, %v1937_v36 }
 0x399   :  { %v1943_v50 = vpop.permute.xlu0 %1942 }
 0x39a   :  { %2010 = vst.msk [vmem:[#allocation4 + $0x94] sm:$0xf] %vm1298_vm4, %v1943_v50  ;;  %v2289_v30 = vpop.permute.xlu1 %2288  ;;  %12924 = vmatmul.mubr.msk.bf16.vlgmr.msra.gmra.mrb[56].mxu1 %vm69_vm3, %v13596_v60  ;;  %v2538_v38 = vld [vmem:[#allocation4 + $0x30] sm:$0xff] }
 0x39b   :  { %v13597_v35 = vld [vmem:[#allocation4 + $0x34] ss:$20 sps:$4 sm:$0xff]   ;;  %2359 = vst.msk [vmem:[#allocation4 + $0x5c] sm:$0xf] %vm1298_vm4, %v2289_v30  ;;  %v10940_v61 = vcombine.low %v2538_v38, %v2541_v59  ;;  %12927 = vmatprep.mubr.msk.bf16.mxu1 %vm13938_vm7, %v15187_v13  ;;  %v13608_v30 = vld [vmem:[#allocation4 + $0xb0] ss:$20 sps:$4 sm:$0xff]  }
 0x39c   :  { %3426 = vmatprep.mubr.bf16.mxu0 %v13597_v35 }
 0x39d   :  { %v2295_v5 = vpop.permute.xlu0 %2294  ;;  %3427 = vmatmul.mubr.bf16.gmra.mrb[56].mxu0 %v10940_v61  ;;  %v2547_v51 = vld [vmem:[#allocation4 + $0x6c] sm:$0xff] }
 0x39e   :  { %2362 = vst.msk [vmem:[#allocation4 + $0x98] sm:$0xf] %vm1298_vm4, %v2295_v5  ;;  %v1941_v32 = vpop.permute.xlu1 %1940 }
 0x39f   :  { %2009 = vst.msk [vmem:[#allocation4 + $0x80] sm:$0xf] %vm1298_vm4, %v1941_v32 }
 0x3a1   :  { %v1947_v31 = vpop.permute.xlu0 %1946 }
 0x3a2   :  { %2012 = vst.msk [vmem:[#allocation4 + $0xbc] sm:$0xf] %vm1298_vm4, %v1947_v31  ;;  %v2293_v29 = vpop.permute.xlu1 %2292  ;;  %12928 = vmatmul.mubr.msk.bf16.gmra.mrb[60].mxu1 %vm69_vm3, %v13599_v52  ;;  %v2544_v26 = vld [vmem:[#allocation4 + $0x58] sm:$0xff] }
 0x3a3   :  { %v13600_v47 = vld [vmem:[#allocation4 + $0x5c] ss:$20 sps:$4 sm:$0xff]   ;;  %2361 = vst.msk [vmem:[#allocation4 + $0x84] sm:$0xf] %vm1298_vm4, %v2293_v29  ;;  %v10945_v55 = vcombine.low %v2544_v26, %v2547_v51  ;;  %12931 = vmatprep.mubr.msk.bf16.mxu1 %vm13938_vm7, %v15187_v13  ;;  %v13611_v29 = vld [vmem:[#allocation4 + $0xd8] ss:$20 sps:$4 sm:$0xff]  }
 0x3a4   :  { %3434 = vmatprep.mubr.bf16.mxu0 %v13600_v47 }
 0x3a5   :  { %v2299_v10 = vpop.permute.xlu0 %2298  ;;  %3435 = vmatmul.mubr.bf16.gmra.mrb[60].mxu0 %v10945_v55  ;;  %v2553_v28 = vld [vmem:[#allocation4 + $0x94] sm:$0xff] }
 0x3a6   :  { %2364 = vst.msk [vmem:[#allocation4 + $0xc0] sm:$0xf] %vm1298_vm4, %v2299_v10  ;;  %v1945_v21 = vpop.permute.xlu1 %1944 }
 0x3a7   :  { %2011 = vst.msk [vmem:[#allocation4 + $0xa8] sm:$0xf] %vm1298_vm4, %v1945_v21 }
 0x3a9   :  { %v1951_v0 = vpop.permute.xlu0 %1950 }
 0x3aa   :  { %2014 = vst.msk [vmem:[#allocation4 + $0xe4] sm:$0xf] %vm1298_vm4, %v1951_v0  ;;  %v2297_v37 = vpop.permute.xlu1 %2296  ;;  %12932 = vmatmul.mubr.msk.bf16.gmra.mrb[64].mxu1 %vm69_vm3, %v13602_v42  ;;  %v2550_v4 = vld [vmem:[#allocation4 + $0x80] sm:$0xff] }
 0x3ab   :  { %v13603_v41 = vld [vmem:[#allocation4 + $0x84] ss:$20 sps:$4 sm:$0xff]   ;;  %2363 = vst.msk [vmem:[#allocation4 + $0xac] sm:$0xf] %vm1298_vm4, %v2297_v37  ;;  %v10950_v57 = vcombine.low %v2550_v4, %v2553_v28  ;;  %12935 = vmatprep.mubr.msk.bf16.mxu1 %vm13938_vm7, %v15187_v13  ;;  %v13614_v37 = vld [vmem:[#allocation4 + $0x100] ss:$20 sps:$4 sm:$0xff]  }
 0x3ac   :  { %3442 = vmatprep.mubr.bf16.mxu0 %v13603_v41 }
 0x3ad   :  { %v2303_v8 = vpop.permute.xlu0 %2302  ;;  %3443 = vmatmul.mubr.bf16.gmra.mrb[64].mxu0 %v10950_v57  ;;  %v2559_v18 = vld [vmem:[#allocation4 + $0xbc] sm:$0xff] }
 0x3ae   :  { %2366 = vst.msk [vmem:[#allocation4 + $0xe8] sm:$0xf] %vm1298_vm4, %v2303_v8  ;;  %v1949_v12 = vpop.permute.xlu1 %1948 }
 0x3af   :  { %2013 = vst.msk [vmem:[#allocation4 + $0xd0] sm:$0xf] %vm1298_vm4, %v1949_v12 }
 0x3b1   :  { %v1955_v63 = vpop.permute.xlu0 %1954 }
 0x3b2   :  { %2016 = vst.msk [vmem:[#allocation4 + $0x10c] sm:$0xf] %vm1298_vm4, %v1955_v63  ;;  %v2301_v23 = vpop.permute.xlu1 %2300  ;;  %12936 = vmatmul.mubr.msk.bf16.gmra.mrb[68].mxu1 %vm69_vm3, %v13605_v34  ;;  %v2556_v39 = vld [vmem:[#allocation4 + $0xa8] sm:$0xff] }
 0x3b3   :  { %v13606_v24 = vld [vmem:[#allocation4 + $0xac] ss:$20 sps:$4 sm:$0xff]   ;;  %2365 = vst.msk [vmem:[#allocation4 + $0xd4] sm:$0xf] %vm1298_vm4, %v2301_v23  ;;  %v10955_v36 = vcombine.low %v2556_v39, %v2559_v18  ;;  %12939 = vmatprep.mubr.msk.bf16.mxu1 %vm13938_vm7, %v15187_v13  ;;  %v13617_v23 = vld [vmem:[#allocation4 + $0x128] ss:$20 sps:$4 sm:$0xff]  }
 0x3b4   :  { %3450 = vmatprep.mubr.bf16.mxu0 %v13606_v24 }
 0x3b5   :  { %v2307_v60 = vpop.permute.xlu0 %2306  ;;  %3451 = vmatmul.mubr.bf16.gmra.mrb[68].mxu0 %v10955_v36  ;;  %v2565_v61 = vld [vmem:[#allocation4 + $0xe4] sm:$0xff] }
 0x3b6   :  { %2368 = vst.msk [vmem:[#allocation4 + $0x110] sm:$0xf] %vm1298_vm4, %v2307_v60  ;;  %v1953_v50 = vpop.permute.xlu1 %1952 }
 0x3b7   :  { %2015 = vst.msk [vmem:[#allocation4 + $0xf8] sm:$0xf] %vm1298_vm4, %v1953_v50 }
 0x3b9   :  { %v1959_v38 = vpop.permute.xlu0 %1958 }
 0x3ba   :  { %2018 = vst.msk [vmem:[#allocation4 + $0x134] sm:$0xf] %vm1298_vm4, %v1959_v38  ;;  %v2305_v59 = vpop.permute.xlu1 %2304  ;;  %12940 = vmatmul.mubr.msk.bf16.gmra.mrb[72].mxu1 %vm69_vm3, %v13608_v30  ;;  %v2562_v35 = vld [vmem:[#allocation4 + $0xd0] sm:$0xff] }
 0x3bb   :  { %v13609_v5 = vld [vmem:[#allocation4 + $0xd4] ss:$20 sps:$4 sm:$0xff]   ;;  %2367 = vst.msk [vmem:[#allocation4 + $0xfc] sm:$0xf] %vm1298_vm4, %v2305_v59  ;;  %v10960_v32 = vcombine.low %v2562_v35, %v2565_v61  ;;  %12943 = vmatprep.mubr.msk.bf16.mxu1 %vm13938_vm7, %v15187_v13  ;;  %v13620_v59 = vld [vmem:[#allocation4 + $0x150] ss:$20 sps:$4 sm:$0xff]  }
 0x3bc   :  { %3458 = vmatprep.mubr.bf16.mxu0 %v13609_v5 }
 0x3bd   :  { %v2311_v52 = vpop.permute.xlu0 %2310  ;;  %3459 = vmatmul.mubr.bf16.gmra.mrb[72].mxu0 %v10960_v32  ;;  %v2571_v55 = vld [vmem:[#allocation4 + $0x10c] sm:$0xff] }
 0x3be   :  { %2370 = vst.msk [vmem:[#allocation4 + $0x138] sm:$0xf] %vm1298_vm4, %v2311_v52  ;;  %v1957_v31 = vpop.permute.xlu1 %1956 }
 0x3bf   :  { %2017 = vst.msk [vmem:[#allocation4 + $0x120] sm:$0xf] %vm1298_vm4, %v1957_v31 }
 0x3c1   :  { %v1963_v26 = vpop.permute.xlu0 %1962 }
 0x3c2   :  { %2020 = vst.msk [vmem:[#allocation4 + $0x15c] sm:$0xf] %vm1298_vm4, %v1963_v26  ;;  %v2309_v51 = vpop.permute.xlu1 %2308  ;;  %12944 = vmatmul.mubr.msk.bf16.gmra.mrb[76].mxu1 %vm69_vm3, %v13611_v29  ;;  %v2568_v47 = vld [vmem:[#allocation4 + $0xf8] sm:$0xff] }
 0x3c3   :  { %v13612_v10 = vld [vmem:[#allocation4 + $0xfc] ss:$20 sps:$4 sm:$0xff]   ;;  %2369 = vst.msk [vmem:[#allocation4 + $0x124] sm:$0xf] %vm1298_vm4, %v2309_v51  ;;  %v10965_v21 = vcombine.low %v2568_v47, %v2571_v55  ;;  %12947 = vmatprep.mubr.msk.bf16.mxu1 %vm13938_vm7, %v15187_v13  ;;  %v13623_v51 = vld [vmem:[#allocation4 + $0x178] ss:$20 sps:$4 sm:$0xff]  }
 0x3c4   :  { %3466 = vmatprep.mubr.bf16.mxu0 %v13612_v10 }
 0x3c5   :  { %v2315_v42 = vpop.permute.xlu0 %2314  ;;  %3467 = vmatmul.mubr.bf16.gmra.mrb[76].mxu0 %v10965_v21  ;;  %v2577_v57 = vld [vmem:[#allocation4 + $0x134] sm:$0xff] }
 0x3c6   :  { %2372 = vst.msk [vmem:[#allocation4 + $0x160] sm:$0xf] %vm1298_vm4, %v2315_v42  ;;  %v1961_v0 = vpop.permute.xlu1 %1960 }
 0x3c7   :  { %2019 = vst.msk [vmem:[#allocation4 + $0x148] sm:$0xf] %vm1298_vm4, %v1961_v0 }
 0x3c9   :  { %v1967_v4 = vpop.permute.xlu0 %1966 }
 0x3ca   :  { %2022 = vst.msk [vmem:[#allocation4 + $0x184] sm:$0xf] %vm1298_vm4, %v1967_v4  ;;  %v2313_v28 = vpop.permute.xlu1 %2312  ;;  %12948 = vmatmul.mubr.msk.bf16.gmra.mrb[80].mxu1 %vm69_vm3, %v13614_v37  ;;  %v2574_v41 = vld [vmem:[#allocation4 + $0x120] sm:$0xff] }
 0x3cb   :  { %v13615_v8 = vld [vmem:[#allocation4 + $0x124] ss:$20 sps:$4 sm:$0xff]   ;;  %2371 = vst.msk [vmem:[#allocation4 + $0x14c] sm:$0xf] %vm1298_vm4, %v2313_v28  ;;  %v10970_v12 = vcombine.low %v2574_v41, %v2577_v57  ;;  %12951 = vmatprep.mubr.msk.bf16.mxu1 %vm13938_vm7, %v15187_v13  ;;  %v13626_v4 = vld [vmem:[#allocation4 + $0x1a0] ss:$20 sps:$4 sm:$0xff]  }
 0x3cc   :  { %3474 = vmatprep.mubr.bf16.mxu0 %v13615_v8 }
 0x3cd   :  { %v2319_v34 = vpop.permute.xlu0 %2318  ;;  %3475 = vmatmul.mubr.bf16.gmra.mrb[80].mxu0 %v10970_v12  ;;  %v2583_v36 = vld [vmem:[#allocation4 + $0x15c] sm:$0xff] }
 0x3ce   :  { %2374 = vst.msk [vmem:[#allocation4 + $0x188] sm:$0xf] %vm1298_vm4, %v2319_v34  ;;  %v1965_v63 = vpop.permute.xlu1 %1964  ;;  %v13631_v12 = vld [vmem:[#allocation4 + $0x1c8] ss:$20 sps:$4 sm:$0xff]  }
 0x3cf   :  { %2021 = vst.msk [vmem:[#allocation4 + $0x170] sm:$0xf] %vm1298_vm4, %v1965_v63 }
 0x3d1   :  { %v1971_v39 = vpop.permute.xlu0 %1970 }
 0x3d2   :  { %2024 = vst.msk [vmem:[#allocation4 + $0x1ac] sm:$0xf] %vm1298_vm4, %v1971_v39  ;;  %v2317_v18 = vpop.permute.xlu1 %2316  ;;  %12952 = vmatmul.mubr.msk.bf16.gmra.mrb[84].mxu1 %vm69_vm3, %v13617_v23  ;;  %v2580_v24 = vld [vmem:[#allocation4 + $0x148] sm:$0xff] }
 0x3d3   :  { %v13618_v60 = vld [vmem:[#allocation4 + $0x14c] ss:$20 sps:$4 sm:$0xff]   ;;  %2373 = vst.msk [vmem:[#allocation4 + $0x174] sm:$0xf] %vm1298_vm4, %v2317_v18  ;;  %v10975_v50 = vcombine.low %v2580_v24, %v2583_v36  ;;  %12955 = vmatprep.mubr.msk.bf16.mxu1 %vm13938_vm7, %v15187_v13 }
 0x3d4   :  { %3482 = vmatprep.mubr.bf16.mxu0 %v13618_v60 }
 0x3d5   :  { %v2323_v30 = vpop.permute.xlu0 %2322  ;;  %3483 = vmatmul.mubr.bf16.gmra.mrb[84].mxu0 %v10975_v50  ;;  %v2589_v32 = vld [vmem:[#allocation4 + $0x184] sm:$0xff] }
 0x3d6   :  { %2376 = vst.msk [vmem:[#allocation4 + $0x1b0] sm:$0xf] %vm1298_vm4, %v2323_v30  ;;  %v1969_v38 = vpop.permute.xlu1 %1968 }
 0x3d7   :  { %2023 = vst.msk [vmem:[#allocation4 + $0x198] sm:$0xf] %vm1298_vm4, %v1969_v38 }
 0x3d9   :  { %v1975_v35 = vpop.permute.xlu0 %1974 }
 0x3da   :  { %2026 = vst.msk [vmem:[#allocation4 + $0x1d4] sm:$0xf] %vm1298_vm4, %v1975_v35  ;;  %v2321_v61 = vpop.permute.xlu1 %2320  ;;  %12956 = vmatmul.mubr.msk.bf16.gmra.mrb[88].mxu1 %vm69_vm3, %v13620_v59  ;;  %v2586_v5 = vld [vmem:[#allocation4 + $0x170] sm:$0xff] }
 0x3db   :  { %v13621_v52 = vld [vmem:[#allocation4 + $0x174] ss:$20 sps:$4 sm:$0xff]   ;;  %2375 = vst.msk [vmem:[#allocation4 + $0x19c] sm:$0xf] %vm1298_vm4, %v2321_v61  ;;  %v10980_v31 = vcombine.low %v2586_v5, %v2589_v32  ;;  %12959 = vmatprep.mubr.msk.bf16.mxu1 %vm13938_vm7, %v15187_v13 }
 0x3dc   :  { %3490 = vmatprep.mubr.bf16.mxu0 %v13621_v52 }
 0x3dd   :  { %v2327_v29 = vpop.permute.xlu0 %2326  ;;  %3491 = vmatmul.mubr.bf16.gmra.mrb[88].mxu0 %v10980_v31  ;;  %v2595_v21 = vld [vmem:[#allocation4 + $0x1ac] sm:$0xff] }
 0x3de   :  { %2378 = vst.msk [vmem:[#allocation4 + $0x1d8] sm:$0xf] %vm1298_vm4, %v2327_v29  ;;  %v1973_v26 = vpop.permute.xlu1 %1972 }
 0x3df   :  { %2025 = vst.msk [vmem:[#allocation4 + $0x1c0] sm:$0xf] %vm1298_vm4, %v1973_v26 }
 0x3e1   :  { %v2329_v47 = vpop.permute.xlu0 %2328 }
 0x3e2   :  { %v2325_v55 = vpop.permute.xlu1 %2324  ;;  %12960 = vmatmul.mubr.msk.bf16.gmra.mrb[92].mxu1 %vm69_vm3, %v13623_v51  ;;  %v2592_v10 = vld [vmem:[#allocation4 + $0x198] sm:$0xff]  ;;  %2379 = vst.msk [vmem:[#allocation4 + $0x1ec] sm:$0xf] %vm1298_vm4, %v2329_v47 }
 0x3e3   :  { %v13624_v42 = vld [vmem:[#allocation4 + $0x19c] ss:$20 sps:$4 sm:$0xff]   ;;  %2377 = vst.msk [vmem:[#allocation4 + $0x1c4] sm:$0xf] %vm1298_vm4, %v2325_v55  ;;  %v10985_v0 = vcombine.low %v2592_v10, %v2595_v21  ;;  %12963 = vmatprep.mubr.msk.bf16.mxu1 %vm13938_vm7, %v15187_v13 }
 0x3e4   :  { %3498 = vmatprep.mubr.bf16.mxu0 %v13624_v42 }
 0x3e5   :  { %3499 = vmatmul.mubr.bf16.gmra.mrb[92].mxu0 %v10985_v0 }
 0x3e6   :  { %v1977_v37 = vpop.permute.xlu1 %1976  ;;  %v13629_v41 = vld [vmem:[#allocation4 + $0x1c0] ss:$20 sps:$4 sm:$0xff]  }
 0x3e7   :  { %2027 = vst.msk [vmem:[#allocation4 + $0x1e8] sm:$0xf] %vm1298_vm4, %v1977_v37 }
 0x3ea   :  { %12964 = vmatmul.mubr.msk.bf16.gmra.mrb[96].mxu1 %vm69_vm3, %v13626_v4  ;;  %v13627_v28 = vld [vmem:[#allocation4 + $0x1c4] ss:$20 sps:$4 sm:$0xff]  }
 0x3eb   :  { %12967 = vmatprep.mubr.msk.bf16.mxu1 %vm13938_vm7, %v15187_v13  ;;  %3506 = vmatprep.mubr.bf16.mxu0 %v13627_v28 }
 0x3ed   :  { %3507 = vmatmul.mubr.bf16.gmra.mrb[96].mxu0 %v13629_v41 }
 0x3ee   :  { %v2604_v57 = vld [vmem:[#allocation4 + $0x1e8] sm:$0xff] }
 0x3ef   :  { %v10996_v8 = vcombine.high %v2604_v57, %v2604_v57  ;;  %v10995_v34 = vcombine.low %v2604_v57, %v2604_v57 }
 0x3f1   :  { %3514 = vmatprep.mubr.bf16.mxu0 %v10996_v8 }
 0x3f2   :  { %12968 = vmatmul.mubr.msk.bf16.gmra.mrb[100].mxu1 %vm69_vm3, %v13631_v12 }
 0x3f3   :  { %12971 = vmatprep.mubr.msk.bf16.mxu1 %vm13938_vm7, %v15187_v13 }
 0x3f5   :  { %3515 = vmatmul.mubr.bf16.gmra.mrb[100].mxu0 %v10995_v34 }
 0x3f6   :  { %11047 = vmatprep.mubr.msk.f32.mxu0 %vm524_vm2, %v14140_v45 }
 0x3fa   :  { %12972 = vmatmul.mubr.msk.bf16.gmra.mrb[104].mxu1 %vm69_vm3, %v15267_v1 }
 0x405   :  { %v12200_v63 = vpop.f32.mrb[4].mxu1 }
 0x406   :  { %v12201_v23 = vpop.f32.mrb[5].mxu1 }
 0x407   :  { %v15363_v39 = vadd.f32 %v12201_v23, %v12200_v63  ;;  %v12203_v18 = vpop.f32.mrb[6].mxu1 }
 0x408   :  { %v12204_v24 = vpop.f32.mrb[7].mxu1 }
 0x409   :  { %v15365_v36 = vadd.f32 %v12204_v24, %v12203_v18 }
 0x40d   :  { %v12206_v60 = vpop.f32.mrb[8].mxu1 }
 0x40e   :  { %v12207_v50 = vpop.f32.mrb[9].mxu1 }
 0x40f   :  { %v15367_v30 = vadd.f32 %v12207_v50, %v12206_v60  ;;  %v12209_v13 = vpop.f32.mrb[10].mxu1 }
 0x410   :  { %v12210_v38 = vpop.f32.mrb[11].mxu1 }
 0x411   :  { %v15369_v59 = vadd.f32 %v12210_v38, %v12209_v13 }
 0x415   :  { %v12212_v35 = vpop.f32.mrb[12].mxu1 }
 0x416   :  { %v12213_v61 = vpop.f32.mrb[13].mxu1 }
 0x417   :  { %v15371_v5 = vadd.f32 %v12213_v61, %v12212_v35  ;;  %v12215_v1 = vpop.f32.mrb[14].mxu1 }
 0x418   :  { %v12216_v32 = vpop.f32.mrb[15].mxu1 }
 0x419   :  { %v15373_v52 = vadd.f32 %v12216_v32, %v12215_v1 }
 0x41d   :  { %v12218_v31 = vpop.f32.mrb[16].mxu1 }
 0x41e   :  { %v12219_v29 = vpop.f32.mrb[17].mxu1 }
 0x41f   :  { %v15375_v26 = vadd.f32 %v12219_v29, %v12218_v31  ;;  %v12221_v51 = vpop.f32.mrb[18].mxu1 }
 0x420   :  { %v12222_v47 = vpop.f32.mrb[19].mxu1 }
 0x421   :  { %v15377_v55 = vadd.f32 %v12222_v47, %v12221_v51 }
 0x425   :  { %v12224_v10 = vpop.f32.mrb[20].mxu1 }
 0x426   :  { %v12225_v21 = vpop.f32.mrb[21].mxu1 }
 0x427   :  { %v15379_v42 = vadd.f32 %v12225_v21, %v12224_v10  ;;  %v12227_v0 = vpop.f32.mrb[22].mxu1 }
 0x428   :  { %v12228_v37 = vpop.f32.mrb[23].mxu1 }
 0x429   :  { %v15381_v4 = vadd.f32 %v12228_v37, %v12227_v0 }
 0x42d   :  { %v12230_v28 = vpop.f32.mrb[24].mxu1 }
 0x42e   :  { %v12231_v41 = vpop.f32.mrb[25].mxu1 }
 0x42f   :  { %v15383_v57 = vadd.f32 %v12231_v41, %v12230_v28  ;;  %v12233_v8 = vpop.f32.mrb[26].mxu1 }
 0x430   :  { %v12234_v12 = vpop.f32.mrb[27].mxu1 }
 0x431   :  { %v15385_v34 = vadd.f32 %v12234_v12, %v12233_v8 }
 0x435   :  { %v12236_v63 = vpop.f32.mrb[28].mxu1 }
 0x436   :  { %v12237_v23 = vpop.f32.mrb[29].mxu1 }
 0x437   :  { %v15387_v18 = vadd.f32 %v12237_v23, %v12236_v63  ;;  %v12239_v24 = vpop.f32.mrb[30].mxu1 }
 0x438   :  { %v12240_v60 = vpop.f32.mrb[31].mxu1 }
 0x439   :  { %v15389_v50 = vadd.f32 %v12240_v60, %v12239_v24 }
 0x43d   :  { %v12242_v13 = vpop.f32.mrb[32].mxu1 }
 0x43e   :  { %v12243_v38 = vpop.f32.mrb[33].mxu1 }
 0x43f   :  { %v15391_v35 = vadd.f32 %v12243_v38, %v12242_v13  ;;  %v12245_v61 = vpop.f32.mrb[34].mxu1 }
 0x440   :  { %v12246_v1 = vpop.f32.mrb[35].mxu1 }
 0x441   :  { %v15393_v32 = vadd.f32 %v12246_v1, %v12245_v61 }
 0x445   :  { %v12248_v31 = vpop.f32.mrb[36].mxu1 }
 0x446   :  { %v12249_v29 = vpop.f32.mrb[37].mxu1 }
 0x447   :  { %v15395_v51 = vadd.f32 %v12249_v29, %v12248_v31  ;;  %v12251_v47 = vpop.f32.mrb[38].mxu1 }
 0x448   :  { %v12252_v10 = vpop.f32.mrb[39].mxu1 }
 0x449   :  { %v15397_v21 = vadd.f32 %v12252_v10, %v12251_v47 }
 0x44d   :  { %v12254_v0 = vpop.f32.mrb[40].mxu1 }
 0x44e   :  { %v12255_v37 = vpop.f32.mrb[41].mxu1 }
 0x44f   :  { %v15399_v28 = vadd.f32 %v12255_v37, %v12254_v0  ;;  %v12257_v41 = vpop.f32.mrb[42].mxu1 }
 0x450   :  { %v12258_v8 = vpop.f32.mrb[43].mxu1 }
 0x451   :  { %v15401_v12 = vadd.f32 %v12258_v8, %v12257_v41 }
 0x455   :  { %v12260_v63 = vpop.f32.mrb[44].mxu1 }
 0x456   :  { %v12261_v23 = vpop.f32.mrb[45].mxu1 }
 0x457   :  { %v15403_v24 = vadd.f32 %v12261_v23, %v12260_v63  ;;  %v12263_v60 = vpop.f32.mrb[46].mxu1 }
 0x458   :  { %v12264_v13 = vpop.f32.mrb[47].mxu1 }
 0x459   :  { %v15405_v38 = vadd.f32 %v12264_v13, %v12263_v60 }
 0x45d   :  { %v12266_v61 = vpop.f32.mrb[48].mxu1 }
 0x45e   :  { %v12267_v1 = vpop.f32.mrb[49].mxu1 }
 0x45f   :  { %v15407_v31 = vadd.f32 %v12267_v1, %v12266_v61  ;;  %v12269_v29 = vpop.f32.mrb[50].mxu1 }
 0x460   :  { %v12270_v47 = vpop.f32.mrb[51].mxu1 }
 0x461   :  { %v15409_v10 = vadd.f32 %v12270_v47, %v12269_v29 }
 0x465   :  { %v12272_v0 = vpop.f32.mrb[52].mxu1 }
 0x466   :  { %v12273_v37 = vpop.f32.mrb[53].mxu1 }
 0x467   :  { %v15411_v41 = vadd.f32 %v12273_v37, %v12272_v0  ;;  %v12275_v8 = vpop.f32.mrb[54].mxu1 }
 0x468   :  { %v12276_v25 = vpop.f32.mrb[55].mxu1  ;;  %v12294_v63 = vpop.f32.mrb[52].mxu0 }
 0x469   :  { %v12295_v23 = vpop.f32.mrb[53].mxu0 }
 0x46a   :  { %v12296_v58 = vadd.f32 %v12295_v23, %v12294_v63  ;;  %v12297_v16 = vpop.f32.mrb[54].mxu0 }
 0x46b   :  { %v12298_v60 = vpop.f32.mrb[55].mxu0 }
 0x46c   :  { %v12299_v13 = vadd.f32 %v12298_v60, %v12297_v16  ;;  %v3421_v53 = vadd.f32 %v12296_v58, %v15363_v39 }
 0x46d   :  { %v3556_v61 = vpop.f32.mrb[56].mxu1 }
 0x46e   :  { %v15414_v1 = vadd.f32 %v3556_v61, %v3421_v53  ;;  %v12925_v27 = vpop.f32.mrb[57].mxu1  ;;  %v3424_v29 = vadd.f32 %v12299_v13, %v15365_v36 }
 0x46f   :  { %v3559_v47 = vpop.f32.mrb[58].mxu1 }
 0x470   :  { %v15417_v22 = vadd.f32 %v3559_v47, %v3424_v29  ;;  %v12926_v0 = vpop.f32.mrb[59].mxu1  ;;  %v12300_v37 = vpop.f32.mrb[56].mxu0 }
 0x471   :  { %v12301_v25 = vpop.f32.mrb[57].mxu0 }
 0x472   :  { %v13286_v8 = vpack.c.bf16 %v15417_v22, %v15414_v1  ;;  %v12302_v63 = vadd.f32 %v12301_v25, %v12300_v37  ;;  %v12303_v23 = vpop.f32.mrb[58].mxu0 }
 0x473   :  { %v12304_v16 = vpop.f32.mrb[59].mxu0 }
 0x474   :  { %v12305_v60 = vadd.f32 %v12304_v16, %v12303_v23  ;;  %v3429_v58 = vadd.f32 %v12302_v63, %v15367_v30  ;;  %13287 = vmatpush1.bf16.msra.mxu0 %v13286_v8 }
 0x475   :  { %v3564_v53 = vpop.f32.mrb[60].mxu1  ;;  %13288 = vmatprep.subr.bf16.mxu0 %v17534_v49 }
 0x476   :  { %v15423_v27 = vadd.f32 %v3564_v53, %v3429_v58  ;;  %v12929_v39 = vpop.f32.mrb[61].mxu1  ;;  %v3432_v36 = vadd.f32 %v12305_v60, %v15369_v59 }
 0x477   :  { %v3567_v13 = vpop.f32.mrb[62].mxu1 }
 0x478   :  { %v15426_v61 = vadd.f32 %v3567_v13, %v3432_v36  ;;  %v12930_v29 = vpop.f32.mrb[63].mxu1  ;;  %v12306_v47 = vpop.f32.mrb[60].mxu0 }
 0x479   :  { %v12307_v0 = vpop.f32.mrb[61].mxu0 }
 0x47a   :  { %v13289_v37 = vpack.c.bf16 %v15426_v61, %v15423_v27  ;;  %v12308_v25 = vadd.f32 %v12307_v0, %v12306_v47  ;;  %v12309_v30 = vpop.f32.mrb[62].mxu0 }
 0x47b   :  { %v12310_v8 = vpop.f32.mrb[63].mxu0 }
 0x47c   :  { %v12311_v63 = vadd.f32 %v12310_v8, %v12309_v30  ;;  %v3437_v23 = vadd.f32 %v12308_v25, %v15371_v5  ;;  %13290 = vmatpush1.bf16.msra.mxu0 %v13289_v37 }
 0x47d   :  { %v3572_v16 = vpop.f32.mrb[64].mxu1  ;;  %13291 = vmatprep.subr.bf16.mxu0 %v17534_v49 }
 0x47e   :  { %v15432_v59 = vadd.f32 %v3572_v16, %v3437_v23  ;;  %v12933_v60 = vpop.f32.mrb[65].mxu1  ;;  %v3440_v58 = vadd.f32 %v12311_v63, %v15373_v52 }
 0x47f   :  { %v3575_v53 = vpop.f32.mrb[66].mxu1 }
 0x480   :  { %v15435_v39 = vadd.f32 %v3575_v53, %v3440_v58  ;;  %v12934_v36 = vpop.f32.mrb[67].mxu1  ;;  %v12312_v13 = vpop.f32.mrb[64].mxu0 }
 0x481   :  { %v12313_v29 = vpop.f32.mrb[65].mxu0 }
 0x482   :  { %v13292_v47 = vpack.c.bf16 %v15435_v39, %v15432_v59  ;;  %v12314_v0 = vadd.f32 %v12313_v29, %v12312_v13  ;;  %v12315_v5 = vpop.f32.mrb[66].mxu0 }
 0x483   :  { %v12316_v37 = vpop.f32.mrb[67].mxu0 }
 0x484   :  { %v12317_v25 = vadd.f32 %v12316_v37, %v12315_v5  ;;  %v3445_v30 = vadd.f32 %v12314_v0, %v15375_v26  ;;  %13293 = vmatpush1.bf16.msra.mxu0 %v13292_v47 }
 0x485   :  { %v3580_v8 = vpop.f32.mrb[68].mxu1  ;;  %13294 = vmatprep.subr.bf16.mxu0 %v17534_v49 }
 0x486   :  { %v15441_v52 = vadd.f32 %v3580_v8, %v3445_v30  ;;  %v12937_v63 = vpop.f32.mrb[69].mxu1  ;;  %v3448_v23 = vadd.f32 %v12317_v25, %v15377_v55 }
 0x487   :  { %v3583_v16 = vpop.f32.mrb[70].mxu1 }
 0x488   :  { %v15444_v60 = vadd.f32 %v3583_v16, %v3448_v23  ;;  %v12938_v58 = vpop.f32.mrb[71].mxu1  ;;  %v12318_v53 = vpop.f32.mrb[68].mxu0 }
 0x489   :  { %v12319_v36 = vpop.f32.mrb[69].mxu0 }
 0x48a   :  { %v13295_v13 = vpack.c.bf16 %v15444_v60, %v15441_v52  ;;  %v12320_v29 = vadd.f32 %v12319_v36, %v12318_v53  ;;  %v12321_v26 = vpop.f32.mrb[70].mxu0 }
 0x48b   :  { %v12322_v47 = vpop.f32.mrb[71].mxu0 }
 0x48c   :  { %v12323_v0 = vadd.f32 %v12322_v47, %v12321_v26  ;;  %v3453_v5 = vadd.f32 %v12320_v29, %v15379_v42  ;;  %13296 = vmatpush1.bf16.msra.mxu0 %v13295_v13 }
 0x48d   :  { %v3588_v37 = vpop.f32.mrb[72].mxu1  ;;  %13297 = vmatprep.subr.bf16.mxu0 %v17534_v49 }
 0x48e   :  { %v15450_v55 = vadd.f32 %v3588_v37, %v3453_v5  ;;  %v12941_v25 = vpop.f32.mrb[73].mxu1  ;;  %v3456_v30 = vadd.f32 %v12323_v0, %v15381_v4 }
 0x48f   :  { %v3591_v8 = vpop.f32.mrb[74].mxu1 }
 0x490   :  { %v15453_v63 = vadd.f32 %v3591_v8, %v3456_v30  ;;  %v12942_v23 = vpop.f32.mrb[75].mxu1  ;;  %v12324_v16 = vpop.f32.mrb[72].mxu0 }
 0x491   :  { %v12325_v58 = vpop.f32.mrb[73].mxu0 }
 0x492   :  { %v13298_v53 = vpack.c.bf16 %v15453_v63, %v15450_v55  ;;  %v12326_v36 = vadd.f32 %v12325_v58, %v12324_v16  ;;  %v12327_v42 = vpop.f32.mrb[74].mxu0 }
 0x493   :  { %v12328_v13 = vpop.f32.mrb[75].mxu0 }
 0x494   :  { %v12329_v29 = vadd.f32 %v12328_v13, %v12327_v42  ;;  %v3461_v26 = vadd.f32 %v12326_v36, %v15383_v57  ;;  %13299 = vmatpush1.bf16.msra.mxu0 %v13298_v53 }
 0x495   :  { %v3596_v47 = vpop.f32.mrb[76].mxu1  ;;  %13300 = vmatprep.subr.bf16.mxu0 %v17534_v49 }
 0x496   :  { %v15459_v4 = vadd.f32 %v3596_v47, %v3461_v26  ;;  %v12945_v0 = vpop.f32.mrb[77].mxu1  ;;  %v3464_v5 = vadd.f32 %v12329_v29, %v15385_v34 }
 0x497   :  { %v3599_v37 = vpop.f32.mrb[78].mxu1 }
 0x498   :  { %v15462_v25 = vadd.f32 %v3599_v37, %v3464_v5  ;;  %v12946_v30 = vpop.f32.mrb[79].mxu1  ;;  %v12330_v8 = vpop.f32.mrb[76].mxu0 }
 0x499   :  { %v12331_v23 = vpop.f32.mrb[77].mxu0 }
 0x49a   :  { %v13301_v16 = vpack.c.bf16 %v15462_v25, %v15459_v4  ;;  %v12332_v58 = vadd.f32 %v12331_v23, %v12330_v8  ;;  %v12333_v57 = vpop.f32.mrb[78].mxu0 }
 0x49b   :  { %v12334_v53 = vpop.f32.mrb[79].mxu0 }
 0x49c   :  { %v12335_v36 = vadd.f32 %v12334_v53, %v12333_v57  ;;  %v3469_v42 = vadd.f32 %v12332_v58, %v15387_v18  ;;  %13302 = vmatpush1.bf16.msra.mxu0 %v13301_v16 }
 0x49d   :  { %v3604_v13 = vpop.f32.mrb[80].mxu1  ;;  %13303 = vmatprep.subr.bf16.mxu0 %v17534_v49 }
 0x49e   :  { %v15468_v34 = vadd.f32 %v3604_v13, %v3469_v42  ;;  %v12949_v29 = vpop.f32.mrb[81].mxu1  ;;  %v3472_v26 = vadd.f32 %v12335_v36, %v15389_v50 }
 0x49f   :  { %v3607_v47 = vpop.f32.mrb[82].mxu1 }
 0x4a0   :  { %v15471_v0 = vadd.f32 %v3607_v47, %v3472_v26  ;;  %v12950_v5 = vpop.f32.mrb[83].mxu1  ;;  %v12336_v37 = vpop.f32.mrb[80].mxu0 }
 0x4a1   :  { %v12337_v30 = vpop.f32.mrb[81].mxu0 }
 0x4a2   :  { %v13304_v8 = vpack.c.bf16 %v15471_v0, %v15468_v34  ;;  %v12338_v23 = vadd.f32 %v12337_v30, %v12336_v37  ;;  %v12339_v18 = vpop.f32.mrb[82].mxu0 }
 0x4a3   :  { %v12340_v16 = vpop.f32.mrb[83].mxu0 }
 0x4a4   :  { %v12341_v58 = vadd.f32 %v12340_v16, %v12339_v18  ;;  %v3477_v57 = vadd.f32 %v12338_v23, %v15391_v35  ;;  %13305 = vmatpush1.bf16.msra.mxu0 %v13304_v8 }
 0x4a5   :  { %v3612_v53 = vpop.f32.mrb[84].mxu1  ;;  %13306 = vmatprep.subr.bf16.mxu0 %v17534_v49 }
 0x4a6   :  { %v15477_v50 = vadd.f32 %v3612_v53, %v3477_v57  ;;  %v12953_v36 = vpop.f32.mrb[85].mxu1  ;;  %v3480_v42 = vadd.f32 %v12341_v58, %v15393_v32 }
 0x4a7   :  { %v3615_v13 = vpop.f32.mrb[86].mxu1 }
 0x4a8   :  { %v15480_v29 = vadd.f32 %v3615_v13, %v3480_v42  ;;  %v12954_v26 = vpop.f32.mrb[87].mxu1  ;;  %v12342_v47 = vpop.f32.mrb[84].mxu0 }
 0x4a9   :  { %v12343_v5 = vpop.f32.mrb[85].mxu0 }
 0x4aa   :  { %v13307_v37 = vpack.c.bf16 %v15480_v29, %v15477_v50  ;;  %v12344_v30 = vadd.f32 %v12343_v5, %v12342_v47  ;;  %v12345_v35 = vpop.f32.mrb[86].mxu0 }
 0x4ab   :  { %v12346_v8 = vpop.f32.mrb[87].mxu0 }
 0x4ac   :  { %v12347_v23 = vadd.f32 %v12346_v8, %v12345_v35  ;;  %v3485_v18 = vadd.f32 %v12344_v30, %v15395_v51  ;;  %13308 = vmatpush1.bf16.msra.mxu0 %v13307_v37 }
 0x4ad   :  { %v3620_v16 = vpop.f32.mrb[88].mxu1  ;;  %13309 = vmatprep.subr.bf16.mxu0 %v17534_v49 }
 0x4ae   :  { %v15486_v32 = vadd.f32 %v3620_v16, %v3485_v18  ;;  %v12957_v58 = vpop.f32.mrb[89].mxu1  ;;  %v3488_v57 = vadd.f32 %v12347_v23, %v15397_v21 }
 0x4af   :  { %v3623_v53 = vpop.f32.mrb[90].mxu1 }
 0x4b0   :  { %v15489_v36 = vadd.f32 %v3623_v53, %v3488_v57  ;;  %v12958_v42 = vpop.f32.mrb[91].mxu1  ;;  %v12348_v13 = vpop.f32.mrb[88].mxu0 }
 0x4b1   :  { %v12349_v26 = vpop.f32.mrb[89].mxu0 }
 0x4b2   :  { %v13310_v47 = vpack.c.bf16 %v15489_v36, %v15486_v32  ;;  %v12350_v5 = vadd.f32 %v12349_v26, %v12348_v13  ;;  %v12351_v51 = vpop.f32.mrb[90].mxu0 }
 0x4b3   :  { %v12352_v37 = vpop.f32.mrb[91].mxu0 }
 0x4b4   :  { %v12353_v30 = vadd.f32 %v12352_v37, %v12351_v51  ;;  %v3493_v35 = vadd.f32 %v12350_v5, %v15399_v28  ;;  %13311 = vmatpush1.bf16.msra.mxu0 %v13310_v47 }
 0x4b5   :  { %v3628_v8 = vpop.f32.mrb[92].mxu1  ;;  %13312 = vmatprep.subr.bf16.mxu0 %v17534_v49 }
 0x4b6   :  { %v15495_v21 = vadd.f32 %v3628_v8, %v3493_v35  ;;  %v12961_v23 = vpop.f32.mrb[93].mxu1  ;;  %v3496_v18 = vadd.f32 %v12353_v30, %v15401_v12 }
 0x4b7   :  { %v3631_v16 = vpop.f32.mrb[94].mxu1 }
 0x4b8   :  { %v15498_v58 = vadd.f32 %v3631_v16, %v3496_v18  ;;  %v12962_v57 = vpop.f32.mrb[95].mxu1  ;;  %v12354_v53 = vpop.f32.mrb[92].mxu0 }
 0x4b9   :  { %v12355_v42 = vpop.f32.mrb[93].mxu0 }
 0x4ba   :  { %v13313_v13 = vpack.c.bf16 %v15498_v58, %v15495_v21  ;;  %v12356_v26 = vadd.f32 %v12355_v42, %v12354_v53  ;;  %v12357_v28 = vpop.f32.mrb[94].mxu0 }
 0x4bb   :  { %v12358_v47 = vpop.f32.mrb[95].mxu0 }
 0x4bc   :  { %v12359_v5 = vadd.f32 %v12358_v47, %v12357_v28  ;;  %v3501_v51 = vadd.f32 %v12356_v26, %v15403_v24  ;;  %13314 = vmatpush1.bf16.msra.mxu0 %v13313_v13 }
 0x4bd   :  { %v3636_v37 = vpop.f32.mrb[96].mxu1  ;;  %13315 = vmatprep.subr.bf16.mxu0 %v17534_v49 }
 0x4be   :  { %v15504_v12 = vadd.f32 %v3636_v37, %v3501_v51  ;;  %v12965_v30 = vpop.f32.mrb[97].mxu1  ;;  %v3504_v35 = vadd.f32 %v12359_v5, %v15405_v38 }
 0x4bf   :  { %v3639_v8 = vpop.f32.mrb[98].mxu1 }
 0x4c0   :  { %v15507_v23 = vadd.f32 %v3639_v8, %v3504_v35  ;;  %v12966_v18 = vpop.f32.mrb[99].mxu1  ;;  %v12360_v16 = vpop.f32.mrb[96].mxu0 }
 0x4c1   :  { %v12361_v57 = vpop.f32.mrb[97].mxu0 }
 0x4c2   :  { %v13316_v53 = vpack.c.bf16 %v15507_v23, %v15504_v12  ;;  %v12362_v42 = vadd.f32 %v12361_v57, %v12360_v16  ;;  %v12363_v24 = vpop.f32.mrb[98].mxu0 }
 0x4c3   :  { %v12364_v13 = vpop.f32.mrb[99].mxu0 }
 0x4c4   :  { %v12365_v26 = vadd.f32 %v12364_v13, %v12363_v24  ;;  %v3509_v28 = vadd.f32 %v12362_v42, %v15407_v31  ;;  %13317 = vmatpush1.bf16.msra.mxu0 %v13316_v53  ;;  %v3730_v42 = vmul.f32 %v15417_v22, %v15417_v22 }
 0x4c5   :  { %v3644_v47 = vpop.f32.mrb[100].mxu1  ;;  %13318 = vmatprep.subr.bf16.mxu0 %v17534_v49 }
 0x4c6   :  { %v15513_v38 = vadd.f32 %v3644_v47, %v3509_v28  ;;  %v12969_v5 = vpop.f32.mrb[101].mxu1  ;;  %v3512_v51 = vadd.f32 %v12365_v26, %v15409_v10  ;;  %v15523_v10 = vld [vmem:[#allocation3] sm:$0xff]  ;;  %v3729_v26 = vmul.f32 %v15414_v1, %v15414_v1 }
 0x4c7   :  { %v3647_v37 = vpop.f32.mrb[102].mxu1 }
 0x4c8   :  { %v15516_v30 = vadd.f32 %v3647_v37, %v3512_v51  ;;  %v12970_v35 = vpop.f32.mrb[103].mxu1  ;;  %v12366_v8 = vpop.f32.mrb[100].mxu0  ;;  %v13322_v51 = vpack.c.bf16 %v3730_v42, %v3729_v26  ;;  %v3732_v37 = vmul.f32 %v15426_v61, %v15426_v61 }
 0x4c9   :  { %v12367_v18 = vpop.f32.mrb[101].mxu0 }
 0x4ca   :  { %v13319_v16 = vpack.c.bf16 %v15516_v30, %v15513_v38  ;;  %v12368_v57 = vadd.f32 %v12367_v18, %v12366_v8  ;;  %v12369_v31 = vpop.f32.mrb[102].mxu0  ;;  %v3734_v18 = vmul.f32 %v15435_v39, %v15435_v39 }
 0x4cb   :  { %v12370_v53 = vpop.f32.mrb[103].mxu0  ;;  %v3736_v31 = vmul.f32 %v15444_v60, %v15444_v60 }
 0x4cc   :  { %v3517_v24 = vadd.f32 %v12368_v57, %v15411_v41  ;;  %13320 = vmatpush1.bf16.msra.mxu0 %v13319_v16  ;;  %v3731_v41 = vmul.f32 %v15423_v27, %v15423_v27  ;;  %v3733_v16 = vmul.f32 %v15432_v59, %v15432_v59  ;;  %v3735_v53 = vmul.f32 %v15441_v52, %v15441_v52 }
 0x4cd   :  { %v3652_v13 = vpop.f32.mrb[104].mxu1  ;;  %3707 = vmatprep.subr.mxu0 %v15523_v10 }
 0x4ce   :  { %v15528_v28 = vadd.f32 %v3652_v13, %v3517_v24  ;;  %v12973_v47 = vpop.f32.mrb[105].mxu1  ;;  %v13325_v8 = vpack.c.bf16 %v3732_v37, %v3731_v41  ;;  %v13328_v57 = vpack.c.bf16 %v3734_v18, %v3733_v16  ;;  %v13331_v42 = vpack.c.bf16 %v3736_v31, %v3735_v53 }
 0x4cf   :  { %v3655_v5 = vpop.f32.mrb[106].mxu1  ;;  %v3738_v24 = vmul.f32 %v15453_v63, %v15453_v63  ;;  %v3737_v13 = vmul.f32 %v15450_v55, %v15450_v55  ;;  %v3740_v47 = vmul.f32 %v15462_v25, %v15462_v25  ;;  %v3742_v37 = vmul.f32 %v15471_v0, %v15471_v0 }
 0x4d0   :  { %v12974_v35 = vpop.f32.mrb[107].mxu1  ;;  %3708 = vmatpush1.msra.mxu0 %v15528_v28  ;;  %v3739_v5 = vmul.f32 %v15459_v4, %v15459_v4  ;;  %v3743_v18 = vmul.f32 %v15477_v50, %v15477_v50  ;;  %v3745_v31 = vmul.f32 %v15486_v32, %v15486_v32 }
 0x4d1   :  { %3724 = vmatmul.mubr.f32.vlgmr.msra.gmra.mrb[104].mxu0 %v14476_v19  ;;  %13321 = vmatprep.subr.bf16.mxu0 %v17534_v49  ;;  %v13334_v26 = vpack.c.bf16 %v3738_v24, %v3737_v13  ;;  %v3741_v35 = vmul.f32 %v15468_v34, %v15468_v34  ;;  %v3747_v24 = vmul.f32 %v15495_v21, %v15495_v21 }
 0x4d2   :  { %13323 = vmatpush1.bf16.msra.mxu0 %v13322_v51  ;;  %11048 = vmatprep.mubr.msk.f32.mxu0 %vm524_vm2, %v14140_v45  ;;  %v13337_v51 = vpack.c.bf16 %v3740_v47, %v3739_v5  ;;  %v3749_v47 = vmul.f32 %v15504_v12, %v15504_v12 }
 0x4d3   :  { %13324 = vmatprep.subr.bf16.mxu0 %v17534_v49  ;;  %v13340_v41 = vpack.c.bf16 %v3742_v37, %v3741_v35  ;;  %v3751_v37 = vmul.f32 %v15513_v38, %v15513_v38 }
 0x4d6   :  { %13326 = vmatpush1.bf16.msra.mxu0 %v13325_v8  ;;  %v3744_v8 = vmul.f32 %v15480_v29, %v15480_v29 }
 0x4d7   :  { %13327 = vmatprep.subr.bf16.mxu0 %v17534_v49 }
 0x4d8   :  { %v13343_v16 = vpack.c.bf16 %v3744_v8, %v3743_v18 }
 0x4da   :  { %13329 = vmatpush1.bf16.msra.mxu0 %v13328_v57  ;;  %v3746_v57 = vmul.f32 %v15489_v36, %v15489_v36 }
 0x4db   :  { %13330 = vmatprep.subr.bf16.mxu0 %v17534_v49 }
 0x4dc   :  { %v13346_v53 = vpack.c.bf16 %v3746_v57, %v3745_v31 }
 0x4de   :  { %13332 = vmatpush1.bf16.msra.mxu0 %v13331_v42  ;;  %v3748_v42 = vmul.f32 %v15498_v58, %v15498_v58 }
 0x4df   :  { %13333 = vmatprep.subr.bf16.mxu0 %v17534_v49 }
 0x4e0   :  { %v13349_v13 = vpack.c.bf16 %v3748_v42, %v3747_v24 }
 0x4e2   :  { %13335 = vmatpush1.bf16.msra.mxu0 %v13334_v26  ;;  %v3750_v26 = vmul.f32 %v15507_v23, %v15507_v23 }
 0x4e3   :  { %13336 = vmatprep.subr.bf16.mxu0 %v17534_v49 }
 0x4e4   :  { %v13352_v5 = vpack.c.bf16 %v3750_v26, %v3749_v47 }
 0x4e6   :  { %13338 = vmatpush1.bf16.msra.mxu0 %v13337_v51  ;;  %v3752_v51 = vmul.f32 %v15516_v30, %v15516_v30 }
 0x4e7   :  { %13339 = vmatprep.subr.bf16.mxu0 %v17534_v49 }
 0x4e8   :  { %v13355_v35 = vpack.c.bf16 %v3752_v51, %v3751_v37  ;;  %v3658_v51 = vld [vmem:[%s17432_s7] sm:$0x3] }
 0x4ea   :  { %13341 = vmatpush1.bf16.msra.mxu0 %v13340_v41  ;;  %v3753_v41 = vmul.f32 %v15528_v28, %v15528_v28 }
 0x4eb   :  { %13342 = vmatprep.subr.bf16.mxu0 %v17534_v49 }
 0x4ee   :  { %13344 = vmatpush1.bf16.msra.mxu0 %v13343_v16 }
 0x4ef   :  { %13345 = vmatprep.subr.bf16.mxu0 %v17534_v49 }
 0x4f2   :  { %13347 = vmatpush1.bf16.msra.mxu0 %v13346_v53 }
 0x4f3   :  { %13348 = vmatprep.subr.bf16.mxu0 %v17534_v49 }
 0x4f6   :  { %13350 = vmatpush1.bf16.msra.mxu0 %v13349_v13 }
 0x4f7   :  { %13351 = vmatprep.subr.bf16.mxu0 %v17534_v49 }
 0x4fa   :  { %13353 = vmatpush1.bf16.msra.mxu0 %v13352_v5 }
 0x4fb   :  { %13354 = vmatprep.subr.bf16.mxu0 %v17534_v49 }
 0x4fe   :  { %13356 = vmatpush1.bf16.msra.mxu0 %v13355_v35 }
 0x4ff   :  { %3802 = vmatprep.subr.mxu0 %v15523_v10 }
 0x502   :  { %3803 = vmatpush1.msra.mxu0 %v3753_v41 }
 0x503   :  { %3819 = vmatmul.mubr.f32.vlgmr.msra.gmra.mrb[106].mxu0 %v14476_v19 }
 0x5a4   :  { %v3725_v8 = vpop.f32.mrb[104].mxu0 }
 0x5a5   :  { %v3727_v18 = vpop.f32.mrb[105].mxu0  ;;  %v3824_v16 = vmul.f32 0.0078125, %v3725_v8 }
 0x5a7   :  { %v3826_v31 = vmul.f32 %v3824_v16, %v3824_v16 }
 0x5d6   :  { %v3820_v57 = vpop.f32.mrb[106].mxu0 }
 0x5d7   :  { %v3825_v53 = vmul.f32 0.0078125, %v3820_v57  ;;  %v3822_v42 = vpop.f32.mrb[107].mxu0 }
 0x5d9   :  { %v3827_v24 = vsub.f32 %v3825_v53, %v3826_v31 }
 0x5db   :  { %v3828_v13 = vmax.f32 %v3827_v24, 0.0 }
 0x5dd   :  { %v3829_v26 = vadd.f32 1e-05, %v3828_v13  ;;  %v4157_v13 = vld [vmem:[#allocation2 + $0x1] sm:$0xff] }
 0x5df   :  { %13916 = vrsqrt.f32 %v3829_v26  ;;  %v11903_v26 = vpack.c.bf16 %v4157_v13, %v4157_v13  ;;  %v13633_v13 = vld [vmem:[%s17434_s3 + $0x40] sm:$0xff]  }
 0x5e0   :  { %12389 = vmatprep.subr.bf16.mxu0 %v13633_v13 }
 0x5e9   :  { %v13917_v47 = vpop.eup %13916 }
 0x5ea   :  { %v3838_v5 = vrot.slane %v13917_v47, %v14564_v40 }
 0x5ec   :  { %3839 = vrot.lane.b32.xlu1 %v3838_v5, %s13936_s21 }
 0x65e   :  { %v3840_v37 = vpop.permute.xlu1 %3839 }
 0x65f   :  { %v3842_v35 = vmul.f32 %v3840_v37, %v3658_v51 }
 0x661   :  { %v3847_v41 = vrot.slane %v3842_v35, %v14465_v48 }
 0x663   :  { %3848 = vrot.lane.b32.xlu0 %v3847_v41, %s13936_s21 }
 0x667   :  { %3870 = vrot.lane.b32.xlu0 %v3847_v41, %s13936_s21 }
 0x66b   :  { %4258 = vrot.lane.b32.xlu0 %v11903_v26, %s13936_s21 }
 0x6d5   :  { %v3849_v8 = vpop.permute.xlu0 %3848 }
 0x6d6   :  { %v3851_v18 = vmul.f32 %v3849_v8, %v3824_v16 }
 0x6d8   :  { %v3859_v57 = vrot.slane %v3851_v18, %v14564_v40 }
 0x6d9   :  { %v3871_v47 = vpop.permute.xlu0 %3870 }
 0x6da   :  { %v3860_v31 = vrot.slane %v3859_v57, 7  ;;  %v3874_v5 = vmul.f32 %v3871_v47, %v15417_v22  ;;  %v3875_v16 = vmul.f32 %v3871_v47, %v15423_v27  ;;  %v3876_v37 = vmul.f32 %v3871_v47, %v15426_v61 }
 0x6db   :  { %v3877_v35 = vmul.f32 %v3871_v47, %v15432_v59  ;;  %v3878_v41 = vmul.f32 %v3871_v47, %v15435_v39  ;;  %v3880_v8 = vmul.f32 %v3871_v47, %v15444_v60  ;;  %v3881_v18 = vmul.f32 %v3871_v47, %v15450_v55 }
 0x6dc   :  { %3861 = vrot.lane.b32.xlu1 %v3860_v31, %s13936_s21  ;;  %v3882_v57 = vmul.f32 %v3871_v47, %v15453_v63  ;;  %v3883_v31 = vmul.f32 %v3871_v47, %v15459_v4  ;;  %v3884_v22 = vmul.f32 %v3871_v47, %v15462_v25  ;;  %v3885_v27 = vmul.f32 %v3871_v47, %v15468_v34 }
 0x6dd   :  { %v3886_v61 = vmul.f32 %v3871_v47, %v15471_v0  ;;  %v3887_v59 = vmul.f32 %v3871_v47, %v15477_v50  ;;  %v3888_v39 = vmul.f32 %v3871_v47, %v15480_v29  ;;  %v3890_v60 = vmul.f32 %v3871_v47, %v15489_v36 }
 0x6de   :  { %v3891_v55 = vmul.f32 %v3871_v47, %v15495_v21  ;;  %v3892_v63 = vmul.f32 %v3871_v47, %v15498_v58  ;;  %v3893_v4 = vmul.f32 %v3871_v47, %v15504_v12  ;;  %v3894_v25 = vmul.f32 %v3871_v47, %v15507_v23 }
 0x6df   :  { %v3895_v34 = vmul.f32 %v3871_v47, %v15513_v38  ;;  %v3896_v0 = vmul.f32 %v3871_v47, %v15516_v30  ;;  %v15633_v50 = vmul.f32 %v3871_v47, %v15414_v1  ;;  %v15636_v29 = vmul.f32 %v3871_v47, %v15528_v28 }
 0x74e   :  { %v3862_v53 = vpop.permute.xlu1 %3861 }
 0x74f   :  { %v3864_v42 = vsub.f32 %v3658_v51, %v3862_v53  ;;  %v3879_v51 = vmul.f32 %v3871_v47, %v15441_v52  ;;  %v3889_v52 = vmul.f32 %v3871_v47, %v15486_v32 }
 0x751   :  { %v3901_v24 = vrot.slane %v3864_v42, %v14131_v43 }
 0x753   :  { %3903 = vrot.lane.b32.xlu1 %v3901_v24, %s13936_s21 }
 0x7c5   :  { %v15630_v53 = vpop.permute.xlu1 %3903 }
 0x7c6   :  { %v3907_v32 = vadd.f32 %v15630_v53, %v3874_v5  ;;  %v3908_v36 = vadd.f32 %v15630_v53, %v3875_v16  ;;  %v3909_v21 = vadd.f32 %v15630_v53, %v3876_v37  ;;  %v3910_v58 = vadd.f32 %v15630_v53, %v3877_v35  ;;  %v13634_v37 = vld [vmem:[%s17434_s3] sm:$0xff]  }
 0x7c7   :  { %v3911_v12 = vadd.f32 %v15630_v53, %v3878_v41  ;;  %v3912_v23 = vadd.f32 %v15630_v53, %v3879_v51  ;;  %v3913_v38 = vadd.f32 %v15630_v53, %v3880_v8  ;;  %v3914_v1 = vadd.f32 %v15630_v53, %v3881_v18  ;;  %12390 = vmatpush3.bf16.msra.mxu0 %v13634_v37 }
 0x7c8   :  { %v3915_v30 = vadd.f32 %v15630_v53, %v3882_v57  ;;  %v3916_v28 = vadd.f32 %v15630_v53, %v3883_v31  ;;  %v15649_v42 = vadd.f32 %v15630_v53, %v3884_v22  ;;  %v15652_v24 = vadd.f32 %v15630_v53, %v3885_v27  ;;  %v13635_v27 = vld [vmem:[%s17434_s3 + $0x48] sm:$0xff]  }
 0x7c9   :  { %v15658_v26 = vadd.f32 %v15630_v53, %v3886_v61  ;;  %v15661_v47 = vadd.f32 %v15630_v53, %v3887_v59  ;;  %v15664_v5 = vadd.f32 %v15630_v53, %v3888_v39  ;;  %v15667_v16 = vadd.f32 %v15630_v53, %v3889_v52  ;;  %v13636_v61 = vld [vmem:[%s17434_s3 + $0x8] sm:$0xff]   ;;  %12391 = vmatprep.subr.bf16.mxu0 %v13635_v27 }
 0x7ca   :  { %v15673_v35 = vadd.f32 %v15630_v53, %v3890_v60  ;;  %v15676_v41 = vadd.f32 %v15630_v53, %v3891_v55  ;;  %v15679_v51 = vadd.f32 %v15630_v53, %v3892_v63  ;;  %v15682_v8 = vadd.f32 %v15630_v53, %v3893_v4 }
 0x7cb   :  { %v15685_v18 = vadd.f32 %v15630_v53, %v3894_v25  ;;  %v15688_v57 = vadd.f32 %v15630_v53, %v3895_v34  ;;  %v15691_v31 = vadd.f32 %v15630_v53, %v3896_v0  ;;  %v3932_v22 = vmax.f32 %v3907_v32, 0.0  ;;  %12392 = vmatpush3.bf16.msra.mxu0 %v13636_v61 }
 0x7cc   :  { %v3933_v59 = vmax.f32 %v3908_v36, 0.0  ;;  %v3934_v39 = vmax.f32 %v3909_v21, 0.0  ;;  %v3935_v52 = vmax.f32 %v3910_v58, 0.0  ;;  %v3936_v60 = vmax.f32 %v3911_v12, 0.0  ;;  %v13637_v58 = vld [vmem:[%s17434_s3 + $0x50] sm:$0xff]  }
 0x7cd   :  { %v3937_v55 = vmax.f32 %v3912_v23, 0.0  ;;  %v3938_v63 = vmax.f32 %v3913_v38, 0.0  ;;  %v3939_v4 = vmax.f32 %v3914_v1, 0.0  ;;  %v3940_v25 = vmax.f32 %v3915_v30, 0.0  ;;  %v13638_v12 = vld [vmem:[%s17434_s3 + $0x10] sm:$0xff]   ;;  %12393 = vmatprep.subr.bf16.mxu0 %v13637_v58 }
 0x7ce   :  { %v3941_v34 = vmax.f32 %v3916_v28, 0.0  ;;  %v3942_v0 = vmax.f32 %v15649_v42, 0.0  ;;  %v3943_v32 = vmax.f32 %v15652_v24, 0.0  ;;  %v3944_v13 = vmax.f32 %v15658_v26, 0.0 }
 0x7cf   :  { %v3945_v37 = vmax.f32 %v15661_v47, 0.0  ;;  %v3946_v43 = vmax.f32 %v15664_v5, 0.0  ;;  %v3947_v36 = vmax.f32 %v15667_v16, 0.0  ;;  %v3948_v21 = vmax.f32 %v15673_v35, 0.0  ;;  %12394 = vmatpush3.bf16.msra.mxu0 %v13638_v12 }
 0x7d0   :  { %v3949_v23 = vmax.f32 %v15676_v41, 0.0  ;;  %v3950_v38 = vmax.f32 %v15679_v51, 0.0  ;;  %v3951_v1 = vmax.f32 %v15682_v8, 0.0  ;;  %v3952_v30 = vmax.f32 %v15685_v18, 0.0 }
 0x7d1   :  { %v3953_v28 = vmax.f32 %v15688_v57, 0.0  ;;  %v3954_v42 = vmax.f32 %v15691_v31, 0.0  ;;  %v3957_v24 = vmul.f32 %v3932_v22, %v14526_v62  ;;  %v3958_v26 = vmul.f32 %v3933_v59, %v14546_v7  ;;  %v13639_v57 = vld [vmem:[%s17434_s3 + $0x58] sm:$0xff]   ;;  %v4006_v31 = vld [vmem:[#allocation2] sm:$0xff] }
 0x7d2   :  { %v3959_v47 = vmul.f32 %v3934_v39, %v14548_v9  ;;  %v3960_v5 = vmul.f32 %v3935_v52, %v14528_v2  ;;  %v3961_v16 = vmul.f32 %v3936_v60, %v14550_v17  ;;  %v3962_v35 = vmul.f32 %v3937_v55, %v14530_v3  ;;  %v13640_v22 = vld [vmem:[%s17434_s3 + $0x18] sm:$0xff]   ;;  %v17535_v55 = vld [vmem:[#allocation12_spill] sm:$0xff]  ;;  %12395 = vmatprep.subr.bf16.mxu0 %v13639_v57 }
 0x7d3   :  { %v3963_v41 = vmul.f32 %v3938_v63, %v14552_v33  ;;  %v3964_v51 = vmul.f32 %v3939_v4, %v14532_v6  ;;  %v3965_v8 = vmul.f32 %v3940_v25, %v14554_v11  ;;  %v3966_v18 = vmul.f32 %v3941_v34, %v14534_v14  ;;  %3982 = vst.msk [vmem:[#allocation2 + $0x13] sm:$0xff] %vm69_vm3, %v3957_v24  ;;  %v17536_v4 = vld [vmem:[#allocation10_spill] sm:$0xff]  ;;  %v17537_v34 = vld [vmem:[#allocation13_spill] sm:$0xff] }
 0x7d4   :  { %3983 = vst.msk [vmem:[#allocation2 + $0x1b] sm:$0xff] %vm69_vm3, %v3958_v26  ;;  %v3967_v27 = vmul.f32 %v3942_v0, %v14556_v44  ;;  %v3968_v61 = vmul.f32 %v3943_v32, %v14536_v15  ;;  %v3969_v59 = vmul.f32 %v3944_v13, %v14558_v54  ;;  %v3970_v39 = vmul.f32 %v3945_v37, %v14538_v46  ;;  %v17538_v32 = vld [vmem:[#allocation14_spill] sm:$0xff] }
 0x7d5   :  { %3984 = vst.msk [vmem:[#allocation2 + $0x23] sm:$0xff] %vm69_vm3, %v3959_v47  ;;  %3985 = vst.msk [vmem:[#allocation2 + $0x2b] sm:$0xff] %vm69_vm3, %v3960_v5  ;;  %v3971_v52 = vmul.f32 %v3946_v43, %v14566_v56  ;;  %v3972_v60 = vmul.f32 %v3947_v36, %v14540_v20  ;;  %v3973_v63 = vmul.f32 %v3948_v21, %v17535_v55  ;;  %v17539_v43 = vld [vmem:[#allocation23_spill] sm:$0xff]  ;;  %v17540_v36 = vld [vmem:[#allocation24_spill] sm:$0xff]  ;;  %12396 = vmatpush3.bf16.msra.mxu0 %v13640_v22 }
 0x7d6   :  { %3986 = vst.msk [vmem:[#allocation2 + $0x33] sm:$0xff] %vm69_vm3, %v3961_v16  ;;  %3987 = vst.msk [vmem:[#allocation2 + $0x3b] sm:$0xff] %vm69_vm3, %v3962_v35  ;;  %v3974_v25 = vmul.f32 %v3949_v23, %v17536_v4  ;;  %v3975_v0 = vmul.f32 %v3950_v38, %v17537_v34  ;;  %v3976_v13 = vmul.f32 %v3951_v1, %v17538_v32  ;;  %v17541_v21 = vld [vmem:[#allocation33_spill] sm:$0xff]  ;;  %v17543_v16 = vld [vmem:[#allocation34_spill] sm:$0xff] }
 0x7d7   :  { %3988 = vst.msk [vmem:[#allocation2 + $0x43] sm:$0xff] %vm69_vm3, %v3963_v41  ;;  %3989 = vst.msk [vmem:[#allocation2 + $0x4b] sm:$0xff] %vm69_vm3, %v3964_v51  ;;  %v3977_v37 = vmul.f32 %v3952_v30, %v17539_v43  ;;  %v3978_v58 = vmul.f32 %v3953_v28, %v17540_v36  ;;  %v3979_v12 = vmul.f32 %v3954_v42, %v17541_v21  ;;  %v13641_v30 = vld [vmem:[%s17434_s3 + $0x60] sm:$0xff]   ;;  %v17542_v42 = vld [vmem:[#allocation9_spill] sm:$0xff] }
 0x7d8   :  { %3990 = vst.msk [vmem:[#allocation2 + $0x53] sm:$0xff] %vm69_vm3, %v3965_v8  ;;  %3991 = vst.msk [vmem:[#allocation2 + $0x5b] sm:$0xff] %vm69_vm3, %v3966_v18  ;;  %v3906_v23 = vadd.f32 %v15630_v53, %v15633_v50  ;;  %v3930_v38 = vadd.f32 %v15630_v53, %v15636_v29  ;;  %v11878_v1 = vpack.c.bf16 %v4006_v31, %v4006_v31  ;;  %v4259_v53 = vpop.permute.xlu0 %4258  ;;  %12397 = vmatprep.subr.bf16.mxu0 %v13641_v30 }
 0x7d9   :  { %3992 = vst.msk [vmem:[#allocation2 + $0x63] sm:$0xff] %vm69_vm3, %v3967_v27  ;;  %3993 = vst.msk [vmem:[#allocation2 + $0x6b] sm:$0xff] %vm69_vm3, %v3968_v61 }
 0x7da   :  { %3994 = vst.msk [vmem:[#allocation2 + $0x73] sm:$0xff] %vm69_vm3, %v3969_v59  ;;  %3995 = vst.msk [vmem:[#allocation2 + $0x7b] sm:$0xff] %vm69_vm3, %v3970_v39  ;;  %v3931_v50 = vmax.f32 %v3906_v23, 0.0  ;;  %v3955_v28 = vmax.f32 %v3930_v38, 0.0 }
 0x7db   :  { %3996 = vst.msk [vmem:[#allocation2 + $0x83] sm:$0xff] %vm69_vm3, %v3971_v52  ;;  %3997 = vst.msk [vmem:[#allocation2 + $0x8b] sm:$0xff] %vm69_vm3, %v3972_v60  ;;  %v4511_v29 = vld [vmem:[#allocation2 + $0x1a] sm:$0xff] }
 0x7dc   :  { %3998 = vst.msk [vmem:[#allocation2 + $0x93] sm:$0xff] %vm69_vm3, %v3973_v63  ;;  %3999 = vst.msk [vmem:[#allocation2 + $0x9b] sm:$0xff] %vm69_vm3, %v3974_v25  ;;  %v3956_v24 = vmul.f32 %v3931_v50, %v17542_v42  ;;  %v15780_v26 = vpack.c.bf16 %v4511_v29, %v4511_v29  ;;  %v4512_v47 = vld [vmem:[#allocation2 + $0x22] sm:$0xff]  ;;  %v4513_v5 = vld [vmem:[#allocation2 + $0x2a] sm:$0xff]  ;;  %v3980_v35 = vmul.f32 %v3955_v28, %v17543_v16 }
 0x7dd   :  { %4000 = vst.msk [vmem:[#allocation2 + $0xa3] sm:$0xff] %vm69_vm3, %v3975_v0  ;;  %4001 = vst.msk [vmem:[#allocation2 + $0xab] sm:$0xff] %vm69_vm3, %v3976_v13  ;;  %v15783_v41 = vpack.c.bf16 %v4512_v47, %v4512_v47  ;;  %v15785_v51 = vpack.c.bf16 %v4513_v5, %v4513_v5  ;;  %v4514_v8 = vld [vmem:[#allocation2 + $0x32] sm:$0xff]  ;;  %v4515_v57 = vld [vmem:[#allocation2 + $0x3a] sm:$0xff] }
 0x7de   :  { %4002 = vst.msk [vmem:[#allocation2 + $0xb3] sm:$0xff] %vm69_vm3, %v3977_v37  ;;  %4003 = vst.msk [vmem:[#allocation2 + $0xbb] sm:$0xff] %vm69_vm3, %v3978_v58  ;;  %v15788_v18 = vpack.c.bf16 %v4514_v8, %v4514_v8  ;;  %v15793_v31 = vpack.c.bf16 %v4515_v57, %v4515_v57  ;;  %v4516_v22 = vld [vmem:[#allocation2 + $0x42] sm:$0xff]  ;;  %v4517_v27 = vld [vmem:[#allocation2 + $0x4a] sm:$0xff] }
 0x7df   :  { %4004 = vst.msk [vmem:[#allocation2 + $0xc3] sm:$0xff] %vm69_vm3, %v3979_v12  ;;  %3981 = vst.msk [vmem:[#allocation2 + $0xb] sm:$0xff] %vm69_vm3, %v3956_v24  ;;  %v15799_v61 = vpack.c.bf16 %v4516_v22, %v4516_v22  ;;  %v15801_v59 = vpack.c.bf16 %v4517_v27, %v4517_v27  ;;  %v4518_v39 = vld [vmem:[#allocation2 + $0x52] sm:$0xff]  ;;  %v4519_v52 = vld [vmem:[#allocation2 + $0x5a] sm:$0xff] }
 0x7e0   :  { %4132 = vst.msk [vmem:[#allocation4] sm:$0xf] %vm1096_vm5, %v11878_v1  ;;  %4487 = vst.msk [vmem:[#allocation4 + $0x40] sm:$0xf] %vm1096_vm5, %v15780_v26  ;;  %v15805_v60 = vpack.c.bf16 %v4518_v39, %v4518_v39  ;;  %v15807_v63 = vpack.c.bf16 %v4519_v52, %v4519_v52  ;;  %v4520_v25 = vld [vmem:[#allocation2 + $0x62] sm:$0xff]  ;;  %v4521_v13 = vld [vmem:[#allocation2 + $0x6a] sm:$0xff] }
 0x7e1   :  { %4333 = vst.msk [vmem:[#allocation4] sm:$0xf] %vm1298_vm4, %v4259_v53  ;;  %v15811_v0 = vpack.c.bf16 %v4520_v25, %v4520_v25  ;;  %v15817_v37 = vpack.c.bf16 %v4521_v13, %v4521_v13  ;;  %v4522_v58 = vld [vmem:[#allocation2 + $0x72] sm:$0xff]  ;;  %v4523_v12 = vld [vmem:[#allocation2 + $0x7a] sm:$0xff] }
 0x7e2   :  { %4005 = vst.msk [vmem:[#allocation2 + $0xcb] sm:$0xff] %vm69_vm3, %v3980_v35  ;;  %v15823_v23 = vpack.c.bf16 %v4522_v58, %v4522_v58  ;;  %v15825_v38 = vpack.c.bf16 %v4523_v12, %v4523_v12  ;;  %v4524_v1 = vld [vmem:[#allocation2 + $0x82] sm:$0xff]  ;;  %v4525_v30 = vld [vmem:[#allocation2 + $0x8a] sm:$0xff]  ;;  %v4160_v22 = vld [vmem:[#allocation2 + $0x19] sm:$0xff] }
 0x7e3   :  { %4488 = vst.msk [vmem:[#allocation4 + $0x54] sm:$0xf] %vm1096_vm5, %v15783_v41  ;;  %4489 = vst.msk [vmem:[#allocation4 + $0x68] sm:$0xf] %vm1096_vm5, %v15785_v51  ;;  %v15829_v53 = vpack.c.bf16 %v4524_v1, %v4524_v1  ;;  %v15831_v29 = vpack.c.bf16 %v4525_v30, %v4525_v30  ;;  %v11906_v27 = vpack.c.bf16 %v4160_v22, %v4160_v22  ;;  %v13642_v52 = vld [vmem:[%s17434_s3 + $0x20] sm:$0xff]   ;;  %v13643_v58 = vld [vmem:[%s17434_s3 + $0x68] sm:$0xff]  }
 0x7e4   :  { %4490 = vst.msk [vmem:[#allocation4 + $0x7c] sm:$0xf] %vm1096_vm5, %v15788_v18  ;;  %4491 = vst.msk [vmem:[#allocation4 + $0x90] sm:$0xf] %vm1096_vm5, %v15793_v31  ;;  %v4161_v25 = vld [vmem:[#allocation2 + $0x21] sm:$0xff]  ;;  %12398 = vmatpush3.bf16.msra.mxu0 %v13642_v52  ;;  %v13647_v22 = vld [vmem:[%s17434_s3 + $0x78] sm:$0xff]  }
 0x7e5   :  { %4492 = vst.msk [vmem:[#allocation4 + $0xa4] sm:$0xf] %vm1096_vm5, %v15799_v61  ;;  %4493 = vst.msk [vmem:[#allocation4 + $0xb8] sm:$0xf] %vm1096_vm5, %v15801_v59  ;;  %v13644_v30 = vld [vmem:[%s17434_s3 + $0x28] sm:$0xff]   ;;  %12399 = vmatprep.subr.bf16.mxu0 %v13643_v58  ;;  %v13653_v58 = vld [vmem:[%s17434_s3 + $0x80] sm:$0xff]  }
 0x7e6   :  { %4494 = vst.msk [vmem:[#allocation4 + $0xcc] sm:$0xf] %vm1096_vm5, %v15805_v60  ;;  %4495 = vst.msk [vmem:[#allocation4 + $0xe0] sm:$0xf] %vm1096_vm5, %v15807_v63  ;;  %v4509_v50 = vld [vmem:[#allocation2 + $0xa] sm:$0xff]  ;;  %v4510_v5 = vld [vmem:[#allocation2 + $0x12] sm:$0xff] }
 0x7e7   :  { %4496 = vst.msk [vmem:[#allocation4 + $0xf4] sm:$0xf] %vm1096_vm5, %v15811_v0  ;;  %v4158_v28 = vld [vmem:[#allocation2 + $0x9] sm:$0xff]  ;;  %4497 = vst.msk [vmem:[#allocation4 + $0x108] sm:$0xf] %vm1096_vm5, %v15817_v37  ;;  %v11953_v24 = vpack.c.bf16 %v4509_v50, %v4509_v50  ;;  %v4159_v35 = vld [vmem:[#allocation2 + $0x11] sm:$0xff]  ;;  %v11954_v8 = vpack.c.bf16 %v4510_v5, %v4510_v5 }
 0x7e8   :  { %v11904_v47 = vpack.c.bf16 %v4158_v28, %v4158_v28  ;;  %4498 = vst.msk [vmem:[#allocation4 + $0x11c] sm:$0xf] %vm1096_vm5, %v15823_v23  ;;  %4499 = vst.msk [vmem:[#allocation4 + $0x130] sm:$0xf] %vm1096_vm5, %v15825_v38  ;;  %v11905_v57 = vpack.c.bf16 %v4159_v35, %v4159_v35  ;;  %v4007_v39 = vld [vmem:[#allocation2 + $0x8] sm:$0xff]  ;;  %v4008_v12 = vld [vmem:[#allocation2 + $0x10] sm:$0xff]  ;;  %v11907_v28 = vpack.c.bf16 %v4161_v25, %v4161_v25  ;;  %12400 = vmatpush3.bf16.msra.mxu0 %v13644_v30 }
 0x7e9   :  { %4500 = vst.msk [vmem:[#allocation4 + $0x144] sm:$0xf] %vm1096_vm5, %v15829_v53  ;;  %4501 = vst.msk [vmem:[#allocation4 + $0x158] sm:$0xf] %vm1096_vm5, %v15831_v29  ;;  %4610 = vrot.lane.b32.xlu0 %v11953_v24, %s13936_s21  ;;  %v11879_v13 = vpack.c.bf16 %v4007_v39, %v4007_v39  ;;  %v11880_v1 = vpack.c.bf16 %v4008_v12, %v4008_v12  ;;  %v4009_v50 = vld [vmem:[#allocation2 + $0x18] sm:$0xff]  ;;  %v4010_v5 = vld [vmem:[#allocation2 + $0x20] sm:$0xff] }
 0x7ea   :  { %4260 = vrot.lane.b32.xlu1 %v11904_v47, %s13936_s21  ;;  %4485 = vst.msk [vmem:[#allocation4 + $0x18] sm:$0xf] %vm1096_vm5, %v11953_v24  ;;  %4486 = vst.msk [vmem:[#allocation4 + $0x2c] sm:$0xf] %vm1096_vm5, %v11954_v8  ;;  %v13645_v24 = vld [vmem:[%s17434_s3 + $0x70] sm:$0xff]   ;;  %v11881_v47 = vpack.c.bf16 %v4009_v50, %v4009_v50  ;;  %v11882_v35 = vpack.c.bf16 %v4010_v5, %v4010_v5  ;;  %v13652_v25 = vld [vmem:[%s17434_s3 + $0xc0] sm:$0xff]  }
 0x7eb   :  { %4133 = vst.msk [vmem:[#allocation4 + $0x14] sm:$0xf] %vm1096_vm5, %v11879_v13  ;;  %4134 = vst.msk [vmem:[#allocation4 + $0x28] sm:$0xf] %vm1096_vm5, %v11880_v1  ;;  %v4012_v39 = vld [vmem:[#allocation2 + $0x30] sm:$0xff]  ;;  %12401 = vmatprep.subr.bf16.mxu0 %v13645_v24  ;;  %v4013_v12 = vld [vmem:[#allocation2 + $0x38] sm:$0xff]  ;;  %12483 = vmatprep.subr.bf16.mxu1 %v13652_v25 }
 0x7ec   :  { %4135 = vst.msk [vmem:[#allocation4 + $0x3c] sm:$0xf] %vm1096_vm5, %v11881_v47  ;;  %4136 = vst.msk [vmem:[#allocation4 + $0x50] sm:$0xf] %vm1096_vm5, %v11882_v35  ;;  %v4163_v13 = vld [vmem:[#allocation2 + $0x31] sm:$0xff]  ;;  %v11885_v30 = vpack.c.bf16 %v4013_v12, %v4013_v12  ;;  %12484 = vmatpush3.bf16.msra.mxu1 %v13653_v58  ;;  %v4164_v24 = vld [vmem:[#allocation2 + $0x39] sm:$0xff] }
 0x7ed   :  { %4262 = vrot.lane.b32.xlu0 %v11905_v57, %s13936_s21  ;;  %v13646_v57 = vld [vmem:[%s17434_s3 + $0x30] sm:$0xff]   ;;  %v13648_v1 = vld [vmem:[%s17434_s3 + $0x38] sm:$0xff]   ;;  %v11909_v50 = vpack.c.bf16 %v4163_v13, %v4163_v13  ;;  %v4015_v47 = vld [vmem:[#allocation2 + $0x48] sm:$0xff]  ;;  %v11910_v35 = vpack.c.bf16 %v4164_v24, %v4164_v24 }
 0x7ee   :  { %4612 = vrot.lane.b32.xlu1 %v11954_v8, %s13936_s21  ;;  %v4011_v8 = vld [vmem:[#allocation2 + $0x28] sm:$0xff]  ;;  %12402 = vmatpush3.bf16.msra.mxu0 %v13646_v57  ;;  %4139 = vst.msk [vmem:[#allocation4 + $0x8c] sm:$0xf] %vm1096_vm5, %v11885_v30  ;;  %v4016_v57 = vld [vmem:[#allocation2 + $0x50] sm:$0xff]  ;;  %v4022_v24 = vld [vmem:[#allocation2 + $0x80] sm:$0xff] }
 0x7ef   :  { %12403 = vmatprep.subr.bf16.mxu0 %v13647_v22  ;;  %v13659_v5 = vld [vmem:[%s17434_s3 + $0xc8] sm:$0xff]   ;;  %v11888_v22 = vpack.c.bf16 %v4016_v57, %v4016_v57  ;;  %v4020_v12 = vld [vmem:[#allocation2 + $0x70] sm:$0xff] }
 0x7f0   :  { %12485 = vmatprep.subr.bf16.mxu1 %v13659_v5  ;;  %v4019_v25 = vld [vmem:[#allocation2 + $0x68] sm:$0xff] }
 0x7f1   :  { %4614 = vrot.lane.b32.xlu0 %v15780_v26, %s13936_s21  ;;  %v4162_v26 = vld [vmem:[#allocation2 + $0x29] sm:$0xff]  ;;  %4142 = vst.msk [vmem:[#allocation4 + $0xc8] sm:$0xf] %vm1096_vm5, %v11888_v22  ;;  %v11891_v58 = vpack.c.bf16 %v4019_v25, %v4019_v25  ;;  %v4376_v22 = vld [vmem:[#allocation2 + $0x92] sm:$0xff]  ;;  %v4169_v25 = vld [vmem:[#allocation2 + $0x61] sm:$0xff] }
 0x7f2   :  { %4264 = vrot.lane.b32.xlu1 %v11906_v27, %s13936_s21  ;;  %v11883_v27 = vpack.c.bf16 %v4011_v8, %v4011_v8  ;;  %v11908_v52 = vpack.c.bf16 %v4162_v26, %v4162_v26  ;;  %v11887_v26 = vpack.c.bf16 %v4015_v47, %v4015_v47  ;;  %12404 = vmatpush3.bf16.msra.mxu0 %v13648_v1  ;;  %v13660_v8 = vld [vmem:[%s17434_s3 + $0x88] sm:$0xff]   ;;  %v4021_v1 = vld [vmem:[#allocation2 + $0x78] sm:$0xff] }
 0x7f3   :  { %12975 = vmatprep.subr.bf16.mxu0 %v15523_v10  ;;  %12486 = vmatpush3.bf16.msra.mxu1 %v13660_v8  ;;  %v4166_v13 = vld [vmem:[#allocation2 + $0x49] sm:$0xff]  ;;  %4145 = vst.msk [vmem:[#allocation4 + $0x104] sm:$0xf] %vm1096_vm5, %v11891_v58 }
 0x7f4   :  { %4137 = vst.msk [vmem:[#allocation4 + $0x64] sm:$0xf] %vm1096_vm5, %v11883_v27  ;;  %4141 = vst.msk [vmem:[#allocation4 + $0xb4] sm:$0xf] %vm1096_vm5, %v11887_v26  ;;  %v4017_v27 = vld [vmem:[#allocation2 + $0x58] sm:$0xff]  ;;  %v11912_v30 = vpack.c.bf16 %v4166_v13, %v4166_v13  ;;  %v4023_v47 = vld [vmem:[#allocation2 + $0x88] sm:$0xff] }
 0x7f5   :  { %4266 = vrot.lane.b32.xlu0 %v11907_v28, %s13936_s21  ;;  %v4014_v28 = vld [vmem:[#allocation2 + $0x40] sm:$0xff]  ;;  %v13666_v26 = vld [vmem:[%s17434_s3 + $0x90] sm:$0xff]   ;;  %v11895_v5 = vpack.c.bf16 %v4023_v47, %v4023_v47  ;;  %v11915_v47 = vpack.c.bf16 %v4169_v25, %v4169_v25 }
 0x7f6   :  { %4616 = vrot.lane.b32.xlu1 %v15783_v41, %s13936_s21  ;;  %v11884_v41 = vpack.c.bf16 %v4012_v39, %v4012_v39  ;;  %v11889_v39 = vpack.c.bf16 %v4017_v27, %v4017_v27  ;;  %v4024_v8 = vld [vmem:[#allocation2 + $0x90] sm:$0xff] }
 0x7f7   :  { %4149 = vst.msk [vmem:[#allocation4 + $0x154] sm:$0xf] %vm1096_vm5, %v11895_v5  ;;  %v11896_v57 = vpack.c.bf16 %v4024_v8, %v4024_v8  ;;  %v4380_v5 = vld [vmem:[#allocation2 + $0xb2] sm:$0xff] }
 0x7f8   :  { %4138 = vst.msk [vmem:[#allocation4 + $0x78] sm:$0xf] %vm1096_vm5, %v11884_v41  ;;  %4143 = vst.msk [vmem:[#allocation4 + $0xdc] sm:$0xf] %vm1096_vm5, %v11889_v39  ;;  %v11946_v39 = vpack.c.bf16 %v4376_v22, %v4376_v22  ;;  %v13670_v8 = vld [vmem:[%s17434_s3 + $0xd8] sm:$0xff]   ;;  %v4030_v22 = vld [vmem:[#allocation2 + $0xc0] sm:$0xff] }
 0x7f9   :  { %4618 = vrot.lane.b32.xlu0 %v15785_v51, %s13936_s21  ;;  %v11886_v51 = vpack.c.bf16 %v4014_v28, %v4014_v28  ;;  %v11893_v28 = vpack.c.bf16 %v4021_v1, %v4021_v1  ;;  %4150 = vst.msk [vmem:[#allocation4 + $0x168] sm:$0xf] %vm1096_vm5, %v11896_v57  ;;  %v4378_v1 = vld [vmem:[#allocation2 + $0xa2] sm:$0xff]  ;;  %v11950_v57 = vpack.c.bf16 %v4380_v5, %v4380_v5  ;;  %v5065_v5 = vld [vmem:[#allocation2 + $0x2c] sm:$0xff] }
 0x7fa   :  { %4268 = vrot.lane.b32.xlu1 %v11908_v52, %s13936_s21  ;;  %v4018_v52 = vld [vmem:[#allocation2 + $0x60] sm:$0xff]  ;;  %4502 = vst.msk [vmem:[#allocation4 + $0x16c] sm:$0xf] %vm1096_vm5, %v11946_v39  ;;  %v4171_v39 = vld [vmem:[#allocation2 + $0x71] sm:$0xff] }
 0x7fb   :  { %4140 = vst.msk [vmem:[#allocation4 + $0xa0] sm:$0xf] %vm1096_vm5, %v11886_v51  ;;  %v11890_v10 = vpack.c.bf16 %v4018_v52, %v4018_v52  ;;  %4147 = vst.msk [vmem:[#allocation4 + $0x12c] sm:$0xf] %vm1096_vm5, %v11893_v28  ;;  %v11894_v51 = vpack.c.bf16 %v4022_v24, %v4022_v24  ;;  %v11948_v28 = vpack.c.bf16 %v4378_v1, %v4378_v1  ;;  %v4379_v24 = vld [vmem:[#allocation2 + $0xaa] sm:$0xff]  ;;  %v5063_v1 = vld [vmem:[#allocation2 + $0x1c] sm:$0xff] }
 0x7fc   :  { %4506 = vst.msk [vmem:[#allocation4 + $0x1bc] sm:$0xf] %vm1096_vm5, %v11950_v57  ;;  %v4715_v57 = vld [vmem:[#allocation2 + $0x33] sm:$0xff] }
 0x7fd   :  { %4270 = vrot.lane.b32.xlu0 %v11909_v50, %s13936_s21  ;;  %4144 = vst.msk [vmem:[#allocation4 + $0xf0] sm:$0xf] %vm1096_vm5, %v11890_v10  ;;  %v4167_v50 = vld [vmem:[#allocation2 + $0x51] sm:$0xff]  ;;  %4148 = vst.msk [vmem:[#allocation4 + $0x140] sm:$0xf] %vm1096_vm5, %v11894_v51  ;;  %v4377_v10 = vld [vmem:[#allocation2 + $0x9a] sm:$0xff] }
 0x7fe   :  { %4620 = vrot.lane.b32.xlu1 %v15788_v18, %s13936_s21  ;;  %v4165_v18 = vld [vmem:[#allocation2 + $0x41] sm:$0xff]  ;;  %v11947_v13 = vpack.c.bf16 %v4377_v10, %v4377_v10  ;;  %v4028_v51 = vld [vmem:[#allocation2 + $0xb0] sm:$0xff]  ;;  %4504 = vst.msk [vmem:[#allocation4 + $0x194] sm:$0xf] %vm1096_vm5, %v11948_v28 }
 0x7ff   :  { %v11911_v41 = vpack.c.bf16 %v4165_v18, %v4165_v18  ;;  %v4025_v18 = vld [vmem:[#allocation2 + $0x98] sm:$0xff] }
 0x800   :  { %v11897_v27 = vpack.c.bf16 %v4025_v18, %v4025_v18  ;;  %4503 = vst.msk [vmem:[#allocation4 + $0x180] sm:$0xf] %vm1096_vm5, %v11947_v13  ;;  %v4711_v13 = vld [vmem:[#allocation2 + $0x13] sm:$0xff]  ;;  %v4712_v28 = vld [vmem:[#allocation2 + $0x1b] sm:$0xff] }
 0x801   :  { %4622 = vrot.lane.b32.xlu0 %v15793_v31, %s13936_s21  ;;  %v11892_v31 = vpack.c.bf16 %v4020_v12, %v4020_v12  ;;  %v4885_v12 = vld [vmem:[#allocation2 + $0xcc] sm:$0xff] }
 0x802   :  { %4272 = vrot.lane.b32.xlu1 %v11910_v35, %s13936_s21  ;;  %v11913_v35 = vpack.c.bf16 %v4167_v50, %v4167_v50  ;;  %4151 = vst.msk [vmem:[#allocation4 + $0x17c] sm:$0xf] %vm1096_vm5, %v11897_v27  ;;  %v4382_v27 = vld [vmem:[#allocation2 + $0xc2] sm:$0xff] }
 0x803   :  { %4146 = vst.msk [vmem:[#allocation4 + $0x118] sm:$0xf] %vm1096_vm5, %v11892_v31  ;;  %v4027_v31 = vld [vmem:[#allocation2 + $0xa8] sm:$0xff]  ;;  %v11952_v10 = vpack.c.bf16 %v4382_v27, %v4382_v27  ;;  %v5067_v27 = vld [vmem:[#allocation2 + $0x3c] sm:$0xff] }
 0x804   :  { %v11899_v50 = vpack.c.bf16 %v4027_v31, %v4027_v31  ;;  %v5062_v31 = vld [vmem:[#allocation2 + $0x14] sm:$0xff] }
 0x805   :  { %4274 = vrot.lane.b32.xlu0 %v11911_v41, %s13936_s21  ;;  %v4026_v41 = vld [vmem:[#allocation2 + $0xa0] sm:$0xff]  ;;  %4508 = vst.msk [vmem:[#allocation4 + $0x1e4] sm:$0xf] %vm1096_vm5, %v11952_v10 }
 0x806   :  { %4624 = vrot.lane.b32.xlu1 %v15799_v61, %s13936_s21  ;;  %v13665_v61 = vld [vmem:[%s17434_s3 + $0xd0] sm:$0xff]   ;;  %v11898_v58 = vpack.c.bf16 %v4026_v41, %v4026_v41  ;;  %4153 = vst.msk [vmem:[#allocation4 + $0x1a4] sm:$0xf] %vm1096_vm5, %v11899_v50  ;;  %v12029_v50 = vpack.c.bf16 %v5063_v1, %v5063_v1 }
 0x807   :  { %12487 = vmatprep.subr.bf16.mxu1 %v13665_v61  ;;  %v11949_v61 = vpack.c.bf16 %v4379_v24, %v4379_v24  ;;  %v4710_v41 = vld [vmem:[#allocation2 + $0xb] sm:$0xff]  ;;  %v4172_v24 = vld [vmem:[#allocation2 + $0x79] sm:$0xff] }
 0x808   :  { %12488 = vmatpush3.bf16.msra.mxu1 %v13666_v26  ;;  %4152 = vst.msk [vmem:[#allocation4 + $0x190] sm:$0xf] %vm1096_vm5, %v11898_v58  ;;  %v11900_v26 = vpack.c.bf16 %v4028_v51, %v4028_v51  ;;  %v13671_v58 = vld [vmem:[%s17434_s3 + $0x98] sm:$0xff]   ;;  %v11980_v51 = vpack.c.bf16 %v4712_v28, %v4712_v28  ;;  %5189 = vst.msk [vmem:[#allocation4 + $0x20] sm:$0xf] %vm1096_vm5, %v12029_v50  ;;  %v5069_v50 = vld [vmem:[#allocation2 + $0x4c] sm:$0xff] }
 0x809   :  { %4626 = vrot.lane.b32.xlu0 %v15801_v59, %s13936_s21  ;;  %v4168_v59 = vld [vmem:[#allocation2 + $0x59] sm:$0xff]  ;;  %4505 = vst.msk [vmem:[#allocation4 + $0x1a8] sm:$0xf] %vm1096_vm5, %v11949_v61  ;;  %12489 = vmatprep.subr.bf16.mxu1 %v13670_v8  ;;  %v5064_v61 = vld [vmem:[#allocation2 + $0x24] sm:$0xff]  ;;  %v12031_v8 = vpack.c.bf16 %v5065_v5, %v5065_v5 }
 0x80a   :  { %4276 = vrot.lane.b32.xlu1 %v11912_v30, %s13936_s21  ;;  %v11914_v52 = vpack.c.bf16 %v4168_v59, %v4168_v59  ;;  %v4170_v30 = vld [vmem:[#allocation2 + $0x69] sm:$0xff]  ;;  %4154 = vst.msk [vmem:[#allocation4 + $0x1b8] sm:$0xf] %vm1096_vm5, %v11900_v26  ;;  %v11917_v26 = vpack.c.bf16 %v4171_v39, %v4171_v39  ;;  %4838 = vst.msk [vmem:[#allocation4 + $0x30] sm:$0xf] %vm1096_vm5, %v11980_v51  ;;  %v5414_v39 = vld [vmem:[#allocation2 + $0x16] sm:$0xff] }
 0x80b   :  { %v11916_v25 = vpack.c.bf16 %v4170_v30, %v4170_v30  ;;  %v12028_v30 = vpack.c.bf16 %v5062_v31, %v5062_v31  ;;  %5191 = vst.msk [vmem:[#allocation4 + $0x48] sm:$0xf] %vm1096_vm5, %v12031_v8  ;;  %v5416_v28 = vld [vmem:[#allocation2 + $0x26] sm:$0xff]  ;;  %v5070_v8 = vld [vmem:[#allocation2 + $0x54] sm:$0xff] }
 0x80c   :  { %12490 = vmatpush3.bf16.msra.mxu1 %v13671_v58  ;;  %v11918_v58 = vpack.c.bf16 %v4172_v24, %v4172_v24  ;;  %v4719_v24 = vld [vmem:[#allocation2 + $0x53] sm:$0xff] }
 0x80d   :  { %4278 = vrot.lane.b32.xlu0 %v11913_v35, %s13936_s21  ;;  %v4381_v35 = vld [vmem:[#allocation2 + $0xba] sm:$0xff]  ;;  %5188 = vst.msk [vmem:[#allocation4 + $0xc] sm:$0xf] %vm1096_vm5, %v12028_v30  ;;  %v5068_v30 = vld [vmem:[#allocation2 + $0x44] sm:$0xff] }
 0x80e   :  { %4628 = vrot.lane.b32.xlu1 %v15805_v60, %s13936_s21  ;;  %v15936_v60 = vpack.c.bf16 %v4885_v12, %v4885_v12  ;;  %v11951_v18 = vpack.c.bf16 %v4381_v35, %v4381_v35  ;;  %v11979_v12 = vpack.c.bf16 %v4711_v13, %v4711_v13  ;;  %v4714_v35 = vld [vmem:[#allocation2 + $0x2b] sm:$0xff]  ;;  %v4716_v13 = vld [vmem:[#allocation2 + $0x3b] sm:$0xff]  ;;  %v12034_v51 = vpack.c.bf16 %v5068_v30, %v5068_v30 }
 0x80f   :  { %v11984_v31 = vpack.c.bf16 %v4716_v13, %v4716_v13 }
 0x810   :  { %5211 = vst.msk [vmem:[#allocation4 + $0x1d8] sm:$0xf] %vm1096_vm5, %v15936_v60  ;;  %4507 = vst.msk [vmem:[#allocation4 + $0x1d0] sm:$0xf] %vm1096_vm5, %v11951_v18  ;;  %v11983_v18 = vpack.c.bf16 %v4715_v57, %v4715_v57  ;;  %v5418_v57 = vld [vmem:[#allocation2 + $0x36] sm:$0xff] }
 0x811   :  { %4630 = vrot.lane.b32.xlu0 %v15807_v63, %s13936_s21  ;;  %v4029_v63 = vld [vmem:[#allocation2 + $0xb8] sm:$0xff]  ;;  %4837 = vst.msk [vmem:[#allocation4 + $0x1c] sm:$0xf] %vm1096_vm5, %v11979_v12  ;;  %4842 = vst.msk [vmem:[#allocation4 + $0x80] sm:$0xf] %vm1096_vm5, %v11984_v31  ;;  %v5420_v31 = vld [vmem:[#allocation2 + $0x46] sm:$0xff] }
 0x812   :  { %4280 = vrot.lane.b32.xlu1 %v11914_v52, %s13936_s21  ;;  %v11901_v59 = vpack.c.bf16 %v4029_v63, %v4029_v63  ;;  %v11902_v52 = vpack.c.bf16 %v4030_v22, %v4030_v22  ;;  %v12030_v63 = vpack.c.bf16 %v5064_v61, %v5064_v61  ;;  %v5066_v22 = vld [vmem:[#allocation2 + $0x34] sm:$0xff]  ;;  %4841 = vst.msk [vmem:[#allocation4 + $0x6c] sm:$0xf] %vm1096_vm5, %v11983_v18  ;;  %v15987_v18 = vld [vmem:[#allocation2 + $0x89] sm:$0xff]  ;;  %5194 = vst.msk [vmem:[#allocation4 + $0x84] sm:$0xf] %vm1096_vm5, %v12034_v51 }
 0x813   :  { %v12032_v10 = vpack.c.bf16 %v5066_v22, %v5066_v22  ;;  %v5417_v61 = vld [vmem:[#allocation2 + $0x2e] sm:$0xff]  ;;  %v12084_v51 = vpack.c.bf16 %v5420_v31, %v5420_v31 }
 0x814   :  { %4155 = vst.msk [vmem:[#allocation4 + $0x1cc] sm:$0xf] %vm1096_vm5, %v11901_v59  ;;  %4156 = vst.msk [vmem:[#allocation4 + $0x1e0] sm:$0xf] %vm1096_vm5, %v11902_v52  ;;  %v11982_v59 = vpack.c.bf16 %v4714_v35, %v4714_v35  ;;  %v15973_v52 = vld [vmem:[#allocation2 + $0x81] sm:$0xff]  ;;  %v11987_v35 = vpack.c.bf16 %v4719_v24, %v4719_v24  ;;  %v4175_v24 = vld [vmem:[#allocation2 + $0x91] sm:$0xff] }
 0x815   :  { %4282 = vrot.lane.b32.xlu0 %v11915_v47, %s13936_s21  ;;  %v4713_v47 = vld [vmem:[#allocation2 + $0x23] sm:$0xff]  ;;  %5190 = vst.msk [vmem:[#allocation4 + $0x34] sm:$0xf] %vm1096_vm5, %v12030_v63  ;;  %5192 = vst.msk [vmem:[#allocation4 + $0x5c] sm:$0xf] %vm1096_vm5, %v12032_v10  ;;  %v12081_v63 = vpack.c.bf16 %v5417_v61, %v5417_v61  ;;  %v4720_v10 = vld [vmem:[#allocation2 + $0x5b] sm:$0xff] }
 0x816   :  { %4632 = vrot.lane.b32.xlu1 %v15811_v0, %s13936_s21  ;;  %v11978_v0 = vpack.c.bf16 %v4710_v41, %v4710_v41  ;;  %4840 = vst.msk [vmem:[#allocation4 + $0x58] sm:$0xf] %vm1096_vm5, %v11982_v59  ;;  %v12033_v41 = vpack.c.bf16 %v5067_v27, %v5067_v27  ;;  %v5071_v59 = vld [vmem:[#allocation2 + $0x5c] sm:$0xff]  ;;  %4845 = vst.msk [vmem:[#allocation4 + $0xbc] sm:$0xf] %vm1096_vm5, %v11987_v35  ;;  %v11988_v13 = vpack.c.bf16 %v4720_v10, %v4720_v10  ;;  %v4722_v61 = vld [vmem:[#allocation2 + $0x6b] sm:$0xff] }
 0x817   :  { %v12037_v22 = vpack.c.bf16 %v5071_v59, %v5071_v59  ;;  %v5419_v27 = vld [vmem:[#allocation2 + $0x3e] sm:$0xff]  ;;  %5543 = vst.msk [vmem:[#allocation4 + $0x4c] sm:$0xf] %vm1096_vm5, %v12081_v63  ;;  %5546 = vst.msk [vmem:[#allocation4 + $0x88] sm:$0xf] %vm1096_vm5, %v12084_v51  ;;  %v11990_v63 = vpack.c.bf16 %v4722_v61, %v4722_v61 }
 0x818   :  { %4836 = vst.msk [vmem:[#allocation4 + $0x8] sm:$0xf] %vm1096_vm5, %v11978_v0  ;;  %v12078_v0 = vpack.c.bf16 %v5414_v39, %v5414_v39  ;;  %5193 = vst.msk [vmem:[#allocation4 + $0x70] sm:$0xf] %vm1096_vm5, %v12033_v41  ;;  %v12082_v39 = vpack.c.bf16 %v5418_v57, %v5418_v57  ;;  %v4721_v41 = vld [vmem:[#allocation2 + $0x63] sm:$0xff]  ;;  %v11920_v57 = vpack.c.bf16 %v15987_v18, %v15987_v18 }
 0x819   :  { %4634 = vrot.lane.b32.xlu0 %v15817_v37, %s13936_s21  ;;  %v11981_v37 = vpack.c.bf16 %v4713_v47, %v4713_v47  ;;  %v12035_v47 = vpack.c.bf16 %v5069_v50, %v5069_v50  ;;  %5197 = vst.msk [vmem:[#allocation4 + $0xc0] sm:$0xf] %vm1096_vm5, %v12037_v22  ;;  %4846 = vst.msk [vmem:[#allocation4 + $0xd0] sm:$0xf] %vm1096_vm5, %v11988_v13  ;;  %v5075_v35 = vld [vmem:[#allocation2 + $0x7c] sm:$0xff]  ;;  %v5076_v13 = vld [vmem:[#allocation2 + $0x84] sm:$0xff] }
 0x81a   :  { %4284 = vrot.lane.b32.xlu1 %v11916_v25, %s13936_s21  ;;  %v5415_v25 = vld [vmem:[#allocation2 + $0x1e] sm:$0xff]  ;;  %5540 = vst.msk [vmem:[#allocation4 + $0x10] sm:$0xf] %vm1096_vm5, %v12078_v0  ;;  %v12083_v0 = vpack.c.bf16 %v5419_v27, %v5419_v27  ;;  %5544 = vst.msk [vmem:[#allocation4 + $0x60] sm:$0xf] %vm1096_vm5, %v12082_v39  ;;  %v12042_v18 = vpack.c.bf16 %v5076_v13, %v5076_v13 }
 0x81b   :  { %4839 = vst.msk [vmem:[#allocation4 + $0x44] sm:$0xf] %vm1096_vm5, %v11981_v37  ;;  %v12079_v12 = vpack.c.bf16 %v5415_v25, %v5415_v25  ;;  %v4718_v37 = vld [vmem:[#allocation2 + $0x4b] sm:$0xff]  ;;  %5195 = vst.msk [vmem:[#allocation4 + $0x98] sm:$0xf] %vm1096_vm5, %v12035_v47  ;;  %v11919_v25 = vpack.c.bf16 %v15973_v52, %v15973_v52  ;;  %v13677_v52 = vld [vmem:[%s17434_s3 + $0xa0] sm:$0xff]  }
 0x81c   :  { %v11986_v5 = vpack.c.bf16 %v4718_v37, %v4718_v37  ;;  %5545 = vst.msk [vmem:[#allocation4 + $0x74] sm:$0xf] %vm1096_vm5, %v12083_v0  ;;  %v5074_v37 = vld [vmem:[#allocation2 + $0x74] sm:$0xff]  ;;  %v5423_v59 = vld [vmem:[#allocation2 + $0x5e] sm:$0xff]  ;;  %4848 = vst.msk [vmem:[#allocation4 + $0xf8] sm:$0xf] %vm1096_vm5, %v11990_v63 }
 0x81d   :  { %4286 = vrot.lane.b32.xlu0 %v11917_v26, %s13936_s21  ;;  %v12080_v26 = vpack.c.bf16 %v5416_v28, %v5416_v28  ;;  %5541 = vst.msk [vmem:[#allocation4 + $0x24] sm:$0xf] %vm1096_vm5, %v12079_v12  ;;  %v5073_v12 = vld [vmem:[#allocation2 + $0x6c] sm:$0xff]  ;;  %v12087_v27 = vpack.c.bf16 %v5423_v59, %v5423_v59  ;;  %v4724_v39 = vld [vmem:[#allocation2 + $0x7b] sm:$0xff]  ;;  %v4725_v10 = vld [vmem:[#allocation2 + $0x83] sm:$0xff] }
 0x81e   :  { %4636 = vrot.lane.b32.xlu1 %v15823_v23, %s13936_s21  ;;  %v4717_v23 = vld [vmem:[#allocation2 + $0x43] sm:$0xff]  ;;  %4844 = vst.msk [vmem:[#allocation4 + $0xa8] sm:$0xf] %vm1096_vm5, %v11986_v5  ;;  %v12039_v50 = vpack.c.bf16 %v5073_v12, %v5073_v12  ;;  %v5421_v28 = vld [vmem:[#allocation2 + $0x4e] sm:$0xff]  ;;  %v12040_v5 = vpack.c.bf16 %v5074_v37, %v5074_v37  ;;  %v11993_v0 = vpack.c.bf16 %v4725_v10, %v4725_v10  ;;  %5202 = vst.msk [vmem:[#allocation4 + $0x124] sm:$0xf] %vm1096_vm5, %v12042_v18 }
 0x81f   :  { %v11985_v1 = vpack.c.bf16 %v4717_v23, %v4717_v23  ;;  %5542 = vst.msk [vmem:[#allocation4 + $0x38] sm:$0xf] %vm1096_vm5, %v12080_v26  ;;  %v11989_v23 = vpack.c.bf16 %v4721_v41, %v4721_v41  ;;  %v12085_v47 = vpack.c.bf16 %v5421_v28, %v5421_v28  ;;  %v4723_v26 = vld [vmem:[#allocation2 + $0x73] sm:$0xff]  ;;  %5549 = vst.msk [vmem:[#allocation4 + $0xc4] sm:$0xf] %vm1096_vm5, %v12087_v27  ;;  %v4177_v61 = vld [vmem:[#allocation2 + $0xa1] sm:$0xff] }
 0x820   :  { %5199 = vst.msk [vmem:[#allocation4 + $0xe8] sm:$0xf] %vm1096_vm5, %v12039_v50  ;;  %v4526_v41 = vld [vmem:[#allocation2 + $0x92] sm:$0xff]  ;;  %5200 = vst.msk [vmem:[#allocation4 + $0xfc] sm:$0xf] %vm1096_vm5, %v12040_v5  ;;  %v4527_v50 = vld [vmem:[#allocation2 + $0x9a] sm:$0xff]  ;;  %v11923_v18 = vpack.c.bf16 %v4177_v61, %v4177_v61 }
 0x821   :  { %4638 = vrot.lane.b32.xlu0 %v15825_v38, %s13936_s21  ;;  %4843 = vst.msk [vmem:[#allocation4 + $0x94] sm:$0xf] %vm1096_vm5, %v11985_v1  ;;  %v12036_v38 = vpack.c.bf16 %v5070_v8, %v5070_v8  ;;  %v13676_v1 = vld [vmem:[%s17434_s3 + $0xe0] sm:$0xff]   ;;  %4847 = vst.msk [vmem:[#allocation4 + $0xe4] sm:$0xf] %vm1096_vm5, %v11989_v23  ;;  %v5422_v8 = vld [vmem:[#allocation2 + $0x56] sm:$0xff] }
 0x822   :  { %4288 = vrot.lane.b32.xlu1 %v11918_v58, %s13936_s21  ;;  %v5072_v58 = vld [vmem:[#allocation2 + $0x64] sm:$0xff]  ;;  %12491 = vmatprep.subr.bf16.mxu1 %v13676_v1  ;;  %5547 = vst.msk [vmem:[#allocation4 + $0x9c] sm:$0xf] %vm1096_vm5, %v12085_v47  ;;  %v12086_v22 = vpack.c.bf16 %v5422_v8, %v5422_v8  ;;  %v5077_v23 = vld [vmem:[#allocation2 + $0x8c] sm:$0xff]  ;;  %4851 = vst.msk [vmem:[#allocation4 + $0x134] sm:$0xf] %vm1096_vm5, %v11993_v0  ;;  %v11921_v1 = vpack.c.bf16 %v4175_v24, %v4175_v24 }
 0x823   :  { %5196 = vst.msk [vmem:[#allocation4 + $0xac] sm:$0xf] %vm1096_vm5, %v12036_v38  ;;  %v12038_v30 = vpack.c.bf16 %v5072_v58, %v5072_v58  ;;  %12492 = vmatpush3.bf16.msra.mxu1 %v13677_v52  ;;  %v12041_v38 = vpack.c.bf16 %v5075_v35, %v5075_v35  ;;  %v5424_v58 = vld [vmem:[#allocation2 + $0x66] sm:$0xff]  ;;  %v12043_v12 = vpack.c.bf16 %v5077_v23, %v5077_v23  ;;  %v4176_v28 = vld [vmem:[#allocation2 + $0x99] sm:$0xff] }
 0x824   :  { %5548 = vst.msk [vmem:[#allocation4 + $0xb0] sm:$0xf] %vm1096_vm5, %v12086_v22  ;;  %v12088_v31 = vpack.c.bf16 %v5424_v58, %v5424_v58  ;;  %v11970_v52 = vpack.c.bf16 %v4526_v41, %v4526_v41  ;;  %v5078_v37 = vld [vmem:[#allocation2 + $0x94] sm:$0xff]  ;;  %v4528_v24 = vld [vmem:[#allocation2 + $0xa2] sm:$0xff]  ;;  %v11971_v35 = vpack.c.bf16 %v4527_v50, %v4527_v50  ;;  %v11922_v8 = vpack.c.bf16 %v4176_v28, %v4176_v28 }
 0x825   :  { %4290 = vrot.lane.b32.xlu0 %v11919_v25, %s13936_s21  ;;  %5198 = vst.msk [vmem:[#allocation4 + $0xd4] sm:$0xf] %vm1096_vm5, %v12038_v30  ;;  %v11992_v25 = vpack.c.bf16 %v4724_v39, %v4724_v39  ;;  %5201 = vst.msk [vmem:[#allocation4 + $0x110] sm:$0xf] %vm1096_vm5, %v12041_v38  ;;  %v4726_v30 = vld [vmem:[#allocation2 + $0x8b] sm:$0xff]  ;;  %v5079_v5 = vld [vmem:[#allocation2 + $0x9c] sm:$0xff] }
 0x826   :  { %4640 = vrot.lane.b32.xlu1 %v15829_v53, %s13936_s21  ;;  %v11991_v53 = vpack.c.bf16 %v4723_v26, %v4723_v26  ;;  %5203 = vst.msk [vmem:[#allocation4 + $0x138] sm:$0xf] %vm1096_vm5, %v12043_v12  ;;  %5550 = vst.msk [vmem:[#allocation4 + $0xd8] sm:$0xf] %vm1096_vm5, %v12088_v31  ;;  %v11994_v47 = vpack.c.bf16 %v4726_v30, %v4726_v30  ;;  %v4727_v26 = vld [vmem:[#allocation2 + $0x93] sm:$0xff]  ;;  %v12045_v59 = vpack.c.bf16 %v5079_v5, %v5079_v5  ;;  %v5427_v38 = vld [vmem:[#allocation2 + $0x7e] sm:$0xff] }
 0x827   :  { %4850 = vst.msk [vmem:[#allocation4 + $0x120] sm:$0xf] %vm1096_vm5, %v11992_v25  ;;  %v11995_v63 = vpack.c.bf16 %v4727_v26, %v4727_v26  ;;  %v4728_v22 = vld [vmem:[#allocation2 + $0x9b] sm:$0xff]  ;;  %v13681_v27 = vld [vmem:[%s17434_s3 + $0xe8] sm:$0xff]   ;;  %v12091_v10 = vpack.c.bf16 %v5427_v38, %v5427_v38  ;;  %v4731_v26 = vld [vmem:[#allocation2 + $0xb3] sm:$0xff] }
 0x828   :  { %4849 = vst.msk [vmem:[#allocation4 + $0x10c] sm:$0xf] %vm1096_vm5, %v11991_v53  ;;  %4852 = vst.msk [vmem:[#allocation4 + $0x148] sm:$0xf] %vm1096_vm5, %v11994_v47  ;;  %v12044_v53 = vpack.c.bf16 %v5078_v37, %v5078_v37  ;;  %v11996_v41 = vpack.c.bf16 %v4728_v22, %v4728_v22  ;;  %v4529_v25 = vld [vmem:[#allocation2 + $0xaa] sm:$0xff]  ;;  %12493 = vmatprep.subr.bf16.mxu1 %v13681_v27  ;;  %v5082_v37 = vld [vmem:[#allocation2 + $0xb4] sm:$0xff] }
 0x829   :  { %4642 = vrot.lane.b32.xlu0 %v15831_v29, %s13936_s21  ;;  %v5425_v29 = vld [vmem:[#allocation2 + $0x6e] sm:$0xff]  ;;  %4853 = vst.msk [vmem:[#allocation4 + $0x15c] sm:$0xf] %vm1096_vm5, %v11995_v63  ;;  %5205 = vst.msk [vmem:[#allocation4 + $0x160] sm:$0xf] %vm1096_vm5, %v12045_v59  ;;  %v4729_v13 = vld [vmem:[#allocation2 + $0xa3] sm:$0xff] }
 0x82a   :  { %4292 = vrot.lane.b32.xlu1 %v11920_v57, %s13936_s21  ;;  %v12089_v51 = vpack.c.bf16 %v5425_v29, %v5425_v29  ;;  %v5426_v57 = vld [vmem:[#allocation2 + $0x76] sm:$0xff]  ;;  %5204 = vst.msk [vmem:[#allocation4 + $0x14c] sm:$0xf] %vm1096_vm5, %v12044_v53  ;;  %v13684_v0 = vld [vmem:[%s17434_s3 + $0xa8] sm:$0xff]   ;;  %5553 = vst.msk [vmem:[#allocation4 + $0x114] sm:$0xf] %vm1096_vm5, %v12091_v10  ;;  %v11997_v58 = vpack.c.bf16 %v4729_v13, %v4729_v13  ;;  %v12048_v53 = vpack.c.bf16 %v5082_v37, %v5082_v37 }
 0x82b   :  { %v12090_v39 = vpack.c.bf16 %v5426_v57, %v5426_v57  ;;  %v4178_v23 = vld [vmem:[#allocation2 + $0xa9] sm:$0xff]  ;;  %4854 = vst.msk [vmem:[#allocation4 + $0x170] sm:$0xf] %vm1096_vm5, %v11996_v41  ;;  %12494 = vmatpush3.bf16.msra.mxu1 %v13684_v0  ;;  %v5083_v63 = vld [vmem:[#allocation2 + $0xbc] sm:$0xff]  ;;  %v4179_v59 = vld [vmem:[#allocation2 + $0xb1] sm:$0xff] }
 0x82c   :  { %5551 = vst.msk [vmem:[#allocation4 + $0xec] sm:$0xf] %vm1096_vm5, %v12089_v51  ;;  %v5080_v12 = vld [vmem:[#allocation2 + $0xa4] sm:$0xff]  ;;  %v5081_v31 = vld [vmem:[#allocation2 + $0xac] sm:$0xff]  ;;  %4855 = vst.msk [vmem:[#allocation4 + $0x184] sm:$0xf] %vm1096_vm5, %v11997_v58  ;;  %v12049_v5 = vpack.c.bf16 %v5083_v63, %v5083_v63  ;;  %v11924_v10 = vpack.c.bf16 %v4178_v23, %v4178_v23 }
 0x82d   :  { %4294 = vrot.lane.b32.xlu0 %v11921_v1, %s13936_s21  ;;  %5552 = vst.msk [vmem:[#allocation4 + $0x100] sm:$0xf] %vm1096_vm5, %v12090_v39  ;;  %v5428_v1 = vld [vmem:[#allocation2 + $0x86] sm:$0xff]  ;;  %v12046_v29 = vpack.c.bf16 %v5080_v12, %v5080_v12  ;;  %v12047_v30 = vpack.c.bf16 %v5081_v31, %v5081_v31  ;;  %v5429_v50 = vld [vmem:[#allocation2 + $0x8e] sm:$0xff]  ;;  %v5431_v38 = vld [vmem:[#allocation2 + $0x9e] sm:$0xff] }
 0x82e   :  { %4644 = vrot.lane.b32.xlu1 %v11970_v52, %s13936_s21  ;;  %v11972_v52 = vpack.c.bf16 %v4528_v24, %v4528_v24  ;;  %v12092_v28 = vpack.c.bf16 %v5428_v1, %v5428_v1  ;;  %v4730_v51 = vld [vmem:[#allocation2 + $0xab] sm:$0xff]  ;;  %v12093_v47 = vpack.c.bf16 %v5429_v50, %v5429_v50  ;;  %v11999_v24 = vpack.c.bf16 %v4731_v26, %v4731_v26  ;;  %v4732_v27 = vld [vmem:[#allocation2 + $0xbb] sm:$0xff]  ;;  %v4733_v39 = vld [vmem:[#allocation2 + $0xc3] sm:$0xff] }
 0x82f   :  { %v11998_v61 = vpack.c.bf16 %v4730_v51, %v4730_v51  ;;  %5206 = vst.msk [vmem:[#allocation4 + $0x174] sm:$0xf] %vm1096_vm5, %v12046_v29  ;;  %5207 = vst.msk [vmem:[#allocation4 + $0x188] sm:$0xf] %vm1096_vm5, %v12047_v30  ;;  %v4530_v57 = vld [vmem:[#allocation2 + $0xb2] sm:$0xff]  ;;  %v12095_v41 = vpack.c.bf16 %v5431_v38, %v5431_v38  ;;  %v12000_v0 = vpack.c.bf16 %v4732_v27, %v4732_v27  ;;  %v5084_v13 = vld [vmem:[#allocation2 + $0xc4] sm:$0xff] }
 0x830   :  { %5554 = vst.msk [vmem:[#allocation4 + $0x128] sm:$0xf] %vm1096_vm5, %v12092_v28  ;;  %5555 = vst.msk [vmem:[#allocation4 + $0x13c] sm:$0xf] %vm1096_vm5, %v12093_v47  ;;  %v5433_v58 = vld [vmem:[#allocation2 + $0xae] sm:$0xff]  ;;  %v12050_v12 = vpack.c.bf16 %v5084_v13, %v5084_v13  ;;  %v5434_v29 = vld [vmem:[#allocation2 + $0xb6] sm:$0xff]  ;;  %v11974_v26 = vpack.c.bf16 %v4530_v57, %v4530_v57 }
 0x831   :  { %4646 = vrot.lane.b32.xlu0 %v11971_v35, %s13936_s21  ;;  %v5430_v35 = vld [vmem:[#allocation2 + $0x96] sm:$0xff]  ;;  %4856 = vst.msk [vmem:[#allocation4 + $0x198] sm:$0xf] %vm1096_vm5, %v11998_v61  ;;  %4857 = vst.msk [vmem:[#allocation4 + $0x1ac] sm:$0xf] %vm1096_vm5, %v11999_v24  ;;  %v12097_v1 = vpack.c.bf16 %v5433_v58, %v5433_v58  ;;  %v5435_v23 = vld [vmem:[#allocation2 + $0xbe] sm:$0xff]  ;;  %v12098_v50 = vpack.c.bf16 %v5434_v29, %v5434_v29  ;;  %v11925_v61 = vpack.c.bf16 %v4179_v59, %v4179_v59 }
 0x832   :  { %4296 = vrot.lane.b32.xlu1 %v11922_v8, %s13936_s21  ;;  %v11973_v8 = vpack.c.bf16 %v4529_v25, %v4529_v25  ;;  %v12094_v22 = vpack.c.bf16 %v5430_v35, %v5430_v35  ;;  %5208 = vst.msk [vmem:[#allocation4 + $0x19c] sm:$0xf] %vm1096_vm5, %v12048_v53  ;;  %5209 = vst.msk [vmem:[#allocation4 + $0x1b0] sm:$0xf] %vm1096_vm5, %v12049_v5  ;;  %v12001_v25 = vpack.c.bf16 %v4733_v39, %v4733_v39  ;;  %v5436_v51 = vld [vmem:[#allocation2 + $0xc6] sm:$0xff]  ;;  %v5437_v47 = vld [vmem:[#allocation2 + $0xce] sm:$0xff] }
 0x833   :  { %5557 = vst.msk [vmem:[#allocation4 + $0x164] sm:$0xf] %vm1096_vm5, %v12095_v41  ;;  %4858 = vst.msk [vmem:[#allocation4 + $0x1c0] sm:$0xf] %vm1096_vm5, %v12000_v0  ;;  %v12099_v28 = vpack.c.bf16 %v5435_v23, %v5435_v23  ;;  %v4531_v37 = vld [vmem:[#allocation2 + $0xba] sm:$0xff]  ;;  %v12100_v24 = vpack.c.bf16 %v5436_v51, %v5436_v51  ;;  %v12101_v53 = vpack.c.bf16 %v5437_v47, %v5437_v47  ;;  %v13687_v5 = vld [vmem:[%s17434_s3 + $0xf0] sm:$0xff]  }
 0x834   :  { %5556 = vst.msk [vmem:[#allocation4 + $0x150] sm:$0xf] %vm1096_vm5, %v12094_v22  ;;  %4859 = vst.msk [vmem:[#allocation4 + $0x1d4] sm:$0xf] %vm1096_vm5, %v12001_v25  ;;  %v4180_v63 = vld [vmem:[#allocation2 + $0xb9] sm:$0xff]  ;;  %v13688_v35 = vld [vmem:[%s17434_s3 + $0xb0] sm:$0xff]   ;;  %12495 = vmatprep.subr.bf16.mxu1 %v13687_v5 }
 0x835   :  { %4298 = vrot.lane.b32.xlu0 %v11923_v18, %s13936_s21  ;;  %v5432_v18 = vld [vmem:[#allocation2 + $0xa6] sm:$0xff]  ;;  %5210 = vst.msk [vmem:[#allocation4 + $0x1c4] sm:$0xf] %vm1096_vm5, %v12050_v12  ;;  %5559 = vst.msk [vmem:[#allocation4 + $0x18c] sm:$0xf] %vm1096_vm5, %v12097_v1  ;;  %v11926_v59 = vpack.c.bf16 %v4180_v63, %v4180_v63  ;;  %12496 = vmatpush3.bf16.msra.mxu1 %v13688_v35  ;;  %v5213_v25 = vld [vmem:[#allocation2 + $0x15] sm:$0xff] }
 0x836   :  { %4648 = vrot.lane.b32.xlu1 %v11972_v52, %s13936_s21  ;;  %v12096_v31 = vpack.c.bf16 %v5432_v18, %v5432_v18  ;;  %v4734_v52 = vld [vmem:[#allocation2 + $0xcb] sm:$0xff]  ;;  %5560 = vst.msk [vmem:[#allocation4 + $0x1a0] sm:$0xf] %vm1096_vm5, %v12098_v50  ;;  %5561 = vst.msk [vmem:[#allocation4 + $0x1b4] sm:$0xf] %vm1096_vm5, %v12099_v28  ;;  %v4181_v57 = vld [vmem:[#allocation2 + $0xc1] sm:$0xff]  ;;  %v12053_v58 = vpack.c.bf16 %v5213_v25, %v5213_v25 }
 0x837   :  { %v12002_v30 = vpack.c.bf16 %v4734_v52, %v4734_v52  ;;  %5562 = vst.msk [vmem:[#allocation4 + $0x1c8] sm:$0xf] %vm1096_vm5, %v12100_v24  ;;  %5563 = vst.msk [vmem:[#allocation4 + $0x1dc] sm:$0xf] %vm1096_vm5, %v12101_v53  ;;  %v4532_v38 = vld [vmem:[#allocation2 + $0xc2] sm:$0xff]  ;;  %v11927_v22 = vpack.c.bf16 %v4181_v57, %v4181_v57  ;;  %v4861_v39 = vld [vmem:[#allocation2 + $0xc] sm:$0xff] }
 0x838   :  { %5558 = vst.msk [vmem:[#allocation4 + $0x178] sm:$0xf] %vm1096_vm5, %v12096_v31  ;;  %v11976_v27 = vpack.c.bf16 %v4532_v38, %v4532_v38  ;;  %v12003_v41 = vpack.c.bf16 %v4861_v39, %v4861_v39  ;;  %v4862_v13 = vld [vmem:[#allocation2 + $0x14] sm:$0xff]  ;;  %v4863_v31 = vld [vmem:[#allocation2 + $0x1c] sm:$0xff]  ;;  %v4864_v50 = vld [vmem:[#allocation2 + $0x24] sm:$0xff] }
 0x839   :  { %4650 = vrot.lane.b32.xlu0 %v11973_v8, %s13936_s21  ;;  %4860 = vst.msk [vmem:[#allocation4 + $0x1e8] sm:$0xf] %vm1096_vm5, %v12002_v30  ;;  %v11975_v8 = vpack.c.bf16 %v4531_v37, %v4531_v37  ;;  %v13693_v18 = vld [vmem:[%s17434_s3 + $0xf8] sm:$0xff]   ;;  %v12004_v12 = vpack.c.bf16 %v4862_v13, %v4862_v13  ;;  %v12005_v29 = vpack.c.bf16 %v4863_v31, %v4863_v31  ;;  %v5215_v30 = vld [vmem:[#allocation2 + $0x25] sm:$0xff] }
 0x83a   :  { %4300 = vrot.lane.b32.xlu1 %v11924_v10, %s13936_s21  ;;  %v4533_v10 = vld [vmem:[#allocation2 + $0xca] sm:$0xff]  ;;  %12497 = vmatprep.subr.bf16.mxu1 %v13693_v18  ;;  %v5214_v1 = vld [vmem:[#allocation2 + $0x1d] sm:$0xff]  ;;  %v12055_v28 = vpack.c.bf16 %v5215_v30, %v5215_v30  ;;  %v12006_v51 = vpack.c.bf16 %v4864_v50, %v4864_v50  ;;  %v5217_v63 = vld [vmem:[#allocation2 + $0x35] sm:$0xff] }
 0x83b   :  { %v11977_v0 = vpack.c.bf16 %v4533_v10, %v4533_v10  ;;  %v13694_v52 = vld [vmem:[%s17434_s3 + $0xb8] sm:$0xff]   ;;  %v12054_v23 = vpack.c.bf16 %v5214_v1, %v5214_v1  ;;  %v4865_v47 = vld [vmem:[#allocation2 + $0x2c] sm:$0xff]  ;;  %v12057_v35 = vpack.c.bf16 %v5217_v63, %v5217_v63 }
 0x83c   :  { %12498 = vmatpush3.bf16.msra.mxu1 %v13694_v52  ;;  %v4866_v24 = vld [vmem:[#allocation2 + $0x34] sm:$0xff]  ;;  %v5218_v57 = vld [vmem:[#allocation2 + $0x3d] sm:$0xff]  ;;  %v5219_v10 = vld [vmem:[#allocation2 + $0x45] sm:$0xff] }
 0x83d   :  { %4302 = vrot.lane.b32.xlu0 %v11925_v61, %s13936_s21  ;;  %13357 = vmatprep.subr.bf16.mxu1 %v17534_v49  ;;  %v5216_v61 = vld [vmem:[#allocation2 + $0x2d] sm:$0xff]  ;;  %v12058_v39 = vpack.c.bf16 %v5218_v57, %v5218_v57  ;;  %v12059_v13 = vpack.c.bf16 %v5219_v10, %v5219_v10  ;;  %v5221_v50 = vld [vmem:[#allocation2 + $0x55] sm:$0xff]  ;;  %v5223_v10 = vld [vmem:[#allocation2 + $0x65] sm:$0xff] }
 0x83e   :  { %4652 = vrot.lane.b32.xlu1 %v11974_v26, %s13936_s21  ;;  %v12007_v26 = vpack.c.bf16 %v4865_v47, %v4865_v47  ;;  %v12056_v37 = vpack.c.bf16 %v5216_v61, %v5216_v61  ;;  %v4871_v63 = vld [vmem:[#allocation2 + $0x5c] sm:$0xff] }
 0x841   :  { %4654 = vrot.lane.b32.xlu0 %v11975_v8, %s13936_s21  ;;  %v12008_v8 = vpack.c.bf16 %v4866_v24, %v4866_v24  ;;  %v5222_v24 = vld [vmem:[#allocation2 + $0x5d] sm:$0xff] }
 0x842   :  { %4304 = vrot.lane.b32.xlu1 %v11926_v59, %s13936_s21  ;;  %v4867_v59 = vld [vmem:[#allocation2 + $0x3c] sm:$0xff]  ;;  %v12062_v57 = vpack.c.bf16 %v5222_v24, %v5222_v24 }
 0x845   :  { %4306 = vrot.lane.b32.xlu0 %v11927_v22, %s13936_s21 }
 0x846   :  { %4656 = vrot.lane.b32.xlu1 %v11976_v27, %s13936_s21  ;;  %v12009_v27 = vpack.c.bf16 %v4867_v59, %v4867_v59  ;;  %v12013_v59 = vpack.c.bf16 %v4871_v63, %v4871_v63 }
 0x849   :  { %4962 = vrot.lane.b32.xlu0 %v12003_v41, %s13936_s21  ;;  %v4868_v41 = vld [vmem:[#allocation2 + $0x44] sm:$0xff] }
 0x84a   :  { %4658 = vrot.lane.b32.xlu1 %v11977_v0, %s13936_s21  ;;  %v12010_v18 = vpack.c.bf16 %v4868_v41, %v4868_v41  ;;  %v4872_v41 = vld [vmem:[#allocation2 + $0x64] sm:$0xff] }
 0x84d   :  { %5314 = vrot.lane.b32.xlu0 %v12053_v58, %s13936_s21  ;;  %v4869_v58 = vld [vmem:[#allocation2 + $0x4c] sm:$0xff] }
 0x84e   :  { %4964 = vrot.lane.b32.xlu1 %v12004_v12, %s13936_s21  ;;  %v5220_v12 = vld [vmem:[#allocation2 + $0x4d] sm:$0xff]  ;;  %v12011_v52 = vpack.c.bf16 %v4869_v58, %v4869_v58  ;;  %v12014_v58 = vpack.c.bf16 %v4872_v41, %v4872_v41 }
 0x851   :  { %4966 = vrot.lane.b32.xlu0 %v12005_v29, %s13936_s21  ;;  %v12060_v29 = vpack.c.bf16 %v5220_v12, %v5220_v12  ;;  %v4873_v12 = vld [vmem:[#allocation2 + $0x6c] sm:$0xff] }
 0x852   :  { %5316 = vrot.lane.b32.xlu1 %v12054_v23, %s13936_s21 }
 0x855   :  { %5318 = vrot.lane.b32.xlu0 %v12055_v28, %s13936_s21  ;;  %v4870_v28 = vld [vmem:[#allocation2 + $0x54] sm:$0xff] }
 0x856   :  { %4968 = vrot.lane.b32.xlu1 %v12006_v51, %s13936_s21  ;;  %v13656_v51 = vld [vmem:[%s17434_s3 + $0x100] sm:$0xff]  }
 0x859   :  { %4970 = vrot.lane.b32.xlu0 %v12007_v26, %s13936_s21  ;;  %v12061_v26 = vpack.c.bf16 %v5221_v50, %v5221_v50 }
 0x85a   :  { %5320 = vrot.lane.b32.xlu1 %v12056_v37, %s13936_s21  ;;  %v12012_v37 = vpack.c.bf16 %v4870_v28, %v4870_v28 }
 0x85b   :  { %v4611_v5 = vpop.permute.xlu0 %4610 }
 0x85c   :  { %v4261_v53 = vpop.permute.xlu1 %4260  ;;  %4685 = vst.msk [vmem:[#allocation4 + $0x4] sm:$0xf] %vm1298_vm4, %v4611_v5  ;;  %v16130_v5 = vld [vmem:[#allocation3] sm:$0xff] }
 0x85d   :  { %4334 = vst.msk [vmem:[#allocation4 + $0x14] sm:$0xf] %vm1298_vm4, %v4261_v53  ;;  %5322 = vrot.lane.b32.xlu0 %v12057_v35, %s13936_s21  ;;  %v13667_v53 = vld [vmem:[%s17434_s3 + $0x108] sm:$0xff]  }
 0x85e   :  { %4972 = vrot.lane.b32.xlu1 %v12008_v8, %s13936_s21 }
 0x85f   :  { %v4263_v22 = vpop.permute.xlu0 %4262 }
 0x860   :  { %v4613_v38 = vpop.permute.xlu1 %4612  ;;  %4335 = vst.msk [vmem:[#allocation4 + $0x28] sm:$0xf] %vm1298_vm4, %v4263_v22 }
 0x861   :  { %4686 = vst.msk [vmem:[#allocation4 + $0x18] sm:$0xf] %vm1298_vm4, %v4613_v38  ;;  %4974 = vrot.lane.b32.xlu0 %v12009_v27, %s13936_s21 }
 0x862   :  { %5324 = vrot.lane.b32.xlu1 %v12058_v39, %s13936_s21 }
 0x863   :  { %v4615_v25 = vpop.permute.xlu0 %4614 }
 0x864   :  { %v4265_v0 = vpop.permute.xlu1 %4264  ;;  %4687 = vst.msk [vmem:[#allocation4 + $0x2c] sm:$0xf] %vm1298_vm4, %v4615_v25  ;;  %v13649_v23 = vld [vmem:[#allocation4] ss:$20 sps:$4 sm:$0xff]  }
 0x865   :  { %4336 = vst.msk [vmem:[#allocation4 + $0x3c] sm:$0xf] %vm1298_vm4, %v4265_v0  ;;  %5326 = vrot.lane.b32.xlu0 %v12059_v13, %s13936_s21  ;;  %v13680_v0 = vld [vmem:[%s17434_s3 + $0x110] sm:$0xff]  }
 0x866   :  { %4976 = vrot.lane.b32.xlu1 %v12010_v18, %s13936_s21  ;;  %v12063_v18 = vpack.c.bf16 %v5223_v10, %v5223_v10 }
 0x867   :  { %v4267_v1 = vpop.permute.xlu0 %4266 }
 0x868   :  { %v4617_v31 = vpop.permute.xlu1 %4616  ;;  %v13651_v30 = vld [vmem:[#allocation4 + $0x4] ss:$20 sps:$4 sm:$0xff]   ;;  %4337 = vst.msk [vmem:[#allocation4 + $0x50] sm:$0xf] %vm1298_vm4, %v4267_v1 }
 0x869   :  { %4688 = vst.msk [vmem:[#allocation4 + $0x40] sm:$0xf] %vm1298_vm4, %v4617_v31  ;;  %4978 = vrot.lane.b32.xlu0 %v12011_v52, %s13936_s21  ;;  %6316 = vmatprep.mubr.bf16.mxu0 %v13651_v30  ;;  %v5224_v31 = vld [vmem:[#allocation2 + $0x6d] sm:$0xff]  ;;  %v13691_v1 = vld [vmem:[%s17434_s3 + $0x118] sm:$0xff]  }
 0x86a   :  { %5328 = vrot.lane.b32.xlu1 %v12060_v29, %s13936_s21  ;;  %6317 = vmatmul.mubr.bf16.vlgmr.msra.gmra.mrb[108].mxu0 %v13649_v23  ;;  %v12015_v23 = vpack.c.bf16 %v4873_v12, %v4873_v12  ;;  %v12064_v30 = vpack.c.bf16 %v5224_v31, %v5224_v31  ;;  %v4877_v31 = vld [vmem:[#allocation2 + $0x8c] sm:$0xff] }
 0x86b   :  { %v4619_v61 = vpop.permute.xlu0 %4618  ;;  %12976 = vmatpush3.bf16.msra.mxu0 %v13656_v51  ;;  %v5571_v38 = vld [vmem:[#allocation4 + $0x28] sm:$0xff] }
 0x86c   :  { %v4269_v47 = vpop.permute.xlu1 %4268  ;;  %4689 = vst.msk [vmem:[#allocation4 + $0x54] sm:$0xf] %vm1298_vm4, %v4619_v61  ;;  %12977 = vmatprep.subr.bf16.mxu0 %v16130_v5  ;;  %v5225_v61 = vld [vmem:[#allocation2 + $0x75] sm:$0xff] }
 0x86d   :  { %4338 = vst.msk [vmem:[#allocation4 + $0x64] sm:$0xf] %vm1298_vm4, %v4269_v47  ;;  %5330 = vrot.lane.b32.xlu0 %v12061_v26, %s13936_s21  ;;  %v4874_v26 = vld [vmem:[#allocation2 + $0x74] sm:$0xff]  ;;  %v12065_v24 = vpack.c.bf16 %v5225_v61, %v5225_v61 }
 0x86e   :  { %4980 = vrot.lane.b32.xlu1 %v12012_v37, %s13936_s21  ;;  %v5229_v61 = vld [vmem:[#allocation2 + $0x95] sm:$0xff] }
 0x86f   :  { %v4271_v8 = vpop.permute.xlu0 %4270  ;;  %12978 = vmatpush3.bf16.msra.mxu0 %v13667_v53  ;;  %v12016_v53 = vpack.c.bf16 %v4874_v26, %v4874_v26  ;;  %v4878_v26 = vld [vmem:[#allocation2 + $0x94] sm:$0xff] }
 0x870   :  { %v4621_v35 = vpop.permute.xlu1 %4620  ;;  %v5574_v22 = vld [vmem:[#allocation4 + $0x3c] sm:$0xff]  ;;  %4339 = vst.msk [vmem:[#allocation4 + $0x78] sm:$0xf] %vm1298_vm4, %v4271_v8  ;;  %12979 = vmatprep.subr.bf16.mxu0 %v16130_v5  ;;  %v5226_v8 = vld [vmem:[#allocation2 + $0x7d] sm:$0xff] }
 0x871   :  { %v13654_v27 = vld [vmem:[#allocation4 + $0x2c] ss:$20 sps:$4 sm:$0xff]   ;;  %4690 = vst.msk [vmem:[#allocation4 + $0x68] sm:$0xf] %vm1298_vm4, %v4621_v35  ;;  %v11279_v39 = vcombine.low %v5571_v38, %v5574_v22  ;;  %4982 = vrot.lane.b32.xlu0 %v12013_v59, %s13936_s21  ;;  %v4875_v35 = vld [vmem:[#allocation2 + $0x7c] sm:$0xff]  ;;  %v12066_v22 = vpack.c.bf16 %v5226_v8, %v5226_v8 }
 0x872   :  { %5332 = vrot.lane.b32.xlu1 %v12062_v57, %s13936_s21  ;;  %6324 = vmatprep.mubr.bf16.mxu0 %v13654_v27  ;;  %v12017_v38 = vpack.c.bf16 %v4875_v35, %v4875_v35  ;;  %v4879_v35 = vld [vmem:[#allocation2 + $0x9c] sm:$0xff] }
 0x873   :  { %6325 = vmatmul.mubr.bf16.gmra.mrb[112].mxu0 %v11279_v39  ;;  %v4623_v13 = vpop.permute.xlu0 %4622  ;;  %v5577_v50 = vld [vmem:[#allocation4 + $0x50] sm:$0xff]  ;;  %v5230_v8 = vld [vmem:[#allocation2 + $0x9d] sm:$0xff] }
 0x874   :  { %v4273_v25 = vpop.permute.xlu1 %4272  ;;  %4691 = vst.msk [vmem:[#allocation4 + $0x7c] sm:$0xf] %vm1298_vm4, %v4623_v13  ;;  %12980 = vmatpush3.bf16.msra.mxu0 %v13680_v0  ;;  %v5227_v0 = vld [vmem:[#allocation2 + $0x85] sm:$0xff] }
 0x875   :  { %4340 = vst.msk [vmem:[#allocation4 + $0x8c] sm:$0xf] %vm1298_vm4, %v4273_v25  ;;  %5334 = vrot.lane.b32.xlu0 %v12063_v18, %s13936_s21  ;;  %12981 = vmatprep.subr.bf16.mxu0 %v16130_v5  ;;  %v4876_v25 = vld [vmem:[#allocation2 + $0x84] sm:$0xff] }
 0x876   :  { %4984 = vrot.lane.b32.xlu1 %v12014_v58, %s13936_s21  ;;  %v12067_v58 = vpack.c.bf16 %v5227_v0, %v5227_v0  ;;  %v12018_v12 = vpack.c.bf16 %v4876_v25, %v4876_v25  ;;  %v5231_v0 = vld [vmem:[#allocation2 + $0xa5] sm:$0xff] }
 0x877   :  { %v4275_v29 = vpop.permute.xlu0 %4274  ;;  %v4880_v25 = vld [vmem:[#allocation2 + $0xa4] sm:$0xff] }
 0x878   :  { %v4625_v52 = vpop.permute.xlu1 %4624  ;;  %v5580_v28 = vld [vmem:[#allocation4 + $0x64] sm:$0xff]  ;;  %4341 = vst.msk [vmem:[#allocation4 + $0xa0] sm:$0xf] %vm1298_vm4, %v4275_v29  ;;  %12982 = vmatpush3.bf16.msra.mxu0 %v13691_v1  ;;  %v5228_v1 = vld [vmem:[#allocation2 + $0x8d] sm:$0xff] }
 0x879   :  { %v13657_v51 = vld [vmem:[#allocation4 + $0x54] ss:$20 sps:$4 sm:$0xff]   ;;  %4692 = vst.msk [vmem:[#allocation4 + $0x90] sm:$0xf] %vm1298_vm4, %v4625_v52  ;;  %v11284_v47 = vcombine.low %v5577_v50, %v5580_v28  ;;  %4986 = vrot.lane.b32.xlu0 %v12015_v23, %s13936_s21  ;;  %v12019_v23 = vpack.c.bf16 %v4877_v31, %v4877_v31 }
 0x87a   :  { %5336 = vrot.lane.b32.xlu1 %v12064_v30, %s13936_s21  ;;  %6332 = vmatprep.mubr.bf16.mxu0 %v13657_v51  ;;  %v12068_v30 = vpack.c.bf16 %v5228_v1, %v5228_v1  ;;  %v4881_v31 = vld [vmem:[#allocation2 + $0xac] sm:$0xff] }
 0x87b   :  { %6333 = vmatmul.mubr.bf16.gmra.mrb[116].mxu0 %v11284_v47  ;;  %v4627_v63 = vpop.permute.xlu0 %4626  ;;  %v5583_v27 = vld [vmem:[#allocation4 + $0x78] sm:$0xff] }
 0x87c   :  { %v4277_v37 = vpop.permute.xlu1 %4276  ;;  %4693 = vst.msk [vmem:[#allocation4 + $0xa4] sm:$0xf] %vm1298_vm4, %v4627_v63  ;;  %v5232_v1 = vld [vmem:[#allocation2 + $0xad] sm:$0xff] }
 0x87d   :  { %4342 = vst.msk [vmem:[#allocation4 + $0xb4] sm:$0xf] %vm1298_vm4, %v4277_v37  ;;  %5338 = vrot.lane.b32.xlu0 %v12065_v24, %s13936_s21  ;;  %v12069_v24 = vpack.c.bf16 %v5229_v61, %v5229_v61  ;;  %v5233_v61 = vld [vmem:[#allocation2 + $0xb5] sm:$0xff] }
 0x87e   :  { %4988 = vrot.lane.b32.xlu1 %v12016_v53, %s13936_s21  ;;  %v12020_v53 = vpack.c.bf16 %v4878_v26, %v4878_v26  ;;  %v4882_v26 = vld [vmem:[#allocation2 + $0xb4] sm:$0xff] }
 0x87f   :  { %v4279_v57 = vpop.permute.xlu0 %4278 }
 0x880   :  { %v4629_v59 = vpop.permute.xlu1 %4628  ;;  %v5586_v39 = vld [vmem:[#allocation4 + $0x8c] sm:$0xff]  ;;  %4343 = vst.msk [vmem:[#allocation4 + $0xc8] sm:$0xf] %vm1298_vm4, %v4279_v57 }
 0x881   :  { %v13661_v10 = vld [vmem:[#allocation4 + $0x7c] ss:$20 sps:$4 sm:$0xff]   ;;  %4694 = vst.msk [vmem:[#allocation4 + $0xb8] sm:$0xf] %vm1298_vm4, %v4629_v59  ;;  %v11289_v41 = vcombine.low %v5583_v27, %v5586_v39  ;;  %4990 = vrot.lane.b32.xlu0 %v12017_v38, %s13936_s21  ;;  %v12021_v38 = vpack.c.bf16 %v4879_v35, %v4879_v35  ;;  %v4883_v35 = vld [vmem:[#allocation2 + $0xbc] sm:$0xff] }
 0x882   :  { %5340 = vrot.lane.b32.xlu1 %v12066_v22, %s13936_s21  ;;  %6340 = vmatprep.mubr.bf16.mxu0 %v13661_v10  ;;  %v12070_v22 = vpack.c.bf16 %v5230_v8, %v5230_v8  ;;  %v5234_v8 = vld [vmem:[#allocation2 + $0xbd] sm:$0xff] }
 0x883   :  { %6341 = vmatmul.mubr.bf16.gmra.mrb[120].mxu0 %v11289_v41  ;;  %v4631_v18 = vpop.permute.xlu0 %4630  ;;  %v5589_v50 = vld [vmem:[#allocation4 + $0xa0] sm:$0xff] }
 0x884   :  { %v4281_v13 = vpop.permute.xlu1 %4280  ;;  %4695 = vst.msk [vmem:[#allocation4 + $0xcc] sm:$0xf] %vm1298_vm4, %v4631_v18 }
 0x885   :  { %4344 = vst.msk [vmem:[#allocation4 + $0xdc] sm:$0xf] %vm1298_vm4, %v4281_v13  ;;  %5342 = vrot.lane.b32.xlu0 %v12067_v58, %s13936_s21  ;;  %v12071_v58 = vpack.c.bf16 %v5231_v0, %v5231_v0 }
 0x886   :  { %4992 = vrot.lane.b32.xlu1 %v12018_v12, %s13936_s21  ;;  %v12022_v12 = vpack.c.bf16 %v4880_v25, %v4880_v25 }
 0x887   :  { %v4283_v29 = vpop.permute.xlu0 %4282 }
 0x888   :  { %v4633_v52 = vpop.permute.xlu1 %4632  ;;  %v5592_v28 = vld [vmem:[#allocation4 + $0xb4] sm:$0xff]  ;;  %4345 = vst.msk [vmem:[#allocation4 + $0xf0] sm:$0xf] %vm1298_vm4, %v4283_v29 }
 0x889   :  { %v13663_v51 = vld [vmem:[#allocation4 + $0xa4] ss:$20 sps:$4 sm:$0xff]   ;;  %4696 = vst.msk [vmem:[#allocation4 + $0xe0] sm:$0xf] %vm1298_vm4, %v4633_v52  ;;  %v11294_v47 = vcombine.low %v5589_v50, %v5592_v28  ;;  %4994 = vrot.lane.b32.xlu0 %v12019_v23, %s13936_s21  ;;  %v12023_v23 = vpack.c.bf16 %v4881_v31, %v4881_v31 }
 0x88a   :  { %5344 = vrot.lane.b32.xlu1 %v12068_v30, %s13936_s21  ;;  %6348 = vmatprep.mubr.bf16.mxu0 %v13663_v51  ;;  %v12072_v30 = vpack.c.bf16 %v5232_v1, %v5232_v1 }
 0x88b   :  { %6349 = vmatmul.mubr.bf16.gmra.mrb[124].mxu0 %v11294_v47  ;;  %v4635_v63 = vpop.permute.xlu0 %4634  ;;  %v5595_v27 = vld [vmem:[#allocation4 + $0xc8] sm:$0xff] }
 0x88c   :  { %v4285_v37 = vpop.permute.xlu1 %4284  ;;  %4697 = vst.msk [vmem:[#allocation4 + $0xf4] sm:$0xf] %vm1298_vm4, %v4635_v63 }
 0x88d   :  { %4346 = vst.msk [vmem:[#allocation4 + $0x104] sm:$0xf] %vm1298_vm4, %v4285_v37  ;;  %5346 = vrot.lane.b32.xlu0 %v12069_v24, %s13936_s21  ;;  %v12073_v24 = vpack.c.bf16 %v5233_v61, %v5233_v61 }
 0x88e   :  { %4996 = vrot.lane.b32.xlu1 %v12020_v53, %s13936_s21  ;;  %v12024_v53 = vpack.c.bf16 %v4882_v26, %v4882_v26 }
 0x88f   :  { %v4287_v57 = vpop.permute.xlu0 %4286 }
 0x890   :  { %v4637_v59 = vpop.permute.xlu1 %4636  ;;  %v5598_v39 = vld [vmem:[#allocation4 + $0xdc] sm:$0xff]  ;;  %4347 = vst.msk [vmem:[#allocation4 + $0x118] sm:$0xf] %vm1298_vm4, %v4287_v57 }
 0x891   :  { %v13668_v10 = vld [vmem:[#allocation4 + $0xcc] ss:$20 sps:$4 sm:$0xff]   ;;  %4698 = vst.msk [vmem:[#allocation4 + $0x108] sm:$0xf] %vm1298_vm4, %v4637_v59  ;;  %v11299_v41 = vcombine.low %v5595_v27, %v5598_v39  ;;  %4998 = vrot.lane.b32.xlu0 %v12021_v38, %s13936_s21  ;;  %v12025_v27 = vpack.c.bf16 %v4883_v35, %v4883_v35  ;;  %v12074_v39 = vpack.c.bf16 %v5234_v8, %v5234_v8 }
 0x892   :  { %5348 = vrot.lane.b32.xlu1 %v12070_v22, %s13936_s21  ;;  %6356 = vmatprep.mubr.bf16.mxu0 %v13668_v10  ;;  %v5086_v59 = vld [vmem:[#allocation2 + $0xd4] sm:$0xff] }
 0x893   :  { %6357 = vmatmul.mubr.bf16.gmra.mrb[128].mxu0 %v11299_v41  ;;  %v4639_v18 = vpop.permute.xlu0 %4638  ;;  %v5601_v50 = vld [vmem:[#allocation4 + $0xf0] sm:$0xff]  ;;  %v12052_v57 = vpack.c.bf16 %v5086_v59, %v5086_v59 }
 0x894   :  { %v4289_v13 = vpop.permute.xlu1 %4288  ;;  %4699 = vst.msk [vmem:[#allocation4 + $0x11c] sm:$0xf] %vm1298_vm4, %v4639_v18  ;;  %v4884_v18 = vld [vmem:[#allocation2 + $0xc4] sm:$0xff] }
 0x895   :  { %4348 = vst.msk [vmem:[#allocation4 + $0x12c] sm:$0xf] %vm1298_vm4, %v4289_v13  ;;  %5350 = vrot.lane.b32.xlu0 %v12071_v58, %s13936_s21  ;;  %v5235_v13 = vld [vmem:[#allocation2 + $0xc5] sm:$0xff]  ;;  %v12026_v1 = vpack.c.bf16 %v4884_v18, %v4884_v18 }
 0x896   :  { %5000 = vrot.lane.b32.xlu1 %v12022_v12, %s13936_s21  ;;  %5212 = vst.msk [vmem:[#allocation4 + $0x1ec] sm:$0xf] %vm1096_vm5, %v12052_v57  ;;  %v12075_v31 = vpack.c.bf16 %v5235_v13, %v5235_v13 }
 0x897   :  { %v4291_v29 = vpop.permute.xlu0 %4290 }
 0x898   :  { %v4641_v52 = vpop.permute.xlu1 %4640  ;;  %v5604_v28 = vld [vmem:[#allocation4 + $0x104] sm:$0xff]  ;;  %4349 = vst.msk [vmem:[#allocation4 + $0x140] sm:$0xf] %vm1298_vm4, %v4291_v29 }
 0x899   :  { %v13672_v51 = vld [vmem:[#allocation4 + $0xf4] ss:$20 sps:$4 sm:$0xff]   ;;  %4700 = vst.msk [vmem:[#allocation4 + $0x130] sm:$0xf] %vm1298_vm4, %v4641_v52  ;;  %v11304_v47 = vcombine.low %v5601_v50, %v5604_v28  ;;  %5002 = vrot.lane.b32.xlu0 %v12023_v23, %s13936_s21  ;;  %v5237_v29 = vld [vmem:[#allocation2 + $0xd5] sm:$0xff] }
 0x89a   :  { %5352 = vrot.lane.b32.xlu1 %v12072_v30, %s13936_s21  ;;  %6364 = vmatprep.mubr.bf16.mxu0 %v13672_v51  ;;  %v5236_v52 = vld [vmem:[#allocation2 + $0xcd] sm:$0xff]  ;;  %v12077_v26 = vpack.c.bf16 %v5237_v29, %v5237_v29 }
 0x89b   :  { %6365 = vmatmul.mubr.bf16.gmra.mrb[132].mxu0 %v11304_v47  ;;  %v4643_v63 = vpop.permute.xlu0 %4642  ;;  %v5607_v10 = vld [vmem:[#allocation4 + $0x118] sm:$0xff]  ;;  %v12076_v50 = vpack.c.bf16 %v5236_v52, %v5236_v52 }
 0x89c   :  { %v4293_v37 = vpop.permute.xlu1 %4292  ;;  %4701 = vst.msk [vmem:[#allocation4 + $0x144] sm:$0xf] %vm1298_vm4, %v4643_v63 }
 0x89d   :  { %4350 = vst.msk [vmem:[#allocation4 + $0x154] sm:$0xf] %vm1298_vm4, %v4293_v37  ;;  %5354 = vrot.lane.b32.xlu0 %v12073_v24, %s13936_s21 }
 0x89e   :  { %5004 = vrot.lane.b32.xlu1 %v12024_v53, %s13936_s21 }
 0x89f   :  { %v4295_v22 = vpop.permute.xlu0 %4294 }
 0x8a0   :  { %v4645_v38 = vpop.permute.xlu1 %4644  ;;  %v5610_v41 = vld [vmem:[#allocation4 + $0x12c] sm:$0xff]  ;;  %4351 = vst.msk [vmem:[#allocation4 + $0x168] sm:$0xf] %vm1298_vm4, %v4295_v22 }
 0x8a1   :  { %v13674_v0 = vld [vmem:[#allocation4 + $0x11c] ss:$20 sps:$4 sm:$0xff]   ;;  %4702 = vst.msk [vmem:[#allocation4 + $0x158] sm:$0xf] %vm1298_vm4, %v4645_v38  ;;  %v11309_v25 = vcombine.low %v5607_v10, %v5610_v41  ;;  %5006 = vrot.lane.b32.xlu0 %v12025_v27, %s13936_s21 }
 0x8a2   :  { %5356 = vrot.lane.b32.xlu1 %v12074_v39, %s13936_s21  ;;  %6372 = vmatprep.mubr.bf16.mxu0 %v13674_v0 }
 0x8a3   :  { %6373 = vmatmul.mubr.bf16.gmra.mrb[136].mxu0 %v11309_v25  ;;  %v4647_v12 = vpop.permute.xlu0 %4646  ;;  %v5613_v28 = vld [vmem:[#allocation4 + $0x140] sm:$0xff] }
 0x8a4   :  { %v4297_v58 = vpop.permute.xlu1 %4296  ;;  %4703 = vst.msk [vmem:[#allocation4 + $0x16c] sm:$0xf] %vm1298_vm4, %v4647_v12 }
 0x8a5   :  { %4352 = vst.msk [vmem:[#allocation4 + $0x17c] sm:$0xf] %vm1298_vm4, %v4297_v58  ;;  %5358 = vrot.lane.b32.xlu0 %v12075_v31, %s13936_s21 }
 0x8a6   :  { %5008 = vrot.lane.b32.xlu1 %v12026_v1, %s13936_s21 }
 0x8a7   :  { %v4299_v30 = vpop.permute.xlu0 %4298 }
 0x8a8   :  { %v4649_v23 = vpop.permute.xlu1 %4648  ;;  %v5616_v51 = vld [vmem:[#allocation4 + $0x154] sm:$0xff]  ;;  %4353 = vst.msk [vmem:[#allocation4 + $0x190] sm:$0xf] %vm1298_vm4, %v4299_v30 }
 0x8a9   :  { %v13678_v47 = vld [vmem:[#allocation4 + $0x144] ss:$20 sps:$4 sm:$0xff]   ;;  %4704 = vst.msk [vmem:[#allocation4 + $0x180] sm:$0xf] %vm1298_vm4, %v4649_v23  ;;  %v11314_v61 = vcombine.low %v5613_v28, %v5616_v51  ;;  %5010 = vrot.lane.b32.xlu0 %v15936_v60, %s13936_s21 }
 0x8aa   :  { %5360 = vrot.lane.b32.xlu1 %v12076_v50, %s13936_s21  ;;  %6380 = vmatprep.mubr.bf16.mxu0 %v13678_v47 }
 0x8ab   :  { %6381 = vmatmul.mubr.bf16.gmra.mrb[140].mxu0 %v11314_v61  ;;  %v4651_v63 = vpop.permute.xlu0 %4650  ;;  %v5619_v35 = vld [vmem:[#allocation4 + $0x168] sm:$0xff] }
 0x8ac   :  { %v4301_v37 = vpop.permute.xlu1 %4300  ;;  %4705 = vst.msk [vmem:[#allocation4 + $0x194] sm:$0xf] %vm1298_vm4, %v4651_v63 }
 0x8ad   :  { %4354 = vst.msk [vmem:[#allocation4 + $0x1a4] sm:$0xf] %vm1298_vm4, %v4301_v37 }
 0x8ae   :  { %5362 = vrot.lane.b32.xlu1 %v12077_v26, %s13936_s21 }
 0x8af   :  { %v4303_v53 = vpop.permute.xlu0 %4302 }
 0x8b0   :  { %v4653_v24 = vpop.permute.xlu1 %4652  ;;  %v5622_v8 = vld [vmem:[#allocation4 + $0x17c] sm:$0xff]  ;;  %4355 = vst.msk [vmem:[#allocation4 + $0x1b8] sm:$0xf] %vm1298_vm4, %v4303_v53 }
 0x8b1   :  { %v13682_v59 = vld [vmem:[#allocation4 + $0x16c] ss:$20 sps:$4 sm:$0xff]   ;;  %4706 = vst.msk [vmem:[#allocation4 + $0x1a8] sm:$0xf] %vm1298_vm4, %v4653_v24  ;;  %v11319_v60 = vcombine.low %v5619_v35, %v5622_v8  ;;  %v13698_v35 = vld [vmem:[#allocation4 + $0x10] ss:$20 sps:$4 sm:$0xff]  }
 0x8b2   :  { %6388 = vmatprep.mubr.bf16.mxu0 %v13682_v59 }
 0x8b3   :  { %6389 = vmatmul.mubr.bf16.gmra.mrb[144].mxu0 %v11319_v60  ;;  %v4655_v38 = vpop.permute.xlu0 %4654  ;;  %v5625_v39 = vld [vmem:[#allocation4 + $0x190] sm:$0xff] }
 0x8b4   :  { %v4305_v57 = vpop.permute.xlu1 %4304  ;;  %4707 = vst.msk [vmem:[#allocation4 + $0x1bc] sm:$0xf] %vm1298_vm4, %v4655_v38 }
 0x8b5   :  { %4356 = vst.msk [vmem:[#allocation4 + $0x1cc] sm:$0xf] %vm1298_vm4, %v4305_v57 }
 0x8b7   :  { %v4307_v27 = vpop.permute.xlu0 %4306 }
 0x8b8   :  { %v4657_v22 = vpop.permute.xlu1 %4656  ;;  %v5628_v10 = vld [vmem:[#allocation4 + $0x1a4] sm:$0xff]  ;;  %4357 = vst.msk [vmem:[#allocation4 + $0x1e0] sm:$0xf] %vm1298_vm4, %v4307_v27 }
 0x8b9   :  { %v13685_v41 = vld [vmem:[#allocation4 + $0x194] ss:$20 sps:$4 sm:$0xff]   ;;  %4708 = vst.msk [vmem:[#allocation4 + $0x1d0] sm:$0xf] %vm1298_vm4, %v4657_v22  ;;  %v11324_v0 = vcombine.low %v5625_v39, %v5628_v10  ;;  %v13701_v10 = vld [vmem:[#allocation4 + $0x38] ss:$20 sps:$4 sm:$0xff]  }
 0x8ba   :  { %6396 = vmatprep.mubr.bf16.mxu0 %v13685_v41 }
 0x8bb   :  { %6397 = vmatmul.mubr.bf16.gmra.mrb[148].mxu0 %v11324_v0  ;;  %v4963_v13 = vpop.permute.xlu0 %4962  ;;  %v5631_v12 = vld [vmem:[#allocation4 + $0x1b8] sm:$0xff] }
 0x8bc   :  { %v4659_v25 = vpop.permute.xlu1 %4658  ;;  %5037 = vst.msk [vmem:[#allocation4 + $0x8] sm:$0xf] %vm1298_vm4, %v4963_v13 }
 0x8bd   :  { %4709 = vst.msk [vmem:[#allocation4 + $0x1e4] sm:$0xf] %vm1298_vm4, %v4659_v25 }
 0x8bf   :  { %v5315_v58 = vpop.permute.xlu0 %5314 }
 0x8c0   :  { %v4965_v18 = vpop.permute.xlu1 %4964  ;;  %v5634_v31 = vld [vmem:[#allocation4 + $0x1cc] sm:$0xff]  ;;  %5389 = vst.msk [vmem:[#allocation4 + $0xc] sm:$0xf] %vm1298_vm4, %v5315_v58 }
 0x8c1   :  { %v13689_v1 = vld [vmem:[#allocation4 + $0x1bc] ss:$20 sps:$4 sm:$0xff]   ;;  %5038 = vst.msk [vmem:[#allocation4 + $0x1c] sm:$0xf] %vm1298_vm4, %v4965_v18  ;;  %v11329_v52 = vcombine.low %v5631_v12, %v5634_v31 }
 0x8c2   :  { %6404 = vmatprep.mubr.bf16.mxu0 %v13689_v1  ;;  %v13704_v1 = vld [vmem:[#allocation4 + $0x60] ss:$20 sps:$4 sm:$0xff]  }
 0x8c3   :  { %6405 = vmatmul.mubr.bf16.gmra.mrb[152].mxu0 %v11329_v52  ;;  %v4967_v23 = vpop.permute.xlu0 %4966 }
 0x8c4   :  { %v5317_v29 = vpop.permute.xlu1 %5316  ;;  %v5637_v30 = vld [vmem:[#allocation4 + $0x1e0] sm:$0xff]  ;;  %5039 = vst.msk [vmem:[#allocation4 + $0x30] sm:$0xf] %vm1298_vm4, %v4967_v23 }
 0x8c5   :  { %5390 = vst.msk [vmem:[#allocation4 + $0x20] sm:$0xf] %vm1298_vm4, %v5317_v29  ;;  %v11335_v50 = vcombine.high %v5637_v30, %v5637_v30  ;;  %v11334_v47 = vcombine.low %v5637_v30, %v5637_v30 }
 0x8c7   :  { %6412 = vmatprep.mubr.bf16.mxu0 %v11335_v50  ;;  %v5319_v51 = vpop.permute.xlu0 %5318 }
 0x8c8   :  { %v4969_v28 = vpop.permute.xlu1 %4968  ;;  %5391 = vst.msk [vmem:[#allocation4 + $0x34] sm:$0xf] %vm1298_vm4, %v5319_v51  ;;  %v13695_v37 = vld [vmem:[#allocation4 + $0x8] ss:$20 sps:$4 sm:$0xff]  }
 0x8c9   :  { %5040 = vst.msk [vmem:[#allocation4 + $0x44] sm:$0xf] %vm1298_vm4, %v4969_v28 }
 0x8cb   :  { %6413 = vmatmul.mubr.bf16.gmra.mrb[156].mxu0 %v11334_v47  ;;  %v4971_v26 = vpop.permute.xlu0 %4970 }
 0x8cc   :  { %v5321_v61 = vpop.permute.xlu1 %5320  ;;  %v13697_v63 = vld [vmem:[#allocation4 + $0xc] ss:$20 sps:$4 sm:$0xff]   ;;  %5041 = vst.msk [vmem:[#allocation4 + $0x58] sm:$0xf] %vm1298_vm4, %v4971_v26  ;;  %12983 = vmatprep.mubr.msk.bf16.mxu0 %vm13938_vm7, %v16130_v5 }
 0x8cd   :  { %5392 = vst.msk [vmem:[#allocation4 + $0x48] sm:$0xf] %vm1298_vm4, %v5321_v61  ;;  %6452 = vmatprep.mubr.bf16.mxu1 %v13697_v63  ;;  %v13707_v61 = vld [vmem:[#allocation4 + $0x88] ss:$20 sps:$4 sm:$0xff]  }
 0x8ce   :  { %6453 = vmatmul.mubr.bf16.vlgmr.msra.gmra.mrb[108].mxu1 %v13695_v37 }
 0x8cf   :  { %v5323_v53 = vpop.permute.xlu0 %5322  ;;  %v5572_v60 = vld [vmem:[#allocation4 + $0x30] sm:$0xff] }
 0x8d0   :  { %v4973_v24 = vpop.permute.xlu1 %4972  ;;  %5393 = vst.msk [vmem:[#allocation4 + $0x5c] sm:$0xf] %vm1298_vm4, %v5323_v53 }
 0x8d1   :  { %5042 = vst.msk [vmem:[#allocation4 + $0x6c] sm:$0xf] %vm1298_vm4, %v4973_v24 }
 0x8d3   :  { %12984 = vmatmul.mubr.msk.bf16.vlgmr.msra.gmra.mrb[160].mxu0 %vm69_vm3, %v13698_v35  ;;  %v4975_v59 = vpop.permute.xlu0 %4974 }
 0x8d4   :  { %v5325_v8 = vpop.permute.xlu1 %5324  ;;  %v5575_v57 = vld [vmem:[#allocation4 + $0x44] sm:$0xff]  ;;  %5043 = vst.msk [vmem:[#allocation4 + $0x80] sm:$0xf] %vm1298_vm4, %v4975_v59  ;;  %12987 = vmatprep.mubr.msk.bf16.mxu0 %vm13938_vm7, %v16130_v5 }
 0x8d5   :  { %v13699_v38 = vld [vmem:[#allocation4 + $0x34] ss:$20 sps:$4 sm:$0xff]   ;;  %5394 = vst.msk [vmem:[#allocation4 + $0x70] sm:$0xf] %vm1298_vm4, %v5325_v8  ;;  %v11281_v22 = vcombine.low %v5572_v60, %v5575_v57  ;;  %v13710_v60 = vld [vmem:[#allocation4 + $0xb0] ss:$20 sps:$4 sm:$0xff]  }
 0x8d6   :  { %6460 = vmatprep.mubr.bf16.mxu1 %v13699_v38 }
 0x8d7   :  { %6461 = vmatmul.mubr.bf16.gmra.mrb[112].mxu1 %v11281_v22  ;;  %v5327_v39 = vpop.permute.xlu0 %5326  ;;  %v5578_v25 = vld [vmem:[#allocation4 + $0x58] sm:$0xff] }
 0x8d8   :  { %v4977_v27 = vpop.permute.xlu1 %4976  ;;  %5395 = vst.msk [vmem:[#allocation4 + $0x84] sm:$0xf] %vm1298_vm4, %v5327_v39 }
 0x8d9   :  { %5044 = vst.msk [vmem:[#allocation4 + $0x94] sm:$0xf] %vm1298_vm4, %v4977_v27 }
 0x8db   :  { %12988 = vmatmul.mubr.msk.bf16.gmra.mrb[164].mxu0 %vm69_vm3, %v13701_v10  ;;  %v4979_v0 = vpop.permute.xlu0 %4978 }
 0x8dc   :  { %v5329_v41 = vpop.permute.xlu1 %5328  ;;  %v5581_v13 = vld [vmem:[#allocation4 + $0x6c] sm:$0xff]  ;;  %5045 = vst.msk [vmem:[#allocation4 + $0xa8] sm:$0xf] %vm1298_vm4, %v4979_v0  ;;  %12991 = vmatprep.mubr.msk.bf16.mxu0 %vm13938_vm7, %v16130_v5 }
 0x8dd   :  { %v13702_v18 = vld [vmem:[#allocation4 + $0x5c] ss:$20 sps:$4 sm:$0xff]   ;;  %5396 = vst.msk [vmem:[#allocation4 + $0x98] sm:$0xf] %vm1298_vm4, %v5329_v41  ;;  %v11286_v58 = vcombine.low %v5578_v25, %v5581_v13  ;;  %v13713_v25 = vld [vmem:[#allocation4 + $0xd8] ss:$20 sps:$4 sm:$0xff]  }
 0x8de   :  { %6468 = vmatprep.mubr.bf16.mxu1 %v13702_v18 }
 0x8df   :  { %6469 = vmatmul.mubr.bf16.gmra.mrb[116].mxu1 %v11286_v58  ;;  %v5331_v31 = vpop.permute.xlu0 %5330  ;;  %v5584_v23 = vld [vmem:[#allocation4 + $0x80] sm:$0xff] }
 0x8e0   :  { %v4981_v12 = vpop.permute.xlu1 %4980  ;;  %5397 = vst.msk [vmem:[#allocation4 + $0xac] sm:$0xf] %vm1298_vm4, %v5331_v31 }
 0x8e1   :  { %5046 = vst.msk [vmem:[#allocation4 + $0xbc] sm:$0xf] %vm1298_vm4, %v4981_v12 }
 0x8e3   :  { %12992 = vmatmul.mubr.msk.bf16.gmra.mrb[168].mxu0 %vm69_vm3, %v13704_v1  ;;  %v4983_v29 = vpop.permute.xlu0 %4982 }
 0x8e4   :  { %v5333_v52 = vpop.permute.xlu1 %5332  ;;  %v5587_v30 = vld [vmem:[#allocation4 + $0x94] sm:$0xff]  ;;  %5047 = vst.msk [vmem:[#allocation4 + $0xd0] sm:$0xf] %vm1298_vm4, %v4983_v29  ;;  %12995 = vmatprep.mubr.msk.bf16.mxu0 %vm13938_vm7, %v16130_v5 }
 0x8e5   :  { %v13705_v50 = vld [vmem:[#allocation4 + $0x84] ss:$20 sps:$4 sm:$0xff]   ;;  %5398 = vst.msk [vmem:[#allocation4 + $0xc0] sm:$0xf] %vm1298_vm4, %v5333_v52  ;;  %v11291_v28 = vcombine.low %v5584_v23, %v5587_v30  ;;  %v13716_v23 = vld [vmem:[#allocation4 + $0x100] ss:$20 sps:$4 sm:$0xff]  }
 0x8e6   :  { %6476 = vmatprep.mubr.bf16.mxu1 %v13705_v50 }
 0x8e7   :  { %6477 = vmatmul.mubr.bf16.gmra.mrb[120].mxu1 %v11291_v28  ;;  %v5335_v47 = vpop.permute.xlu0 %5334  ;;  %v5590_v63 = vld [vmem:[#allocation4 + $0xa8] sm:$0xff] }
 0x8e8   :  { %v4985_v51 = vpop.permute.xlu1 %4984  ;;  %5399 = vst.msk [vmem:[#allocation4 + $0xd4] sm:$0xf] %vm1298_vm4, %v5335_v47 }
 0x8e9   :  { %5048 = vst.msk [vmem:[#allocation4 + $0xe4] sm:$0xf] %vm1298_vm4, %v4985_v51 }
 0x8eb   :  { %12996 = vmatmul.mubr.msk.bf16.gmra.mrb[172].mxu0 %vm69_vm3, %v13707_v61  ;;  %v4987_v37 = vpop.permute.xlu0 %4986 }
 0x8ec   :  { %v5337_v26 = vpop.permute.xlu1 %5336  ;;  %v5593_v24 = vld [vmem:[#allocation4 + $0xbc] sm:$0xff]  ;;  %5049 = vst.msk [vmem:[#allocation4 + $0xf8] sm:$0xf] %vm1298_vm4, %v4987_v37  ;;  %12999 = vmatprep.mubr.msk.bf16.mxu0 %vm13938_vm7, %v16130_v5 }
 0x8ed   :  { %v13708_v53 = vld [vmem:[#allocation4 + $0xac] ss:$20 sps:$4 sm:$0xff]   ;;  %5400 = vst.msk [vmem:[#allocation4 + $0xe8] sm:$0xf] %vm1298_vm4, %v5337_v26  ;;  %v11296_v35 = vcombine.low %v5590_v63, %v5593_v24  ;;  %v13719_v63 = vld [vmem:[#allocation4 + $0x128] ss:$20 sps:$4 sm:$0xff]  }
 0x8ee   :  { %6484 = vmatprep.mubr.bf16.mxu1 %v13708_v53 }
 0x8ef   :  { %6485 = vmatmul.mubr.bf16.gmra.mrb[124].mxu1 %v11296_v35  ;;  %v5339_v59 = vpop.permute.xlu0 %5338  ;;  %v5596_v22 = vld [vmem:[#allocation4 + $0xd0] sm:$0xff] }
 0x8f0   :  { %v4989_v8 = vpop.permute.xlu1 %4988  ;;  %5401 = vst.msk [vmem:[#allocation4 + $0xfc] sm:$0xf] %vm1298_vm4, %v5339_v59 }
 0x8f1   :  { %5050 = vst.msk [vmem:[#allocation4 + $0x10c] sm:$0xf] %vm1298_vm4, %v4989_v8 }
 0x8f3   :  { %13000 = vmatmul.mubr.msk.bf16.gmra.mrb[176].mxu0 %vm69_vm3, %v13710_v60  ;;  %v4991_v38 = vpop.permute.xlu0 %4990 }
 0x8f4   :  { %v5341_v57 = vpop.permute.xlu1 %5340  ;;  %v5599_v27 = vld [vmem:[#allocation4 + $0xe4] sm:$0xff]  ;;  %5051 = vst.msk [vmem:[#allocation4 + $0x120] sm:$0xf] %vm1298_vm4, %v4991_v38  ;;  %13003 = vmatprep.mubr.msk.bf16.mxu0 %vm13938_vm7, %v16130_v5 }
 0x8f5   :  { %v13711_v39 = vld [vmem:[#allocation4 + $0xd4] ss:$20 sps:$4 sm:$0xff]   ;;  %5402 = vst.msk [vmem:[#allocation4 + $0x110] sm:$0xf] %vm1298_vm4, %v5341_v57  ;;  %v11301_v10 = vcombine.low %v5596_v22, %v5599_v27  ;;  %v13722_v22 = vld [vmem:[#allocation4 + $0x150] ss:$20 sps:$4 sm:$0xff]  }
 0x8f6   :  { %6492 = vmatprep.mubr.bf16.mxu1 %v13711_v39 }
 0x8f7   :  { %6493 = vmatmul.mubr.bf16.gmra.mrb[128].mxu1 %v11301_v10  ;;  %v5343_v0 = vpop.permute.xlu0 %5342  ;;  %v5602_v58 = vld [vmem:[#allocation4 + $0xf8] sm:$0xff] }
 0x8f8   :  { %v4993_v41 = vpop.permute.xlu1 %4992  ;;  %5403 = vst.msk [vmem:[#allocation4 + $0x124] sm:$0xf] %vm1298_vm4, %v5343_v0 }
 0x8f9   :  { %5052 = vst.msk [vmem:[#allocation4 + $0x134] sm:$0xf] %vm1298_vm4, %v4993_v41 }
 0x8fb   :  { %13004 = vmatmul.mubr.msk.bf16.gmra.mrb[180].mxu0 %vm69_vm3, %v13713_v25  ;;  %v4995_v18 = vpop.permute.xlu0 %4994 }
 0x8fc   :  { %v5345_v13 = vpop.permute.xlu1 %5344  ;;  %v5605_v12 = vld [vmem:[#allocation4 + $0x10c] sm:$0xff]  ;;  %5053 = vst.msk [vmem:[#allocation4 + $0x148] sm:$0xf] %vm1298_vm4, %v4995_v18  ;;  %13007 = vmatprep.mubr.msk.bf16.mxu0 %vm13938_vm7, %v16130_v5 }
 0x8fd   :  { %v13714_v31 = vld [vmem:[#allocation4 + $0xfc] ss:$20 sps:$4 sm:$0xff]   ;;  %5404 = vst.msk [vmem:[#allocation4 + $0x138] sm:$0xf] %vm1298_vm4, %v5345_v13  ;;  %v11306_v1 = vcombine.low %v5602_v58, %v5605_v12  ;;  %v13725_v58 = vld [vmem:[#allocation4 + $0x178] ss:$20 sps:$4 sm:$0xff]  }
 0x8fe   :  { %6500 = vmatprep.mubr.bf16.mxu1 %v13714_v31 }
 0x8ff   :  { %6501 = vmatmul.mubr.bf16.gmra.mrb[132].mxu1 %v11306_v1  ;;  %v5347_v29 = vpop.permute.xlu0 %5346  ;;  %v5608_v28 = vld [vmem:[#allocation4 + $0x120] sm:$0xff] }
 0x900   :  { %v4997_v52 = vpop.permute.xlu1 %4996  ;;  %5405 = vst.msk [vmem:[#allocation4 + $0x14c] sm:$0xf] %vm1298_vm4, %v5347_v29 }
 0x901   :  { %5054 = vst.msk [vmem:[#allocation4 + $0x15c] sm:$0xf] %vm1298_vm4, %v4997_v52 }
 0x903   :  { %13008 = vmatmul.mubr.msk.bf16.gmra.mrb[184].mxu0 %vm69_vm3, %v13716_v23  ;;  %v4999_v50 = vpop.permute.xlu0 %4998 }
 0x904   :  { %v5349_v30 = vpop.permute.xlu1 %5348  ;;  %v5611_v51 = vld [vmem:[#allocation4 + $0x134] sm:$0xff]  ;;  %5055 = vst.msk [vmem:[#allocation4 + $0x170] sm:$0xf] %vm1298_vm4, %v4999_v50  ;;  %13011 = vmatprep.mubr.msk.bf16.mxu0 %vm13938_vm7, %v16130_v5 }
 0x905   :  { %v13717_v47 = vld [vmem:[#allocation4 + $0x124] ss:$20 sps:$4 sm:$0xff]   ;;  %5406 = vst.msk [vmem:[#allocation4 + $0x160] sm:$0xf] %vm1298_vm4, %v5349_v30  ;;  %v11311_v61 = vcombine.low %v5608_v28, %v5611_v51  ;;  %v13728_v50 = vld [vmem:[#allocation4 + $0x1a0] ss:$20 sps:$4 sm:$0xff]  }
 0x906   :  { %6508 = vmatprep.mubr.bf16.mxu1 %v13717_v47 }
 0x907   :  { %6509 = vmatmul.mubr.bf16.gmra.mrb[136].mxu1 %v11311_v61  ;;  %v5351_v37 = vpop.permute.xlu0 %5350  ;;  %v5614_v35 = vld [vmem:[#allocation4 + $0x148] sm:$0xff] }
 0x908   :  { %v5001_v26 = vpop.permute.xlu1 %5000  ;;  %5407 = vst.msk [vmem:[#allocation4 + $0x174] sm:$0xf] %vm1298_vm4, %v5351_v37 }
 0x909   :  { %5056 = vst.msk [vmem:[#allocation4 + $0x184] sm:$0xf] %vm1298_vm4, %v5001_v26  ;;  %v13733_v26 = vld [vmem:[#allocation4 + $0x1c8] ss:$20 sps:$4 sm:$0xff]  }
 0x90b   :  { %13012 = vmatmul.mubr.msk.bf16.gmra.mrb[188].mxu0 %vm69_vm3, %v13719_v63  ;;  %v5003_v53 = vpop.permute.xlu0 %5002  ;;  %v13734_v63 = vld [vmem:[#allocation4 + $0x1f0] ss:$0 sps:$4 sm:$0xff]  }
 0x90c   :  { %v5353_v24 = vpop.permute.xlu1 %5352  ;;  %v5617_v8 = vld [vmem:[#allocation4 + $0x15c] sm:$0xff]  ;;  %5057 = vst.msk [vmem:[#allocation4 + $0x198] sm:$0xf] %vm1298_vm4, %v5003_v53  ;;  %13015 = vmatprep.mubr.msk.bf16.mxu0 %vm13938_vm7, %v16130_v5 }
 0x90d   :  { %v13720_v59 = vld [vmem:[#allocation4 + $0x14c] ss:$20 sps:$4 sm:$0xff]   ;;  %5408 = vst.msk [vmem:[#allocation4 + $0x188] sm:$0xf] %vm1298_vm4, %v5353_v24  ;;  %v11316_v60 = vcombine.low %v5614_v35, %v5617_v8 }
 0x90e   :  { %6516 = vmatprep.mubr.bf16.mxu1 %v13720_v59 }
 0x90f   :  { %6517 = vmatmul.mubr.bf16.gmra.mrb[140].mxu1 %v11316_v60  ;;  %v5355_v38 = vpop.permute.xlu0 %5354  ;;  %v5620_v10 = vld [vmem:[#allocation4 + $0x170] sm:$0xff] }
 0x910   :  { %v5005_v57 = vpop.permute.xlu1 %5004  ;;  %5409 = vst.msk [vmem:[#allocation4 + $0x19c] sm:$0xf] %vm1298_vm4, %v5355_v38 }
 0x911   :  { %5058 = vst.msk [vmem:[#allocation4 + $0x1ac] sm:$0xf] %vm1298_vm4, %v5005_v57 }
 0x913   :  { %13016 = vmatmul.mubr.msk.bf16.gmra.mrb[192].mxu0 %vm69_vm3, %v13722_v22  ;;  %v5007_v39 = vpop.permute.xlu0 %5006 }
 0x914   :  { %v5357_v27 = vpop.permute.xlu1 %5356  ;;  %v5623_v41 = vld [vmem:[#allocation4 + $0x184] sm:$0xff]  ;;  %5059 = vst.msk [vmem:[#allocation4 + $0x1c0] sm:$0xf] %vm1298_vm4, %v5007_v39  ;;  %13019 = vmatprep.mubr.msk.bf16.mxu0 %vm13938_vm7, %v16130_v5 }
 0x915   :  { %v13723_v0 = vld [vmem:[#allocation4 + $0x174] ss:$20 sps:$4 sm:$0xff]   ;;  %5410 = vst.msk [vmem:[#allocation4 + $0x1b0] sm:$0xf] %vm1298_vm4, %v5357_v27  ;;  %v11321_v25 = vcombine.low %v5620_v10, %v5623_v41 }
 0x916   :  { %6524 = vmatprep.mubr.bf16.mxu1 %v13723_v0 }
 0x917   :  { %6525 = vmatmul.mubr.bf16.gmra.mrb[144].mxu1 %v11321_v25  ;;  %v5359_v18 = vpop.permute.xlu0 %5358  ;;  %v5626_v1 = vld [vmem:[#allocation4 + $0x198] sm:$0xff] }
 0x918   :  { %v5009_v13 = vpop.permute.xlu1 %5008  ;;  %5411 = vst.msk [vmem:[#allocation4 + $0x1c4] sm:$0xf] %vm1298_vm4, %v5359_v18 }
 0x919   :  { %5060 = vst.msk [vmem:[#allocation4 + $0x1d4] sm:$0xf] %vm1298_vm4, %v5009_v13 }
 0x91b   :  { %13020 = vmatmul.mubr.msk.bf16.gmra.mrb[196].mxu0 %vm69_vm3, %v13725_v58  ;;  %v5011_v31 = vpop.permute.xlu0 %5010 }
 0x91c   :  { %v5361_v12 = vpop.permute.xlu1 %5360  ;;  %v5629_v52 = vld [vmem:[#allocation4 + $0x1ac] sm:$0xff]  ;;  %5061 = vst.msk [vmem:[#allocation4 + $0x1e8] sm:$0xf] %vm1298_vm4, %v5011_v31  ;;  %13023 = vmatprep.mubr.msk.bf16.mxu0 %vm13938_vm7, %v16130_v5 }
 0x91d   :  { %v13726_v29 = vld [vmem:[#allocation4 + $0x19c] ss:$20 sps:$4 sm:$0xff]   ;;  %5412 = vst.msk [vmem:[#allocation4 + $0x1d8] sm:$0xf] %vm1298_vm4, %v5361_v12  ;;  %v11326_v23 = vcombine.low %v5626_v1, %v5629_v52 }
 0x91e   :  { %6532 = vmatprep.mubr.bf16.mxu1 %v13726_v29 }
 0x91f   :  { %6533 = vmatmul.mubr.bf16.gmra.mrb[148].mxu1 %v11326_v23 }
 0x920   :  { %v5363_v30 = vpop.permute.xlu1 %5362  ;;  %v13731_v51 = vld [vmem:[#allocation4 + $0x1c0] ss:$20 sps:$4 sm:$0xff]  }
 0x921   :  { %5413 = vst.msk [vmem:[#allocation4 + $0x1ec] sm:$0xf] %vm1298_vm4, %v5363_v30  ;;  %vm10396_vm4 = vcmask 1043456  }
 0x923   :  { %13024 = vmatmul.mubr.msk.bf16.gmra.mrb[200].mxu0 %vm69_vm3, %v13728_v50 }
 0x924   :  { %v13729_v28 = vld [vmem:[#allocation4 + $0x1c4] ss:$20 sps:$4 sm:$0xff]   ;;  %13027 = vmatprep.mubr.msk.bf16.mxu0 %vm13938_vm7, %v16130_v5 }
 0x925   :  { %6540 = vmatprep.mubr.bf16.mxu1 %v13729_v28 }
 0x927   :  { %6541 = vmatmul.mubr.bf16.gmra.mrb[152].mxu1 %v13731_v51 }
 0x928   :  { %v5638_v47 = vld [vmem:[#allocation4 + $0x1e8] sm:$0xff] }
 0x929   :  { %v11337_v61 = vcombine.high %v5638_v47, %v5638_v47  ;;  %v11336_v37 = vcombine.low %v5638_v47, %v5638_v47 }
 0x92b   :  { %6548 = vmatprep.mubr.bf16.mxu1 %v11337_v61  ;;  %13028 = vmatmul.mubr.msk.bf16.gmra.mrb[204].mxu0 %vm69_vm3, %v13733_v26 }
 0x92c   :  { %13031 = vmatprep.mubr.msk.bf16.mxu0 %vm13938_vm7, %v16130_v5 }
 0x92f   :  { %6549 = vmatmul.mubr.bf16.gmra.mrb[156].mxu1 %v11336_v37 }
 0x930   :  { %11388 = vmatprep.mubr.msk.f32.mxu1 %vm524_vm2, %v14140_v45 }
 0x933   :  { %13032 = vmatmul.mubr.msk.bf16.gmra.mrb[208].mxu0 %vm69_vm3, %v13734_v63 }
 0x93d   :  { %v12405_v24 = vpop.f32.mrb[108].mxu0 }
 0x93e   :  { %v12406_v53 = vpop.f32.mrb[109].mxu0 }
 0x93f   :  { %v16304_v35 = vadd.f32 %v12406_v53, %v12405_v24  ;;  %v12408_v8 = vpop.f32.mrb[110].mxu0 }
 0x940   :  { %v12409_v59 = vpop.f32.mrb[111].mxu0 }
 0x941   :  { %v16306_v60 = vadd.f32 %v12409_v59, %v12408_v8 }
 0x946   :  { %v12411_v57 = vpop.f32.mrb[112].mxu0 }
 0x947   :  { %v12412_v38 = vpop.f32.mrb[113].mxu0 }
 0x948   :  { %v16308_v22 = vadd.f32 %v12412_v38, %v12411_v57  ;;  %v12414_v5 = vpop.f32.mrb[114].mxu0 }
 0x949   :  { %v12415_v27 = vpop.f32.mrb[115].mxu0 }
 0x94a   :  { %v16310_v39 = vadd.f32 %v12415_v27, %v12414_v5 }
 0x94e   :  { %v12417_v10 = vpop.f32.mrb[116].mxu0 }
 0x94f   :  { %v12418_v41 = vpop.f32.mrb[117].mxu0 }
 0x950   :  { %v16312_v0 = vadd.f32 %v12418_v41, %v12417_v10  ;;  %v12420_v25 = vpop.f32.mrb[118].mxu0 }
 0x951   :  { %v12421_v13 = vpop.f32.mrb[119].mxu0 }
 0x952   :  { %v16314_v18 = vadd.f32 %v12421_v13, %v12420_v25 }
 0x956   :  { %v12423_v58 = vpop.f32.mrb[120].mxu0 }
 0x957   :  { %v12424_v12 = vpop.f32.mrb[121].mxu0 }
 0x958   :  { %v16316_v31 = vadd.f32 %v12424_v12, %v12423_v58  ;;  %v12426_v1 = vpop.f32.mrb[122].mxu0 }
 0x959   :  { %v12427_v52 = vpop.f32.mrb[123].mxu0 }
 0x95a   :  { %v16318_v29 = vadd.f32 %v12427_v52, %v12426_v1 }
 0x95e   :  { %v12429_v23 = vpop.f32.mrb[124].mxu0 }
 0x95f   :  { %v12430_v30 = vpop.f32.mrb[125].mxu0 }
 0x960   :  { %v16320_v50 = vadd.f32 %v12430_v30, %v12429_v23  ;;  %v12432_v28 = vpop.f32.mrb[126].mxu0 }
 0x961   :  { %v12433_v51 = vpop.f32.mrb[127].mxu0 }
 0x962   :  { %v16322_v47 = vadd.f32 %v12433_v51, %v12432_v28 }
 0x966   :  { %v12435_v61 = vpop.f32.mrb[128].mxu0 }
 0x967   :  { %v12436_v26 = vpop.f32.mrb[129].mxu0 }
 0x968   :  { %v16324_v37 = vadd.f32 %v12436_v26, %v12435_v61  ;;  %v12438_v63 = vpop.f32.mrb[130].mxu0 }
 0x969   :  { %v12439_v24 = vpop.f32.mrb[131].mxu0 }
 0x96a   :  { %v16326_v53 = vadd.f32 %v12439_v24, %v12438_v63 }
 0x96e   :  { %v12441_v8 = vpop.f32.mrb[132].mxu0 }
 0x96f   :  { %v12442_v59 = vpop.f32.mrb[133].mxu0 }
 0x970   :  { %v16328_v57 = vadd.f32 %v12442_v59, %v12441_v8  ;;  %v12444_v38 = vpop.f32.mrb[134].mxu0 }
 0x971   :  { %v12445_v5 = vpop.f32.mrb[135].mxu0 }
 0x972   :  { %v16330_v27 = vadd.f32 %v12445_v5, %v12444_v38 }
 0x976   :  { %v12447_v10 = vpop.f32.mrb[136].mxu0 }
 0x977   :  { %v12448_v41 = vpop.f32.mrb[137].mxu0 }
 0x978   :  { %v16332_v25 = vadd.f32 %v12448_v41, %v12447_v10  ;;  %v12450_v13 = vpop.f32.mrb[138].mxu0 }
 0x979   :  { %v12451_v58 = vpop.f32.mrb[139].mxu0 }
 0x97a   :  { %v16334_v12 = vadd.f32 %v12451_v58, %v12450_v13 }
 0x97e   :  { %v12453_v1 = vpop.f32.mrb[140].mxu0 }
 0x97f   :  { %v12454_v52 = vpop.f32.mrb[141].mxu0 }
 0x980   :  { %v16336_v23 = vadd.f32 %v12454_v52, %v12453_v1  ;;  %v12456_v30 = vpop.f32.mrb[142].mxu0 }
 0x981   :  { %v12457_v28 = vpop.f32.mrb[143].mxu0 }
 0x982   :  { %v16338_v51 = vadd.f32 %v12457_v28, %v12456_v30 }
 0x986   :  { %v12459_v61 = vpop.f32.mrb[144].mxu0 }
 0x987   :  { %v12460_v26 = vpop.f32.mrb[145].mxu0 }
 0x988   :  { %v16340_v63 = vadd.f32 %v12460_v26, %v12459_v61  ;;  %v12462_v24 = vpop.f32.mrb[146].mxu0 }
 0x989   :  { %v12463_v8 = vpop.f32.mrb[147].mxu0 }
 0x98a   :  { %v16342_v59 = vadd.f32 %v12463_v8, %v12462_v24 }
 0x98e   :  { %v12465_v38 = vpop.f32.mrb[148].mxu0 }
 0x98f   :  { %v12466_v5 = vpop.f32.mrb[149].mxu0 }
 0x990   :  { %v16344_v10 = vadd.f32 %v12466_v5, %v12465_v38  ;;  %v12468_v41 = vpop.f32.mrb[150].mxu0 }
 0x991   :  { %v12469_v13 = vpop.f32.mrb[151].mxu0 }
 0x992   :  { %v16346_v58 = vadd.f32 %v12469_v13, %v12468_v41 }
 0x996   :  { %v12471_v1 = vpop.f32.mrb[152].mxu0 }
 0x997   :  { %v12472_v52 = vpop.f32.mrb[153].mxu0 }
 0x998   :  { %v16348_v30 = vadd.f32 %v12472_v52, %v12471_v1  ;;  %v12474_v28 = vpop.f32.mrb[154].mxu0 }
 0x999   :  { %v12475_v42 = vpop.f32.mrb[155].mxu0 }
 0x99a   :  { %v16350_v61 = vadd.f32 %v12475_v42, %v12474_v28 }
 0x99e   :  { %v12477_v26 = vpop.f32.mrb[156].mxu0 }
 0x99f   :  { %v12478_v16 = vpop.f32.mrb[157].mxu0 }
 0x9a0   :  { %v16352_v24 = vadd.f32 %v12478_v16, %v12477_v26  ;;  %v12480_v8 = vpop.f32.mrb[158].mxu0 }
 0x9a1   :  { %v12481_v21 = vpop.f32.mrb[159].mxu0  ;;  %v12499_v38 = vpop.f32.mrb[108].mxu1 }
 0x9a2   :  { %v12500_v5 = vpop.f32.mrb[109].mxu1 }
 0x9a3   :  { %v12501_v36 = vadd.f32 %v12500_v5, %v12499_v38  ;;  %v12502_v43 = vpop.f32.mrb[110].mxu1 }
 0x9a4   :  { %v12503_v41 = vpop.f32.mrb[111].mxu1 }
 0x9a5   :  { %v12504_v13 = vadd.f32 %v12503_v41, %v12502_v43  ;;  %v6455_v32 = vadd.f32 %v12501_v36, %v16304_v35 }
 0x9a6   :  { %v6590_v1 = vpop.f32.mrb[160].mxu0 }
 0x9a7   :  { %v16355_v52 = vadd.f32 %v6590_v1, %v6455_v32  ;;  %v12985_v34 = vpop.f32.mrb[161].mxu0  ;;  %v6458_v42 = vadd.f32 %v12504_v13, %v16306_v60 }
 0x9a8   :  { %v6593_v28 = vpop.f32.mrb[162].mxu0 }
 0x9a9   :  { %v16358_v4 = vadd.f32 %v6593_v28, %v6458_v42  ;;  %v12986_v16 = vpop.f32.mrb[163].mxu0 }
 0x9aa   :  { %v12505_v26 = vpop.f32.mrb[112].mxu1 }
 0x9ab   :  { %v12506_v21 = vpop.f32.mrb[113].mxu1  ;;  %v13358_v8 = vpack.c.bf16 %v16358_v4, %v16355_v52 }
 0x9ac   :  { %v12507_v38 = vadd.f32 %v12506_v21, %v12505_v26  ;;  %v12508_v5 = vpop.f32.mrb[114].mxu1 }
 0x9ad   :  { %v12509_v43 = vpop.f32.mrb[115].mxu1  ;;  %13359 = vmatpush1.bf16.msra.mxu1 %v13358_v8 }
 0x9ae   :  { %v12510_v41 = vadd.f32 %v12509_v43, %v12508_v5  ;;  %v6463_v36 = vadd.f32 %v12507_v38, %v16308_v22  ;;  %v6598_v32 = vpop.f32.mrb[164].mxu0  ;;  %13360 = vmatprep.subr.bf16.mxu1 %v17534_v49 }
 0x9af   :  { %v12989_v35 = vpop.f32.mrb[165].mxu0 }
 0x9b0   :  { %v16364_v34 = vadd.f32 %v6598_v32, %v6463_v36  ;;  %v6466_v60 = vadd.f32 %v12510_v41, %v16310_v39  ;;  %v6601_v13 = vpop.f32.mrb[166].mxu0 }
 0x9b1   :  { %v12990_v42 = vpop.f32.mrb[167].mxu0 }
 0x9b2   :  { %v16367_v1 = vadd.f32 %v6601_v13, %v6466_v60  ;;  %v12511_v28 = vpop.f32.mrb[116].mxu1 }
 0x9b3   :  { %v12512_v16 = vpop.f32.mrb[117].mxu1 }
 0x9b4   :  { %v13361_v26 = vpack.c.bf16 %v16367_v1, %v16364_v34  ;;  %v12513_v21 = vadd.f32 %v12512_v16, %v12511_v28  ;;  %v12514_v22 = vpop.f32.mrb[118].mxu1 }
 0x9b5   :  { %v12515_v8 = vpop.f32.mrb[119].mxu1 }
 0x9b6   :  { %v12516_v38 = vadd.f32 %v12515_v8, %v12514_v22  ;;  %v6471_v5 = vadd.f32 %v12513_v21, %v16312_v0  ;;  %13362 = vmatpush1.bf16.msra.mxu1 %v13361_v26  ;;  %v6606_v43 = vpop.f32.mrb[168].mxu0 }
 0x9b7   :  { %13363 = vmatprep.subr.bf16.mxu1 %v17534_v49  ;;  %v12993_v41 = vpop.f32.mrb[169].mxu0 }
 0x9b8   :  { %v16373_v39 = vadd.f32 %v6606_v43, %v6471_v5  ;;  %v6474_v36 = vadd.f32 %v12516_v38, %v16314_v18  ;;  %v6609_v32 = vpop.f32.mrb[170].mxu0 }
 0x9b9   :  { %v12994_v60 = vpop.f32.mrb[171].mxu0 }
 0x9ba   :  { %v16376_v35 = vadd.f32 %v6609_v32, %v6474_v36  ;;  %v12517_v13 = vpop.f32.mrb[120].mxu1 }
 0x9bb   :  { %v12518_v42 = vpop.f32.mrb[121].mxu1 }
 0x9bc   :  { %v13364_v28 = vpack.c.bf16 %v16376_v35, %v16373_v39  ;;  %v12519_v16 = vadd.f32 %v12518_v42, %v12517_v13  ;;  %v12520_v0 = vpop.f32.mrb[122].mxu1 }
 0x9bd   :  { %v12521_v26 = vpop.f32.mrb[123].mxu1 }
 0x9be   :  { %v12522_v21 = vadd.f32 %v12521_v26, %v12520_v0  ;;  %v6479_v22 = vadd.f32 %v12519_v16, %v16316_v31  ;;  %13365 = vmatpush1.bf16.msra.mxu1 %v13364_v28  ;;  %v6614_v8 = vpop.f32.mrb[172].mxu0 }
 0x9bf   :  { %13366 = vmatprep.subr.bf16.mxu1 %v17534_v49  ;;  %v12997_v38 = vpop.f32.mrb[173].mxu0 }
 0x9c0   :  { %v16382_v18 = vadd.f32 %v6614_v8, %v6479_v22  ;;  %v6482_v5 = vadd.f32 %v12522_v21, %v16318_v29  ;;  %v6617_v43 = vpop.f32.mrb[174].mxu0 }
 0x9c1   :  { %v12998_v36 = vpop.f32.mrb[175].mxu0 }
 0x9c2   :  { %v16385_v41 = vadd.f32 %v6617_v43, %v6482_v5  ;;  %v12523_v32 = vpop.f32.mrb[124].mxu1 }
 0x9c3   :  { %v12524_v60 = vpop.f32.mrb[125].mxu1 }
 0x9c4   :  { %v13367_v13 = vpack.c.bf16 %v16385_v41, %v16382_v18  ;;  %v12525_v42 = vadd.f32 %v12524_v60, %v12523_v32  ;;  %v12526_v31 = vpop.f32.mrb[126].mxu1 }
 0x9c5   :  { %v12527_v28 = vpop.f32.mrb[127].mxu1 }
 0x9c6   :  { %v12528_v16 = vadd.f32 %v12527_v28, %v12526_v31  ;;  %v6487_v0 = vadd.f32 %v12525_v42, %v16320_v50  ;;  %13368 = vmatpush1.bf16.msra.mxu1 %v13367_v13  ;;  %v6622_v26 = vpop.f32.mrb[176].mxu0 }
 0x9c7   :  { %13369 = vmatprep.subr.bf16.mxu1 %v17534_v49  ;;  %v13001_v21 = vpop.f32.mrb[177].mxu0 }
 0x9c8   :  { %v16391_v29 = vadd.f32 %v6622_v26, %v6487_v0  ;;  %v6490_v22 = vadd.f32 %v12528_v16, %v16322_v47  ;;  %v6625_v8 = vpop.f32.mrb[178].mxu0 }
 0x9c9   :  { %v13002_v5 = vpop.f32.mrb[179].mxu0 }
 0x9ca   :  { %v16394_v38 = vadd.f32 %v6625_v8, %v6490_v22  ;;  %v12529_v43 = vpop.f32.mrb[128].mxu1 }
 0x9cb   :  { %v12530_v36 = vpop.f32.mrb[129].mxu1 }
 0x9cc   :  { %v13370_v32 = vpack.c.bf16 %v16394_v38, %v16391_v29  ;;  %v12531_v60 = vadd.f32 %v12530_v36, %v12529_v43  ;;  %v12532_v50 = vpop.f32.mrb[130].mxu1 }
 0x9cd   :  { %v12533_v13 = vpop.f32.mrb[131].mxu1 }
 0x9ce   :  { %v12534_v42 = vadd.f32 %v12533_v13, %v12532_v50  ;;  %v6495_v31 = vadd.f32 %v12531_v60, %v16324_v37  ;;  %13371 = vmatpush1.bf16.msra.mxu1 %v13370_v32  ;;  %v6630_v28 = vpop.f32.mrb[180].mxu0 }
 0x9cf   :  { %13372 = vmatprep.subr.bf16.mxu1 %v17534_v49  ;;  %v13005_v16 = vpop.f32.mrb[181].mxu0 }
 0x9d0   :  { %v16400_v47 = vadd.f32 %v6630_v28, %v6495_v31  ;;  %v6498_v0 = vadd.f32 %v12534_v42, %v16326_v53  ;;  %v6633_v26 = vpop.f32.mrb[182].mxu0 }
 0x9d1   :  { %v13006_v22 = vpop.f32.mrb[183].mxu0 }
 0x9d2   :  { %v16403_v21 = vadd.f32 %v6633_v26, %v6498_v0  ;;  %v12535_v8 = vpop.f32.mrb[132].mxu1 }
 0x9d3   :  { %v12536_v5 = vpop.f32.mrb[133].mxu1 }
 0x9d4   :  { %v13373_v43 = vpack.c.bf16 %v16403_v21, %v16400_v47  ;;  %v12537_v36 = vadd.f32 %v12536_v5, %v12535_v8  ;;  %v12538_v37 = vpop.f32.mrb[134].mxu1 }
 0x9d5   :  { %v12539_v32 = vpop.f32.mrb[135].mxu1 }
 0x9d6   :  { %v12540_v60 = vadd.f32 %v12539_v32, %v12538_v37  ;;  %v6503_v50 = vadd.f32 %v12537_v36, %v16328_v57  ;;  %13374 = vmatpush1.bf16.msra.mxu1 %v13373_v43  ;;  %v6638_v13 = vpop.f32.mrb[184].mxu0 }
 0x9d7   :  { %13375 = vmatprep.subr.bf16.mxu1 %v17534_v49  ;;  %v13009_v42 = vpop.f32.mrb[185].mxu0 }
 0x9d8   :  { %v16409_v53 = vadd.f32 %v6638_v13, %v6503_v50  ;;  %v6506_v31 = vadd.f32 %v12540_v60, %v16330_v27  ;;  %v6641_v28 = vpop.f32.mrb[186].mxu0 }
 0x9d9   :  { %v13010_v0 = vpop.f32.mrb[187].mxu0 }
 0x9da   :  { %v16412_v16 = vadd.f32 %v6641_v28, %v6506_v31  ;;  %v12541_v26 = vpop.f32.mrb[136].mxu1 }
 0x9db   :  { %v12542_v22 = vpop.f32.mrb[137].mxu1 }
 0x9dc   :  { %v13376_v8 = vpack.c.bf16 %v16412_v16, %v16409_v53  ;;  %v12543_v5 = vadd.f32 %v12542_v22, %v12541_v26  ;;  %v12544_v57 = vpop.f32.mrb[138].mxu1 }
 0x9dd   :  { %v12545_v43 = vpop.f32.mrb[139].mxu1 }
 0x9de   :  { %v12546_v36 = vadd.f32 %v12545_v43, %v12544_v57  ;;  %v6511_v37 = vadd.f32 %v12543_v5, %v16332_v25  ;;  %13377 = vmatpush1.bf16.msra.mxu1 %v13376_v8  ;;  %v6646_v32 = vpop.f32.mrb[188].mxu0 }
 0x9df   :  { %13378 = vmatprep.subr.bf16.mxu1 %v17534_v49  ;;  %v13013_v60 = vpop.f32.mrb[189].mxu0 }
 0x9e0   :  { %v16418_v27 = vadd.f32 %v6646_v32, %v6511_v37  ;;  %v6514_v50 = vadd.f32 %v12546_v36, %v16334_v12  ;;  %v6649_v13 = vpop.f32.mrb[190].mxu0 }
 0x9e1   :  { %v13014_v31 = vpop.f32.mrb[191].mxu0 }
 0x9e2   :  { %v16421_v42 = vadd.f32 %v6649_v13, %v6514_v50  ;;  %v12547_v28 = vpop.f32.mrb[140].mxu1 }
 0x9e3   :  { %v12548_v0 = vpop.f32.mrb[141].mxu1 }
 0x9e4   :  { %v13379_v26 = vpack.c.bf16 %v16421_v42, %v16418_v27  ;;  %v12549_v22 = vadd.f32 %v12548_v0, %v12547_v28  ;;  %v12550_v25 = vpop.f32.mrb[142].mxu1 }
 0x9e5   :  { %v12551_v8 = vpop.f32.mrb[143].mxu1 }
 0x9e6   :  { %v12552_v5 = vadd.f32 %v12551_v8, %v12550_v25  ;;  %v6519_v57 = vadd.f32 %v12549_v22, %v16336_v23  ;;  %13380 = vmatpush1.bf16.msra.mxu1 %v13379_v26  ;;  %v6654_v43 = vpop.f32.mrb[192].mxu0 }
 0x9e7   :  { %13381 = vmatprep.subr.bf16.mxu1 %v17534_v49  ;;  %v13017_v36 = vpop.f32.mrb[193].mxu0 }
 0x9e8   :  { %v16427_v12 = vadd.f32 %v6654_v43, %v6519_v57  ;;  %v6522_v37 = vadd.f32 %v12552_v5, %v16338_v51  ;;  %v6657_v32 = vpop.f32.mrb[194].mxu0 }
 0x9e9   :  { %v13018_v50 = vpop.f32.mrb[195].mxu0 }
 0x9ea   :  { %v16430_v60 = vadd.f32 %v6657_v32, %v6522_v37  ;;  %v12553_v13 = vpop.f32.mrb[144].mxu1 }
 0x9eb   :  { %v12554_v31 = vpop.f32.mrb[145].mxu1 }
 0x9ec   :  { %v13382_v28 = vpack.c.bf16 %v16430_v60, %v16427_v12  ;;  %v12555_v0 = vadd.f32 %v12554_v31, %v12553_v13  ;;  %v12556_v23 = vpop.f32.mrb[146].mxu1 }
 0x9ed   :  { %v12557_v26 = vpop.f32.mrb[147].mxu1 }
 0x9ee   :  { %v12558_v22 = vadd.f32 %v12557_v26, %v12556_v23  ;;  %v6527_v25 = vadd.f32 %v12555_v0, %v16340_v63  ;;  %13383 = vmatpush1.bf16.msra.mxu1 %v13382_v28  ;;  %v6662_v8 = vpop.f32.mrb[196].mxu0 }
 0x9ef   :  { %13384 = vmatprep.subr.bf16.mxu1 %v17534_v49  ;;  %v13021_v5 = vpop.f32.mrb[197].mxu0 }
 0x9f0   :  { %v16436_v51 = vadd.f32 %v6662_v8, %v6527_v25  ;;  %v6530_v57 = vadd.f32 %v12558_v22, %v16342_v59  ;;  %v6665_v43 = vpop.f32.mrb[198].mxu0 }
 0x9f1   :  { %v13022_v37 = vpop.f32.mrb[199].mxu0 }
 0x9f2   :  { %v16439_v36 = vadd.f32 %v6665_v43, %v6530_v57  ;;  %v12559_v32 = vpop.f32.mrb[148].mxu1 }
 0x9f3   :  { %v12560_v50 = vpop.f32.mrb[149].mxu1 }
 0x9f4   :  { %v13385_v13 = vpack.c.bf16 %v16439_v36, %v16436_v51  ;;  %v12561_v31 = vadd.f32 %v12560_v50, %v12559_v32  ;;  %v12562_v63 = vpop.f32.mrb[150].mxu1 }
 0x9f5   :  { %v12563_v28 = vpop.f32.mrb[151].mxu1 }
 0x9f6   :  { %v12564_v0 = vadd.f32 %v12563_v28, %v12562_v63  ;;  %v6535_v23 = vadd.f32 %v12561_v31, %v16344_v10  ;;  %13386 = vmatpush1.bf16.msra.mxu1 %v13385_v13  ;;  %v6670_v26 = vpop.f32.mrb[200].mxu0 }
 0x9f7   :  { %13387 = vmatprep.subr.bf16.mxu1 %v17534_v49  ;;  %v13025_v22 = vpop.f32.mrb[201].mxu0 }
 0x9f8   :  { %v16445_v59 = vadd.f32 %v6670_v26, %v6535_v23  ;;  %v6538_v25 = vadd.f32 %v12564_v0, %v16346_v58  ;;  %v6673_v8 = vpop.f32.mrb[202].mxu0 }
 0x9f9   :  { %v13026_v57 = vpop.f32.mrb[203].mxu0 }
 0x9fa   :  { %v16448_v5 = vadd.f32 %v6673_v8, %v6538_v25  ;;  %v12565_v43 = vpop.f32.mrb[152].mxu1 }
 0x9fb   :  { %v12566_v37 = vpop.f32.mrb[153].mxu1 }
 0x9fc   :  { %v13388_v32 = vpack.c.bf16 %v16448_v5, %v16445_v59  ;;  %v12567_v50 = vadd.f32 %v12566_v37, %v12565_v43  ;;  %v12568_v10 = vpop.f32.mrb[154].mxu1 }
 0x9fd   :  { %v12569_v13 = vpop.f32.mrb[155].mxu1 }
 0x9fe   :  { %v12570_v31 = vadd.f32 %v12569_v13, %v12568_v10  ;;  %v6543_v63 = vadd.f32 %v12567_v50, %v16348_v30  ;;  %13389 = vmatpush1.bf16.msra.mxu1 %v13388_v32  ;;  %v6678_v28 = vpop.f32.mrb[204].mxu0  ;;  %v6764_v50 = vmul.f32 %v16358_v4, %v16358_v4 }
 0x9ff   :  { %13390 = vmatprep.subr.bf16.mxu1 %v17534_v49  ;;  %v13029_v0 = vpop.f32.mrb[205].mxu0 }
 0xa00   :  { %v16454_v58 = vadd.f32 %v6678_v28, %v6543_v63  ;;  %v6546_v23 = vadd.f32 %v12570_v31, %v16350_v61  ;;  %v6681_v26 = vpop.f32.mrb[206].mxu0  ;;  %v16464_v61 = vld [vmem:[#allocation3] sm:$0xff]  ;;  %v6763_v31 = vmul.f32 %v16355_v52, %v16355_v52 }
 0xa01   :  { %v13030_v25 = vpop.f32.mrb[207].mxu0 }
 0xa02   :  { %v16457_v22 = vadd.f32 %v6681_v26, %v6546_v23  ;;  %v12571_v8 = vpop.f32.mrb[156].mxu1  ;;  %v13394_v23 = vpack.c.bf16 %v6764_v50, %v6763_v31  ;;  %v6766_v26 = vmul.f32 %v16367_v1, %v16367_v1  ;;  %v6772_v50 = vmul.f32 %v16394_v38, %v16394_v38 }
 0xa03   :  { %v12572_v57 = vpop.f32.mrb[157].mxu1  ;;  %v6774_v31 = vmul.f32 %v16403_v21, %v16403_v21 }
 0xa04   :  { %v13391_v43 = vpack.c.bf16 %v16457_v22, %v16454_v58  ;;  %v12573_v37 = vadd.f32 %v12572_v57, %v12571_v8  ;;  %v12574_v30 = vpop.f32.mrb[158].mxu1  ;;  %v6768_v57 = vmul.f32 %v16376_v35, %v16376_v35 }
 0xa05   :  { %v12575_v32 = vpop.f32.mrb[159].mxu1  ;;  %v6770_v30 = vmul.f32 %v16385_v41, %v16385_v41 }
 0xa06   :  { %v6551_v10 = vadd.f32 %v12573_v37, %v16352_v24  ;;  %13392 = vmatpush1.bf16.msra.mxu1 %v13391_v43  ;;  %v6686_v13 = vpop.f32.mrb[208].mxu0  ;;  %v6765_v24 = vmul.f32 %v16364_v34, %v16364_v34  ;;  %v6767_v43 = vmul.f32 %v16373_v39, %v16373_v39  ;;  %v6769_v32 = vmul.f32 %v16382_v18, %v16382_v18 }
 0xa07   :  { %6741 = vmatprep.subr.mxu1 %v16464_v61  ;;  %v13033_v28 = vpop.f32.mrb[209].mxu0 }
 0xa08   :  { %v16469_v63 = vadd.f32 %v6686_v13, %v6551_v10  ;;  %v6689_v0 = vpop.f32.mrb[210].mxu0  ;;  %v13397_v8 = vpack.c.bf16 %v6766_v26, %v6765_v24  ;;  %v13400_v37 = vpack.c.bf16 %v6768_v57, %v6767_v43  ;;  %v6771_v10 = vmul.f32 %v16391_v29, %v16391_v29 }
 0xa09   :  { %v13034_v25 = vpop.f32.mrb[211].mxu0  ;;  %v6773_v28 = vmul.f32 %v16400_v47, %v16400_v47  ;;  %v6775_v26 = vmul.f32 %v16409_v53, %v16409_v53  ;;  %v6778_v24 = vmul.f32 %v16421_v42, %v16421_v42  ;;  %v6780_v43 = vmul.f32 %v16430_v60, %v16430_v60 }
 0xa0a   :  { %6742 = vmatpush1.msra.mxu1 %v16469_v63  ;;  %v13406_v13 = vpack.c.bf16 %v6772_v50, %v6771_v10  ;;  %v6784_v10 = vmul.f32 %v16448_v5, %v16448_v5 }
 0xa0b   :  { %6758 = vmatmul.mubr.f32.vlgmr.msra.gmra.mrb[160].mxu1 %v14476_v19  ;;  %13393 = vmatprep.subr.bf16.mxu1 %v17534_v49  ;;  %v13409_v0 = vpack.c.bf16 %v6774_v31, %v6773_v28  ;;  %v6786_v28 = vmul.f32 %v16457_v22, %v16457_v22 }
 0xa0c   :  { %13395 = vmatpush1.bf16.msra.mxu1 %v13394_v23  ;;  %11389 = vmatprep.mubr.msk.f32.mxu1 %vm524_vm2, %v14140_v45  ;;  %v13403_v45 = vpack.c.bf16 %v6770_v30, %v6769_v32  ;;  %v6776_v23 = vmul.f32 %v16412_v16, %v16412_v16  ;;  %v6782_v32 = vmul.f32 %v16439_v36, %v16439_v36 }
 0xa0d   :  { %13396 = vmatprep.subr.bf16.mxu1 %v17534_v49 }
 0xa0e   :  { %v13412_v25 = vpack.c.bf16 %v6776_v23, %v6775_v26  ;;  %v6787_v26 = vmul.f32 %v16469_v63, %v16469_v63 }
 0xa10   :  { %13398 = vmatpush1.bf16.msra.mxu1 %v13397_v8  ;;  %v6777_v8 = vmul.f32 %v16418_v27, %v16418_v27 }
 0xa11   :  { %13399 = vmatprep.subr.bf16.mxu1 %v17534_v49 }
 0xa12   :  { %v13415_v57 = vpack.c.bf16 %v6778_v24, %v6777_v8 }
 0xa14   :  { %13401 = vmatpush1.bf16.msra.mxu1 %v13400_v37  ;;  %v6779_v37 = vmul.f32 %v16427_v12, %v16427_v12 }
 0xa15   :  { %13402 = vmatprep.subr.bf16.mxu1 %v17534_v49 }
 0xa16   :  { %v13418_v30 = vpack.c.bf16 %v6780_v43, %v6779_v37  ;;  %v13736_v43 = vld [vmem:[%s17435_s4 + $0x80] sm:$0xff]  }
 0xa18   :  { %13404 = vmatpush1.bf16.msra.mxu1 %v13403_v45  ;;  %v6781_v45 = vmul.f32 %v16436_v51, %v16436_v51 }
 0xa19   :  { %13405 = vmatprep.subr.bf16.mxu1 %v17534_v49 }
 0xa1a   :  { %v13421_v50 = vpack.c.bf16 %v6782_v32, %v6781_v45  ;;  %v13738_v45 = vld [vmem:[%s17435_s4 + $0x88] sm:$0xff]  }
 0xa1c   :  { %13407 = vmatpush1.bf16.msra.mxu1 %v13406_v13  ;;  %v6783_v13 = vmul.f32 %v16445_v59, %v16445_v59 }
 0xa1d   :  { %13408 = vmatprep.subr.bf16.mxu1 %v17534_v49 }
 0xa1e   :  { %v13424_v31 = vpack.c.bf16 %v6784_v10, %v6783_v13  ;;  %v13739_v10 = vld [vmem:[%s17435_s4 + $0xd0] sm:$0xff]  }
 0xa20   :  { %13410 = vmatpush1.bf16.msra.mxu1 %v13409_v0  ;;  %v6785_v0 = vmul.f32 %v16454_v58, %v16454_v58 }
 0xa21   :  { %13411 = vmatprep.subr.bf16.mxu1 %v17534_v49 }
 0xa22   :  { %v13427_v23 = vpack.c.bf16 %v6786_v28, %v6785_v0  ;;  %v13741_v28 = vld [vmem:[%s17435_s4 + $0xd8] sm:$0xff]  }
 0xa24   :  { %13413 = vmatpush1.bf16.msra.mxu1 %v13412_v25 }
 0xa25   :  { %13414 = vmatprep.subr.bf16.mxu1 %v17534_v49 }
 0xa28   :  { %13416 = vmatpush1.bf16.msra.mxu1 %v13415_v57  ;;  %v13735_v57 = vld [vmem:[%s17435_s4 + $0xc0] sm:$0xff]  }
 0xa29   :  { %13417 = vmatprep.subr.bf16.mxu1 %v17534_v49  ;;  %12622 = vmatprep.subr.bf16.mxu0 %v13735_v57 }
 0xa2a   :  { %12623 = vmatpush3.bf16.msra.mxu0 %v13736_v43 }
 0xa2c   :  { %13419 = vmatpush1.bf16.msra.mxu1 %v13418_v30 }
 0xa2d   :  { %13420 = vmatprep.subr.bf16.mxu1 %v17534_v49 }
 0xa30   :  { %13422 = vmatpush1.bf16.msra.mxu1 %v13421_v50 }
 0xa31   :  { %13423 = vmatprep.subr.bf16.mxu1 %v17534_v49 }
 0xa34   :  { %13425 = vmatpush1.bf16.msra.mxu1 %v13424_v31  ;;  %v13740_v31 = vld [vmem:[%s17435_s4 + $0x90] sm:$0xff]  }
 0xa35   :  { %13426 = vmatprep.subr.bf16.mxu1 %v17534_v49  ;;  %v17555_v49 = vld [vmem:[#allocation25_spill] sm:$0xff] }
 0xa38   :  { %13428 = vmatpush1.bf16.msra.mxu1 %v13427_v23  ;;  %v13742_v23 = vld [vmem:[%s17435_s4 + $0x98] sm:$0xff]  }
 0xa39   :  { %6836 = vmatprep.subr.mxu1 %v16464_v61  ;;  %v13737_v61 = vld [vmem:[%s17435_s4 + $0xc8] sm:$0xff]  }
 0xa3a   :  { %12624 = vmatprep.subr.bf16.mxu0 %v13737_v61 }
 0xa3b   :  { %12625 = vmatpush3.bf16.msra.mxu0 %v13738_v45 }
 0xa3c   :  { %6837 = vmatpush1.msra.mxu1 %v6787_v26  ;;  %12626 = vmatprep.subr.bf16.mxu0 %v13739_v10  ;;  %v6692_v26 = vld [vmem:[%s17432_s7 + $0x2] sm:$0x3] }
 0xa3d   :  { %6853 = vmatmul.mubr.f32.vlgmr.msra.gmra.mrb[162].mxu1 %v14476_v19 }
 0xa3f   :  { %12627 = vmatpush3.bf16.msra.mxu0 %v13740_v31 }
 0xa40   :  { %12628 = vmatprep.subr.bf16.mxu0 %v13741_v28 }
 0xa43   :  { %12629 = vmatpush3.bf16.msra.mxu0 %v13742_v23  ;;  %v17544_v23 = vld [vmem:[#allocation7_spill] sm:$0xff] }
 0xade   :  { %v6759_v25 = vpop.f32.mrb[160].mxu1 }
 0xadf   :  { %v6761_v24 = vpop.f32.mrb[161].mxu1  ;;  %v6858_v8 = vmul.f32 0.0078125, %v6759_v25 }
 0xae1   :  { %v6860_v30 = vmul.f32 %v6858_v8, %v6858_v8 }
 0xb10   :  { %v6854_v37 = vpop.f32.mrb[162].mxu1 }
 0xb11   :  { %v6859_v32 = vmul.f32 0.0078125, %v6854_v37  ;;  %v6856_v19 = vpop.f32.mrb[163].mxu1 }
 0xb13   :  { %v6861_v50 = vsub.f32 %v6859_v32, %v6860_v30 }
 0xb15   :  { %v6862_v13 = vmax.f32 %v6861_v50, 0.0 }
 0xb17   :  { %v6863_v0 = vadd.f32 1e-05, %v6862_v13 }
 0xb19   :  { %13918 = vrsqrt.f32 %v6863_v0 }
 0xb23   :  { %v13919_v25 = vpop.eup %13918 }
 0xb24   :  { %v6865_v24 = vmul.f32 %v13919_v25, %v6692_v26 }
 0xb26   :  { %v6866_v57 = vmul.f32 %v6865_v24, %v6858_v8  ;;  %v6881_v43 = vrot.slane %v6865_v24, %v14465_v48  ;;  %v17553_v48 = vld [vmem:[#allocation21_spill] sm:$0xff] }
 0xb28   :  { %v6874_v37 = vrot.slane %v6866_v57, %v14564_v40  ;;  %v6883_v61 = vmul.f32 %v6881_v43, %v16358_v4  ;;  %v6884_v30 = vmul.f32 %v6881_v43, %v16364_v34  ;;  %v6885_v32 = vmul.f32 %v6881_v43, %v16367_v1  ;;  %v17554_v40 = vld [vmem:[#allocation19_spill] sm:$0xff] }
 0xb29   :  { %v6886_v19 = vmul.f32 %v6881_v43, %v16373_v39  ;;  %v6887_v50 = vmul.f32 %v6881_v43, %v16376_v35  ;;  %v6888_v10 = vmul.f32 %v6881_v43, %v16382_v18  ;;  %v6889_v13 = vmul.f32 %v6881_v43, %v16385_v41 }
 0xb2a   :  { %v6875_v45 = vrot.slane %v6874_v37, 7  ;;  %v6890_v8 = vmul.f32 %v6881_v43, %v16391_v29  ;;  %v6891_v31 = vmul.f32 %v6881_v43, %v16394_v38  ;;  %v6892_v28 = vmul.f32 %v6881_v43, %v16400_v47 }
 0xb2b   :  { %v6893_v4 = vmul.f32 %v6881_v43, %v16403_v21  ;;  %v6894_v1 = vmul.f32 %v6881_v43, %v16409_v53  ;;  %v6895_v39 = vmul.f32 %v6881_v43, %v16412_v16  ;;  %v6896_v0 = vmul.f32 %v6881_v43, %v16418_v27 }
 0xb2c   :  { %v6877_v34 = vsub.f32 %v6692_v26, %v6875_v45  ;;  %v6897_v35 = vmul.f32 %v6881_v43, %v16421_v42  ;;  %v6898_v18 = vmul.f32 %v6881_v43, %v16427_v12  ;;  %v6899_v41 = vmul.f32 %v6881_v43, %v16430_v60 }
 0xb2d   :  { %v6900_v29 = vmul.f32 %v6881_v43, %v16436_v51  ;;  %v6901_v38 = vmul.f32 %v6881_v43, %v16439_v36  ;;  %v6902_v47 = vmul.f32 %v6881_v43, %v16445_v59  ;;  %v6903_v21 = vmul.f32 %v6881_v43, %v16448_v5 }
 0xb2e   :  { %v16586_v53 = vrot.slane %v6877_v34, %v17544_v23  ;;  %v6904_v16 = vmul.f32 %v6881_v43, %v16454_v58  ;;  %v6905_v27 = vmul.f32 %v6881_v43, %v16457_v22  ;;  %v6906_v42 = vmul.f32 %v6881_v43, %v16469_v63  ;;  %v17552_v23 = vld [vmem:[#allocation20_spill] sm:$0xff] }
 0xb2f   :  { %v16592_v12 = vmul.f32 %v6881_v43, %v16355_v52 }
 0xb30   :  { %v6912_v60 = vadd.f32 %v16586_v53, %v6883_v61  ;;  %v6913_v51 = vadd.f32 %v16586_v53, %v6884_v30  ;;  %v6914_v36 = vadd.f32 %v16586_v53, %v6885_v32  ;;  %v6915_v59 = vadd.f32 %v16586_v53, %v6886_v19 }
 0xb31   :  { %v6916_v5 = vadd.f32 %v16586_v53, %v6887_v50  ;;  %v6917_v26 = vadd.f32 %v16586_v53, %v6888_v10  ;;  %v6918_v58 = vadd.f32 %v16586_v53, %v6889_v13  ;;  %v6919_v22 = vadd.f32 %v16586_v53, %v6890_v8 }
 0xb32   :  { %v6920_v63 = vadd.f32 %v16586_v53, %v6891_v31  ;;  %v6921_v52 = vadd.f32 %v16586_v53, %v6892_v28  ;;  %v6922_v25 = vadd.f32 %v16586_v53, %v6893_v4  ;;  %v6923_v24 = vadd.f32 %v16586_v53, %v6894_v1  ;;  %v17545_v31 = vld [vmem:[#allocation41_spill] sm:$0xff]  ;;  %v17546_v4 = vld [vmem:[#allocation42_spill] sm:$0xff]  ;;  %v17547_v1 = vld [vmem:[#allocation43_spill] sm:$0xff] }
 0xb33   :  { %v6924_v57 = vadd.f32 %v16586_v53, %v6895_v39  ;;  %v6925_v43 = vadd.f32 %v16586_v53, %v6896_v0  ;;  %v6926_v37 = vadd.f32 %v16586_v53, %v6897_v35  ;;  %v6927_v61 = vadd.f32 %v16586_v53, %v6898_v18  ;;  %v17548_v0 = vld [vmem:[#allocation15_spill] sm:$0xff]  ;;  %v17549_v18 = vld [vmem:[#allocation16_spill] sm:$0xff] }
 0xb34   :  { %v6928_v30 = vadd.f32 %v16586_v53, %v6899_v41  ;;  %v6929_v32 = vadd.f32 %v16586_v53, %v6900_v29  ;;  %v6930_v19 = vadd.f32 %v16586_v53, %v6901_v38  ;;  %v6931_v45 = vadd.f32 %v16586_v53, %v6902_v47  ;;  %v17550_v29 = vld [vmem:[#allocation17_spill] sm:$0xff]  ;;  %v17551_v47 = vld [vmem:[#allocation18_spill] sm:$0xff] }
 0xb35   :  { %v6932_v50 = vadd.f32 %v16586_v53, %v6903_v21  ;;  %v6933_v10 = vadd.f32 %v16586_v53, %v6904_v16  ;;  %v6934_v13 = vadd.f32 %v16586_v53, %v6905_v27  ;;  %v6935_v8 = vadd.f32 %v16586_v53, %v6906_v42 }
 0xb36   :  { %v6937_v28 = vadd.f32 %v6912_v60, %v17545_v31  ;;  %v6938_v34 = vadd.f32 %v6913_v51, %v17546_v4  ;;  %v6939_v39 = vadd.f32 %v6914_v36, %v17547_v1  ;;  %v6940_v35 = vadd.f32 %v6915_v59, %v17548_v0  ;;  %v17556_v31 = vld [vmem:[#allocation22_spill] sm:$0xff]  ;;  %v17557_v4 = vld [vmem:[#allocation27_spill] sm:$0xff]  ;;  %v17559_v0 = vld [vmem:[#allocation29_spill] sm:$0xff] }
 0xb37   :  { %v6941_v41 = vadd.f32 %v6916_v5, %v17549_v18  ;;  %v6942_v38 = vadd.f32 %v6917_v26, %v17550_v29  ;;  %v6943_v21 = vadd.f32 %v6918_v58, %v17551_v47  ;;  %v6944_v16 = vadd.f32 %v6919_v22, %v17552_v23  ;;  %v17558_v1 = vld [vmem:[#allocation26_spill] sm:$0xff]  ;;  %v17560_v18 = vld [vmem:[#allocation28_spill] sm:$0xff]  ;;  %v17561_v29 = vld [vmem:[#allocation31_spill] sm:$0xff] }
 0xb38   :  { %v6945_v27 = vadd.f32 %v6920_v63, %v17553_v48  ;;  %v6946_v42 = vadd.f32 %v6921_v52, %v17554_v40  ;;  %v6947_v60 = vadd.f32 %v6922_v25, %v17555_v49  ;;  %v6948_v51 = vadd.f32 %v6923_v24, %v17556_v31  ;;  %v17562_v47 = vld [vmem:[#allocation30_spill] sm:$0xff]  ;;  %v17563_v22 = vld [vmem:[#allocation32_spill] sm:$0xff]  ;;  %v17564_v63 = vld [vmem:[#allocation35_spill] sm:$0xff] }
 0xb39   :  { %v6949_v36 = vadd.f32 %v6924_v57, %v17557_v4  ;;  %v6950_v59 = vadd.f32 %v6925_v43, %v17558_v1  ;;  %v6951_v5 = vadd.f32 %v6926_v37, %v17559_v0  ;;  %v6952_v26 = vadd.f32 %v6927_v61, %v17560_v18  ;;  %v17565_v52 = vld [vmem:[#allocation36_spill] sm:$0xff]  ;;  %v17566_v25 = vld [vmem:[#allocation37_spill] sm:$0xff]  ;;  %v17567_v31 = vld [vmem:[#allocation38_spill] sm:$0xff] }
 0xb3a   :  { %v6953_v58 = vadd.f32 %v6928_v30, %v17561_v29  ;;  %v6954_v23 = vadd.f32 %v6929_v32, %v17562_v47  ;;  %v6955_v48 = vadd.f32 %v6930_v19, %v17563_v22  ;;  %v6956_v40 = vadd.f32 %v6931_v45, %v17564_v63  ;;  %v17568_v4 = vld [vmem:[#allocation39_spill] sm:$0xff] }
 0xb3b   :  { %v6957_v49 = vadd.f32 %v6932_v50, %v17565_v52  ;;  %v6958_v24 = vadd.f32 %v6933_v10, %v17566_v25  ;;  %v6959_v57 = vadd.f32 %v6934_v13, %v17567_v31  ;;  %v6960_v43 = vadd.f32 %v6935_v8, %v17568_v4 }
 0xb3c   :  { %v6962_v1 = vmax.f32 %v6937_v28, 0.0  ;;  %v6963_v37 = vmax.f32 %v6938_v34, 0.0  ;;  %v6964_v0 = vmax.f32 %v6939_v39, 0.0  ;;  %v6965_v61 = vmax.f32 %v6940_v35, 0.0 }
 0xb3d   :  { %v6966_v18 = vmax.f32 %v6941_v41, 0.0  ;;  %v6967_v30 = vmax.f32 %v6942_v38, 0.0  ;;  %v6968_v29 = vmax.f32 %v6943_v21, 0.0  ;;  %v6969_v32 = vmax.f32 %v6944_v16, 0.0 }
 0xb3e   :  { %v6970_v47 = vmax.f32 %v6945_v27, 0.0  ;;  %v6971_v19 = vmax.f32 %v6946_v42, 0.0  ;;  %v6972_v22 = vmax.f32 %v6947_v60, 0.0  ;;  %v6973_v45 = vmax.f32 %v6948_v51, 0.0 }
 0xb3f   :  { %v6974_v63 = vmax.f32 %v6949_v36, 0.0  ;;  %v6975_v50 = vmax.f32 %v6950_v59, 0.0  ;;  %v6976_v52 = vmax.f32 %v6951_v5, 0.0  ;;  %v6977_v10 = vmax.f32 %v6952_v26, 0.0  ;;  %v17574_v26 = vld [vmem:[#allocation33_spill] sm:$0xff] }
 0xb40   :  { %v6978_v25 = vmax.f32 %v6953_v58, 0.0  ;;  %v6979_v13 = vmax.f32 %v6954_v23, 0.0  ;;  %v6980_v31 = vmax.f32 %v6955_v48, 0.0  ;;  %v6981_v8 = vmax.f32 %v6956_v40, 0.0  ;;  %v17575_v58 = vld [vmem:[#allocation34_spill] sm:$0xff] }
 0xb41   :  { %v6982_v28 = vmax.f32 %v6957_v49, 0.0  ;;  %v6983_v34 = vmax.f32 %v6958_v24, 0.0  ;;  %v6984_v39 = vmax.f32 %v6959_v57, 0.0  ;;  %v6985_v35 = vmax.f32 %v6960_v43, 0.0  ;;  %v17576_v49 = vld [vmem:[#allocation40_spill] sm:$0xff] }
 0xb42   :  { %v6987_v41 = vmul.f32 %v6962_v1, %v14526_v62  ;;  %v6988_v38 = vmul.f32 %v6963_v37, %v14546_v7  ;;  %v6989_v21 = vmul.f32 %v6964_v0, %v14548_v9  ;;  %v6990_v16 = vmul.f32 %v6965_v61, %v14528_v2  ;;  %v17569_v9 = vld [vmem:[#allocation10_spill] sm:$0xff]  ;;  %v13743_v61 = vld [vmem:[%s17435_s4 + $0xe0] sm:$0xff]  }
 0xb43   :  { %v6991_v27 = vmul.f32 %v6966_v18, %v14550_v17  ;;  %v6992_v42 = vmul.f32 %v6967_v30, %v14530_v3  ;;  %v6993_v60 = vmul.f32 %v6968_v29, %v14552_v33  ;;  %v6994_v51 = vmul.f32 %v6969_v32, %v14532_v6  ;;  %v17570_v33 = vld [vmem:[#allocation13_spill] sm:$0xff]  ;;  %v13744_v29 = vld [vmem:[%s17435_s4 + $0xa0] sm:$0xff]   ;;  %12630 = vmatprep.subr.bf16.mxu0 %v13743_v61 }
 0xb44   :  { %v6995_v36 = vmul.f32 %v6970_v47, %v14554_v11  ;;  %v6996_v59 = vmul.f32 %v6971_v19, %v14534_v14  ;;  %v6997_v62 = vmul.f32 %v6972_v22, %v14556_v44  ;;  %v6998_v7 = vmul.f32 %v6973_v45, %v14536_v15  ;;  %7012 = vst.msk [vmem:[#allocation2 + $0x13] sm:$0xff] %vm69_vm3, %v6987_v41  ;;  %v17571_v44 = vld [vmem:[#allocation14_spill] sm:$0xff]  ;;  %v17577_v47 = vld [vmem:[#allocation9_spill] sm:$0xff] }
 0xb45   :  { %7013 = vst.msk [vmem:[#allocation2 + $0x1b] sm:$0xff] %vm69_vm3, %v6988_v38  ;;  %7014 = vst.msk [vmem:[#allocation2 + $0x23] sm:$0xff] %vm69_vm3, %v6989_v21  ;;  %v6999_v2 = vmul.f32 %v6974_v63, %v14558_v54  ;;  %v7000_v3 = vmul.f32 %v6975_v50, %v14538_v46  ;;  %v7001_v6 = vmul.f32 %v6976_v52, %v14566_v56  ;;  %v17573_v56 = vld [vmem:[#allocation24_spill] sm:$0xff]  ;;  %12631 = vmatpush3.bf16.msra.mxu0 %v13744_v29 }
 0xb46   :  { %7015 = vst.msk [vmem:[#allocation2 + $0x2b] sm:$0xff] %vm69_vm3, %v6990_v16  ;;  %v7002_v14 = vmul.f32 %v6977_v10, %v14540_v20  ;;  %7016 = vst.msk [vmem:[#allocation2 + $0x33] sm:$0xff] %vm69_vm3, %v6991_v27  ;;  %v7003_v15 = vmul.f32 %v6978_v25, %v17535_v55  ;;  %v7004_v17 = vmul.f32 %v6979_v13, %v17569_v9  ;;  %v17572_v20 = vld [vmem:[#allocation23_spill] sm:$0xff] }
 0xb47   :  { %7017 = vst.msk [vmem:[#allocation2 + $0x3b] sm:$0xff] %vm69_vm3, %v6992_v42  ;;  %7018 = vst.msk [vmem:[#allocation2 + $0x43] sm:$0xff] %vm69_vm3, %v6993_v60  ;;  %v7005_v11 = vmul.f32 %v6980_v31, %v17570_v33  ;;  %v7006_v46 = vmul.f32 %v6981_v8, %v17571_v44  ;;  %v7007_v54 = vmul.f32 %v6982_v28, %v17572_v20  ;;  %v13745_v8 = vld [vmem:[%s17435_s4 + $0x40] sm:$0xff]   ;;  %v13746_v28 = vld [vmem:[%s17435_s4 + $0xe8] sm:$0xff]  }
 0xb48   :  { %7019 = vst.msk [vmem:[#allocation2 + $0x4b] sm:$0xff] %vm69_vm3, %v6994_v51  ;;  %7020 = vst.msk [vmem:[#allocation2 + $0x53] sm:$0xff] %vm69_vm3, %v6995_v36  ;;  %v7008_v5 = vmul.f32 %v6983_v34, %v17573_v56  ;;  %v7009_v55 = vmul.f32 %v6984_v39, %v17574_v26  ;;  %v7010_v23 = vmul.f32 %v6985_v35, %v17575_v58  ;;  %v13747_v39 = vld [vmem:[%s17435_s4] sm:$0xff]   ;;  %v13748_v35 = vld [vmem:[%s17435_s4 + $0xa8] sm:$0xff]   ;;  %12594 = vmatprep.subr.bf16.mxu1 %v13745_v8 }
 0xb49   :  { %7021 = vst.msk [vmem:[#allocation2 + $0x5b] sm:$0xff] %vm69_vm3, %v6996_v59  ;;  %7022 = vst.msk [vmem:[#allocation2 + $0x63] sm:$0xff] %vm69_vm3, %v6997_v62  ;;  %v6911_v48 = vadd.f32 %v16586_v53, %v16592_v12  ;;  %12632 = vmatprep.subr.bf16.mxu0 %v13746_v28  ;;  %12595 = vmatpush3.bf16.msra.mxu1 %v13747_v39  ;;  %v13749_v60 = vld [vmem:[%s17435_s4 + $0x48] sm:$0xff]   ;;  %v13754_v58 = vld [vmem:[%s17435_s4 + $0xf0] sm:$0xff]  }
 0xb4a   :  { %7023 = vst.msk [vmem:[#allocation2 + $0x6b] sm:$0xff] %vm69_vm3, %v6998_v7  ;;  %7024 = vst.msk [vmem:[#allocation2 + $0x73] sm:$0xff] %vm69_vm3, %v6999_v2  ;;  %12633 = vmatpush3.bf16.msra.mxu0 %v13748_v35  ;;  %v13750_v51 = vld [vmem:[%s17435_s4 + $0x8] sm:$0xff]   ;;  %12596 = vmatprep.subr.bf16.mxu1 %v13749_v60  ;;  %v13759_v28 = vld [vmem:[%s17435_s4 + $0x20] sm:$0xff]  }
 0xb4b   :  { %7025 = vst.msk [vmem:[#allocation2 + $0x7b] sm:$0xff] %vm69_vm3, %v7000_v3  ;;  %7026 = vst.msk [vmem:[#allocation2 + $0x83] sm:$0xff] %vm69_vm3, %v7001_v6  ;;  %v6936_v24 = vadd.f32 %v6911_v48, %v17576_v49  ;;  %12634 = vmatprep.subr.bf16.mxu0 %v13754_v58 }
 0xb4c   :  { %7027 = vst.msk [vmem:[#allocation2 + $0x8b] sm:$0xff] %vm69_vm3, %v7002_v14  ;;  %7028 = vst.msk [vmem:[#allocation2 + $0x93] sm:$0xff] %vm69_vm3, %v7003_v15  ;;  %v7448_v40 = vld [vmem:[#allocation2 + $0x20] ss:$2 sm:$0xf]  ;;  %v13751_v14 = vld [vmem:[%s17435_s4 + $0x50] sm:$0xff]  }
 0xb4d   :  { %7029 = vst.msk [vmem:[#allocation2 + $0x9b] sm:$0xff] %vm69_vm3, %v7004_v17  ;;  %7030 = vst.msk [vmem:[#allocation2 + $0xa3] sm:$0xff] %vm69_vm3, %v7005_v11  ;;  %v7449_v57 = vpack.c.bf16 %v7448_v40, %v7448_v40  ;;  %v7455_v4 = vld [vmem:[#allocation2 + $0x34] ss:$2 sm:$0xf]  ;;  %v6961_v12 = vmax.f32 %v6936_v24, 0.0  ;;  %12597 = vmatpush3.bf16.msra.mxu1 %v13750_v51 }
 0xb4e   :  { %7031 = vst.msk [vmem:[#allocation2 + $0xab] sm:$0xff] %vm69_vm3, %v7006_v46  ;;  %7035 = vst.msk [vmem:[#allocation2 + $0xcb] sm:$0xff] %vm69_vm3, %v7010_v23  ;;  %v7456_v43 = vpack.c.bf16 %v7455_v4, %v7455_v4  ;;  %v7335_v1 = vld [vmem:[#allocation2 + $0x17] ss:$2 sm:$0xf]  ;;  %12598 = vmatprep.subr.bf16.mxu1 %v13751_v14 }
 0xb4f   :  { %7032 = vst.msk [vmem:[#allocation2 + $0xb3] sm:$0xff] %vm69_vm3, %v7007_v54  ;;  %7033 = vst.msk [vmem:[#allocation2 + $0xbb] sm:$0xff] %vm69_vm3, %v7008_v5  ;;  %7451 = vrot.lane.b32.xlu0 %v7449_v57, %s13936_s21  ;;  %v7336_v18 = vpack.c.bf16 %v7335_v1, %v7335_v1  ;;  %v7343_v30 = vld [vmem:[#allocation2 + $0x2b] ss:$2 sm:$0xf]  ;;  %v6986_v19 = vmul.f32 %v6961_v12, %v17577_v47  ;;  %v13755_v24 = vld [vmem:[%s17435_s4 + $0x18] sm:$0xff]  }
 0xb50   :  { %7034 = vst.msk [vmem:[#allocation2 + $0xc3] sm:$0xff] %vm69_vm3, %v7009_v55  ;;  %v7472_v37 = vld [vmem:[#allocation2 + $0x5c] ss:$2 sm:$0xf]  ;;  %v7458_v0 = vrot.slane %v7456_v43, 6  ;;  %v7344_v45 = vpack.c.bf16 %v7343_v30, %v7343_v30  ;;  %v13752_v15 = vld [vmem:[%s17435_s4 + $0x10] sm:$0xff]  }
 0xb51   :  { %v7473_v53 = vpack.c.bf16 %v7472_v37, %v7472_v37  ;;  %v7215_v32 = vld [vmem:[#allocation2 + $0x15] ss:$2 sm:$0xf]  ;;  %7011 = vst.msk [vmem:[#allocation2 + $0xb] sm:$0xff] %vm69_vm3, %v6986_v19  ;;  %12599 = vmatpush3.bf16.msra.mxu1 %v13752_v15 }
 0xb52   :  { %7459 = vrot.lane.b32.xlu1 %v7458_v0, %s13936_s21  ;;  %v7216_v63 = vpack.c.bf16 %v7215_v32, %v7215_v32  ;;  %v7361_v50 = vld [vmem:[#allocation2 + $0x53] ss:$2 sm:$0xf]  ;;  %v7480_v52 = vld [vmem:[#allocation2 + $0x84] ss:$2 sm:$0xf] }
 0xb53   :  { %7338 = vrot.lane.b32.xlu0 %v7336_v18, %s13936_s21  ;;  %v7475_v22 = vrot.slane %v7473_v53, 2  ;;  %v7346_v10 = vrot.slane %v7344_v45, 6  ;;  %v7362_v25 = vpack.c.bf16 %v7361_v50, %v7361_v50  ;;  %v7481_v13 = vpack.c.bf16 %v7480_v52, %v7480_v52  ;;  %v7223_v31 = vld [vmem:[#allocation2 + $0x29] ss:$2 sm:$0xf]  ;;  %v13753_v55 = vld [vmem:[%s17435_s4 + $0x58] sm:$0xff]  }
 0xb54   :  { %v7224_v38 = vpack.c.bf16 %v7223_v31, %v7223_v31  ;;  %v7241_v16 = vld [vmem:[#allocation2 + $0x51] ss:$2 sm:$0xf]  ;;  %v7370_v27 = vld [vmem:[#allocation2 + $0x7b] ss:$2 sm:$0xf]  ;;  %12600 = vmatprep.subr.bf16.mxu1 %v13753_v55 }
 0xb55   :  { %v7364_v41 = vrot.slane %v7362_v25, 2  ;;  %v7487_v42 = vld [vmem:[#allocation2 + $0x98] ss:$2 sm:$0xf]  ;;  %v7242_v59 = vpack.c.bf16 %v7241_v16, %v7241_v16  ;;  %v7371_v7 = vpack.c.bf16 %v7370_v27, %v7370_v27  ;;  %v13756_v57 = vld [vmem:[%s17435_s4 + $0xb0] sm:$0xff]   ;;  %12601 = vmatpush3.bf16.msra.mxu1 %v13755_v24  ;;  %v13757_v52 = vld [vmem:[%s17435_s4 + $0x60] sm:$0xff]  }
 0xb56   :  { %7476 = vrot.lane.b32.xlu1 %v7475_v22, %s13936_s21  ;;  %v7226_v36 = vrot.slane %v7224_v38, 6  ;;  %v7250_v2 = vld [vmem:[#allocation2 + $0x79] ss:$2 sm:$0xf]  ;;  %v7488_v3 = vpack.c.bf16 %v7487_v42, %v7487_v42  ;;  %12635 = vmatpush3.bf16.msra.mxu0 %v13756_v57 }
 0xb57   :  { %7218 = vrot.lane.b32.xlu0 %v7216_v63, %s13936_s21  ;;  %v7504_v62 = vld [vmem:[#allocation2 + $0xc0] ss:$2 sm:$0xf]  ;;  %v7463_v6 = vld [vmem:[#allocation2 + $0x48] ss:$2 sm:$0xf]  ;;  %v7251_v44 = vpack.c.bf16 %v7250_v2, %v7250_v2  ;;  %12602 = vmatprep.subr.bf16.mxu1 %v13757_v52 }
 0xb58   :  { %v7091_v34 = vld [vmem:[#allocation2 + $0xc] ss:$2 sm:$0xf]  ;;  %v7505_v17 = vpack.c.bf16 %v7504_v62, %v7504_v62  ;;  %v7244_v33 = vrot.slane %v7242_v59, 2  ;;  %v7464_v46 = vpack.c.bf16 %v7463_v6, %v7463_v6  ;;  %v7490_v56 = vrot.slane %v7488_v3, 6 }
 0xb59   :  { %v7092_v21 = vpack.c.bf16 %v7091_v34, %v7091_v34  ;;  %v7130_v9 = vld [vmem:[#allocation2 + $0x70] ss:$2 sm:$0xf]  ;;  %v7100_v11 = vld [vmem:[#allocation2 + $0x20] ss:$2 sm:$0xf]  ;;  %12603 = vmatpush3.bf16.msra.mxu1 %v13759_v28 }
 0xb5a   :  { %7347 = vrot.lane.b32.xlu1 %v7346_v10, %s13936_s21  ;;  %v7352_v20 = vld [vmem:[#allocation2 + $0x3f] ss:$2 sm:$0xf]  ;;  %v7407_v26 = vld [vmem:[#allocation2 + $0x33] ss:$2 sm:$0xf]  ;;  %v7131_v23 = vpack.c.bf16 %v7130_v9, %v7130_v9  ;;  %v7101_v4 = vpack.c.bf16 %v7100_v11, %v7100_v11 }
 0xb5b   :  { %7483 = vrot.lane.b32.xlu0 %v7481_v13, %s13936_s21  ;;  %v7404_v54 = vld [vmem:[#allocation2 + $0x1f] ss:$2 sm:$0xf]  ;;  %v7507_v48 = vrot.slane %v7505_v17, 2  ;;  %v7408_v40 = vpack.c.bf16 %v7407_v26, %v7407_v26  ;;  %v7353_v43 = vpack.c.bf16 %v7352_v20, %v7352_v20  ;;  %v7466_v53 = vrot.slane %v7464_v46, 4  ;;  %v13762_v2 = vld [vmem:[%s17435_s4 + $0x28] sm:$0xff]  }
 0xb5c   :  { %v7405_v5 = vpack.c.bf16 %v7404_v54, %v7404_v54  ;;  %v7285_v49 = vld [vmem:[#allocation2 + $0x16] ss:$2 sm:$0xf]  ;;  %v7420_v37 = vld [vmem:[#allocation2 + $0x5b] ss:$2 sm:$0xf] }
 0xb5d   :  { %v7286_v1 = vpack.c.bf16 %v7285_v49, %v7285_v49  ;;  %v7165_v0 = vld [vmem:[#allocation2 + $0xd] ss:$2 sm:$0xf]  ;;  %v7410_v12 = vrot.slane %v7408_v40, 6  ;;  %v7421_v61 = vpack.c.bf16 %v7420_v37, %v7420_v37  ;;  %v13758_v10 = vld [vmem:[%s17435_s4 + $0xf8] sm:$0xff]   ;;  %v7103_v39 = vrot.slane %v7101_v4, 6 }
 0xb5e   :  { %7365 = vrot.lane.b32.xlu1 %v7364_v41, %s13936_s21  ;;  %7406 = vst.msk [vmem:[#allocation5 + $0x18] sm:$0x3] %vm7039_vm8, %v7405_v5  ;;  %v7166_v18 = vpack.c.bf16 %v7165_v0, %v7165_v0  ;;  %v7289_v30 = vld [vmem:[#allocation2 + $0x2a] ss:$2 sm:$0xf]  ;;  %v13760_v34 = vld [vmem:[%s17435_s4 + $0xb8] sm:$0xff]   ;;  %12636 = vmatprep.subr.bf16.mxu0 %v13758_v10 }
 0xb5f   :  { %7094 = vrot.lane.b32.xlu0 %v7092_v21, %s13936_s21  ;;  %7287 = vst.msk [vmem:[#allocation5 + $0x10] sm:$0x3] %vm7039_vm8, %v7286_v1  ;;  %v7290_v29 = vpack.c.bf16 %v7289_v30, %v7289_v30  ;;  %v7426_v32 = vld [vmem:[#allocation2 + $0x83] ss:$2 sm:$0xf]  ;;  %v7423_v22 = vrot.slane %v7421_v61, 2  ;;  %12637 = vmatpush3.bf16.msra.mxu0 %v13760_v34 }
 0xb60   :  { %v7303_v47 = vld [vmem:[#allocation2 + $0x52] ss:$2 sm:$0xf]  ;;  %v16754_v19 = vld [vmem:[#allocation2 + $0x48] ss:$2 sm:$0xf]  ;;  %v7427_v45 = vpack.c.bf16 %v7426_v32, %v7426_v32 }
 0xb61   :  { %7412 = vst.msk [vmem:[#allocation5 + $0x18] sm:$0xc] %vm7047_vm9, %v7410_v12  ;;  %v7304_v63 = vpack.c.bf16 %v7303_v47, %v7303_v47  ;;  %v7037_v50 = vld [vmem:[#allocation2 + $0xb] ss:$2 sm:$0xf]  ;;  %v7292_v13 = vrot.slane %v7290_v29, 6  ;;  %v7121_v3 = vpack.c.bf16 %v16754_v19, %v16754_v19 }
 0xb62   :  { %7227 = vrot.lane.b32.xlu1 %v7226_v36, %s13936_s21  ;;  %7167 = vst.msk [vmem:[#allocation5 + $0x8] sm:$0x3] %vm7039_vm8, %v7166_v18  ;;  %v16764_v25 = vld [vmem:[#allocation2 + $0x3d] ss:$2 sm:$0xf]  ;;  %v7038_v31 = vpack.c.bf16 %v7037_v50, %v7037_v50  ;;  %v7355_v35 = vrot.slane %v7353_v43, 4 }
 0xb63   :  { %7373 = vrot.lane.b32.xlu0 %v7371_v7, %s13936_s21  ;;  %v7169_v8 = vld [vmem:[#allocation2 + $0x21] ss:$2 sm:$0xf]  ;;  %7425 = vst.msk [vmem:[#allocation5 + $0x18] sm:$0xc0] %vm7063_vm10, %v7423_v22  ;;  %v7306_v41 = vrot.slane %v7304_v63, 2  ;;  %v7233_v17 = vpack.c.bf16 %v16764_v25, %v16764_v25 }
 0xb64   :  { %7428 = vst.msk [vmem:[#allocation5 + $0x40] sm:$0x3] %vm7039_vm8, %v7427_v45  ;;  %v7170_v38 = vpack.c.bf16 %v7169_v8, %v7169_v8  ;;  %v7310_v21 = vld [vmem:[#allocation2 + $0x7a] ss:$2 sm:$0xf]  ;;  %v13761_v7 = vld [vmem:[%s17435_s4 + $0x68] sm:$0xff]  }
 0xb65   :  { %7294 = vst.msk [vmem:[#allocation5 + $0x10] sm:$0xc] %vm7047_vm9, %v7292_v13  ;;  %v7311_v16 = vpack.c.bf16 %v7310_v21, %v7310_v21  ;;  %v7183_v27 = vld [vmem:[#allocation2 + $0x49] ss:$2 sm:$0xf]  ;;  %12604 = vmatprep.subr.bf16.mxu1 %v13761_v7  ;;  %v13763_v5 = vld [vmem:[%s17435_s4 + $0x70] sm:$0xff]  }
 0xb66   :  { %7245 = vrot.lane.b32.xlu1 %v7244_v33, %s13936_s21  ;;  %7040 = vst.msk [vmem:[#allocation5] sm:$0x3] %vm7039_vm8, %v7038_v31  ;;  %v7190_v42 = vld [vmem:[#allocation2 + $0x71] ss:$2 sm:$0xf]  ;;  %v7172_v51 = vrot.slane %v7170_v38, 6  ;;  %v7184_v36 = vpack.c.bf16 %v7183_v27, %v7183_v27  ;;  %12605 = vmatpush3.bf16.msra.mxu1 %v13762_v2 }
 0xb67   :  { %7253 = vrot.lane.b32.xlu0 %v7251_v44, %s13936_s21  ;;  %v16778_v60 = vld [vmem:[#allocation2 + $0x8f] ss:$2 sm:$0xf]  ;;  %7308 = vst.msk [vmem:[#allocation5 + $0x10] sm:$0xc0] %vm7063_vm10, %v7306_v41  ;;  %v7191_v59 = vpack.c.bf16 %v7190_v42, %v7190_v42  ;;  %v7123_v40 = vrot.slane %v7121_v3, 2  ;;  %12606 = vmatprep.subr.bf16.mxu1 %v13763_v5 }
 0xb68   :  { %v7429_v62 = vld [vmem:[#allocation2 + $0x97] ss:$2 sm:$0xf]  ;;  %v16789_v6 = vld [vmem:[#allocation2 + $0xac] ss:$2 sm:$0xf]  ;;  %v7379_v49 = vpack.c.bf16 %v16778_v60, %v16778_v60 }
 0xb69   :  { %7312 = vst.msk [vmem:[#allocation5 + $0x38] sm:$0x3] %vm7039_vm8, %v7311_v16  ;;  %v7430_v14 = vpack.c.bf16 %v7429_v62, %v7429_v62  ;;  %v7066_v15 = vld [vmem:[#allocation2 + $0x6f] ss:$2 sm:$0xf]  ;;  %v7186_v33 = vrot.slane %v7184_v36, 2  ;;  %v7496_v37 = vpack.c.bf16 %v16789_v6, %v16789_v6 }
 0xb6a   :  { %7491 = vrot.lane.b32.xlu1 %v7490_v56, %s13936_s21  ;;  %v7442_v9 = vld [vmem:[#allocation2 + $0xbf] ss:$2 sm:$0xf]  ;;  %7174 = vst.msk [vmem:[#allocation5 + $0x8] sm:$0xc] %vm7047_vm9, %v7172_v51  ;;  %v7067_v11 = vpack.c.bf16 %v7066_v15, %v7066_v15  ;;  %v13764_v26 = vld [vmem:[%s17435_s4 + $0x30] sm:$0xff]  }
 0xb6b   :  { %7133 = vrot.lane.b32.xlu0 %v7131_v23, %s13936_s21  ;;  %7192 = vst.msk [vmem:[#allocation5 + $0x30] sm:$0x3] %vm7039_vm8, %v7191_v59  ;;  %v7443_v44 = vpack.c.bf16 %v7442_v9, %v7442_v9  ;;  %v7413_v46 = vld [vmem:[#allocation2 + $0x47] ss:$2 sm:$0xf]  ;;  %v7432_v20 = vrot.slane %v7430_v14, 6  ;;  %12607 = vmatpush3.bf16.msra.mxu1 %v13764_v26 }
 0xb6c   :  { %v7414_v54 = vpack.c.bf16 %v7413_v46, %v7413_v46  ;;  %v7042_v56 = vld [vmem:[#allocation2 + $0x1f] ss:$2 sm:$0xf]  ;;  %v16804_v55 = vld [vmem:[#allocation2 + $0xb7] ss:$2 sm:$0xf] }
 0xb6d   :  { %7188 = vst.msk [vmem:[#allocation5 + $0x8] sm:$0xc0] %vm7063_vm10, %v7186_v33  ;;  %v7445_v58 = vrot.slane %v7443_v44, 2  ;;  %v7043_v23 = vpack.c.bf16 %v7042_v56, %v7042_v56  ;;  %v7110_v24 = vld [vmem:[#allocation2 + $0x34] ss:$2 sm:$0xf]  ;;  %v7397_v52 = vpack.c.bf16 %v16804_v55, %v16804_v55 }
 0xb6e   :  { %7508 = vrot.lane.b32.xlu1 %v7507_v48, %s13936_s21  ;;  %7068 = vst.msk [vmem:[#allocation5 + $0x28] sm:$0x3] %vm7039_vm8, %v7067_v11  ;;  %v7296_v48 = vld [vmem:[#allocation2 + $0x3e] ss:$2 sm:$0xf]  ;;  %v7416_v57 = vrot.slane %v7414_v54, 4  ;;  %v7111_v28 = vpack.c.bf16 %v7110_v24, %v7110_v24 }
 0xb6f   :  { %7467 = vrot.lane.b32.xlu0 %v7466_v53, %s13936_s21  ;;  %7434 = vst.msk [vmem:[#allocation5 + $0x40] sm:$0xc] %vm7047_vm9, %v7432_v20  ;;  %v7297_v4 = vpack.c.bf16 %v7296_v48, %v7296_v48  ;;  %v7058_v43 = vld [vmem:[#allocation2 + $0x47] ss:$2 sm:$0xf]  ;;  %v7235_v1 = vrot.slane %v7233_v17, 4 }
 0xb70   :  { %7447 = vst.msk [vmem:[#allocation5 + $0x40] sm:$0xc0] %vm7063_vm10, %v7445_v58  ;;  %v7045_v0 = vrot.slane %v7043_v23, 6  ;;  %v7059_v53 = vpack.c.bf16 %v7058_v43, %v7058_v43  ;;  %v7176_v12 = vld [vmem:[#allocation2 + $0x35] ss:$2 sm:$0xf] }
 0xb71   :  { %7418 = vst.msk [vmem:[#allocation5 + $0x18] sm:$0x30] %vm7055_vm11, %v7416_v57  ;;  %v7299_v61 = vrot.slane %v7297_v4, 4  ;;  %v7177_v18 = vpack.c.bf16 %v7176_v12, %v7176_v12  ;;  %v7314_v30 = vld [vmem:[#allocation2 + $0x8e] ss:$2 sm:$0xf] }
 0xb72   :  { %7104 = vrot.lane.b32.xlu1 %v7103_v39, %s13936_s21  ;;  %v13765_v29 = vld [vmem:[%s17435_s4 + $0x78] sm:$0xff]   ;;  %v16822_v32 = vld [vmem:[%s17435_s4 + $0x100] sm:$0xff]   ;;  %v7258_v47 = vld [vmem:[#allocation2 + $0x8d] ss:$2 sm:$0xf]  ;;  %v7061_v19 = vrot.slane %v7059_v53, 2  ;;  %v7315_v22 = vpack.c.bf16 %v7314_v30, %v7314_v30 }
 0xb73   :  { %7356 = vrot.lane.b32.xlu0 %v7355_v35, %s13936_s21  ;;  %7048 = vst.msk [vmem:[#allocation5] sm:$0xc] %vm7047_vm9, %v7045_v0  ;;  %v7435_v45 = vld [vmem:[#allocation2 + $0xab] ss:$2 sm:$0xf]  ;;  %v13767_v63 = vld [vmem:[%s17435_s4 + $0x38] sm:$0xff]   ;;  %12608 = vmatprep.subr.bf16.mxu1 %v13765_v29  ;;  %v7259_v62 = vpack.c.bf16 %v7258_v47, %v7258_v47 }
 0xb74   :  { %v7381_v50 = vrot.slane %v7379_v49, 6  ;;  %v7387_v10 = vld [vmem:[#allocation2 + $0xa3] ss:$2 sm:$0xf]  ;;  %7301 = vst.msk [vmem:[#allocation5 + $0x10] sm:$0x30] %vm7055_vm11, %v7299_v61  ;;  %v7436_v13 = vpack.c.bf16 %v7435_v45, %v7435_v45  ;;  %13035 = vmatprep.subr.bf16.mxu0 %v16822_v32  ;;  %12609 = vmatpush3.bf16.msra.mxu1 %v13767_v63 }
 0xb75   :  { %v7179_v25 = vrot.slane %v7177_v18, 4  ;;  %v7328_v31 = vld [vmem:[#allocation2 + $0xb6] ss:$2 sm:$0xf]  ;;  %v7498_v8 = vrot.slane %v7496_v37, 4  ;;  %v7317_v34 = vrot.slane %v7315_v22, 6  ;;  %v7388_v14 = vpack.c.bf16 %v7387_v10, %v7387_v10 }
 0xb76   :  { %7124 = vrot.lane.b32.xlu1 %v7123_v40, %s13936_s21  ;;  %7064 = vst.msk [vmem:[#allocation5] sm:$0xc0] %vm7063_vm10, %v7061_v19  ;;  %v7329_v39 = vpack.c.bf16 %v7328_v31, %v7328_v31  ;;  %v7050_v35 = vld [vmem:[#allocation2 + $0x33] ss:$2 sm:$0xf]  ;;  %v7438_v21 = vrot.slane %v7436_v13, 4 }
 0xb77   :  { %7236 = vrot.lane.b32.xlu0 %v7235_v1, %s13936_s21  ;;  %v7276_v41 = vld [vmem:[#allocation2 + $0xb5] ss:$2 sm:$0xf]  ;;  %v7267_v38 = vld [vmem:[#allocation2 + $0xa1] ss:$2 sm:$0xf]  ;;  %v7051_v16 = vpack.c.bf16 %v7050_v35, %v7050_v35 }
 0xb78   :  { %7181 = vst.msk [vmem:[#allocation5 + $0x8] sm:$0x30] %vm7055_vm11, %v7179_v25  ;;  %v7194_v27 = vld [vmem:[#allocation2 + $0x85] ss:$2 sm:$0xf]  ;;  %v7331_v42 = vrot.slane %v7329_v39, 2  ;;  %v7277_v46 = vpack.c.bf16 %v7276_v41, %v7276_v41  ;;  %v7268_v20 = vpack.c.bf16 %v7267_v38, %v7267_v38 }
 0xb79   :  { %7319 = vst.msk [vmem:[#allocation5 + $0x38] sm:$0xc] %vm7047_vm9, %v7317_v34  ;;  %v7195_v60 = vpack.c.bf16 %v7194_v27, %v7194_v27  ;;  %v7321_v51 = vld [vmem:[#allocation2 + $0xa2] ss:$2 sm:$0xf]  ;;  %v17578_v36 = vmov 0.0|0.0  }
 0xb7a   :  { %7382 = vrot.lane.b32.xlu1 %v7381_v50, %s13936_s21  ;;  %13429 = vmatprep.subr.bf16.mxu1 %v17578_v36  ;;  %v7399_v59 = vrot.slane %v7397_v52, 2  ;;  %7440 = vst.msk [vmem:[#allocation5 + $0x40] sm:$0x30] %vm7055_vm11, %v7438_v21  ;;  %v7053_v7 = vrot.slane %v7051_v16, 4  ;;  %v7322_v2 = vpack.c.bf16 %v7321_v51, %v7321_v51  ;;  %v7113_v6 = vrot.slane %v7111_v28, 4 }
 0xb7b   :  { %7499 = vrot.lane.b32.xlu0 %v7498_v8, %s13936_s21  ;;  %v7208_v3 = vld [vmem:[#allocation2 + $0xad] ss:$2 sm:$0xf]  ;;  %7333 = vst.msk [vmem:[#allocation5 + $0x38] sm:$0xc0] %vm7063_vm10, %v7331_v42  ;;  %v7197_v15 = vrot.slane %v7195_v60, 6 }
 0xb7c   :  { %v7209_v9 = vpack.c.bf16 %v7208_v3, %v7208_v3  ;;  %v7201_v17 = vld [vmem:[#allocation2 + $0x99] ss:$2 sm:$0xf]  ;;  %7056 = vst.msk [vmem:[#allocation5] sm:$0x30] %vm7055_vm11, %v7053_v7  ;;  %v7324_v33 = vrot.slane %v7322_v2, 4 }
 0xb7d   :  { %v7202_v11 = vpack.c.bf16 %v7201_v17, %v7201_v17  ;;  %v7070_v44 = vld [vmem:[#allocation2 + $0x83] ss:$2 sm:$0xf]  ;;  %v7138_v54 = vld [vmem:[#allocation2 + $0x84] ss:$2 sm:$0xf] }
 0xb7e   :  { %7400 = vrot.lane.b32.xlu1 %v7399_v59, %s13936_s21  ;;  %7199 = vst.msk [vmem:[#allocation5 + $0x30] sm:$0xc] %vm7047_vm9, %v7197_v15  ;;  %v7211_v56 = vrot.slane %v7209_v9, 2  ;;  %v7071_v5 = vpack.c.bf16 %v7070_v44, %v7070_v44  ;;  %v7077_v26 = vld [vmem:[#allocation2 + $0x97] ss:$2 sm:$0xf]  ;;  %v7139_v29 = vpack.c.bf16 %v7138_v54, %v7138_v54 }
 0xb7f   :  { %7114 = vrot.lane.b32.xlu0 %v7113_v6, %s13936_s21  ;;  %v7261_v55 = vrot.slane %v7259_v62, 6  ;;  %v7147_v58 = vld [vmem:[#allocation2 + $0x98] ss:$2 sm:$0xf]  ;;  %7326 = vst.msk [vmem:[#allocation5 + $0x38] sm:$0x30] %vm7055_vm11, %v7324_v33  ;;  %v7078_v48 = vpack.c.bf16 %v7077_v26, %v7077_v26 }
 0xb80   :  { %v7204_v23 = vrot.slane %v7202_v11, 4  ;;  %v7084_v40 = vld [vmem:[#allocation2 + $0xab] ss:$2 sm:$0xf]  ;;  %v7390_v49 = vrot.slane %v7388_v14, 4  ;;  %v7073_v24 = vrot.slane %v7071_v5, 6  ;;  %v7148_v45 = vpack.c.bf16 %v7147_v58, %v7147_v58 }
 0xb81   :  { %7213 = vst.msk [vmem:[#allocation5 + $0x30] sm:$0xc0] %vm7063_vm10, %v7211_v56  ;;  %v7085_v57 = vpack.c.bf16 %v7084_v40, %v7084_v40  ;;  %v7512_v4 = vld [vmem:[#allocation2 + $0x21] ss:$2 sm:$0xf]  ;;  %v7080_v43 = vrot.slane %v7078_v48, 4 }
 0xb82   :  { %7262 = vrot.lane.b32.xlu1 %v7261_v55, %s13936_s21  ;;  %7206 = vst.msk [vmem:[#allocation5 + $0x30] sm:$0x30] %vm7055_vm11, %v7204_v23  ;;  %v7513_v1 = vpack.c.bf16 %v7512_v4, %v7512_v4  ;;  %v7515_v37 = vld [vmem:[#allocation2 + $0x35] ss:$2 sm:$0xf]  ;;  %v7279_v0 = vrot.slane %v7277_v46, 2 }
 0xb83   :  { %7391 = vrot.lane.b32.xlu0 %v7390_v49, %s13936_s21  ;;  %v7270_v53 = vrot.slane %v7268_v20, 4  ;;  %v7156_v12 = vld [vmem:[#allocation2 + $0xac] ss:$2 sm:$0xf]  ;;  %7075 = vst.msk [vmem:[#allocation5 + $0x28] sm:$0xc] %vm7047_vm9, %v7073_v24  ;;  %v7516_v18 = vpack.c.bf16 %v7515_v37, %v7515_v37 }
 0xb84   :  { %v7087_v61 = vrot.slane %v7085_v57, 2  ;;  %v7521_v30 = vld [vmem:[#allocation2 + $0x49] ss:$2 sm:$0xf]  ;;  %7082 = vst.msk [vmem:[#allocation5 + $0x28] sm:$0x30] %vm7055_vm11, %v7080_v43  ;;  %v7157_v35 = vpack.c.bf16 %v7156_v12, %v7156_v12 }
 0xb85   :  { %7514 = vst.msk [vmem:[#allocation5 + $0x20] sm:$0x3] %vm7039_vm8, %v7513_v1  ;;  %v7522_v47 = vpack.c.bf16 %v7521_v30, %v7521_v30  ;;  %v7528_v19 = vld [vmem:[#allocation2 + $0x5d] ss:$2 sm:$0xf]  ;;  %v7518_v63 = vrot.slane %v7516_v18, 6 }
 0xb86   :  { %v7534_v22 = vld [vmem:[#allocation2 + $0x85] ss:$2 sm:$0xf]  ;;  %7089 = vst.msk [vmem:[#allocation5 + $0x28] sm:$0xc0] %vm7063_vm10, %v7087_v61  ;;  %v7529_v50 = vpack.c.bf16 %v7528_v19, %v7528_v19  ;;  %7280 = vrot.lane.b32.xlu1 %v7279_v0, %s13936_s21  ;;  %v7141_v39 = vrot.slane %v7139_v29, 6 }
 0xb87   :  { %v7535_v52 = vpack.c.bf16 %v7534_v22, %v7534_v22  ;;  %v7537_v10 = vld [vmem:[#allocation2 + $0x99] ss:$2 sm:$0xf]  ;;  %v7524_v25 = vrot.slane %v7522_v47, 4  ;;  %7271 = vrot.lane.b32.xlu0 %v7270_v53, %s13936_s21  ;;  %7520 = vst.msk [vmem:[#allocation5 + $0x20] sm:$0xc] %vm7047_vm9, %v7518_v63 }
 0xb88   :  { %v7538_v13 = vpack.c.bf16 %v7537_v10, %v7537_v10  ;;  %v7543_v31 = vld [vmem:[#allocation2 + $0xad] ss:$2 sm:$0xf]  ;;  %v7531_v8 = vrot.slane %v7529_v50, 2  ;;  %v7150_v21 = vrot.slane %v7148_v45, 4  ;;  %v7159_v42 = vrot.slane %v7157_v35, 2 }
 0xb89   :  { %7536 = vst.msk [vmem:[#allocation5 + $0x48] sm:$0x3] %vm7039_vm8, %v7535_v52  ;;  %v7544_v28 = vpack.c.bf16 %v7543_v31, %v7543_v31  ;;  %v7550_v34 = vld [vmem:[#allocation2 + $0xc1] ss:$2 sm:$0xf]  ;;  %v13768_v23 = vld [vmem:[%s17435_s4 + $0x108] sm:$0xff]  }
 0xb8a   :  { %7526 = vst.msk [vmem:[#allocation5 + $0x20] sm:$0x30] %vm7055_vm11, %v7524_v25  ;;  %v7540_v41 = vrot.slane %v7538_v13, 6  ;;  %v7551_v38 = vpack.c.bf16 %v7550_v34, %v7550_v34  ;;  %7142 = vrot.lane.b32.xlu1 %v7141_v39, %s13936_s21  ;;  %v13769_v24 = vld [vmem:[%s17435_s4 + $0x110] sm:$0xff]   ;;  %v16911_v45 = vld [vmem:[#allocation3] sm:$0xff] }
 0xb8b   :  { %7533 = vst.msk [vmem:[#allocation5 + $0x20] sm:$0xc0] %vm7063_vm10, %v7531_v8  ;;  %v7546_v16 = vrot.slane %v7544_v28, 4  ;;  %7151 = vrot.lane.b32.xlu0 %v7150_v21, %s13936_s21 }
 0xb8c   :  { %7542 = vst.msk [vmem:[#allocation5 + $0x48] sm:$0xc] %vm7047_vm9, %v7540_v41  ;;  %v7553_v27 = vrot.slane %v7551_v38, 2 }
 0xb8d   :  { %7548 = vst.msk [vmem:[#allocation5 + $0x48] sm:$0x30] %vm7055_vm11, %v7546_v16 }
 0xb8e   :  { %7555 = vst.msk [vmem:[#allocation5 + $0x48] sm:$0xc0] %vm7063_vm10, %v7553_v27  ;;  %7160 = vrot.lane.b32.xlu1 %v7159_v42, %s13936_s21 }
 0xb92   :  { %v7560_v29 = vld [vmem:[#allocation5 + $0x20] sm:$0xff] }
 0xb95   :  { %v7565_v22 = vld [vmem:[#allocation5 + $0x48] sm:$0xff] }
 0xbc1   :  { %v7452_v60 = vpop.permute.xlu0 %7451 }
 0xbc2   :  { %7454 = vst.msk [vmem:[#allocation5 + $0x18] sm:$0x3] %vm7097_vm12, %v7452_v60 }
 0xbc4   :  { %v7460_v51 = vpop.permute.xlu1 %7459 }
 0xbc5   :  { %7462 = vst.msk [vmem:[#allocation5 + $0x18] sm:$0xc] %vm7107_vm13, %v7460_v51  ;;  %v7339_v59 = vpop.permute.xlu0 %7338 }
 0xbc6   :  { %7341 = vst.msk [vmem:[#allocation5 + $0x10] sm:$0x3] %vm7097_vm12, %v7339_v59 }
 0xbc8   :  { %v7477_v62 = vpop.permute.xlu1 %7476 }
 0xbc9   :  { %7479 = vst.msk [vmem:[#allocation5 + $0x18] sm:$0xc0] %vm7127_vm14, %v7477_v62  ;;  %v7219_v7 = vpop.permute.xlu0 %7218 }
 0xbca   :  { %7221 = vst.msk [vmem:[#allocation5 + $0x8] sm:$0x3] %vm7097_vm12, %v7219_v7 }
 0xbcc   :  { %v7348_v2 = vpop.permute.xlu1 %7347 }
 0xbcd   :  { %7350 = vst.msk [vmem:[#allocation5 + $0x10] sm:$0xc] %vm7107_vm13, %v7348_v2  ;;  %v7484_v3 = vpop.permute.xlu0 %7483 }
 0xbce   :  { %7486 = vst.msk [vmem:[#allocation5 + $0x40] sm:$0x3] %vm7097_vm12, %v7484_v3 }
 0xbd0   :  { %v7366_v6 = vpop.permute.xlu1 %7365 }
 0xbd1   :  { %7368 = vst.msk [vmem:[#allocation5 + $0x10] sm:$0xc0] %vm7127_vm14, %v7366_v6  ;;  %v7095_v14 = vpop.permute.xlu0 %7094 }
 0xbd2   :  { %7098 = vst.msk [vmem:[#allocation5] sm:$0x3] %vm7097_vm12, %v7095_v14 }
 0xbd4   :  { %v7228_v15 = vpop.permute.xlu1 %7227 }
 0xbd5   :  { %7230 = vst.msk [vmem:[#allocation5 + $0x8] sm:$0xc] %vm7107_vm13, %v7228_v15  ;;  %v7374_v9 = vpop.permute.xlu0 %7373 }
 0xbd6   :  { %7376 = vst.msk [vmem:[#allocation5 + $0x38] sm:$0x3] %vm7097_vm12, %v7374_v9 }
 0xbd8   :  { %v7246_v17 = vpop.permute.xlu1 %7245 }
 0xbd9   :  { %7248 = vst.msk [vmem:[#allocation5 + $0x8] sm:$0xc0] %vm7127_vm14, %v7246_v17  ;;  %v7254_v33 = vpop.permute.xlu0 %7253 }
 0xbda   :  { %7256 = vst.msk [vmem:[#allocation5 + $0x30] sm:$0x3] %vm7097_vm12, %v7254_v33 }
 0xbdc   :  { %v7492_v11 = vpop.permute.xlu1 %7491 }
 0xbdd   :  { %7494 = vst.msk [vmem:[#allocation5 + $0x40] sm:$0xc] %vm7107_vm13, %v7492_v11  ;;  %v7134_v44 = vpop.permute.xlu0 %7133 }
 0xbde   :  { %7136 = vst.msk [vmem:[#allocation5 + $0x28] sm:$0x3] %vm7097_vm12, %v7134_v44 }
 0xbe0   :  { %v7509_v46 = vpop.permute.xlu1 %7508 }
 0xbe1   :  { %7511 = vst.msk [vmem:[#allocation5 + $0x40] sm:$0xc0] %vm7127_vm14, %v7509_v46  ;;  %v7468_v20 = vpop.permute.xlu0 %7467 }
 0xbe2   :  { %7470 = vst.msk [vmem:[#allocation5 + $0x18] sm:$0x30] %vm7117_vm15, %v7468_v20 }
 0xbe4   :  { %v7105_v54 = vpop.permute.xlu1 %7104 }
 0xbe5   :  { %7108 = vst.msk [vmem:[#allocation5] sm:$0xc] %vm7107_vm13, %v7105_v54  ;;  %v7357_v56 = vpop.permute.xlu0 %7356 }
 0xbe6   :  { %7359 = vst.msk [vmem:[#allocation5 + $0x10] sm:$0x30] %vm7117_vm15, %v7357_v56 }
 0xbe8   :  { %v7125_v5 = vpop.permute.xlu1 %7124 }
 0xbe9   :  { %7128 = vst.msk [vmem:[#allocation5] sm:$0xc0] %vm7127_vm14, %v7125_v5  ;;  %v7237_v26 = vpop.permute.xlu0 %7236  ;;  %v7559_v55 = vld [vmem:[#allocation5 + $0x18] sm:$0xff] }
 0xbea   :  { %7239 = vst.msk [vmem:[#allocation5 + $0x8] sm:$0x30] %vm7117_vm15, %v7237_v26  ;;  %7941 = vmatprep.mubr.bf16.mxu0 %v7559_v55 }
 0xbec   :  { %v7383_v58 = vpop.permute.xlu1 %7382 }
 0xbed   :  { %7385 = vst.msk [vmem:[#allocation5 + $0x38] sm:$0xc] %vm7107_vm13, %v7383_v58  ;;  %v7500_v48 = vpop.permute.xlu0 %7499  ;;  %v7558_v40 = vld [vmem:[#allocation5 + $0x10] sm:$0xff] }
 0xbee   :  { %7502 = vst.msk [vmem:[#allocation5 + $0x40] sm:$0x30] %vm7117_vm15, %v7500_v48  ;;  %7942 = vmatmul.mubr.bf16.vlgmr.msra.gmra.mrb[212].mxu0 %v7558_v40 }
 0xbef   :  { %13036 = vmatpush3.bf16.msra.mxu0 %v16822_v32  ;;  %v13770_v32 = vld [vmem:[%s17435_s4 + $0x118] sm:$0xff]  }
 0xbf0   :  { %v7401_v49 = vpop.permute.xlu1 %7400  ;;  %13037 = vmatprep.subr.bf16.mxu0 %v13768_v23 }
 0xbf1   :  { %7403 = vst.msk [vmem:[#allocation5 + $0x38] sm:$0xc0] %vm7127_vm14, %v7401_v49  ;;  %v7115_v57 = vpop.permute.xlu0 %7114  ;;  %v7557_v4 = vld [vmem:[#allocation5 + $0x8] sm:$0xff] }
 0xbf2   :  { %7118 = vst.msk [vmem:[#allocation5] sm:$0x30] %vm7117_vm15, %v7115_v57  ;;  %7892 = vmatprep.mubr.bf16.mxu1 %v7557_v4  ;;  %v13771_v57 = vld [vmem:[%s17436_s5 + $0x40] sm:$0xff]  }
 0xbf3   :  { %13038 = vmatpush3.bf16.msra.mxu0 %v13768_v23  ;;  %v13772_v4 = vld [vmem:[%s17436_s5 + $0xc0] sm:$0xff]  }
 0xbf4   :  { %v7263_v43 = vpop.permute.xlu1 %7262  ;;  %13039 = vmatprep.subr.bf16.mxu0 %v13769_v24 }
 0xbf5   :  { %7265 = vst.msk [vmem:[#allocation5 + $0x30] sm:$0xc] %vm7107_vm13, %v7263_v43  ;;  %v7392_v1 = vpop.permute.xlu0 %7391  ;;  %v7564_v37 = vld [vmem:[#allocation5 + $0x40] sm:$0xff]  ;;  %v13773_v43 = vld [vmem:[%s17436_s5] sm:$0xff]  }
 0xbf6   :  { %7394 = vst.msk [vmem:[#allocation5 + $0x38] sm:$0x30] %vm7117_vm15, %v7392_v1  ;;  %7949 = vmatprep.mubr.bf16.mxu0 %v7564_v37  ;;  %v13775_v1 = vld [vmem:[%s17436_s5 + $0x48] sm:$0xff]  }
 0xbf7   :  { %13040 = vmatpush3.bf16.msra.mxu0 %v13769_v24  ;;  %v13939_v24 = vmov 1.0   ;;  %v13776_v37 = vld [vmem:[%s17436_s5 + $0xc8] sm:$0xff]  }
 0xbf8   :  { %v7281_v0 = vpop.permute.xlu1 %7280  ;;  %13041 = vmatprep.subr.bf16.mxu0 %v13770_v32 }
 0xbf9   :  { %7283 = vst.msk [vmem:[#allocation5 + $0x30] sm:$0xc0] %vm7127_vm14, %v7281_v0  ;;  %v7272_v53 = vpop.permute.xlu0 %7271  ;;  %v7556_v12 = vld [vmem:[#allocation5] sm:$0xff] }
 0xbfa   :  { %7274 = vst.msk [vmem:[#allocation5 + $0x30] sm:$0x30] %vm7117_vm15, %v7272_v53  ;;  %7893 = vmatmul.mubr.bf16.vlgmr.msra.gmra.mrb[164].mxu1 %v7556_v12  ;;  %v13777_v0 = vld [vmem:[%s17436_s5 + $0x8] sm:$0xff]   ;;  %v12103_v53 = vpack.c.bf16 %v16911_v45, %v16911_v45 }
 0xbfb   :  { %13042 = vmatpush3.bf16.msra.mxu0 %v13770_v32  ;;  %v13774_v32 = vld [vmem:[%s17436_s5 + $0x80] sm:$0xff]   ;;  %v13778_v12 = vld [vmem:[%s17436_s5 + $0x88] sm:$0xff]  }
 0xbfc   :  { %v7143_v61 = vpop.permute.xlu1 %7142  ;;  %13435 = vmatprep.subr.bf16.mxu0 %v17578_v36  ;;  %8250 = vst [vmem:[#allocation6] sm:$0xf] %v12103_v53  ;;  %8255 = vst [vmem:[#allocation6 + $0xb4] sm:$0xf] %v12103_v53 }
 0xbfd   :  { %7145 = vst.msk [vmem:[#allocation5 + $0x28] sm:$0xc] %vm7107_vm13, %v7143_v61  ;;  %v7152_v18 = vpop.permute.xlu0 %7151  ;;  %v7563_v30 = vld [vmem:[#allocation5 + $0x38] sm:$0xff]  ;;  %v13779_v61 = vld [vmem:[%s17436_s5 + $0x50] sm:$0xff]   ;;  %8529 = vst [vmem:[#allocation6 + $0xa4] sm:$0xf] %v12103_v53 }
 0xbfe   :  { %7154 = vst.msk [vmem:[#allocation5 + $0x28] sm:$0x30] %vm7117_vm15, %v7152_v18  ;;  %7950 = vmatmul.mubr.bf16.gmra.mrb[216].mxu0 %v7563_v30  ;;  %8533 = vst [vmem:[#allocation6 + $0x134] sm:$0xf] %v12103_v53  ;;  %v13780_v18 = vld [vmem:[%s17436_s5 + $0xd0] sm:$0xff]  }
 0xbff   :  { %13043 = vmatprep.mubr.msk.bf16.mxu0 %vm69_vm3, %v7560_v29  ;;  %v13781_v30 = vld [vmem:[%s17436_s5 + $0x10] sm:$0xff]  }
 0xc00   :  { %v7161_v47 = vpop.permute.xlu1 %7160  ;;  %v13782_v29 = vld [vmem:[%s17436_s5 + $0x90] sm:$0xff]  }
 0xc01   :  { %7163 = vst.msk [vmem:[#allocation5 + $0x28] sm:$0xc0] %vm7127_vm14, %v7161_v47  ;;  %v7562_v19 = vld [vmem:[#allocation5 + $0x30] sm:$0xff] }
 0xc02   :  { %7900 = vmatprep.mubr.bf16.mxu1 %v7562_v19  ;;  %v13783_v47 = vld [vmem:[%s17436_s5 + $0x58] sm:$0xff]  }
 0xc03   :  { %v13784_v19 = vld [vmem:[%s17436_s5 + $0xd8] sm:$0xff]  }
 0xc06   :  { %13044 = vmatmul.mubr.msk.bf16.vlgmr.msra.gmra.mrb[220].mxu0 %vm69_vm3, %v7565_v22  ;;  %v13785_v22 = vld [vmem:[%s17436_s5 + $0x18] sm:$0xff]  }
 0xc07   :  { %13066 = vmatprep.mubr.msk.f32.mxu0 %vm13938_vm7, %v16911_v45 }
 0xc08   :  { %v7561_v63 = vld [vmem:[#allocation5 + $0x28] sm:$0xff] }
 0xc09   :  { %7901 = vmatmul.mubr.bf16.gmra.mrb[168].mxu1 %v7561_v63  ;;  %v13787_v63 = vld [vmem:[%s17436_s5 + $0x60] sm:$0xff]  }
 0xc0a   :  { %13055 = vmatprep.mubr.msk.f32.mxu1 %vm13938_vm7, %v16911_v45  ;;  %v13786_v45 = vld [vmem:[%s17436_s5 + $0x98] sm:$0xff]  }
 0xcc1   :  { %v12638_v50 = vpop.f32.mrb[212].mxu0 }
 0xcc2   :  { %v12639_v52 = vpop.f32.mrb[213].mxu0 }
 0xcc3   :  { %v12640_v10 = vadd.f32 %v12639_v52, %v12638_v50  ;;  %v12641_v25 = vpop.f32.mrb[214].mxu0  ;;  %v13788_v50 = vld [vmem:[%s17436_s5 + $0xe0] sm:$0xff]  }
 0xcc4   :  { %v12642_v13 = vpop.f32.mrb[215].mxu0  ;;  %v13789_v52 = vld [vmem:[%s17436_s5 + $0x20] sm:$0xff]  }
 0xcc5   :  { %v12643_v31 = vadd.f32 %v12642_v13, %v12641_v25  ;;  %v13791_v25 = vld [vmem:[%s17436_s5 + $0x68] sm:$0xff]  }
 0xcc6   :  { %v13792_v13 = vld [vmem:[%s17436_s5 + $0xe8] sm:$0xff]  }
 0xccd   :  { %v12610_v8 = vpop.f32.mrb[164].mxu1 }
 0xcce   :  { %v12611_v28 = vpop.f32.mrb[165].mxu1 }
 0xccf   :  { %v12612_v34 = vadd.f32 %v12611_v28, %v12610_v8  ;;  %v12613_v39 = vpop.f32.mrb[166].mxu1  ;;  %v13794_v8 = vld [vmem:[%s17436_s5 + $0xa8] sm:$0xff]   ;;  %v13795_v28 = vld [vmem:[%s17436_s5 + $0x70] sm:$0xff]  }
 0xcd0   :  { %v12614_v35 = vpop.f32.mrb[167].mxu1 }
 0xcd1   :  { %v12615_v41 = vadd.f32 %v12614_v35, %v12613_v39  ;;  %v12644_v38 = vpop.f32.mrb[216].mxu0  ;;  %v7944_v21 = vadd.f32 %v12640_v10, %v12612_v34  ;;  %v13790_v10 = vld [vmem:[%s17436_s5 + $0xa0] sm:$0xff]   ;;  %v13796_v34 = vld [vmem:[%s17436_s5 + $0xf0] sm:$0xff]  }
 0xcd2   :  { %v12645_v16 = vpop.f32.mrb[217].mxu0  ;;  %v13797_v39 = vld [vmem:[%s17436_s5 + $0x30] sm:$0xff]  }
 0xcd3   :  { %v12646_v27 = vadd.f32 %v12645_v16, %v12644_v38  ;;  %v12647_v42 = vpop.f32.mrb[218].mxu0  ;;  %v7947_v60 = vadd.f32 %v12643_v31, %v12615_v41  ;;  %v13793_v31 = vld [vmem:[%s17436_s5 + $0x28] sm:$0xff]   ;;  %v13798_v35 = vld [vmem:[%s17436_s5 + $0xb0] sm:$0xff]   ;;  %v13799_v41 = vld [vmem:[%s17436_s5 + $0x78] sm:$0xff]  }
 0xcd4   :  { %v12648_v51 = vpop.f32.mrb[219].mxu0  ;;  %v13800_v38 = vld [vmem:[%s17436_s5 + $0xf8] sm:$0xff]  }
 0xcd5   :  { %v12649_v59 = vadd.f32 %v12648_v51, %v12647_v42  ;;  %v13802_v16 = vld [vmem:[%s17436_s5 + $0xb8] sm:$0xff]   ;;  %v8314_v42 = vld [vmem:[#allocation3 + $0x2] sm:$0xff] }
 0xcd9   :  { %v13045_v62 = vpop.f32.mrb[220].mxu0 }
 0xcda   :  { %v7992_v7 = vpop.f32.mrb[221].mxu0 }
 0xcdb   :  { %v16917_v2 = vadd.f32 %v7992_v7, %v7944_v21  ;;  %v13046_v3 = vpop.f32.mrb[222].mxu0  ;;  %v13801_v21 = vld [vmem:[%s17436_s5 + $0x38] sm:$0xff]   ;;  %v13814_v7 = vld [vmem:[%s17436_s5 + $0x140] sm:$0xff]  }
 0xcdc   :  { %v12616_v6 = vpop.f32.mrb[168].mxu1  ;;  %v7995_v14 = vpop.f32.mrb[223].mxu0 }
 0xcdd   :  { %v12617_v15 = vpop.f32.mrb[169].mxu1  ;;  %v16919_v9 = vadd.f32 %v7995_v14, %v7947_v60  ;;  %v8082_v11 = vmul.f32 %v16917_v2, %v16917_v2  ;;  %v8369_v60 = vld [vmem:[#allocation3 + $0x6] sm:$0xff] }
 0xcde   :  { %v12618_v17 = vadd.f32 %v12617_v15, %v12616_v6  ;;  %v12619_v33 = vpop.f32.mrb[170].mxu1  ;;  %v8264_v6 = vld [vmem:[#allocation3 + $0x29] sm:$0xff] }
 0xcdf   :  { %v13430_v44 = vpack.c.bf16 %v16919_v9, %v16917_v2  ;;  %v8083_v46 = vmul.f32 %v16919_v9, %v16919_v9  ;;  %v12620_v20 = vpop.f32.mrb[171].mxu1  ;;  %v8319_v14 = vld [vmem:[#allocation3 + $0x2a] sm:$0xff] }
 0xce0   :  { %v7952_v54 = vadd.f32 %v12646_v27, %v12618_v17  ;;  %v12621_v56 = vadd.f32 %v12620_v20, %v12619_v33  ;;  %v8259_v27 = vld [vmem:[#allocation3 + $0x1] sm:$0xff]  ;;  %v12117_v17 = vpack.c.bf16 %v8264_v6, %v8264_v6  ;;  %v12126_v33 = vpack.c.bf16 %v8319_v14, %v8319_v14 }
 0xce1   :  { %v13436_v5 = vpack.c.bf16 %v8083_v46, %v8082_v11  ;;  %13431 = vmatpush3.bf16.msra.mxu1 %v13430_v44  ;;  %v12112_v51 = vpack.c.bf16 %v8259_v27, %v8259_v27  ;;  %v8373_v15 = vld [vmem:[#allocation3 + $0x26] sm:$0xff] }
 0xce2   :  { %v16927_v26 = vadd.f32 %v13045_v62, %v7952_v54  ;;  %v7955_v55 = vadd.f32 %v12649_v59, %v12621_v56  ;;  %13432 = vmatprep.subr.bf16.mxu1 %v17578_v36  ;;  %v12121_v59 = vpack.c.bf16 %v8314_v42, %v8314_v42  ;;  %v12130_v62 = vpack.c.bf16 %v8369_v60, %v8369_v60  ;;  %v8537_v44 = vld [vmem:[#allocation3 + $0x24] sm:$0xff] }
 0xce3   :  { %13437 = vmatpush3.bf16.msra.mxu0 %v13436_v5  ;;  %8305 = vst [vmem:[#allocation6 + $0x4] sm:$0xf] %v12112_v51  ;;  %v12134_v11 = vpack.c.bf16 %v8373_v15, %v8373_v15  ;;  %8310 = vst [vmem:[#allocation6 + $0xb8] sm:$0xf] %v12117_v17  ;;  %v8592_v46 = vld [vmem:[#allocation3 + $0x25] sm:$0xff]  ;;  %v12160_v20 = vpack.c.bf16 %v8537_v44, %v8537_v44 }
 0xce4   :  { %v16930_v58 = vadd.f32 %v13046_v3, %v7955_v55  ;;  %13438 = vmatprep.subr.bf16.mxu0 %v17578_v36  ;;  %v8084_v23 = vmul.f32 %v16927_v26, %v16927_v26  ;;  %v13815_v3 = vld [vmem:[%s17436_s5 + $0x1c0] sm:$0xff]   ;;  %8360 = vst [vmem:[#allocation6 + $0x8] sm:$0xf] %v12121_v59  ;;  %8415 = vst [vmem:[#allocation6 + $0xc] sm:$0xf] %v12130_v62  ;;  %v12169_v54 = vpack.c.bf16 %v8592_v46, %v8592_v46 }
 0xce5   :  { %8365 = vst [vmem:[#allocation6 + $0xbc] sm:$0xf] %v12126_v33  ;;  %8419 = vst [vmem:[#allocation6 + $0x9c] sm:$0xf] %v12134_v11  ;;  %v8428_v56 = vld [vmem:[#allocation3 + $0x27] sm:$0xff] }
 0xce6   :  { %v8085_v48 = vmul.f32 %v16930_v58, %v16930_v58  ;;  %v13433_v40 = vpack.c.bf16 %v16930_v58, %v16927_v26  ;;  %8693 = vst [vmem:[#allocation6 + $0x8c] sm:$0xf] %v12134_v11  ;;  %v12143_v5 = vpack.c.bf16 %v8428_v56, %v8428_v56  ;;  %8583 = vst [vmem:[#allocation6 + $0x84] sm:$0xf] %v12160_v20 }
 0xce7   :  { %8638 = vst [vmem:[#allocation6 + $0x88] sm:$0xf] %v12169_v54 }
 0xce8   :  { %13434 = vmatpush3.bf16.msra.mxu1 %v13433_v40  ;;  %v13439_v49 = vpack.c.bf16 %v8085_v48, %v8084_v23  ;;  %8474 = vst [vmem:[#allocation6 + $0xa0] sm:$0xf] %v12143_v5 }
 0xce9   :  { %12666 = vmatprep.subr.bf16.mxu1 %v13771_v57  ;;  %v8597_v57 = vld [vmem:[#allocation3 + $0x4d] sm:$0xff] }
 0xcea   :  { %13440 = vmatpush3.bf16.msra.mxu0 %v13439_v49  ;;  %v8542_v49 = vld [vmem:[#allocation3 + $0x4c] sm:$0xff] }
 0xceb   :  { %13056 = vmatmul.mubr.msk.f32.vlgmr.msra.gmra.mrb[172].mxu1 %vm8008_vm0, %v13939_v24  ;;  %12712 = vmatprep.subr.bf16.mxu0 %v13772_v4 }
 0xcec   :  { %12667 = vmatpush3.bf16.msra.mxu1 %v13773_v43 }
 0xced   :  { %13067 = vmatmul.mubr.msk.f32.vlgmr.msra.gmra.mrb[224].mxu0 %vm8008_vm0, %v13939_v24  ;;  %12668 = vmatprep.subr.bf16.mxu1 %v13775_v1  ;;  %v12165_v1 = vpack.c.bf16 %v8542_v49, %v8542_v49 }
 0xcee   :  { %12713 = vmatpush3.bf16.msra.mxu0 %v13774_v32 }
 0xcef   :  { %12714 = vmatprep.subr.bf16.mxu0 %v13776_v37  ;;  %v12174_v37 = vpack.c.bf16 %v8597_v57, %v8597_v57  ;;  %8588 = vst [vmem:[#allocation6 + $0x138] sm:$0xf] %v12165_v1 }
 0xcf0   :  { %12669 = vmatpush3.bf16.msra.mxu1 %v13777_v0 }
 0xcf1   :  { %12670 = vmatprep.subr.bf16.mxu1 %v13779_v61  ;;  %8643 = vst [vmem:[#allocation6 + $0x13c] sm:$0xf] %v12174_v37  ;;  %v8007_v61 = vld [vmem:[%s17437_s8] sm:$0x3] }
 0xcf2   :  { %12715 = vmatpush3.bf16.msra.mxu0 %v13778_v12 }
 0xcf3   :  { %12716 = vmatprep.subr.bf16.mxu0 %v13780_v18 }
 0xcf4   :  { %12671 = vmatpush3.bf16.msra.mxu1 %v13781_v30 }
 0xcf5   :  { %12672 = vmatprep.subr.bf16.mxu1 %v13783_v47  ;;  %v17579_v47 = vld [vmem:[#allocation11_spill] sm:$0xff] }
 0xcf6   :  { %12717 = vmatpush3.bf16.msra.mxu0 %v13782_v29 }
 0xcf7   :  { %12718 = vmatprep.subr.bf16.mxu0 %v13784_v19 }
 0xcf8   :  { %12673 = vmatpush3.bf16.msra.mxu1 %v13785_v22  ;;  %v17580_v22 = vld [vmem:[#allocation8_spill] sm:$0xff] }
 0xcf9   :  { %12674 = vmatprep.subr.bf16.mxu1 %v13787_v63 }
 0xcfa   :  { %12719 = vmatpush3.bf16.msra.mxu0 %v13786_v45 }
 0xcfb   :  { %12720 = vmatprep.subr.bf16.mxu0 %v13788_v50 }
 0xcfc   :  { %12675 = vmatpush3.bf16.msra.mxu1 %v13789_v52 }
 0xcfd   :  { %12676 = vmatprep.subr.bf16.mxu1 %v13791_v25 }
 0xcfe   :  { %12721 = vmatpush3.bf16.msra.mxu0 %v13790_v10 }
 0xcff   :  { %12722 = vmatprep.subr.bf16.mxu0 %v13792_v13 }
 0xd00   :  { %12677 = vmatpush3.bf16.msra.mxu1 %v13793_v31  ;;  %v17581_v31 = vld [vmem:[#allocation7_spill] sm:$0xff] }
 0xd01   :  { %12678 = vmatprep.subr.bf16.mxu1 %v13795_v28 }
 0xd02   :  { %12723 = vmatpush3.bf16.msra.mxu0 %v13794_v8 }
 0xd03   :  { %12724 = vmatprep.subr.bf16.mxu0 %v13796_v34 }
 0xd04   :  { %12679 = vmatpush3.bf16.msra.mxu1 %v13797_v39 }
 0xd05   :  { %12680 = vmatprep.subr.bf16.mxu1 %v13799_v41  ;;  %v8652_v41 = vld [vmem:[#allocation3 + $0x4e] sm:$0xff] }
 0xd06   :  { %12725 = vmatpush3.bf16.msra.mxu0 %v13798_v35  ;;  %v12183_v42 = vpack.c.bf16 %v8652_v41, %v8652_v41 }
 0xd07   :  { %12726 = vmatprep.subr.bf16.mxu0 %v13800_v38 }
 0xd08   :  { %12681 = vmatpush3.bf16.msra.mxu1 %v13801_v21  ;;  %8698 = vst [vmem:[#allocation6 + $0x140] sm:$0xf] %v12183_v42 }
 0xd09   :  { %12758 = vmatprep.subr.bf16.mxu1 %v13814_v7 }
 0xd0a   :  { %12727 = vmatpush3.bf16.msra.mxu0 %v13802_v16 }
 0xd0b   :  { %12804 = vmatprep.subr.bf16.mxu0 %v13815_v3 }
 0xdbe   :  { %v8078_v55 = vpop.f32.mrb[172].mxu1 }
 0xdbf   :  { %v8156_v23 = vmul.f32 0.03125, %v8078_v55  ;;  %v13057_v48 = vpop.f32.mrb[173].mxu1 }
 0xdc0   :  { %v8152_v40 = vpop.f32.mrb[224].mxu0 }
 0xdc1   :  { %v8158_v4 = vmul.f32 %v8156_v23, %v8156_v23  ;;  %v8157_v43 = vmul.f32 0.03125, %v8152_v40  ;;  %v13068_v32 = vpop.f32.mrb[225].mxu0 }
 0xdc3   :  { %v8159_v0 = vsub.f32 %v8157_v43, %v8158_v4 }
 0xdc5   :  { %v8160_v53 = vmax.f32 %v8159_v0, 0.0 }
 0xdc7   :  { %v8161_v12 = vadd.f32 1e-05, %v8160_v53 }
 0xdc9   :  { %13920 = vrsqrt.f32 %v8161_v12 }
 0xdd3   :  { %v13921_v18 = vpop.eup %13920 }
 0xdd4   :  { %v8163_v30 = vmul.f32 %v13921_v18, %v8007_v61 }
 0xdd6   :  { %v8164_v29 = vmul.f32 %v8163_v30, %v8156_v23  ;;  %v8179_v45 = vrot.slane %v8163_v30, %v17580_v22 }
 0xdd8   :  { %v8172_v19 = vrot.slane %v8164_v29, %v17579_v47  ;;  %v8180_v52 = vmul.f32 %v8179_v45, %v16917_v2  ;;  %v8181_v10 = vmul.f32 %v8179_v45, %v16919_v9  ;;  %v8182_v25 = vmul.f32 %v8179_v45, %v16927_v26 }
 0xdd9   :  { %v8183_v13 = vmul.f32 %v8179_v45, %v16930_v58 }
 0xdda   :  { %v8173_v63 = vrot.slane %v8172_v19, 7 }
 0xddc   :  { %v8175_v50 = vsub.f32 %v8007_v61, %v8173_v63 }
 0xdde   :  { %v8187_v8 = vrot.slane %v8175_v50, %v17581_v31 }
 0xde0   :  { %v8188_v28 = vadd.f32 %v8187_v8, %v8180_v52  ;;  %v8189_v34 = vadd.f32 %v8187_v8, %v8181_v10  ;;  %v8190_v39 = vadd.f32 %v8187_v8, %v8182_v25  ;;  %v8191_v35 = vadd.f32 %v8187_v8, %v8183_v13 }
 0xde2   :  { %v8192_v38 = vmax.f32 %v8188_v28, 0.0  ;;  %v8193_v21 = vmax.f32 %v8189_v34, 0.0  ;;  %v8194_v16 = vmax.f32 %v8190_v39, 0.0  ;;  %v8195_v27 = vmax.f32 %v8191_v35, 0.0  ;;  %v13820_v39 = vld [vmem:[%s17436_s5 + $0x100] sm:$0xff]  }
 0xde4   :  { %8196 = vst [vmem:[#allocation3 + $0xe] ss:$6 sps:$4 sm:$0xff] %v8192_v38   ;;  %8198 = vst [vmem:[#allocation3 + $0x1a] ss:$6 sps:$4 sm:$0xff] %v8193_v21  }
 0xde5   :  { %8200 = vst [vmem:[#allocation3 + $0x32] ss:$6 sps:$4 sm:$0xff] %v8194_v16   ;;  %8202 = vst [vmem:[#allocation3 + $0x3e] ss:$6 sps:$4 sm:$0xff] %v8195_v27  }
 0xdeb   :  { %v8205_v2 = vld [vmem:[#allocation3 + $0x8] sm:$0xff]  ;;  %v8206_v62 = vld [vmem:[#allocation3 + $0x10] sm:$0xff]  ;;  %v8207_v7 = vld [vmem:[#allocation3 + $0x18] sm:$0xff] }
 0xdec   :  { %v8260_v9 = vld [vmem:[#allocation3 + $0x9] sm:$0xff]  ;;  %v12104_v58 = vpack.c.bf16 %v8205_v2, %v8205_v2  ;;  %v12105_v6 = vpack.c.bf16 %v8206_v62, %v8206_v62  ;;  %v12106_v14 = vpack.c.bf16 %v8207_v7, %v8207_v7  ;;  %v8261_v15 = vld [vmem:[#allocation3 + $0x11] sm:$0xff]  ;;  %v8262_v17 = vld [vmem:[#allocation3 + $0x19] sm:$0xff] }
 0xded   :  { %v8315_v26 = vld [vmem:[#allocation3 + $0xa] sm:$0xff]  ;;  %v12113_v60 = vpack.c.bf16 %v8260_v9, %v8260_v9  ;;  %v8316_v33 = vld [vmem:[#allocation3 + $0x12] sm:$0xff]  ;;  %v12114_v11 = vpack.c.bf16 %v8261_v15, %v8261_v15  ;;  %v12115_v44 = vpack.c.bf16 %v8262_v17, %v8262_v17  ;;  %v8317_v46 = vld [vmem:[#allocation3 + $0x1a] sm:$0xff] }
 0xdee   :  { %v12122_v51 = vpack.c.bf16 %v8315_v26, %v8315_v26  ;;  %v8370_v59 = vld [vmem:[#allocation3 + $0xe] sm:$0xff]  ;;  %8251 = vst [vmem:[#allocation6 + $0x24] sm:$0xf] %v12104_v58  ;;  %v12123_v20 = vpack.c.bf16 %v8316_v33, %v8316_v33  ;;  %v8371_v54 = vld [vmem:[#allocation3 + $0x16] sm:$0xff]  ;;  %v8372_v56 = vld [vmem:[#allocation3 + $0x1e] sm:$0xff]  ;;  %v12124_v5 = vpack.c.bf16 %v8317_v46, %v8317_v46 }
 0xdef   :  { %v12131_v3 = vpack.c.bf16 %v8370_v59, %v8370_v59  ;;  %8306 = vst [vmem:[#allocation6 + $0x28] sm:$0xf] %v12113_v60  ;;  %8525 = vst [vmem:[#allocation6 + $0x14] sm:$0xf] %v12104_v58  ;;  %v12132_v55 = vpack.c.bf16 %v8371_v54, %v8371_v54  ;;  %v12133_v23 = vpack.c.bf16 %v8372_v56, %v8372_v56  ;;  %v8208_v48 = vld [vmem:[#allocation3 + $0x20] sm:$0xff]  ;;  %v8374_v32 = vld [vmem:[#allocation3 + $0x2e] sm:$0xff] }
 0xdf0   :  { %8361 = vst [vmem:[#allocation6 + $0x2c] sm:$0xf] %v12122_v51  ;;  %8252 = vst [vmem:[#allocation6 + $0x48] sm:$0xf] %v12105_v6  ;;  %v8263_v40 = vld [vmem:[#allocation3 + $0x21] sm:$0xff]  ;;  %v12107_v57 = vpack.c.bf16 %v8208_v48, %v8208_v48  ;;  %v8210_v1 = vld [vmem:[#allocation3 + $0x30] sm:$0xff]  ;;  %v12135_v0 = vpack.c.bf16 %v8374_v32, %v8374_v32 }
 0xdf1   :  { %8416 = vst [vmem:[#allocation6 + $0x30] sm:$0xf] %v12131_v3  ;;  %8253 = vst [vmem:[#allocation6 + $0x6c] sm:$0xf] %v12106_v14  ;;  %v8318_v49 = vld [vmem:[#allocation3 + $0x22] sm:$0xff]  ;;  %v12116_v4 = vpack.c.bf16 %v8263_v40, %v8263_v40  ;;  %v8211_v37 = vld [vmem:[#allocation3 + $0x38] sm:$0xff]  ;;  %v12109_v53 = vpack.c.bf16 %v8210_v1, %v8210_v1 }
 0xdf2   :  { %8526 = vst [vmem:[#allocation6 + $0x38] sm:$0xf] %v12105_v6  ;;  %8527 = vst [vmem:[#allocation6 + $0x5c] sm:$0xf] %v12106_v14  ;;  %v12125_v43 = vpack.c.bf16 %v8318_v49, %v8318_v49  ;;  %v12110_v12 = vpack.c.bf16 %v8211_v37, %v8211_v37  ;;  %v8265_v61 = vld [vmem:[#allocation3 + $0x31] sm:$0xff]  ;;  %v8266_v18 = vld [vmem:[#allocation3 + $0x39] sm:$0xff] }
 0xdf3   :  { %8690 = vst [vmem:[#allocation6 + $0x20] sm:$0xf] %v12131_v3  ;;  %8307 = vst [vmem:[#allocation6 + $0x4c] sm:$0xf] %v12114_v11  ;;  %v8320_v30 = vld [vmem:[#allocation3 + $0x32] sm:$0xff]  ;;  %v12118_v29 = vpack.c.bf16 %v8265_v61, %v8265_v61  ;;  %v12119_v19 = vpack.c.bf16 %v8266_v18, %v8266_v18  ;;  %v8321_v45 = vld [vmem:[#allocation3 + $0x3a] sm:$0xff] }
 0xdf4   :  { %8308 = vst [vmem:[#allocation6 + $0x70] sm:$0xf] %v12115_v44  ;;  %8362 = vst [vmem:[#allocation6 + $0x50] sm:$0xf] %v12123_v20  ;;  %v12127_v63 = vpack.c.bf16 %v8320_v30, %v8320_v30  ;;  %v8375_v50 = vld [vmem:[#allocation3 + $0x36] sm:$0xff]  ;;  %v8376_v52 = vld [vmem:[#allocation3 + $0x3e] sm:$0xff]  ;;  %v12128_v10 = vpack.c.bf16 %v8321_v45, %v8321_v45 }
 0xdf5   :  { %8363 = vst [vmem:[#allocation6 + $0x74] sm:$0xf] %v12124_v5  ;;  %8417 = vst [vmem:[#allocation6 + $0x54] sm:$0xf] %v12132_v55  ;;  %v12136_v25 = vpack.c.bf16 %v8375_v50, %v8375_v50  ;;  %v12137_v13 = vpack.c.bf16 %v8376_v52, %v8376_v52  ;;  %v8212_v8 = vld [vmem:[#allocation3 + $0x40] sm:$0xff]  ;;  %v8425_v27 = vld [vmem:[#allocation3 + $0xf] sm:$0xff] }
 0xdf6   :  { %8418 = vst [vmem:[#allocation6 + $0x78] sm:$0xf] %v12133_v23  ;;  %8691 = vst [vmem:[#allocation6 + $0x44] sm:$0xf] %v12132_v55  ;;  %v8267_v28 = vld [vmem:[#allocation3 + $0x41] sm:$0xff]  ;;  %v12111_v35 = vpack.c.bf16 %v8212_v8, %v8212_v8  ;;  %v12140_v60 = vpack.c.bf16 %v8425_v27, %v8425_v27  ;;  %v13827_v11 = vld [vmem:[%s17436_s5 + $0x150] sm:$0xff]  }
 0xdf7   :  { %8692 = vst [vmem:[#allocation6 + $0x68] sm:$0xf] %v12133_v23  ;;  %8254 = vst [vmem:[#allocation6 + $0x90] sm:$0xf] %v12107_v57  ;;  %v8322_v34 = vld [vmem:[#allocation3 + $0x42] sm:$0xff]  ;;  %v12120_v41 = vpack.c.bf16 %v8267_v28, %v8267_v28  ;;  %v13828_v44 = vld [vmem:[%s17436_s5 + $0x1d0] sm:$0xff]  }
 0xdf8   :  { %8309 = vst [vmem:[#allocation6 + $0x94] sm:$0xf] %v12116_v4  ;;  %8364 = vst [vmem:[#allocation6 + $0x98] sm:$0xf] %v12125_v43  ;;  %v12129_v38 = vpack.c.bf16 %v8322_v34, %v8322_v34  ;;  %v8377_v21 = vld [vmem:[#allocation3 + $0x46] sm:$0xff]  ;;  %v13833_v46 = vld [vmem:[%s17436_s5 + $0x110] sm:$0xff]  }
 0xdf9   :  { %8528 = vst [vmem:[#allocation6 + $0x80] sm:$0xf] %v12107_v57  ;;  %8420 = vst [vmem:[#allocation6 + $0xc0] sm:$0xf] %v12135_v0  ;;  %v8424_v16 = vld [vmem:[#allocation3 + $0x7] sm:$0xff]  ;;  %v12138_v26 = vpack.c.bf16 %v8377_v21, %v8377_v21  ;;  %v13834_v20 = vld [vmem:[%s17436_s5 + $0x190] sm:$0xff]  }
 0xdfa   :  { %8256 = vst [vmem:[#allocation6 + $0xd8] sm:$0xf] %v12109_v53  ;;  %8257 = vst [vmem:[#allocation6 + $0xfc] sm:$0xf] %v12110_v12  ;;  %v13803_v42 = vld [vmem:[#allocation6] ss:$36 sps:$4 sm:$0xff]   ;;  %v12139_v58 = vpack.c.bf16 %v8424_v16, %v8424_v16 }
 0xdfb   :  { %8530 = vst [vmem:[#allocation6 + $0xc8] sm:$0xf] %v12109_v53  ;;  %8531 = vst [vmem:[#allocation6 + $0xec] sm:$0xf] %v12110_v12  ;;  %v13805_v2 = vld [vmem:[#allocation6 + $0x4] ss:$36 sps:$4 sm:$0xff]  }
 0xdfc   :  { %8694 = vst [vmem:[#allocation6 + $0xb0] sm:$0xf] %v12135_v0  ;;  %8311 = vst [vmem:[#allocation6 + $0xdc] sm:$0xf] %v12118_v29  ;;  %v13821_v9 = vld [vmem:[%s17436_s5 + $0x180] sm:$0xff]   ;;  %9568 = vmatprep.mubr.bf16.mxu1 %v13805_v2  ;;  %v13822_v7 = vld [vmem:[%s17436_s5 + $0x148] sm:$0xff]  }
 0xdfd   :  { %8312 = vst [vmem:[#allocation6 + $0x100] sm:$0xf] %v12119_v19  ;;  %8366 = vst [vmem:[#allocation6 + $0xe0] sm:$0xf] %v12127_v63  ;;  %v13806_v51 = vld [vmem:[#allocation6 + $0x8] ss:$36 sps:$4 sm:$0xff]   ;;  %9569 = vmatmul.mubr.bf16.vlgmr.msra.gmra.mrb[176].mxu1 %v13803_v42 }
 0xdfe   :  { %8367 = vst [vmem:[#allocation6 + $0x104] sm:$0xf] %v12128_v10  ;;  %8421 = vst [vmem:[#allocation6 + $0xe4] sm:$0xf] %v12136_v25  ;;  %v13808_v59 = vld [vmem:[#allocation6 + $0xc] ss:$36 sps:$4 sm:$0xff]   ;;  %12759 = vmatpush3.bf16.msra.mxu1 %v13820_v39 }
 0xdff   :  { %8422 = vst [vmem:[#allocation6 + $0x108] sm:$0xf] %v12137_v13  ;;  %8695 = vst [vmem:[#allocation6 + $0xd4] sm:$0xf] %v12136_v25  ;;  %v13809_v62 = vld [vmem:[#allocation6 + $0x4c] ss:$36 sps:$4 sm:$0xff]   ;;  %9640 = vmatprep.mubr.bf16.mxu0 %v13808_v59  ;;  %12760 = vmatprep.subr.bf16.mxu1 %v13822_v7 }
 0xe00   :  { %8696 = vst [vmem:[#allocation6 + $0xf8] sm:$0xf] %v12137_v13  ;;  %8258 = vst [vmem:[#allocation6 + $0x120] sm:$0xf] %v12111_v35  ;;  %v13823_v3 = vld [vmem:[%s17436_s5 + $0x1c8] sm:$0xff]   ;;  %9641 = vmatmul.mubr.bf16.vlgmr.msra.gmra.mrb[228].mxu0 %v13806_v51  ;;  %9576 = vmatprep.mubr.bf16.mxu1 %v13809_v62  ;;  %v13835_v54 = vld [vmem:[%s17436_s5 + $0x158] sm:$0xff]  }
 0xe01   :  { %8313 = vst [vmem:[#allocation6 + $0x124] sm:$0xf] %v12120_v41  ;;  %8368 = vst [vmem:[#allocation6 + $0x128] sm:$0xf] %v12129_v38  ;;  %v13811_v6 = vld [vmem:[#allocation6 + $0x54] ss:$36 sps:$4 sm:$0xff]   ;;  %12805 = vmatpush3.bf16.msra.mxu0 %v13821_v9 }
 0xe02   :  { %8532 = vst [vmem:[#allocation6 + $0x110] sm:$0xf] %v12111_v35  ;;  %8423 = vst [vmem:[#allocation6 + $0x12c] sm:$0xf] %v12138_v26  ;;  %v13824_v14 = vld [vmem:[%s17436_s5 + $0x108] sm:$0xff]   ;;  %9648 = vmatprep.mubr.bf16.mxu0 %v13811_v6  ;;  %12806 = vmatprep.subr.bf16.mxu0 %v13823_v3  ;;  %v13836_v55 = vld [vmem:[%s17436_s5 + $0x1d8] sm:$0xff]  }
 0xe03   :  { %8470 = vst [vmem:[#allocation6 + $0x10] sm:$0xf] %v12139_v58  ;;  %8471 = vst [vmem:[#allocation6 + $0x34] sm:$0xf] %v12140_v60  ;;  %v13825_v15 = vld [vmem:[%s17436_s5 + $0x188] sm:$0xff]   ;;  %12761 = vmatpush3.bf16.msra.mxu1 %v13824_v14  ;;  %v13837_v49 = vld [vmem:[%s17436_s5 + $0x118] sm:$0xff]  }
 0xe04   :  { %8697 = vst [vmem:[#allocation6 + $0x11c] sm:$0xf] %v12138_v26  ;;  %v8709_v17 = vld [vmem:[#allocation6 + $0x48] sm:$0xff]  ;;  %v13813_v5 = vld [vmem:[#allocation6 + $0x50] ss:$36 sps:$4 sm:$0xff]   ;;  %12762 = vmatprep.subr.bf16.mxu1 %v13827_v11  ;;  %v8535_v57 = vld [vmem:[#allocation3 + $0x14] sm:$0xff] }
 0xe05   :  { %v8714_v33 = vld [vmem:[#allocation6 + $0x6c] sm:$0xff]  ;;  %v13816_v23 = vld [vmem:[#allocation6 + $0x94] ss:$36 sps:$4 sm:$0xff]   ;;  %v13818_v48 = vld [vmem:[#allocation6 + $0x9c] ss:$36 sps:$4 sm:$0xff]   ;;  %12807 = vmatpush3.bf16.msra.mxu0 %v13825_v15  ;;  %v12158_v12 = vpack.c.bf16 %v8535_v57, %v8535_v57 }
 0xe06   :  { %v11520_v56 = vcombine.low %v8709_v17, %v8714_v33  ;;  %v8534_v40 = vld [vmem:[#allocation3 + $0xc] sm:$0xff]  ;;  %12808 = vmatprep.subr.bf16.mxu0 %v13828_v44  ;;  %v8590_v32 = vld [vmem:[#allocation3 + $0x15] sm:$0xff]  ;;  %v13840_v53 = vld [vmem:[%s17436_s5 + $0x160] sm:$0xff]  }
 0xe07   :  { %v12157_v4 = vpack.c.bf16 %v8534_v40, %v8534_v40  ;;  %v8589_v43 = vld [vmem:[#allocation3 + $0xd] sm:$0xff]  ;;  %v13838_v0 = vld [vmem:[%s17436_s5 + $0x198] sm:$0xff]   ;;  %v12167_v18 = vpack.c.bf16 %v8590_v32, %v8590_v32  ;;  %12763 = vmatpush3.bf16.msra.mxu1 %v13833_v46  ;;  %v13841_v45 = vld [vmem:[%s17436_s5 + $0x1e0] sm:$0xff]   ;;  %8581 = vst [vmem:[#allocation6 + $0x3c] sm:$0xf] %v12158_v12 }
 0xe08   :  { %9577 = vmatmul.mubr.bf16.gmra.mrb[180].mxu1 %v11520_v56  ;;  %9649 = vmatmul.mubr.bf16.gmra.mrb[232].mxu0 %v13813_v5  ;;  %v17096_v1 = vld [vmem:[#allocation6 + $0x90] sm:$0xff]  ;;  %v12166_v61 = vpack.c.bf16 %v8589_v43, %v8589_v43  ;;  %v8426_v30 = vld [vmem:[#allocation3 + $0x17] sm:$0xff]  ;;  %v8427_v29 = vld [vmem:[#allocation3 + $0x1f] sm:$0xff] }
 0xe09   :  { %v17098_v37 = vld [vmem:[#allocation6 + $0xb4] sm:$0xff]  ;;  %9584 = vmatprep.mubr.bf16.mxu1 %v13816_v23  ;;  %v8536_v19 = vld [vmem:[#allocation3 + $0x1c] sm:$0xff]  ;;  %9656 = vmatprep.mubr.bf16.mxu0 %v13818_v48  ;;  %8580 = vst [vmem:[#allocation6 + $0x18] sm:$0xf] %v12157_v4  ;;  %v12141_v63 = vpack.c.bf16 %v8426_v30, %v8426_v30  ;;  %v12142_v50 = vpack.c.bf16 %v8427_v29, %v8427_v29  ;;  %8636 = vst [vmem:[#allocation6 + $0x40] sm:$0xf] %v12167_v18 }
 0xe0a   :  { %v12159_v52 = vpack.c.bf16 %v8536_v19, %v8536_v19  ;;  %v8591_v10 = vld [vmem:[#allocation3 + $0x1d] sm:$0xff]  ;;  %v8429_v25 = vld [vmem:[#allocation3 + $0x2f] sm:$0xff]  ;;  %12809 = vmatpush3.bf16.msra.mxu0 %v13834_v20  ;;  %12764 = vmatprep.subr.bf16.mxu1 %v13835_v54  ;;  %8635 = vst [vmem:[#allocation6 + $0x1c] sm:$0xf] %v12166_v61  ;;  %v8596_v3 = vld [vmem:[#allocation3 + $0x45] sm:$0xff]  ;;  %v11529_v6 = vcombine.low %v17096_v1, %v17098_v37 }
 0xe0b   :  { %v8538_v13 = vld [vmem:[#allocation3 + $0x2c] sm:$0xff]  ;;  %v12168_v8 = vpack.c.bf16 %v8591_v10, %v8591_v10  ;;  %v12144_v28 = vpack.c.bf16 %v8429_v25, %v8429_v25  ;;  %v8539_v34 = vld [vmem:[#allocation3 + $0x34] sm:$0xff]  ;;  %12810 = vmatprep.subr.bf16.mxu0 %v13836_v55  ;;  %v13844_v38 = vld [vmem:[%s17436_s5 + $0x120] sm:$0xff]   ;;  %8472 = vst [vmem:[#allocation6 + $0x58] sm:$0xf] %v12141_v63  ;;  %12765 = vmatpush3.bf16.msra.mxu1 %v13837_v49 }
 0xe0c   :  { %v12161_v39 = vpack.c.bf16 %v8538_v13, %v8538_v13  ;;  %v8593_v35 = vld [vmem:[#allocation3 + $0x2d] sm:$0xff]  ;;  %v8594_v41 = vld [vmem:[#allocation3 + $0x35] sm:$0xff]  ;;  %8473 = vst [vmem:[#allocation6 + $0x7c] sm:$0xf] %v12142_v50  ;;  %8582 = vst [vmem:[#allocation6 + $0x60] sm:$0xf] %v12159_v52  ;;  %v12162_v21 = vpack.c.bf16 %v8539_v34, %v8539_v34  ;;  %v12173_v33 = vpack.c.bf16 %v8596_v3, %v8596_v3  ;;  %12766 = vmatprep.subr.bf16.mxu1 %v13840_v53 }
 0xe0d   :  { %v12170_v16 = vpack.c.bf16 %v8593_v35, %v8593_v35  ;;  %v12171_v27 = vpack.c.bf16 %v8594_v41, %v8594_v41  ;;  %v8430_v42 = vld [vmem:[#allocation3 + $0x37] sm:$0xff]  ;;  %v8431_v2 = vld [vmem:[#allocation3 + $0x3f] sm:$0xff]  ;;  %v13846_v58 = vld [vmem:[%s17436_s5 + $0x168] sm:$0xff]   ;;  %8637 = vst [vmem:[#allocation6 + $0x64] sm:$0xf] %v12168_v8 }
 0xe0e   :  { %v8540_v9 = vld [vmem:[#allocation3 + $0x3c] sm:$0xff]  ;;  %8475 = vst [vmem:[#allocation6 + $0xc4] sm:$0xf] %v12144_v28  ;;  %8584 = vst [vmem:[#allocation6 + $0xa8] sm:$0xf] %v12161_v39  ;;  %v12145_v60 = vpack.c.bf16 %v8430_v42, %v8430_v42  ;;  %v12146_v51 = vpack.c.bf16 %v8431_v2, %v8431_v2  ;;  %v8541_v59 = vld [vmem:[#allocation3 + $0x44] sm:$0xff]  ;;  %12811 = vmatpush3.bf16.msra.mxu0 %v13838_v0 }
 0xe0f   :  { %v13845_v26 = vld [vmem:[%s17436_s5 + $0x1a0] sm:$0xff]   ;;  %v12163_v62 = vpack.c.bf16 %v8540_v9, %v8540_v9  ;;  %v13847_v14 = vld [vmem:[%s17436_s5 + $0x1e8] sm:$0xff]   ;;  %8585 = vst [vmem:[#allocation6 + $0xcc] sm:$0xf] %v12162_v21  ;;  %8639 = vst [vmem:[#allocation6 + $0xac] sm:$0xf] %v12170_v16  ;;  %v12164_v15 = vpack.c.bf16 %v8541_v59, %v8541_v59  ;;  %12812 = vmatprep.subr.bf16.mxu0 %v13841_v45  ;;  %12767 = vmatpush3.bf16.msra.mxu1 %v13844_v38 }
 0xe10   :  { %v8595_v7 = vld [vmem:[#allocation3 + $0x3d] sm:$0xff]  ;;  %8640 = vst [vmem:[#allocation6 + $0xd0] sm:$0xf] %v12171_v27  ;;  %v8432_v11 = vld [vmem:[#allocation3 + $0x47] sm:$0xff]  ;;  %v13826_v44 = vld [vmem:[#allocation6 + $0x98] ss:$36 sps:$4 sm:$0xff]   ;;  %9585 = vmatmul.mubr.bf16.gmra.mrb[184].mxu1 %v11529_v6  ;;  %12768 = vmatprep.subr.bf16.mxu1 %v13846_v58 }
 0xe11   :  { %v12172_v17 = vpack.c.bf16 %v8595_v7, %v8595_v7  ;;  %v13829_v46 = vld [vmem:[#allocation6 + $0xdc] ss:$36 sps:$4 sm:$0xff]   ;;  %8476 = vst [vmem:[#allocation6 + $0xe8] sm:$0xf] %v12145_v60  ;;  %8477 = vst [vmem:[#allocation6 + $0x10c] sm:$0xf] %v12146_v51  ;;  %v12147_v20 = vpack.c.bf16 %v8432_v11, %v8432_v11  ;;  %9657 = vmatmul.mubr.bf16.gmra.mrb[236].mxu0 %v13826_v44 }
 0xe12   :  { %8586 = vst [vmem:[#allocation6 + $0xf0] sm:$0xf] %v12163_v62  ;;  %v13831_v54 = vld [vmem:[#allocation6 + $0xe4] ss:$36 sps:$4 sm:$0xff]   ;;  %8587 = vst [vmem:[#allocation6 + $0x114] sm:$0xf] %v12164_v15  ;;  %9592 = vmatprep.mubr.bf16.mxu1 %v13829_v46  ;;  %12813 = vmatpush3.bf16.msra.mxu0 %v13845_v26 }
 0xe13   :  { %8641 = vst [vmem:[#allocation6 + $0xf4] sm:$0xf] %v12172_v17  ;;  %8642 = vst [vmem:[#allocation6 + $0x118] sm:$0xf] %v12173_v33  ;;  %v13848_v56 = vld [vmem:[%s17436_s5 + $0x128] sm:$0xff]   ;;  %9664 = vmatprep.mubr.bf16.mxu0 %v13831_v54  ;;  %v8729_v55 = vld [vmem:[#allocation6 + $0xd8] sm:$0xff]  ;;  %12814 = vmatprep.subr.bf16.mxu0 %v13847_v14 }
 0xe14   :  { %8478 = vst [vmem:[#allocation6 + $0x130] sm:$0xf] %v12147_v20  ;;  %v13849_v5 = vld [vmem:[%s17436_s5 + $0x1a8] sm:$0xff]   ;;  %v8734_v23 = vld [vmem:[#allocation6 + $0xfc] sm:$0xff]  ;;  %v13852_v48 = vld [vmem:[%s17436_s5 + $0x170] sm:$0xff]   ;;  %12769 = vmatpush3.bf16.msra.mxu1 %v13848_v56 }
 0xe15   :  { %v8739_v40 = vld [vmem:[#allocation6 + $0x120] sm:$0xff]  ;;  %v13853_v49 = vld [vmem:[%s17436_s5 + $0x1f0] sm:$0xff]   ;;  %v8740_v57 = vld [vmem:[#allocation6 + $0x128] sm:$0xff]  ;;  %v11538_v4 = vcombine.low %v8729_v55, %v8734_v23  ;;  %12770 = vmatprep.subr.bf16.mxu1 %v13852_v48 }
 0xe16   :  { %v13854_v43 = vld [vmem:[%s17436_s5 + $0x130] sm:$0xff]   ;;  %v13839_v32 = vld [vmem:[#allocation6 + $0xe0] ss:$36 sps:$4 sm:$0xff]   ;;  %v11548_v1 = vcombine.high %v8739_v40, %v8739_v40  ;;  %12815 = vmatpush3.bf16.msra.mxu0 %v13849_v5  ;;  %v11550_v53 = vcombine.high %v8740_v57, %v8740_v57  ;;  %v11547_v30 = vcombine.low %v8739_v40, %v8739_v40  ;;  %v11549_v29 = vcombine.low %v8740_v57, %v8740_v57  ;;  %v13877_v8 = vld [vmem:[%s17436_s5 + $0x208] sm:$0xff]  }
 0xe17   :  { %v13858_v37 = vld [vmem:[%s17436_s5 + $0x1b0] sm:$0xff]   ;;  %v13862_v0 = vld [vmem:[%s17436_s5 + $0x178] sm:$0xff]   ;;  %12816 = vmatprep.subr.bf16.mxu0 %v13853_v49  ;;  %v17153_v45 = vld [vmem:[#allocation3] sm:$0xff] }
 0xe18   :  { %9593 = vmatmul.mubr.bf16.gmra.mrb[188].mxu1 %v11538_v4  ;;  %v13863_v12 = vld [vmem:[%s17436_s5 + $0x1f8] sm:$0xff]   ;;  %v13857_v19 = vld [vmem:[#allocation6 + $0x14] ss:$36 sps:$4 sm:$0xff]   ;;  %v13876_v52 = vld [vmem:[%s17436_s5 + $0x200] sm:$0xff]  }
 0xe19   :  { %9665 = vmatmul.mubr.bf16.gmra.mrb[240].mxu0 %v13839_v32  ;;  %9600 = vmatprep.mubr.bf16.mxu1 %v11548_v1  ;;  %v13864_v61 = vld [vmem:[%s17436_s5 + $0x138] sm:$0xff]   ;;  %v13855_v50 = vld [vmem:[#allocation6 + $0x10] ss:$36 sps:$4 sm:$0xff]   ;;  %v13868_v13 = vld [vmem:[#allocation6 + $0x64] ss:$36 sps:$4 sm:$0xff]  }
 0xe1a   :  { %9672 = vmatprep.mubr.bf16.mxu0 %v11550_v53  ;;  %12771 = vmatpush3.bf16.msra.mxu1 %v13854_v43  ;;  %v13865_v18 = vld [vmem:[%s17436_s5 + $0x1b8] sm:$0xff]   ;;  %v13883_v35 = vld [vmem:[%s17436_s5 + $0x210] sm:$0xff]   ;;  %v13871_v38 = vld [vmem:[#allocation6 + $0xa4] ss:$36 sps:$4 sm:$0xff]  }
 0xe1b   :  { %12817 = vmatpush3.bf16.msra.mxu0 %v13858_v37  ;;  %12772 = vmatprep.subr.bf16.mxu1 %v13862_v0  ;;  %v13861_v63 = vld [vmem:[#allocation6 + $0x1c] ss:$36 sps:$4 sm:$0xff]   ;;  %v13875_v21 = vld [vmem:[#allocation6 + $0xac] ss:$36 sps:$4 sm:$0xff]   ;;  %v8726_v42 = vld [vmem:[#allocation6 + $0xc4] sm:$0xff] }
 0xe1c   :  { %12818 = vmatprep.subr.bf16.mxu0 %v13863_v12  ;;  %v13859_v10 = vld [vmem:[#allocation6 + $0x18] ss:$36 sps:$4 sm:$0xff]   ;;  %v13870_v41 = vld [vmem:[#allocation6 + $0x60] ss:$36 sps:$4 sm:$0xff]   ;;  %v13873_v26 = vld [vmem:[#allocation6 + $0xa8] ss:$36 sps:$4 sm:$0xff]  }
 0xe1d   :  { %v13866_v25 = vld [vmem:[#allocation6 + $0x5c] ss:$36 sps:$4 sm:$0xff]   ;;  %v13886_v9 = vld [vmem:[%s17436_s5 + $0x220] sm:$0xff]   ;;  %v13878_v58 = vld [vmem:[#allocation6 + $0xec] ss:$36 sps:$4 sm:$0xff]  }
 0xe1e   :  { %12773 = vmatpush3.bf16.msra.mxu1 %v13864_v61  ;;  %v8711_v28 = vld [vmem:[#allocation6 + $0x58] sm:$0xff]  ;;  %v8721_v27 = vld [vmem:[#allocation6 + $0xa0] sm:$0xff]  ;;  %v13887_v51 = vld [vmem:[%s17436_s5 + $0x228] sm:$0xff]  }
 0xe1f   :  { %12819 = vmatpush3.bf16.msra.mxu0 %v13865_v18  ;;  %13069 = vmatprep.subr.bf16.mxu1 %v17153_v45  ;;  %v8716_v34 = vld [vmem:[#allocation6 + $0x7c] sm:$0xff]  ;;  %v11533_v2 = vcombine.low %v8721_v27, %v8726_v42  ;;  %v13882_v60 = vld [vmem:[#allocation6 + $0xf4] ss:$36 sps:$4 sm:$0xff]   ;;  %v8731_v59 = vld [vmem:[#allocation6 + $0xe8] sm:$0xff] }
 0xe20   :  { %9601 = vmatmul.mubr.bf16.gmra.mrb[192].mxu1 %v11547_v30  ;;  %13441 = vmatprep.subr.bf16.mxu0 %v17578_v36  ;;  %v11524_v39 = vcombine.low %v8711_v28, %v8716_v34  ;;  %v13884_v16 = vld [vmem:[%s17436_s5 + $0x218] sm:$0xff]   ;;  %v8736_v62 = vld [vmem:[#allocation6 + $0x10c] sm:$0xff]  ;;  %v13891_v15 = vld [vmem:[%s17436_s5 + $0x230] sm:$0xff]  }
 0xe21   :  { %9673 = vmatmul.mubr.bf16.gmra.mrb[244].mxu0 %v11549_v29  ;;  %9712 = vmatprep.mubr.bf16.mxu1 %v13857_v19  ;;  %v8742_v7 = vld [vmem:[#allocation6 + $0x138] sm:$0xff]  ;;  %v8741_v3 = vld [vmem:[#allocation6 + $0x130] sm:$0xff]  ;;  %v11542_v6 = vcombine.low %v8731_v59, %v8736_v62  ;;  %v13896_v44 = vld [vmem:[%s17438_s6] sm:$0xff]  }
 0xe22   :  { %9784 = vmatprep.mubr.bf16.mxu0 %v13861_v63  ;;  %v11554_v14 = vcombine.high %v8742_v7, %v8742_v7  ;;  %v13880_v17 = vld [vmem:[#allocation6 + $0xf0] ss:$36 sps:$4 sm:$0xff]   ;;  %v11552_v33 = vcombine.high %v8741_v3, %v8741_v3  ;;  %v13892_v11 = vld [vmem:[%s17436_s5 + $0x238] sm:$0xff]   ;;  %v11553_v46 = vcombine.low %v8742_v7, %v8742_v7  ;;  %v11551_v20 = vcombine.low %v8741_v3, %v8741_v3  ;;  %v13894_v55 = vld [vmem:[#allocation6 + $0x68] ss:$36 sps:$4 sm:$0xff]  }
 0xe23   :  { %v13893_v54 = vld [vmem:[#allocation6 + $0x20] ss:$36 sps:$4 sm:$0xff]   ;;  %v13898_v56 = vld [vmem:[%s17438_s6 + $0x8] sm:$0xff]   ;;  %v13900_v5 = vld [vmem:[%s17438_s6 + $0x10] sm:$0xff]  }
 0xe24   :  { %v13901_v23 = vld [vmem:[%s17438_s6 + $0x18] sm:$0xff]   ;;  %v13895_v48 = vld [vmem:[#allocation6 + $0xb0] ss:$36 sps:$4 sm:$0xff]   ;;  %v10094_v4 = vld [vmem:[#allocation5 + $0x38] sm:$0xff] }
 0xe25   :  { %v13897_v40 = vld [vmem:[#allocation6 + $0xf8] ss:$36 sps:$4 sm:$0xff]   ;;  %v13899_v49 = vld [vmem:[#allocation6 + $0x140] ss:$0 sps:$4 sm:$0xff]  }
 0xe26   :  { %v10093_v57 = vld [vmem:[#allocation5 + $0x10] sm:$0xff] }
 0xe28   :  { %9713 = vmatmul.mubr.bf16.vlgmr.msra.gmra.mrb[196].mxu1 %v13855_v50 }
 0xe29   :  { %9785 = vmatmul.mubr.bf16.vlgmr.msra.gmra.mrb[248].mxu0 %v13859_v10  ;;  %9720 = vmatprep.mubr.bf16.mxu1 %v13866_v25 }
 0xe2a   :  { %9792 = vmatprep.mubr.bf16.mxu0 %v13868_v13  ;;  %13070 = vmatpush3.bf16.msra.mxu1 %v13876_v52 }
 0xe2b   :  { %13071 = vmatprep.subr.bf16.mxu1 %v17153_v45 }
 0xe2e   :  { %13072 = vmatpush3.bf16.msra.mxu1 %v13877_v8 }
 0xe2f   :  { %13073 = vmatprep.subr.bf16.mxu1 %v17153_v45 }
 0xe30   :  { %9721 = vmatmul.mubr.bf16.gmra.mrb[200].mxu1 %v11524_v39 }
 0xe31   :  { %9793 = vmatmul.mubr.bf16.gmra.mrb[252].mxu0 %v13870_v41  ;;  %9728 = vmatprep.mubr.bf16.mxu1 %v13871_v38 }
 0xe32   :  { %9800 = vmatprep.mubr.bf16.mxu0 %v13875_v21  ;;  %13074 = vmatpush3.bf16.msra.mxu1 %v13883_v35 }
 0xe33   :  { %13075 = vmatprep.subr.bf16.mxu1 %v17153_v45 }
 0xe36   :  { %13076 = vmatpush3.bf16.msra.mxu1 %v13884_v16 }
 0xe37   :  { %13077 = vmatprep.subr.bf16.mxu1 %v17153_v45 }
 0xe38   :  { %9729 = vmatmul.mubr.bf16.gmra.mrb[204].mxu1 %v11533_v2 }
 0xe39   :  { %9801 = vmatmul.mubr.bf16.gmra.mrb[0].mxu0 %v13873_v26  ;;  %9736 = vmatprep.mubr.bf16.mxu1 %v13878_v58 }
 0xe3a   :  { %9808 = vmatprep.mubr.bf16.mxu0 %v13882_v60  ;;  %13078 = vmatpush3.bf16.msra.mxu1 %v13886_v9 }
 0xe3b   :  { %13079 = vmatprep.subr.bf16.mxu1 %v17153_v45 }
 0xe3e   :  { %13080 = vmatpush3.bf16.msra.mxu1 %v13887_v51 }
 0xe3f   :  { %13081 = vmatprep.subr.bf16.mxu1 %v17153_v45 }
 0xe40   :  { %9737 = vmatmul.mubr.bf16.gmra.mrb[208].mxu1 %v11542_v6 }
 0xe41   :  { %9809 = vmatmul.mubr.bf16.gmra.mrb[4].mxu0 %v13880_v17  ;;  %9744 = vmatprep.mubr.bf16.mxu1 %v11552_v33 }
 0xe42   :  { %9816 = vmatprep.mubr.bf16.mxu0 %v11554_v14  ;;  %13082 = vmatpush3.bf16.msra.mxu1 %v13891_v15 }
 0xe43   :  { %13083 = vmatprep.subr.bf16.mxu1 %v17153_v45 }
 0xe46   :  { %13084 = vmatpush3.bf16.msra.mxu1 %v13892_v11 }
 0xe47   :  { %13147 = vmatprep.subr.bf16.mxu1 %v13896_v44 }
 0xe48   :  { %9745 = vmatmul.mubr.bf16.gmra.mrb[212].mxu1 %v11551_v20 }
 0xe49   :  { %9817 = vmatmul.mubr.bf16.gmra.mrb[8].mxu0 %v11553_v46  ;;  %13085 = vmatprep.mubr.msk.bf16.mxu1 %vm13938_vm7, %v17153_v45 }
 0xe4a   :  { %13123 = vmatprep.mubr.msk.f32.mxu0 %vm13938_vm7, %v17153_v45 }
 0xe50   :  { %13086 = vmatmul.mubr.bf16.vlgmr.msra.gmra.mrb[216].mxu1 %v13893_v54 }
 0xe51   :  { %13089 = vmatprep.mubr.msk.bf16.mxu1 %vm13938_vm7, %v17153_v45  ;;  %13148 = vmatpush3.bf16.msra.mxu1 %v13896_v44 }
 0xe52   :  { %13149 = vmatprep.subr.bf16.mxu1 %v13898_v56 }
 0xe55   :  { %13150 = vmatpush3.bf16.msra.mxu1 %v13898_v56 }
 0xe56   :  { %13151 = vmatprep.subr.bf16.mxu1 %v13900_v5 }
 0xe58   :  { %13090 = vmatmul.mubr.bf16.gmra.mrb[220].mxu1 %v13894_v55 }
 0xe59   :  { %13093 = vmatprep.mubr.msk.bf16.mxu1 %vm13938_vm7, %v17153_v45  ;;  %13152 = vmatpush3.bf16.msra.mxu1 %v13900_v5 }
 0xe5a   :  { %13153 = vmatprep.subr.bf16.mxu1 %v13901_v23 }
 0xe5d   :  { %13154 = vmatpush3.bf16.msra.mxu1 %v13901_v23 }
 0xe60   :  { %13094 = vmatmul.mubr.bf16.gmra.mrb[224].mxu1 %v13895_v48 }
 0xe61   :  { %13097 = vmatprep.mubr.msk.bf16.mxu1 %vm13938_vm7, %v17153_v45 }
 0xe68   :  { %13098 = vmatmul.mubr.bf16.gmra.mrb[228].mxu1 %v13897_v40 }
 0xe69   :  { %13101 = vmatprep.mubr.msk.bf16.mxu1 %vm13938_vm7, %v17153_v45 }
 0xe70   :  { %13102 = vmatmul.mubr.bf16.gmra.mrb[232].mxu1 %v13899_v49 }
 0xe71   :  { %13155 = vmatprep.mubr.msk.bf16.mxu1 %vm69_vm3, %v10093_v57 }
 0xe78   :  { %13156 = vmatmul.mubr.msk.bf16.vlgmr.msra.gmra.mrb[236].mxu1 %vm69_vm3, %v10094_v4 }
 0xed0   :  { %v12682_v43 = vpop.f32.mrb[176].mxu1 }
 0xed1   :  { %v12683_v1 = vpop.f32.mrb[177].mxu1 }
 0xed2   :  { %v12684_v37 = vadd.f32 %v12683_v1, %v12682_v43  ;;  %v12685_v53 = vpop.f32.mrb[178].mxu1 }
 0xed3   :  { %v12728_v32 = vpop.f32.mrb[228].mxu0  ;;  %v12686_v18 = vpop.f32.mrb[179].mxu1 }
 0xed4   :  { %v12729_v0 = vpop.f32.mrb[229].mxu0  ;;  %v12687_v30 = vadd.f32 %v12686_v18, %v12685_v53 }
 0xed5   :  { %v12730_v12 = vadd.f32 %v12729_v0, %v12728_v32  ;;  %v12731_v61 = vpop.f32.mrb[230].mxu0 }
 0xed6   :  { %v12732_v29 = vpop.f32.mrb[231].mxu0 }
 0xed7   :  { %v17214_v19 = vadd.f32 %v12730_v12, %v12684_v37  ;;  %v12733_v63 = vadd.f32 %v12732_v29, %v12731_v61 }
 0xed9   :  { %v17216_v50 = vadd.f32 %v12733_v63, %v12687_v30 }
 0xedb   :  { %v12688_v52 = vpop.f32.mrb[180].mxu1  ;;  %v12734_v10 = vpop.f32.mrb[232].mxu0 }
 0xedc   :  { %v12689_v25 = vpop.f32.mrb[181].mxu1  ;;  %v12735_v8 = vpop.f32.mrb[233].mxu0 }
 0xedd   :  { %v12690_v13 = vadd.f32 %v12689_v25, %v12688_v52  ;;  %v12691_v28 = vpop.f32.mrb[182].mxu1  ;;  %v12736_v34 = vadd.f32 %v12735_v8, %v12734_v10  ;;  %v12737_v39 = vpop.f32.mrb[234].mxu0 }
 0xede   :  { %v12692_v35 = vpop.f32.mrb[183].mxu1  ;;  %v12738_v38 = vpop.f32.mrb[235].mxu0 }
 0xedf   :  { %v12693_v41 = vadd.f32 %v12692_v35, %v12691_v28  ;;  %v17218_v21 = vadd.f32 %v12736_v34, %v12690_v13  ;;  %v12739_v16 = vadd.f32 %v12738_v38, %v12737_v39 }
 0xee1   :  { %v17220_v27 = vadd.f32 %v12739_v16, %v12693_v41 }
 0xee3   :  { %v12694_v42 = vpop.f32.mrb[184].mxu1 }
 0xee4   :  { %v12740_v2 = vpop.f32.mrb[236].mxu0  ;;  %v12695_v9 = vpop.f32.mrb[185].mxu1 }
 0xee5   :  { %v12696_v26 = vadd.f32 %v12695_v9, %v12694_v42  ;;  %v12741_v58 = vpop.f32.mrb[237].mxu0  ;;  %v12697_v60 = vpop.f32.mrb[186].mxu1 }
 0xee6   :  { %v12742_v51 = vadd.f32 %v12741_v58, %v12740_v2  ;;  %v12743_v59 = vpop.f32.mrb[238].mxu0  ;;  %v12698_v62 = vpop.f32.mrb[187].mxu1 }
 0xee7   :  { %v12699_v7 = vadd.f32 %v12698_v62, %v12697_v60  ;;  %v12744_v3 = vpop.f32.mrb[239].mxu0 }
 0xee8   :  { %v17222_v6 = vadd.f32 %v12742_v51, %v12696_v26  ;;  %v12745_v14 = vadd.f32 %v12744_v3, %v12743_v59 }
 0xeea   :  { %v17224_v15 = vadd.f32 %v12745_v14, %v12699_v7 }
 0xeeb   :  { %v12700_v17 = vpop.f32.mrb[188].mxu1 }
 0xeec   :  { %v12746_v33 = vpop.f32.mrb[240].mxu0  ;;  %v12701_v11 = vpop.f32.mrb[189].mxu1 }
 0xeed   :  { %v12702_v44 = vadd.f32 %v12701_v11, %v12700_v17  ;;  %v12747_v46 = vpop.f32.mrb[241].mxu0  ;;  %v12703_v20 = vpop.f32.mrb[190].mxu1 }
 0xeee   :  { %v12748_v54 = vadd.f32 %v12747_v46, %v12746_v33  ;;  %v12749_v56 = vpop.f32.mrb[242].mxu0  ;;  %v12704_v5 = vpop.f32.mrb[191].mxu1 }
 0xeef   :  { %v12705_v55 = vadd.f32 %v12704_v5, %v12703_v20  ;;  %v12750_v23 = vpop.f32.mrb[243].mxu0 }
 0xef0   :  { %v17226_v48 = vadd.f32 %v12748_v54, %v12702_v44  ;;  %v12751_v40 = vadd.f32 %v12750_v23, %v12749_v56 }
 0xef2   :  { %v17228_v49 = vadd.f32 %v12751_v40, %v12705_v55 }
 0xef3   :  { %v12706_v57 = vpop.f32.mrb[192].mxu1 }
 0xef4   :  { %v12752_v4 = vpop.f32.mrb[244].mxu0  ;;  %v12707_v43 = vpop.f32.mrb[193].mxu1 }
 0xef5   :  { %v12708_v32 = vadd.f32 %v12707_v43, %v12706_v57  ;;  %v12753_v1 = vpop.f32.mrb[245].mxu0  ;;  %v12709_v37 = vpop.f32.mrb[194].mxu1 }
 0xef6   :  { %v12754_v0 = vadd.f32 %v12753_v1, %v12752_v4  ;;  %v12755_v53 = vpop.f32.mrb[246].mxu0  ;;  %v12710_v12 = vpop.f32.mrb[195].mxu1 }
 0xef7   :  { %v12756_v61 = vpop.f32.mrb[247].mxu0 }
 0xef8   :  { %v17230_v18 = vadd.f32 %v12754_v0, %v12708_v32 }
 0xefb   :  { %v12774_v30 = vpop.f32.mrb[196].mxu1 }
 0xefc   :  { %v12820_v29 = vpop.f32.mrb[248].mxu0  ;;  %v12775_v63 = vpop.f32.mrb[197].mxu1 }
 0xefd   :  { %v12776_v52 = vadd.f32 %v12775_v63, %v12774_v30  ;;  %v12821_v10 = vpop.f32.mrb[249].mxu0  ;;  %v12777_v25 = vpop.f32.mrb[198].mxu1 }
 0xefe   :  { %v12822_v13 = vadd.f32 %v12821_v10, %v12820_v29  ;;  %v12823_v8 = vpop.f32.mrb[250].mxu0  ;;  %v12778_v28 = vpop.f32.mrb[199].mxu1 }
 0xeff   :  { %v9715_v34 = vadd.f32 %v12776_v52, %v17214_v19  ;;  %v12779_v39 = vadd.f32 %v12778_v28, %v12777_v25  ;;  %v12824_v35 = vpop.f32.mrb[251].mxu0 }
 0xf00   :  { %v12825_v41 = vadd.f32 %v12824_v35, %v12823_v8 }
 0xf01   :  { %v9718_v38 = vadd.f32 %v12779_v39, %v17216_v50  ;;  %v17234_v16 = vadd.f32 %v12822_v13, %v9715_v34 }
 0xf03   :  { %v12780_v42 = vpop.f32.mrb[200].mxu1  ;;  %v17236_v2 = vadd.f32 %v12825_v41, %v9718_v38 }
 0xf04   :  { %v12826_v9 = vpop.f32.mrb[252].mxu0  ;;  %v12781_v26 = vpop.f32.mrb[201].mxu1 }
 0xf05   :  { %v12782_v58 = vadd.f32 %v12781_v26, %v12780_v42  ;;  %v12827_v60 = vpop.f32.mrb[253].mxu0  ;;  %v12783_v51 = vpop.f32.mrb[202].mxu1 }
 0xf06   :  { %v12828_v59 = vadd.f32 %v12827_v60, %v12826_v9  ;;  %v12829_v62 = vpop.f32.mrb[254].mxu0  ;;  %v12784_v7 = vpop.f32.mrb[203].mxu1 }
 0xf07   :  { %v9723_v19 = vadd.f32 %v12782_v58, %v17218_v21  ;;  %v12785_v3 = vadd.f32 %v12784_v7, %v12783_v51  ;;  %v12830_v14 = vpop.f32.mrb[255].mxu0 }
 0xf08   :  { %v12831_v17 = vadd.f32 %v12830_v14, %v12829_v62 }
 0xf09   :  { %v9726_v50 = vadd.f32 %v12785_v3, %v17220_v27  ;;  %v9795_v33 = vadd.f32 %v12828_v59, %v9723_v19 }
 0xf0b   :  { %v12786_v11 = vpop.f32.mrb[204].mxu1  ;;  %v9798_v44 = vadd.f32 %v12831_v17, %v9726_v50 }
 0xf0c   :  { %v12832_v46 = vpop.f32.mrb[0].mxu0  ;;  %v12787_v20 = vpop.f32.mrb[205].mxu1 }
 0xf0d   :  { %v12788_v54 = vadd.f32 %v12787_v20, %v12786_v11  ;;  %v12833_v56 = vpop.f32.mrb[1].mxu0  ;;  %v12789_v5 = vpop.f32.mrb[206].mxu1 }
 0xf0e   :  { %v12834_v55 = vadd.f32 %v12833_v56, %v12832_v46  ;;  %v12835_v23 = vpop.f32.mrb[2].mxu0  ;;  %v12790_v40 = vpop.f32.mrb[207].mxu1 }
 0xf0f   :  { %v9731_v57 = vadd.f32 %v12788_v54, %v17222_v6  ;;  %v12791_v4 = vadd.f32 %v12790_v40, %v12789_v5  ;;  %v12836_v21 = vpop.f32.mrb[3].mxu0 }
 0xf10   :  { %v12837_v43 = vadd.f32 %v12836_v21, %v12835_v23 }
 0xf11   :  { %v9734_v32 = vadd.f32 %v12791_v4, %v17224_v15  ;;  %v9803_v1 = vadd.f32 %v12834_v55, %v9731_v57 }
 0xf13   :  { %v12792_v27 = vpop.f32.mrb[208].mxu1  ;;  %v9806_v37 = vadd.f32 %v12837_v43, %v9734_v32 }
 0xf14   :  { %v12838_v0 = vpop.f32.mrb[4].mxu0  ;;  %v12793_v53 = vpop.f32.mrb[209].mxu1 }
 0xf15   :  { %v12794_v12 = vadd.f32 %v12793_v53, %v12792_v27  ;;  %v12839_v61 = vpop.f32.mrb[5].mxu0  ;;  %v12795_v30 = vpop.f32.mrb[210].mxu1 }
 0xf16   :  { %v12840_v29 = vadd.f32 %v12839_v61, %v12838_v0  ;;  %v12841_v63 = vpop.f32.mrb[6].mxu0  ;;  %v12796_v52 = vpop.f32.mrb[211].mxu1 }
 0xf17   :  { %v9739_v10 = vadd.f32 %v12794_v12, %v17226_v48  ;;  %v12797_v25 = vadd.f32 %v12796_v52, %v12795_v30  ;;  %v12842_v6 = vpop.f32.mrb[7].mxu0  ;;  %v43_v12 = vld [vmem:[%s17430_s10 + $0x1] sm:$0x1] }
 0xf18   :  { %v12843_v13 = vadd.f32 %v12842_v6, %v12841_v63 }
 0xf19   :  { %v9742_v8 = vadd.f32 %v12797_v25, %v17228_v49  ;;  %v9811_v28 = vadd.f32 %v12840_v29, %v9739_v10 }
 0xf1b   :  { %v12798_v15 = vpop.f32.mrb[212].mxu1  ;;  %v9814_v34 = vadd.f32 %v12843_v13, %v9742_v8 }
 0xf1c   :  { %v12799_v39 = vpop.f32.mrb[213].mxu1  ;;  %v12844_v35 = vpop.f32.mrb[8].mxu0 }
 0xf1d   :  { %v12800_v41 = vadd.f32 %v12799_v39, %v12798_v15  ;;  %v12801_v38 = vpop.f32.mrb[214].mxu1  ;;  %v12845_v42 = vpop.f32.mrb[9].mxu0 }
 0xf1e   :  { %v12802_v9 = vpop.f32.mrb[215].mxu1  ;;  %v12846_v26 = vadd.f32 %v12845_v42, %v12844_v35  ;;  %v12847_v58 = vpop.f32.mrb[10].mxu0 }
 0xf1f   :  { %v9747_v60 = vadd.f32 %v12800_v41, %v17230_v18  ;;  %v12848_v51 = vpop.f32.mrb[11].mxu0 }
 0xf21   :  { %v9819_v48 = vadd.f32 %v12846_v26, %v9747_v60 }
 0xf23   :  { %v9858_v59 = vpop.f32.mrb[216].mxu1 }
 0xf24   :  { %v17246_v62 = vadd.f32 %v9858_v59, %v17234_v16  ;;  %v13087_v49 = vpop.f32.mrb[217].mxu1 }
 0xf25   :  { %v9861_v7 = vpop.f32.mrb[218].mxu1  ;;  %v13902_v49 = vld [vmem:[%s17438_s6 + $0x20] sm:$0xff]  }
 0xf26   :  { %v17249_v19 = vadd.f32 %v9861_v7, %v17236_v2  ;;  %v13088_v3 = vpop.f32.mrb[219].mxu1  ;;  %v13903_v7 = vld [vmem:[%s17438_s6 + $0x28] sm:$0xff]   ;;  %13181 = vmatprep.subr.bf16.mxu1 %v13902_v49 }
 0xf27   :  { %13182 = vmatpush3.bf16.msra.mxu1 %v13902_v49  ;;  %v13910_v3 = vld [vmem:[%s17438_s6 + $0x60] sm:$0xff]  }
 0xf28   :  { %v13442_v14 = vpack.c.bf16 %v17249_v19, %v17246_v62  ;;  %13183 = vmatprep.subr.bf16.mxu1 %v13903_v7 }
 0xf2a   :  { %13443 = vmatpush3.bf16.msra.mxu0 %v13442_v14  ;;  %v13907_v14 = vld [vmem:[%s17438_s6 + $0x48] sm:$0xff]  }
 0xf2b   :  { %v9866_v17 = vpop.f32.mrb[220].mxu1  ;;  %13444 = vmatprep.subr.bf16.mxu0 %v17578_v36  ;;  %13184 = vmatpush3.bf16.msra.mxu1 %v13903_v7 }
 0xf2c   :  { %v17254_v18 = vadd.f32 %v9866_v17, %v9795_v33  ;;  %v13091_v50 = vpop.f32.mrb[221].mxu1  ;;  %v13908_v17 = vld [vmem:[%s17438_s6 + $0x50] sm:$0xff]  }
 0xf2d   :  { %v9869_v11 = vpop.f32.mrb[222].mxu1  ;;  %v13909_v50 = vld [vmem:[%s17438_s6 + $0x58] sm:$0xff]  }
 0xf2e   :  { %v17256_v46 = vadd.f32 %v9869_v11, %v9798_v44  ;;  %v13092_v16 = vpop.f32.mrb[223].mxu1  ;;  %v9972_v52 = vmul.f32 %v17254_v18, %v17254_v18 }
 0xf30   :  { %v13445_v20 = vpack.c.bf16 %v17256_v46, %v17254_v18  ;;  %v9973_v29 = vmul.f32 %v17256_v46, %v17256_v46 }
 0xf32   :  { %13446 = vmatpush3.bf16.msra.mxu0 %v13445_v20  ;;  %v13457_v25 = vpack.c.bf16 %v9973_v29, %v9972_v52 }
 0xf33   :  { %v9874_v2 = vpop.f32.mrb[224].mxu1  ;;  %13447 = vmatprep.subr.bf16.mxu0 %v17578_v36 }
 0xf34   :  { %v9875_v54 = vadd.f32 %v9874_v2, %v9803_v1  ;;  %v13095_v56 = vpop.f32.mrb[225].mxu1  ;;  %v9971_v1 = vmul.f32 %v17249_v19, %v17249_v19 }
 0xf35   :  { %v9877_v5 = vpop.f32.mrb[226].mxu1 }
 0xf36   :  { %v17261_v55 = vadd.f32 %v9877_v5, %v9806_v37  ;;  %v13096_v23 = vpop.f32.mrb[227].mxu1  ;;  %v9970_v37 = vmul.f32 %v17246_v62, %v17246_v62  ;;  %v9974_v6 = vmul.f32 %v9875_v54, %v9875_v54 }
 0xf38   :  { %v13448_v33 = vpack.c.bf16 %v17261_v55, %v9875_v54  ;;  %v13454_v30 = vpack.c.bf16 %v9971_v1, %v9970_v37  ;;  %v9975_v10 = vmul.f32 %v17261_v55, %v17261_v55  ;;  %v9896_v1 = vld [vmem:[%s17437_s8 + $0x2] sm:$0x3] }
 0xf3a   :  { %13449 = vmatpush3.bf16.msra.mxu0 %v13448_v33 }
 0xf3b   :  { %v9882_v40 = vpop.f32.mrb[228].mxu1  ;;  %13450 = vmatprep.subr.bf16.mxu0 %v17578_v36 }
 0xf3c   :  { %v17265_v44 = vadd.f32 %v9882_v40, %v9811_v28  ;;  %v13099_v57 = vpop.f32.mrb[229].mxu1  ;;  %v13460_v28 = vpack.c.bf16 %v9975_v10, %v9974_v6 }
 0xf3d   :  { %v9885_v4 = vpop.f32.mrb[230].mxu1 }
 0xf3e   :  { %v17267_v21 = vadd.f32 %v9885_v4, %v9814_v34  ;;  %v13100_v43 = vpop.f32.mrb[231].mxu1  ;;  %v9976_v58 = vmul.f32 %v17265_v44, %v17265_v44 }
 0xf40   :  { %v13451_v32 = vpack.c.bf16 %v17267_v21, %v17265_v44  ;;  %v9977_v34 = vmul.f32 %v17267_v21, %v17267_v21 }
 0xf42   :  { %13452 = vmatpush3.bf16.msra.mxu0 %v13451_v32 }
 0xf43   :  { %v9890_v27 = vpop.f32.mrb[232].mxu1  ;;  %13121 = vmatprep.subr.mxu0 %v17153_v45 }
 0xf44   :  { %v17276_v0 = vadd.f32 %v9890_v27, %v9819_v48  ;;  %v13103_v53 = vpop.f32.mrb[233].mxu1  ;;  %v13463_v48 = vpack.c.bf16 %v9977_v34, %v9976_v58 }
 0xf45   :  { %v9893_v61 = vpop.f32.mrb[234].mxu1 }
 0xf46   :  { %13122 = vmatpush3.msra.mxu0 %v17276_v0  ;;  %v13104_v63 = vpop.f32.mrb[235].mxu1  ;;  %v9978_v59 = vmul.f32 %v17276_v0, %v17276_v0 }
 0xf47   :  { %13453 = vmatprep.subr.bf16.mxu0 %v17578_v36  ;;  %13124 = vmatmul.mubr.msk.f32.vlgmr.msra.gmra.mrb[226].mxu0 %vm524_vm2, %v43_v12 }
 0xf48   :  { %13455 = vmatpush3.bf16.msra.mxu0 %v13454_v30  ;;  %13144 = vmatprep.mubr.msk.f32.mxu0 %vm13938_vm7, %v17153_v45 }
 0xf49   :  { %13456 = vmatprep.subr.bf16.mxu0 %v17578_v36 }
 0xf4b   :  { %v17293_v13 = vpop.f32.mrb[236].mxu1 }
 0xf4c   :  { %13458 = vmatpush3.bf16.msra.mxu0 %v13457_v25  ;;  %v17295_v8 = vpop.f32.mrb[237].mxu1  ;;  %v10255_v39 = vmul.f32 %v17293_v13, %v17293_v13 }
 0xf4d   :  { %v17297_v15 = vpop.f32.mrb[238].mxu1  ;;  %13459 = vmatprep.subr.bf16.mxu0 %v17578_v36  ;;  %v10253_v42 = vmul.f32 %v17295_v8, %v17295_v8 }
 0xf4e   :  { %v13469_v35 = vpack.c.bf16 %v17297_v15, %v17293_v13  ;;  %v10256_v41 = vmul.f32 %v17297_v15, %v17297_v15  ;;  %v17308_v38 = vpop.f32.mrb[239].mxu1 }
 0xf4f   :  { %v13466_v9 = vpack.c.bf16 %v17308_v38, %v17295_v8  ;;  %v10254_v26 = vmul.f32 %v17308_v38, %v17308_v38 }
 0xf50   :  { %v13475_v60 = vpack.c.bf16 %v10256_v41, %v10255_v39  ;;  %13461 = vmatpush3.bf16.msra.mxu0 %v13460_v28 }
 0xf51   :  { %v13472_v51 = vpack.c.bf16 %v10254_v26, %v10253_v42  ;;  %13462 = vmatprep.subr.bf16.mxu0 %v17578_v36 }
 0xf54   :  { %13464 = vmatpush3.bf16.msra.mxu0 %v13463_v48 }
 0xf55   :  { %13142 = vmatprep.subr.mxu0 %v17153_v45 }
 0xf58   :  { %13143 = vmatpush3.msra.mxu0 %v9978_v59 }
 0xf59   :  { %13145 = vmatmul.mubr.msk.f32.vlgmr.msra.gmra.mrb[12].mxu0 %vm524_vm2, %v43_v12  ;;  %13465 = vmatprep.subr.bf16.mxu0 %v17578_v36  ;;  %vm10370_vm2 = vcmask 1046528  }
 0xf5a   :  { %13467 = vmatpush3.bf16.msra.mxu0 %v13466_v9  ;;  %13167 = vmatprep.mubr.msk.f32.mxu0 %vm13938_vm7, %v17153_v45 }
 0xf5b   :  { %13468 = vmatprep.subr.bf16.mxu0 %v17578_v36 }
 0xf5e   :  { %13470 = vmatpush3.bf16.msra.mxu0 %v13469_v35 }
 0xf5f   :  { %13471 = vmatprep.subr.bf16.mxu0 %v17578_v36 }
 0xf61   :  { %13168 = vmatmul.mubr.msk.f32.vlgmr.msra.gmra.mrb[14].mxu0 %vm8008_vm0, %v13939_v24 }
 0xf62   :  { %13473 = vmatpush3.bf16.msra.mxu0 %v13472_v51  ;;  %13178 = vmatprep.mubr.msk.f32.mxu0 %vm13938_vm7, %v17153_v45  ;;  %v13904_v45 = vld [vmem:[%s17438_s6 + $0x30] sm:$0xff]  }
 0xf63   :  { %13474 = vmatprep.subr.bf16.mxu0 %v17578_v36  ;;  %13185 = vmatprep.subr.bf16.mxu1 %v13904_v45  ;;  %v13905_v36 = vld [vmem:[%s17438_s6 + $0x38] sm:$0xff]  }
 0xf64   :  { %13186 = vmatpush3.bf16.msra.mxu1 %v13904_v45 }
 0xf65   :  { %13187 = vmatprep.subr.bf16.mxu1 %v13905_v36 }
 0xf66   :  { %13476 = vmatpush3.bf16.msra.mxu0 %v13475_v60 }
 0xf67   :  { %13201 = vmatprep.subr.bf16.mxu0 %v13910_v3 }
 0xf68   :  { %13188 = vmatpush3.bf16.msra.mxu1 %v13905_v36 }
 0xf69   :  { %13179 = vmatmul.mubr.msk.f32.vlgmr.msra.gmra.mrb[16].mxu0 %vm8008_vm0, %v13939_v24  ;;  %v13906_v24 = vld [vmem:[%s17438_s6 + $0x40] sm:$0xff]  }
 0xf6a   :  { %13189 = vmatprep.subr.bf16.mxu1 %v13906_v24  ;;  %13202 = vmatpush3.bf16.msra.mxu0 %v13910_v3 }
 0xf6c   :  { %13190 = vmatpush3.bf16.msra.mxu1 %v13906_v24 }
 0xf6d   :  { %13191 = vmatprep.subr.bf16.mxu1 %v13907_v14 }
 0xf70   :  { %13192 = vmatpush3.bf16.msra.mxu1 %v13907_v14 }
 0xf71   :  { %13193 = vmatprep.subr.bf16.mxu1 %v13908_v17 }
 0xf74   :  { %13194 = vmatpush3.bf16.msra.mxu1 %v13908_v17 }
 0xf75   :  { %13195 = vmatprep.subr.bf16.mxu1 %v13909_v50 }
 0xf78   :  { %13196 = vmatpush3.bf16.msra.mxu1 %v13909_v50 }
0x101a   :  { %v9966_v11 = vpop.f32.mrb[226].mxu0 }
0x101b   :  { %v13125_v16 = vpop.f32.mrb[227].mxu0  ;;  %v10049_v20 = vmul.f32 0.03125, %v9966_v11 }
0x101d   :  { %v10051_v54 = vmul.f32 %v10049_v20, %v10049_v20 }
0x102c   :  { %v10045_v2 = vpop.f32.mrb[12].mxu0 }
0x102d   :  { %v10050_v56 = vmul.f32 0.03125, %v10045_v2  ;;  %v13146_v5 = vpop.f32.mrb[13].mxu0 }
0x102f   :  { %v10052_v23 = vsub.f32 %v10050_v56, %v10051_v54 }
0x1031   :  { %v10053_v33 = vmax.f32 %v10052_v23, 0.0 }
0x1033   :  { %v10054_v40 = vadd.f32 1e-05, %v10053_v33 }
0x1034   :  { %v10249_v57 = vpop.f32.mrb[14].mxu0 }
0x1035   :  { %13922 = vrsqrt.f32 %v10054_v40  ;;  %v13169_v4 = vpop.f32.mrb[15].mxu0  ;;  %v10327_v43 = vmul.f32 0.03125, %v10249_v57 }
0x1037   :  { %v10329_v27 = vmul.f32 %v10327_v43, %v10327_v43 }
0x103c   :  { %v10323_v32 = vpop.f32.mrb[16].mxu0 }
0x103d   :  { %v10328_v37 = vmul.f32 0.03125, %v10323_v32  ;;  %v13180_v53 = vpop.f32.mrb[17].mxu0 }
0x103f   :  { %v13923_v12 = vpop.eup %13922  ;;  %v10330_v61 = vsub.f32 %v10328_v37, %v10329_v27 }
0x1040   :  { %v10056_v30 = vmul.f32 %v13923_v12, %v9896_v1 }
0x1041   :  { %v10331_v29 = vmax.f32 %v10330_v61, 0.0 }
0x1042   :  { %v10057_v63 = vmul.f32 %v10056_v30, %v10049_v20  ;;  %v10072_v25 = vrot.slane %v10056_v30, %v17580_v22 }
0x1043   :  { %v10332_v52 = vadd.f32 1e-05, %v10331_v29 }
0x1044   :  { %v10065_v10 = vrot.slane %v10057_v63, %v17579_v47  ;;  %v10073_v34 = vmul.f32 %v10072_v25, %v17246_v62  ;;  %v10074_v35 = vmul.f32 %v10072_v25, %v17249_v19  ;;  %v10075_v41 = vmul.f32 %v10072_v25, %v17254_v18  ;;  %v10182_v19 = vld [vmem:[%s17437_s8 + $0x4] sm:$0x3] }
0x1045   :  { %13924 = vrsqrt.f32 %v10332_v52  ;;  %v10076_v42 = vmul.f32 %v10072_v25, %v17256_v46  ;;  %v10077_v9 = vmul.f32 %v10072_v25, %v17261_v55  ;;  %v10078_v26 = vmul.f32 %v10072_v25, %v17265_v44 }
0x1046   :  { %v10066_v6 = vrot.slane %v10065_v10, 7  ;;  %v10079_v58 = vmul.f32 %v10072_v25, %v17267_v21  ;;  %v10080_v60 = vmul.f32 %v10072_v25, %v17276_v0 }
0x1048   :  { %v10068_v28 = vsub.f32 %v9896_v1, %v10066_v6 }
0x104a   :  { %v10084_v39 = vrot.slane %v10068_v28, %v17581_v31 }
0x104c   :  { %v10085_v51 = vadd.f32 %v10084_v39, %v10073_v34  ;;  %v10086_v62 = vadd.f32 %v10084_v39, %v10074_v35  ;;  %v10087_v48 = vadd.f32 %v10084_v39, %v10075_v41  ;;  %v10088_v59 = vadd.f32 %v10084_v39, %v10076_v42  ;;  %v13911_v35 = vld [vmem:[%s17438_s6 + $0x68] sm:$0xff]   ;;  %v10553_v41 = vld [vmem:[%s17439_s9] sm:$0x3]  ;;  %v13912_v42 = vld [vmem:[%s17438_s6 + $0x70] sm:$0xff]  }
0x104d   :  { %v10089_v49 = vadd.f32 %v10084_v39, %v10077_v9  ;;  %v10090_v18 = vadd.f32 %v10084_v39, %v10078_v26  ;;  %v10091_v7 = vadd.f32 %v10084_v39, %v10079_v58  ;;  %v10092_v46 = vadd.f32 %v10084_v39, %v10080_v60  ;;  %13203 = vmatprep.subr.bf16.mxu0 %v13911_v35  ;;  %v13913_v9 = vld [vmem:[%s17438_s6 + $0x78] sm:$0xff]   ;;  %v11638_v60 = vld [vmem:[%s17439_s9] ss:$0 sm:$0xff] }
0x104e   :  { %v10365_v45 = vrot.slane %v10085_v51, 7  ;;  %v10366_v55 = vrot.slane %v10086_v62, 7  ;;  %v10371_v36 = vrot.slane %v10086_v62, 1  ;;  %v10372_v44 = vrot.slane %v10087_v48, 1  ;;  %13204 = vmatpush3.bf16.msra.mxu0 %v13911_v35 }
0x104f   :  { %v13925_v24 = vpop.eup %13924  ;;  %v10375_v21 = vrot.slane %v10087_v48, 3  ;;  %v10378_v3 = vrot.slane %v10088_v59, 5  ;;  %v10381_v0 = vrot.slane %v10089_v49, 3  ;;  %v10384_v14 = vrot.slane %v10090_v18, 5  ;;  %13205 = vmatprep.subr.bf16.mxu0 %v13912_v42 }
0x1050   :  { %v10334_v17 = vmul.f32 %v13925_v24, %v10182_v19  ;;  %v10367_v50 = vsel %vm373_vm1, %v10365_v45, %v10366_v55  ;;  %v10373_v11 = vsel %vm10370_vm2, %v10371_v36, %v10372_v44  ;;  %v10387_v16 = vrot.slane %v10090_v18, 7 }
0x1051   :  { %v10397_v20 = vsel %vm10396_vm4, %v10367_v50, %v10373_v11  ;;  %v10398_v2 = vsel %vm10396_vm4, %v10375_v21, %v10378_v3  ;;  %v10388_v54 = vrot.slane %v10091_v7, 7  ;;  %v10392_v56 = vrot.slane %v10091_v7, 1 }
0x1052   :  { %v10335_v5 = vmul.f32 %v10334_v17, %v10327_v43  ;;  %v10350_v23 = vrot.slane %v10334_v17, %v17580_v22  ;;  %v10393_v33 = vrot.slane %v10092_v46, 1  ;;  %v10399_v40 = vsel %vm10396_vm4, %v10381_v0, %v10384_v14  ;;  %13206 = vmatpush3.bf16.msra.mxu0 %v13912_v42 }
0x1053   :  { %v10389_v57 = vsel %vm373_vm1, %v10387_v16, %v10388_v54  ;;  %v10562_v26 = vrot.slane %v10553_v41, %v17581_v31  ;;  %v10558_v58 = vrot.slane %v10553_v41, %v17580_v22  ;;  %13207 = vmatprep.subr.bf16.mxu0 %v13913_v9 }
0x1054   :  { %v10343_v4 = vrot.slane %v10335_v5, %v17579_v47  ;;  %v10351_v32 = vmul.f32 %v10350_v23, %v17295_v8  ;;  %v10352_v1 = vmul.f32 %v10350_v23, %v17308_v38  ;;  %v10353_v27 = vmul.f32 %v17293_v13, %v10350_v23 }
0x1055   :  { %v10354_v37 = vmul.f32 %v17297_v15, %v10350_v23  ;;  %v10394_v53 = vsel %vm10370_vm2, %v10392_v56, %v10393_v33  ;;  %10589 = vrot.lane.b32.xlu1 %v10562_v26, %s13936_s21  ;;  %10587 = vrot.lane.b32.xlu0 %v10558_v58, %s13936_s21 }
0x1056   :  { %v10344_v43 = vrot.slane %v10343_v4, 7  ;;  %v10400_v12 = vsel %vm10396_vm4, %v10389_v57, %v10394_v53  ;;  %13208 = vmatpush3.bf16.msra.mxu0 %v13913_v9 }
0x1058   :  { %v10346_v61 = vsub.f32 %v10182_v19, %v10344_v43 }
0x105a   :  { %v10358_v30 = vrot.slane %v10346_v61, %v17581_v31 }
0x105c   :  { %v10359_v29 = vadd.f32 %v10358_v30, %v10351_v32  ;;  %v10360_v63 = vadd.f32 %v10358_v30, %v10352_v1  ;;  %v10361_v52 = vadd.f32 %v10358_v30, %v10353_v27  ;;  %v10362_v47 = vadd.f32 %v10358_v30, %v10354_v37 }
0x105e   :  { %v10401_v10 = vadd.f32 %v10397_v20, %v10359_v29  ;;  %v10402_v8 = vadd.f32 %v10398_v2, %v10360_v63  ;;  %v10403_v25 = vadd.f32 %v10399_v40, %v10361_v52  ;;  %v10404_v38 = vadd.f32 %v10400_v12, %v10362_v47 }
0x1060   :  { %v10405_v6 = vmax.f32 %v10401_v10, 0.0  ;;  %v10406_v13 = vmax.f32 %v10402_v8, 0.0  ;;  %v10407_v28 = vmax.f32 %v10403_v25, 0.0  ;;  %v10408_v15 = vmax.f32 %v10404_v38, 0.0 }
0x1062   :  { %v10409_v34 = vpack.c.bf16 %v10406_v13, %v10405_v6  ;;  %v10410_v39 = vpack.c.bf16 %v10408_v15, %v10407_v28 }
0x1064   :  { %13197 = vmatprep.mubr.bf16.mxu1 %v10409_v34 }
0x1065   :  { %13198 = vmatmul.mubr.bf16.vlgmr.msra.gmra.mrb[240].mxu1 %v10410_v39 }
0x10c7   :  { %v10590_v0 = vpop.permute.xlu1 %10589  ;;  %v10588_v14 = vpop.permute.xlu0 %10587 }
0x10c8   :  { %v10591_v17 = vsel %vm69_vm3, %v10588_v14, %v10590_v0 }
0x1138   :  { %v13199_v51 = vpop.f32.mrb[240].mxu1 }
0x1139   :  { %v10525_v62 = vadd.f32 %v13199_v51, %v11638_v60  ;;  %v10516_v48 = vpop.f32.mrb[241].mxu1 }
0x113a   :  { %v10517_v59 = vadd.f32 %v11638_v60, %v10516_v48  ;;  %v13200_v19 = vpop.f32.mrb[242].mxu1 }
0x113b   :  { %v10537_v49 = vmul.f32 0.2, %v10525_v62  ;;  %v10528_v18 = vadd.f32 %v13200_v19, %v11638_v60  ;;  %v10519_v31 = vpop.f32.mrb[243].mxu1  ;;  %vm10533_vm1 = vcmp.gt.f32.partialorder %v10525_v62, 0.0 }
0x113c   :  { %v10535_v22 = vmul.f32 0.2, %v10517_v59  ;;  %v10520_v7 = vadd.f32 %v11638_v60, %v10519_v31  ;;  %vm10531_vm5 = vcmp.gt.f32.partialorder %v10517_v59, 0.0 }
0x113d   :  { %vm10534_vm6 = vcmp.gt.f32.partialorder %v10528_v18, 0.0  ;;  %v10538_v46 = vmul.f32 0.2, %v10528_v18  ;;  %v10541_v55 = vsel %vm10533_vm1, %v10525_v62, %v10537_v49 }
0x113e   :  { %vm10532_vm7 = vcmp.gt.f32.partialorder %v10520_v7, 0.0  ;;  %v10536_v45 = vmul.f32 0.2, %v10520_v7  ;;  %v10539_v44 = vsel %vm10531_vm5, %v10517_v59, %v10535_v22 }
0x113f   :  { %v10542_v36 = vsel %vm10534_vm6, %v10528_v18, %v10538_v46 }
0x1140   :  { %v10544_v24 = vpack.c.bf16 %v10542_v36, %v10541_v55  ;;  %v10540_v21 = vsel %vm10532_vm7, %v10520_v7, %v10536_v45 }
0x1141   :  { %v10543_v3 = vpack.c.bf16 %v10540_v21, %v10539_v44 }
0x1143   :  { %13209 = vmatprep.mubr.msk.bf16.mxu0 %vm69_vm3, %v10543_v3 }
0x1144   :  { %13210 = vmatmul.mubr.msk.bf16.vlgmr.msra.gmra.mrb[20].mxu0 %vm69_vm3, %v10544_v24 }
0x1217   :  { %v13211_v50 = vpop.f32.mrb[20].mxu0 }
0x1218   :  { %v10642_v11 = vadd.f32 %v13211_v50, %v10591_v17  ;;  %v10633_v16 = vpop.f32.mrb[21].mxu0 }
0x1219   :  { %v10634_v20 = vadd.f32 %v10633_v16, %v10591_v17  ;;  %v13212_v2 = vpop.f32.mrb[22].mxu0 }
0x121a   :  { %10650 = vst [vmem:[%s17440_s12 + $0x10] sm:$0xff] %v10642_v11  ;;  %v10645_v54 = vadd.f32 %v13212_v2, %v10591_v17  ;;  %v10636_v56 = vpop.f32.mrb[23].mxu0 }
0x121b   :  { %10648 = vst [vmem:[%s17440_s12] sm:$0xff] %v10634_v20  ;;  %v10637_v5 = vadd.f32 %v10636_v56, %v10591_v17 }
0x121c   :  { %10651 = vst [vmem:[%s17440_s12 + $0x18] sm:$0xff] %v10645_v54 }
0x121d   :  { %10649 = vst [vmem:[%s17440_s12 + $0x8] sm:$0xff] %v10637_v5 }

</bundles_post_ra>
